<compile_context>
chip_gen: v7x
topology: tpu7x:2x2x1
jax: 0.10.0
libtpu: 0.0.40
codegen_flags: <defaults>
</compile_context>

<pallas_src>
import functools

import jax
import jax.numpy as jnp
from jax.experimental import pallas as pl
from jax.experimental.pallas import tpu as pltpu

BN_EPS = 1e-5
LANE = 128
# M-tile target for the streaming (M, C) kernels.  Sweep 256..2048 on real
# shapes; 256 keeps the small self-test exercising a multi-step grid.
TILE_M_TARGET = 256


def _round_up(x, m):
    return (x + m - 1) // m * m


def _tile_m(m, target=TILE_M_TARGET):
    """Largest tile <= target that divides m and is a multiple of 8."""
    if m <= target:
        return m
    for t in range(target, 7, -1):
        if t % 8 == 0 and m % t == 0:
            return t
    return m


# ------------------------------ Pallas kernels ------------------------------
def _conv3x3_stats_kernel(x_ref, w_ref, y_ref, s_ref, ss_ref, *, H, W):
    """3x3 s1 p1 conv (bias-free) as 9 accumulated MXU dots + BN batch stats.

    x_ref : (1, H+2, W+2, Cin_p)  spatially padded NHWC image
    w_ref : (3, 3, Cin_p, Cout_p)
    y_ref : (1, H*W, Cout_p)      raw conv output (pre-BN)
    s_ref, ss_ref : (1, 8, Cout_p) per-image channel sum / sum-of-squares
    """
    x = x_ref[0]                                   # (H+2, W+2, Cin_p)
    cin = x.shape[-1]
    cout = w_ref.shape[-1]
    acc = jnp.zeros((H * W, cout), jnp.float32)
    for kh in range(3):
        for kw in range(3):
            patch = x[kh:kh + H, kw:kw + W, :].reshape(H * W, cin)
            acc = acc + jnp.dot(patch, w_ref[kh, kw],
                                preferred_element_type=jnp.float32)
    y_ref[0] = acc
    s = jnp.sum(acc, axis=0, keepdims=True)        # XLU column reduce
    ss = jnp.sum(acc * acc, axis=0, keepdims=True)
    s_ref[0] = jnp.broadcast_to(s, (8, cout))
    ss_ref[0] = jnp.broadcast_to(ss, (8, cout))


def _bn_act_kernel(y_ref, scale_ref, shift_ref, o_ref, *, relu):
    """Apply per-channel scale/shift (folded BN) and optional ReLU, tiled over M."""
    out = y_ref[...] * scale_ref[...] + shift_ref[...]
    if relu:
        out = jnp.maximum(out, 0.0)
    o_ref[...] = out.astype(o_ref.dtype)


def _matmul_bias_kernel(x_ref, w_ref, b_ref, o_ref):
    """1x1 conv == matmul + bias, tiled over M."""
    o_ref[...] = (jnp.dot(x_ref[...], w_ref[...],
                          preferred_element_type=jnp.float32)
                  + b_ref[...]).astype(o_ref.dtype)


def _pam_kernel(fb_ref, fc_ref, fd_ref, fp_ref, alpha_ref, o_ref):
    """Position attention for one (batch, query-tile) block.

    fb_ref: (1, TQ, C8p)  fc_ref: (1, HW, C8p)  fd_ref: (1, HW, Cp)
    fp_ref: (1, TQ, Cp)   alpha_ref: (1, Cp)    o_ref: (1, TQ, Cp)
    """
    fb = fb_ref[0]
    fc = fc_ref[0]
    fd = fd_ref[0]
    s = jax.lax.dot_general(fb, fc, (((1,), (1,)), ((), ())),
                            preferred_element_type=jnp.float32)   # (TQ, HW)
    s = s - jnp.max(s, axis=-1, keepdims=True)
    p = jnp.exp(s)
    p = p * pl.reciprocal(jnp.sum(p, axis=-1, keepdims=True))
    e = jnp.dot(p, fd, preferred_element_type=jnp.float32)        # (TQ, Cp)
    o_ref[0] = (alpha_ref[...] * e + fp_ref[0]).astype(o_ref.dtype)


def _cam_kernel(f_ref, beta_ref, o_ref, *, c_true):
    """Channel attention for one batch image.  f_ref: (1, HW, Cp) (HW,C layout)."""
    f = f_ref[0]                                                   # (HW, Cp)
    # attention[i,j] = <feat_i, feat_j> over spatial  ==  F^T F
    gram = jax.lax.dot_general(f, f, (((0,), (0,)), ((), ())),
                               preferred_element_type=jnp.float32)  # (Cp, Cp)
    cp = gram.shape[-1]
    rowmax = jnp.max(gram, axis=-1, keepdims=True)
    logits = rowmax - gram
    col = jax.lax.broadcasted_iota(jnp.int32, (cp, cp), 1)
    logits = jnp.where(col < c_true, logits, -jnp.inf)   # mask padded channels
    logits = logits - jnp.max(logits, axis=-1, keepdims=True)
    p = jnp.exp(logits)
    p = p * pl.reciprocal(jnp.sum(p, axis=-1, keepdims=True))
    # feat_e in (HW, C) layout: E = F @ A^T
    e = jax.lax.dot_general(f, p, (((1,), (1,)), ((), ())),
                            preferred_element_type=jnp.float32)    # (HW, Cp)
    chan = jax.lax.broadcasted_iota(jnp.int32, e.shape, 1)
    e = jnp.where(chan < c_true, e, 0.0)                 # keep padded lanes zero
    o_ref[0] = (beta_ref[...] * e + f).astype(o_ref.dtype)


def _fuse_out_kernel(a_ref, b_ref, w_ref, bias_ref, o_ref):
    """feat_p + feat_c fusion and final 1x1 conv + bias, tiled over M."""
    s = a_ref[...] + b_ref[...]
    o_ref[...] = (jnp.dot(s, w_ref[...], preferred_element_type=jnp.float32)
                  + bias_ref[...]).astype(o_ref.dtype)


# ------------------------------ pallas_call wrappers -------------------------
def _parallel(n):
    return pltpu.CompilerParams(dimension_semantics=("parallel",) * n)


def _conv3x3_stats(x_pad, w, *, H, W):
    n = x_pad.shape[0]
    cin_p = x_pad.shape[-1]
    cout_p = w.shape[-1]
    kernel = functools.partial(_conv3x3_stats_kernel, H=H, W=W)
    return pl.pallas_call(
        kernel,
        out_shape=(jax.ShapeDtypeStruct((n, H * W, cout_p), jnp.float32),
                   jax.ShapeDtypeStruct((n, 8, cout_p), jnp.float32),
                   jax.ShapeDtypeStruct((n, 8, cout_p), jnp.float32)),
        grid=(n,),
        in_specs=[pl.BlockSpec((1, H + 2, W + 2, cin_p), lambda i: (i, 0, 0, 0)),
                  pl.BlockSpec((3, 3, cin_p, cout_p), lambda i: (0, 0, 0, 0))],
        out_specs=(pl.BlockSpec((1, H * W, cout_p), lambda i: (i, 0, 0)),
                   pl.BlockSpec((1, 8, cout_p), lambda i: (i, 0, 0)),
                   pl.BlockSpec((1, 8, cout_p), lambda i: (i, 0, 0))),
        compiler_params=_parallel(1),
    )(x_pad, w)
    # TODO(synk): for large H*W, add row tiling with halo exchange instead of
    # one whole image per grid step.


def _bn_affine(s_out, ss_out, gamma, beta, count):
    """Tiny finalize (pure glue): per-channel scale/shift from sum / sumsq."""
    total = jnp.sum(s_out[:, 0, :], axis=0)
    total_sq = jnp.sum(ss_out[:, 0, :], axis=0)
    mean = total / count
    var = jnp.maximum(total_sq / count - mean * mean, 0.0)   # biased variance
    inv = gamma * jax.lax.rsqrt(var + BN_EPS)
    return inv.reshape(1, -1), (beta - mean * inv).reshape(1, -1)


def _bn_act(y2d, scale, shift, *, relu):
    m, c = y2d.shape
    tm = _tile_m(m)
    kernel = functools.partial(_bn_act_kernel, relu=relu)
    return pl.pallas_call(
        kernel,
        out_shape=jax.ShapeDtypeStruct((m, c), jnp.float32),
        grid=(m // tm,),
        in_specs=[pl.BlockSpec((tm, c), lambda i: (i, 0)),
                  pl.BlockSpec((1, c), lambda i: (0, 0)),
                  pl.BlockSpec((1, c), lambda i: (0, 0))],
        out_specs=pl.BlockSpec((tm, c), lambda i: (i, 0)),
        compiler_params=_parallel(1),
    )(y2d, scale, shift)


def _matmul_bias(x2d, w, b):
    m, k = x2d.shape
    n_out = w.shape[1]
    tm = _tile_m(m)
    return pl.pallas_call(
        _matmul_bias_kernel,
        out_shape=jax.ShapeDtypeStruct((m, n_out), jnp.float32),
        grid=(m // tm,),
        in_specs=[pl.BlockSpec((tm, k), lambda i: (i, 0)),
                  pl.BlockSpec((k, n_out), lambda i: (0, 0)),
                  pl.BlockSpec((1, n_out), lambda i: (0, 0))],
        out_specs=pl.BlockSpec((tm, n_out), lambda i: (i, 0)),
        compiler_params=_parallel(1),
    )(x2d, w, b)


def _pam_attention(fb, fc, fd, fp, alpha_row):
    n, hw, c8_p = fb.shape
    ci_p = fd.shape[-1]
    tq = _tile_m(hw, 512)
    return pl.pallas_call(
        _pam_kernel,
        out_shape=jax.ShapeDtypeStruct((n, hw, ci_p), jnp.float32),
        grid=(n, hw // tq),
        in_specs=[pl.BlockSpec((1, tq, c8_p), lambda b, q: (b, q, 0)),
                  pl.BlockSpec((1, hw, c8_p), lambda b, q: (b, 0, 0)),
                  pl.BlockSpec((1, hw, ci_p), lambda b, q: (b, 0, 0)),
                  pl.BlockSpec((1, tq, ci_p), lambda b, q: (b, q, 0)),
                  pl.BlockSpec((1, ci_p), lambda b, q: (0, 0))],
        out_specs=pl.BlockSpec((1, tq, ci_p), lambda b, q: (b, q, 0)),
        compiler_params=_parallel(2),
    )(fb, fc, fd, fp, alpha_row)
    # TODO(synk): for very large H*W the (TQ, HW) score tile should switch to a
    # flash-style online softmax over key tiles.


def _cam(f, beta_row, *, c_true):
    n, hw, ci_p = f.shape
    kernel = functools.partial(_cam_kernel, c_true=c_true)
    return pl.pallas_call(
        kernel,
        out_shape=jax.ShapeDtypeStruct((n, hw, ci_p), jnp.float32),
        grid=(n,),
        in_specs=[pl.BlockSpec((1, hw, ci_p), lambda b: (b, 0, 0)),
                  pl.BlockSpec((1, ci_p), lambda b: (0, 0))],
        out_specs=pl.BlockSpec((1, hw, ci_p), lambda b: (b, 0, 0)),
        compiler_params=_parallel(1),
    )(f, beta_row)


def _fuse_out(a2d, b2d, w, bias):
    m, c = a2d.shape
    n_out = w.shape[1]
    tm = _tile_m(m)
    return pl.pallas_call(
        _fuse_out_kernel,
        out_shape=jax.ShapeDtypeStruct((m, n_out), jnp.float32),
        grid=(m // tm,),
        in_specs=[pl.BlockSpec((tm, c), lambda i: (i, 0)),
                  pl.BlockSpec((tm, c), lambda i: (i, 0)),
                  pl.BlockSpec((c, n_out), lambda i: (0, 0)),
                  pl.BlockSpec((1, n_out), lambda i: (0, 0))],
        out_specs=pl.BlockSpec((tm, n_out), lambda i: (i, 0)),
        compiler_params=_parallel(1),
    )(a2d, b2d, w, bias)


# ------------------------------ padding glue ---------------------------------
def _pad_last(a, size):
    if a.shape[-1] == size:
        return a
    pad = [(0, 0)] * (a.ndim - 1) + [(0, size - a.shape[-1])]
    return jnp.pad(a, pad)


def _pad_conv_w(w, cin_p, cout_p):
    _, _, cin, cout = w.shape
    return jnp.pad(w, ((0, 0), (0, 0), (0, cin_p - cin), (0, cout_p - cout)))


def _pad_mat(w, cin_p, cout_p):
    cin, cout = w.shape
    return jnp.pad(w, ((0, cin_p - cin), (0, cout_p - cout)))


def _pad_vec(v, size, fill):
    return jnp.pad(v, (0, size - v.shape[0]), constant_values=fill)


def _spatial_pad(x_nhwc):
    return jnp.pad(x_nhwc, ((0, 0), (1, 1), (1, 1), (0, 0)))


# ------------------------------ parameters -----------------------------------
def init_params(key, in_channels, out_channel):
    assert in_channels >= 32 and in_channels % 4 == 0
    inter = in_channels // 4
    c8 = inter // 8
    ks = jax.random.split(key, 24)
    f32 = jnp.float32

    def w(k, shape, scale=0.1):
        return (scale * jax.random.normal(k, shape)).astype(f32)

    def affine(k, c):
        k1, k2 = jax.random.split(k)
        g = (1.0 + 0.05 * jax.random.normal(k1, (c,))).astype(f32)
        b = (0.05 * jax.random.normal(k2, (c,))).astype(f32)
        return g, b

    p = {}
    p["p1_w"] = w(ks[0], (3, 3, in_channels, inter))     # conv_p1 (bias=False)
    p["p1_gamma"], p["p1_beta"] = affine(ks[1], inter)
    p["c1_w"] = w(ks[2], (3, 3, in_channels, inter))     # conv_c1 (bias=False)
    p["c1_gamma"], p["c1_beta"] = affine(ks[3], inter)
    # PAM 1x1 convs (bias=True) + alpha
    p["pam_b_w"] = w(ks[4], (inter, c8)); p["pam_b_b"] = w(ks[5], (c8,))
    p["pam_c_w"] = w(ks[6], (inter, c8)); p["pam_c_b"] = w(ks[7], (c8,))
    p["pam_d_w"] = w(ks[8], (inter, inter)); p["pam_d_b"] = w(ks[9], (inter,))
    p["pam_alpha"] = jnp.full((1,), 0.1, f32)   # nn.Parameter (0 at init; nonzero here to exercise path)
    # CAM beta
    p["cam_beta"] = jnp.full((1,), 0.1, f32)
    p["p2_w"] = w(ks[10], (3, 3, inter, inter))
    p["p2_gamma"], p["p2_beta"] = affine(ks[11], inter)
    p["c2_w"] = w(ks[12], (3, 3, inter, inter))
    p["c2_gamma"], p["c2_beta"] = affine(ks[13], inter)
    p["out_w"] = w(ks[14], (inter, out_channel))         # self.out (bias=True)
    p["out_b"] = w(ks[15], (out_channel,))
    return p


# ------------------------------ forward --------------------------------------
def da_head_forward(x_nchw, params):
    x = jnp.transpose(x_nchw, (0, 2, 3, 1)).astype(jnp.float32)   # NHWC
    n, h, w, cin = x.shape
    hw = h * w
    m = n * hw
    inter = params["p1_w"].shape[-1]
    c8 = params["pam_b_w"].shape[-1]
    cout = params["out_w"].shape[-1]

    cin_p = _round_up(cin, LANE)
    ci_p = _round_up(inter, LANE)
    c8_p = _round_up(c8, LANE)
    co_p = _round_up(cout, LANE)

    # --- conv_p1 & conv_c1 fused (same input x) via output-channel concat ----
    x_sp = _spatial_pad(_pad_last(x, cin_p))
    w_pc1 = jnp.concatenate([_pad_conv_w(params["p1_w"], cin_p, ci_p),
                             _pad_conv_w(params["c1_w"], cin_p, ci_p)], axis=-1)
    y1, s1, ss1 = _conv3x3_stats(x_sp, w_pc1, H=h, W=w)           # (n, hw, 2*ci_p)
    gamma1 = jnp.concatenate([_pad_vec(params["p1_gamma"], ci_p, 1.0),
                              _pad_vec(params["c1_gamma"], ci_p, 1.0)])
    beta1 = jnp.concatenate([_pad_vec(params["p1_beta"], ci_p, 0.0),
                             _pad_vec(params["c1_beta"], ci_p, 0.0)])
    scale1, shift1 = _bn_affine(s1, ss1, gamma1, beta1, m)
    act1 = _bn_act(y1.reshape(m, 2 * ci_p), scale1, shift1, relu=True)
    feat_p = act1[:, :ci_p]                                       # (m, ci_p)
    feat_c = act1[:, ci_p:]

    # --- PAM: conv_b / conv_c / conv_d fused into one matmul (read feat_p once)
    w_bcd = jnp.concatenate([_pad_mat(params["pam_b_w"], ci_p, c8_p),
                             _pad_mat(params["pam_c_w"], ci_p, c8_p),
                             _pad_mat(params["pam_d_w"], ci_p, ci_p)], axis=-1)
    b_bcd = jnp.concatenate([_pad_vec(params["pam_b_b"], c8_p, 0.0),
                             _pad_vec(params["pam_c_b"], c8_p, 0.0),
                             _pad_vec(params["pam_d_b"], ci_p, 0.0)]).reshape(1, -1)
    bcd = _matmul_bias(feat_p, w_bcd, b_bcd)
    fb = bcd[:, :c8_p].reshape(n, hw, c8_p)
    fc = bcd[:, c8_p:2 * c8_p].reshape(n, hw, c8_p)
    fd = bcd[:, 2 * c8_p:].reshape(n, hw, ci_p)
    alpha_row = jnp.broadcast_to(params["pam_alpha"].reshape(1, 1), (1, ci_p))
    pam_out = _pam_attention(fb, fc, fd, feat_p.reshape(n, hw, ci_p), alpha_row)

    # --- conv_p2 + BN + ReLU ---
    y_p2, s_p2, ss_p2 = _conv3x3_stats(
        _spatial_pad(pam_out.reshape(n, h, w, ci_p)),
        _pad_conv_w(params["p2_w"], ci_p, ci_p), H=h, W=w)
    sc, sh = _bn_affine(s_p2, ss_p2, _pad_vec(params["p2_gamma"], ci_p, 1.0),
                        _pad_vec(params["p2_beta"], ci_p, 0.0), m)
    feat_p2 = _bn_act(y_p2.reshape(m, ci_p), sc, sh, relu=True)

    # --- CAM ---
    beta_row = jnp.broadcast_to(params["cam_beta"].reshape(1, 1), (1, ci_p))
    cam_out = _cam(feat_c.reshape(n, hw, ci_p), beta_row, c_true=inter)

    # --- conv_c2 + BN + ReLU ---
    y_c2, s_c2, ss_c2 = _conv3x3_stats(
        _spatial_pad(cam_out.reshape(n, h, w, ci_p)),
        _pad_conv_w(params["c2_w"], ci_p, ci_p), H=h, W=w)
    sc, sh = _bn_affine(s_c2, ss_c2, _pad_vec(params["c2_gamma"], ci_p, 1.0),
                        _pad_vec(params["c2_beta"], ci_p, 0.0), m)
    feat_c2 = _bn_act(y_c2.reshape(m, ci_p), sc, sh, relu=True)

    # --- fusion add + final 1x1 conv (fused kernel) ---
    out2d = _fuse_out(feat_p2, feat_c2,
                      _pad_mat(params["out_w"], ci_p, co_p),
                      _pad_vec(params["out_b"], co_p, 0.0).reshape(1, -1))
    out = out2d.reshape(n, h, w, co_p)[..., :cout]
    return jnp.transpose(out, (0, 3, 1, 2))                       # back to NCHW

# TODO(synk): BatchNorm running_mean/running_var buffer updates (stateful, no
# effect on the training-mode forward output) are not reproduced.


if __name__ == "__main__":
    key = jax.random.PRNGKey(0)
    k_x, k_p = jax.random.split(key)

    # in_channels must be >= 32 so that inter_channels // 8 >= 1 (as the module implies).
    batch, in_channels, out_channel, spatial = 2, 32, 8, 16
    x = jax.random.normal(k_x, (batch, in_channels, spatial, spatial),
                          dtype=jnp.float32)
    params = init_params(k_p, in_channels, out_channel)

    fwd = jax.jit(da_head_forward)
    y = fwd(x, params)
    jax.block_until_ready(y)

    assert y.shape == (batch, out_channel, spatial, spatial), y.shape
    assert bool(jnp.all(jnp.isfinite(y)))
    print("KERNEL_OK")
</pallas_src>

<mosaic_0001>
module attributes {stable_mosaic.version = 11 : i64} {
  func.func @_conv3x3_stats_kernel(%arg0: i32, %arg1: memref<1x18x18x128xf32, #tpu.memory_space<vmem>>, %arg2: memref<3x3x128x256xf32, #tpu.memory_space<vmem>>, %arg3: memref<1x256x256xf32, #tpu.memory_space<vmem>>, %arg4: memref<1x8x256xf32, #tpu.memory_space<vmem>>, %arg5: memref<1x8x256xf32, #tpu.memory_space<vmem>>) attributes {dimension_semantics = [#tpu.dimension_semantics<parallel>], iteration_bounds = array<i64: 2>, scalar_prefetch = 0 : i64, scratch_operands = 0 : i64, tpu.core_type = #tpu.core_type<tc>, window_params = [{transform_indices = @transform_0, window_bounds = array<i64: 1, 18, 18, 128>}, {pipeline_mode = #tpu.pipeline_mode<synchronous>, transform_indices = @transform_1, window_bounds = array<i64: 3, 3, 128, 256>}, {transform_indices = @transform_2, window_bounds = array<i64: 1, 256, 256>}, {transform_indices = @transform_3, window_bounds = array<i64: 1, 8, 256>}, {transform_indices = @transform_4, window_bounds = array<i64: 1, 8, 256>}]} {
    %c0 = arith.constant 0 : index
    %c0_0 = arith.constant 0 : index
    %c0_1 = arith.constant 0 : index
    %c0_2 = arith.constant 0 : index
    %0 = vector.load %arg1[%c0, %c0_0, %c0_1, %c0_2] : memref<1x18x18x128xf32, #tpu.memory_space<vmem>>, vector<1x18x18x128xf32>
    %1 = vector.shape_cast %0 : vector<1x18x18x128xf32> to vector<18x18x128xf32>
    %cst = arith.constant 0.000000e+00 : f32
    %2 = vector.broadcast %cst : f32 to vector<256x256xf32>
    %3 = vector.extract_strided_slice %1 {offsets = [0, 0, 0], sizes = [16, 16, 128], strides = [1, 1, 1]} : vector<18x18x128xf32> to vector<16x16x128xf32>
    %4 = vector.shape_cast %3 : vector<16x16x128xf32> to vector<256x128xf32>
    %c0_3 = arith.constant 0 : index
    %c0_4 = arith.constant 0 : index
    %c0_5 = arith.constant 0 : index
    %c0_6 = arith.constant 0 : index
    %5 = vector.load %arg2[%c0_3, %c0_4, %c0_5, %c0_6] : memref<3x3x128x256xf32, #tpu.memory_space<vmem>>, vector<1x1x128x256xf32>
    %6 = vector.shape_cast %5 : vector<1x1x128x256xf32> to vector<128x256xf32>
    %cst_7 = arith.constant dense<0.000000e+00> : vector<256x256xf32>
    %7 = tpu.matmul %4, %6, %cst_7 {dimension_numbers = #tpu.dot_dimension_numbers<[1], [0], [0], [1], [0, 0, 1, 1], [], []>} : vector<256x128xf32>, vector<128x256xf32>, vector<256x256xf32> -> vector<256x256xf32>
    %8 = arith.addf %2, %7 : vector<256x256xf32>
    %9 = vector.extract_strided_slice %1 {offsets = [0, 1, 0], sizes = [16, 16, 128], strides = [1, 1, 1]} : vector<18x18x128xf32> to vector<16x16x128xf32>
    %10 = vector.shape_cast %9 : vector<16x16x128xf32> to vector<256x128xf32>
    %c0_8 = arith.constant 0 : index
    %c1 = arith.constant 1 : index
    %c0_9 = arith.constant 0 : index
    %c0_10 = arith.constant 0 : index
    %11 = vector.load %arg2[%c0_8, %c1, %c0_9, %c0_10] : memref<3x3x128x256xf32, #tpu.memory_space<vmem>>, vector<1x1x128x256xf32>
    %12 = vector.shape_cast %11 : vector<1x1x128x256xf32> to vector<128x256xf32>
    %cst_11 = arith.constant dense<0.000000e+00> : vector<256x256xf32>
    %13 = tpu.matmul %10, %12, %cst_11 {dimension_numbers = #tpu.dot_dimension_numbers<[1], [0], [0], [1], [0, 0, 1, 1], [], []>} : vector<256x128xf32>, vector<128x256xf32>, vector<256x256xf32> -> vector<256x256xf32>
    %14 = arith.addf %8, %13 : vector<256x256xf32>
    %15 = vector.extract_strided_slice %1 {offsets = [0, 2, 0], sizes = [16, 16, 128], strides = [1, 1, 1]} : vector<18x18x128xf32> to vector<16x16x128xf32>
    %16 = vector.shape_cast %15 : vector<16x16x128xf32> to vector<256x128xf32>
    %c0_12 = arith.constant 0 : index
    %c2 = arith.constant 2 : index
    %c0_13 = arith.constant 0 : index
    %c0_14 = arith.constant 0 : index
    %17 = vector.load %arg2[%c0_12, %c2, %c0_13, %c0_14] : memref<3x3x128x256xf32, #tpu.memory_space<vmem>>, vector<1x1x128x256xf32>
    %18 = vector.shape_cast %17 : vector<1x1x128x256xf32> to vector<128x256xf32>
    %cst_15 = arith.constant dense<0.000000e+00> : vector<256x256xf32>
    %19 = tpu.matmul %16, %18, %cst_15 {dimension_numbers = #tpu.dot_dimension_numbers<[1], [0], [0], [1], [0, 0, 1, 1], [], []>} : vector<256x128xf32>, vector<128x256xf32>, vector<256x256xf32> -> vector<256x256xf32>
    %20 = arith.addf %14, %19 : vector<256x256xf32>
    %21 = vector.extract_strided_slice %1 {offsets = [1, 0, 0], sizes = [16, 16, 128], strides = [1, 1, 1]} : vector<18x18x128xf32> to vector<16x16x128xf32>
    %22 = vector.shape_cast %21 : vector<16x16x128xf32> to vector<256x128xf32>
    %c1_16 = arith.constant 1 : index
    %c0_17 = arith.constant 0 : index
    %c0_18 = arith.constant 0 : index
    %c0_19 = arith.constant 0 : index
    %23 = vector.load %arg2[%c1_16, %c0_17, %c0_18, %c0_19] : memref<3x3x128x256xf32, #tpu.memory_space<vmem>>, vector<1x1x128x256xf32>
    %24 = vector.shape_cast %23 : vector<1x1x128x256xf32> to vector<128x256xf32>
    %cst_20 = arith.constant dense<0.000000e+00> : vector<256x256xf32>
    %25 = tpu.matmul %22, %24, %cst_20 {dimension_numbers = #tpu.dot_dimension_numbers<[1], [0], [0], [1], [0, 0, 1, 1], [], []>} : vector<256x128xf32>, vector<128x256xf32>, vector<256x256xf32> -> vector<256x256xf32>
    %26 = arith.addf %20, %25 : vector<256x256xf32>
    %27 = vector.extract_strided_slice %1 {offsets = [1, 1, 0], sizes = [16, 16, 128], strides = [1, 1, 1]} : vector<18x18x128xf32> to vector<16x16x128xf32>
    %28 = vector.shape_cast %27 : vector<16x16x128xf32> to vector<256x128xf32>
    %c1_21 = arith.constant 1 : index
    %c1_22 = arith.constant 1 : index
    %c0_23 = arith.constant 0 : index
    %c0_24 = arith.constant 0 : index
    %29 = vector.load %arg2[%c1_21, %c1_22, %c0_23, %c0_24] : memref<3x3x128x256xf32, #tpu.memory_space<vmem>>, vector<1x1x128x256xf32>
    %30 = vector.shape_cast %29 : vector<1x1x128x256xf32> to vector<128x256xf32>
    %cst_25 = arith.constant dense<0.000000e+00> : vector<256x256xf32>
    %31 = tpu.matmul %28, %30, %cst_25 {dimension_numbers = #tpu.dot_dimension_numbers<[1], [0], [0], [1], [0, 0, 1, 1], [], []>} : vector<256x128xf32>, vector<128x256xf32>, vector<256x256xf32> -> vector<256x256xf32>
    %32 = arith.addf %26, %31 : vector<256x256xf32>
    %33 = vector.extract_strided_slice %1 {offsets = [1, 2, 0], sizes = [16, 16, 128], strides = [1, 1, 1]} : vector<18x18x128xf32> to vector<16x16x128xf32>
    %34 = vector.shape_cast %33 : vector<16x16x128xf32> to vector<256x128xf32>
    %c1_26 = arith.constant 1 : index
    %c2_27 = arith.constant 2 : index
    %c0_28 = arith.constant 0 : index
    %c0_29 = arith.constant 0 : index
    %35 = vector.load %arg2[%c1_26, %c2_27, %c0_28, %c0_29] : memref<3x3x128x256xf32, #tpu.memory_space<vmem>>, vector<1x1x128x256xf32>
    %36 = vector.shape_cast %35 : vector<1x1x128x256xf32> to vector<128x256xf32>
    %cst_30 = arith.constant dense<0.000000e+00> : vector<256x256xf32>
    %37 = tpu.matmul %34, %36, %cst_30 {dimension_numbers = #tpu.dot_dimension_numbers<[1], [0], [0], [1], [0, 0, 1, 1], [], []>} : vector<256x128xf32>, vector<128x256xf32>, vector<256x256xf32> -> vector<256x256xf32>
    %38 = arith.addf %32, %37 : vector<256x256xf32>
    %39 = vector.extract_strided_slice %1 {offsets = [2, 0, 0], sizes = [16, 16, 128], strides = [1, 1, 1]} : vector<18x18x128xf32> to vector<16x16x128xf32>
    %40 = vector.shape_cast %39 : vector<16x16x128xf32> to vector<256x128xf32>
    %c2_31 = arith.constant 2 : index
    %c0_32 = arith.constant 0 : index
    %c0_33 = arith.constant 0 : index
    %c0_34 = arith.constant 0 : index
    %41 = vector.load %arg2[%c2_31, %c0_32, %c0_33, %c0_34] : memref<3x3x128x256xf32, #tpu.memory_space<vmem>>, vector<1x1x128x256xf32>
    %42 = vector.shape_cast %41 : vector<1x1x128x256xf32> to vector<128x256xf32>
    %cst_35 = arith.constant dense<0.000000e+00> : vector<256x256xf32>
    %43 = tpu.matmul %40, %42, %cst_35 {dimension_numbers = #tpu.dot_dimension_numbers<[1], [0], [0], [1], [0, 0, 1, 1], [], []>} : vector<256x128xf32>, vector<128x256xf32>, vector<256x256xf32> -> vector<256x256xf32>
    %44 = arith.addf %38, %43 : vector<256x256xf32>
    %45 = vector.extract_strided_slice %1 {offsets = [2, 1, 0], sizes = [16, 16, 128], strides = [1, 1, 1]} : vector<18x18x128xf32> to vector<16x16x128xf32>
    %46 = vector.shape_cast %45 : vector<16x16x128xf32> to vector<256x128xf32>
    %c2_36 = arith.constant 2 : index
    %c1_37 = arith.constant 1 : index
    %c0_38 = arith.constant 0 : index
    %c0_39 = arith.constant 0 : index
    %47 = vector.load %arg2[%c2_36, %c1_37, %c0_38, %c0_39] : memref<3x3x128x256xf32, #tpu.memory_space<vmem>>, vector<1x1x128x256xf32>
    %48 = vector.shape_cast %47 : vector<1x1x128x256xf32> to vector<128x256xf32>
    %cst_40 = arith.constant dense<0.000000e+00> : vector<256x256xf32>
    %49 = tpu.matmul %46, %48, %cst_40 {dimension_numbers = #tpu.dot_dimension_numbers<[1], [0], [0], [1], [0, 0, 1, 1], [], []>} : vector<256x128xf32>, vector<128x256xf32>, vector<256x256xf32> -> vector<256x256xf32>
    %50 = arith.addf %44, %49 : vector<256x256xf32>
    %51 = vector.extract_strided_slice %1 {offsets = [2, 2, 0], sizes = [16, 16, 128], strides = [1, 1, 1]} : vector<18x18x128xf32> to vector<16x16x128xf32>
    %52 = vector.shape_cast %51 : vector<16x16x128xf32> to vector<256x128xf32>
    %c2_41 = arith.constant 2 : index
    %c2_42 = arith.constant 2 : index
    %c0_43 = arith.constant 0 : index
    %c0_44 = arith.constant 0 : index
    %53 = vector.load %arg2[%c2_41, %c2_42, %c0_43, %c0_44] : memref<3x3x128x256xf32, #tpu.memory_space<vmem>>, vector<1x1x128x256xf32>
    %54 = vector.shape_cast %53 : vector<1x1x128x256xf32> to vector<128x256xf32>
    %cst_45 = arith.constant dense<0.000000e+00> : vector<256x256xf32>
    %55 = tpu.matmul %52, %54, %cst_45 {dimension_numbers = #tpu.dot_dimension_numbers<[1], [0], [0], [1], [0, 0, 1, 1], [], []>} : vector<256x128xf32>, vector<128x256xf32>, vector<256x256xf32> -> vector<256x256xf32>
    %56 = arith.addf %50, %55 : vector<256x256xf32>
    %c0_46 = arith.constant 0 : index
    %c0_47 = arith.constant 0 : index
    %c0_48 = arith.constant 0 : index
    %57 = vector.load %arg3[%c0_46, %c0_47, %c0_48] : memref<1x256x256xf32, #tpu.memory_space<vmem>>, vector<1x256x256xf32>
    %58 = vector.shape_cast %57 : vector<1x256x256xf32> to vector<256x256xf32>
    %59 = vector.shape_cast %56 : vector<256x256xf32> to vector<1x256x256xf32>
    tpu.vector_store %arg3[%c0_46, %c0_47, %c0_48], %59 {strides = array<i32>} : memref<1x256x256xf32, #tpu.memory_space<vmem>>, vector<1x256x256xf32>,
    %cst_49 = arith.constant dense<0.000000e+00> : vector<256xf32>
    %60 = vector.multi_reduction <add>, %56, %cst_49 [0] : vector<256x256xf32> to vector<256xf32>
    %61 = vector.shape_cast %60 : vector<256xf32> to vector<1x256xf32>
    %62 = arith.mulf %56, %56 : vector<256x256xf32>
    %cst_50 = arith.constant dense<0.000000e+00> : vector<256xf32>
    %63 = vector.multi_reduction <add>, %62, %cst_50 [0] : vector<256x256xf32> to vector<256xf32>
    %64 = vector.shape_cast %63 : vector<256xf32> to vector<1x256xf32>
    %65 = vector.shape_cast %61 : vector<1x256xf32> to vector<1x256xf32>
    %66 = vector.broadcast %65 : vector<1x256xf32> to vector<8x256xf32>
    %c0_51 = arith.constant 0 : index
    %c0_52 = arith.constant 0 : index
    %c0_53 = arith.constant 0 : index
    %67 = vector.load %arg4[%c0_51, %c0_52, %c0_53] : memref<1x8x256xf32, #tpu.memory_space<vmem>>, vector<1x8x256xf32>
    %68 = vector.shape_cast %67 : vector<1x8x256xf32> to vector<8x256xf32>
    %69 = vector.shape_cast %66 : vector<8x256xf32> to vector<1x8x256xf32>
    tpu.vector_store %arg4[%c0_51, %c0_52, %c0_53], %69 {strides = array<i32>} : memref<1x8x256xf32, #tpu.memory_space<vmem>>, vector<1x8x256xf32>,
    %70 = vector.shape_cast %64 : vector<1x256xf32> to vector<1x256xf32>
    %71 = vector.broadcast %70 : vector<1x256xf32> to vector<8x256xf32>
    %c0_54 = arith.constant 0 : index
    %c0_55 = arith.constant 0 : index
    %c0_56 = arith.constant 0 : index
    %72 = vector.load %arg5[%c0_54, %c0_55, %c0_56] : memref<1x8x256xf32, #tpu.memory_space<vmem>>, vector<1x8x256xf32>
    %73 = vector.shape_cast %72 : vector<1x8x256xf32> to vector<8x256xf32>
    %74 = vector.shape_cast %71 : vector<8x256xf32> to vector<1x8x256xf32>
    tpu.vector_store %arg5[%c0_54, %c0_55, %c0_56], %74 {strides = array<i32>} : memref<1x8x256xf32, #tpu.memory_space<vmem>>, vector<1x8x256xf32>,
    return
  }
  func.func @transform_0(%arg0: i32) -> (i32, i32, i32, i32) {
    %c0_i32 = arith.constant 0 : i32
    %c0_i32_0 = arith.constant 0 : i32
    %c0_i32_1 = arith.constant 0 : i32
    %c0_i32_2 = arith.constant 0 : i32
    return %arg0, %c0_i32, %c0_i32_0, %c0_i32_1 : i32, i32, i32, i32
  }
  func.func @transform_1(%arg0: i32) -> (i32, i32, i32, i32) {
    %c0_i32 = arith.constant 0 : i32
    %c0_i32_0 = arith.constant 0 : i32
    %c0_i32_1 = arith.constant 0 : i32
    %c0_i32_2 = arith.constant 0 : i32
    %c0_i32_3 = arith.constant 0 : i32
    return %c0_i32, %c0_i32_0, %c0_i32_1, %c0_i32_2 : i32, i32, i32, i32
  }
  func.func @transform_2(%arg0: i32) -> (i32, i32, i32) {
    %c0_i32 = arith.constant 0 : i32
    %c0_i32_0 = arith.constant 0 : i32
    %c0_i32_1 = arith.constant 0 : i32
    return %arg0, %c0_i32, %c0_i32_0 : i32, i32, i32
  }
  func.func @transform_3(%arg0: i32) -> (i32, i32, i32) {
    %c0_i32 = arith.constant 0 : i32
    %c0_i32_0 = arith.constant 0 : i32
    %c0_i32_1 = arith.constant 0 : i32
    return %arg0, %c0_i32, %c0_i32_0 : i32, i32, i32
  }
  func.func @transform_4(%arg0: i32) -> (i32, i32, i32) {
    %c0_i32 = arith.constant 0 : i32
    %c0_i32_0 = arith.constant 0 : i32
    %c0_i32_1 = arith.constant 0 : i32
    return %arg0, %c0_i32, %c0_i32_0 : i32, i32, i32
  }
}

module attributes {stable_mosaic.version = 11 : i64} {
  func.func @_cam_kernel(%arg0: i32, %arg1: memref<1x256x128xf32, #tpu.memory_space<vmem>>, %arg2: memref<1x128xf32, #tpu.memory_space<vmem>>, %arg3: memref<1x256x128xf32, #tpu.memory_space<vmem>>) attributes {dimension_semantics = [#tpu.dimension_semantics<parallel>], iteration_bounds = array<i64: 2>, scalar_prefetch = 0 : i64, scratch_operands = 0 : i64, tpu.core_type = #tpu.core_type<tc>, window_params = [{transform_indices = @transform_0, window_bounds = array<i64: 1, 256, 128>}, {pipeline_mode = #tpu.pipeline_mode<synchronous>, transform_indices = @transform_1, window_bounds = array<i64: 1, 128>}, {transform_indices = @transform_2, window_bounds = array<i64: 1, 256, 128>}]} {
    %c0 = arith.constant 0 : index
    %c0_0 = arith.constant 0 : index
    %c0_1 = arith.constant 0 : index
    %0 = vector.load %arg1[%c0, %c0_0, %c0_1] : memref<1x256x128xf32, #tpu.memory_space<vmem>>, vector<1x256x128xf32>
    %1 = vector.shape_cast %0 : vector<1x256x128xf32> to vector<256x128xf32>
    %cst = arith.constant dense<0.000000e+00> : vector<128x128xf32>
    %2 = tpu.matmul %1, %1, %cst {dimension_numbers = #tpu.dot_dimension_numbers<[0], [0], [1], [1], [0, 1, 1, 1], [], []>} : vector<256x128xf32>, vector<256x128xf32>, vector<128x128xf32> -> vector<128x128xf32>
    %cst_2 = arith.constant dense<0xFF800000> : vector<128xf32>
    %3 = vector.multi_reduction <maximumf>, %2, %cst_2 [1] : vector<128x128xf32> to vector<128xf32>
    %4 = vector.shape_cast %3 : vector<128xf32> to vector<128x1xf32>
    %5 = vector.broadcast %4 : vector<128x1xf32> to vector<128x128xf32>
    %6 = arith.subf %5, %2 : vector<128x128xf32>
    %7 = tpu.iota {dimensions = array<i32: 1>} : vector<128x128xi32>
    %c8_i32 = arith.constant 8 : i32
    %8 = vector.broadcast %c8_i32 : i32 to vector<128x128xi32>
    %9 = arith.cmpi slt, %7, %8 : vector<128x128xi32>
    %cst_3 = arith.constant 0xFF800000 : f32
    %10 = vector.broadcast %cst_3 : f32 to vector<128x128xf32>
    %11 = arith.select %9, %6, %10 : vector<128x128xi1>, vector<128x128xf32>
    %cst_4 = arith.constant dense<0xFF800000> : vector<128xf32>
    %12 = vector.multi_reduction <maximumf>, %11, %cst_4 [1] : vector<128x128xf32> to vector<128xf32>
    %13 = vector.shape_cast %12 : vector<128xf32> to vector<128x1xf32>
    %14 = vector.broadcast %13 : vector<128x1xf32> to vector<128x128xf32>
    %15 = arith.subf %11, %14 : vector<128x128xf32>
    %16 = math.exp %15 : vector<128x128xf32>
    %cst_5 = arith.constant dense<0.000000e+00> : vector<128xf32>
    %17 = vector.multi_reduction <add>, %16, %cst_5 [1] : vector<128x128xf32> to vector<128xf32>
    %18 = vector.shape_cast %17 : vector<128xf32> to vector<128x1xf32>
    %19 = tpu.reciprocal %18 : vector<128x1xf32> -> vector<128x1xf32>
    %20 = vector.broadcast %19 : vector<128x1xf32> to vector<128x128xf32>
    %21 = arith.mulf %16, %20 : vector<128x128xf32>
    %cst_6 = arith.constant dense<0.000000e+00> : vector<256x128xf32>
    %22 = tpu.matmul %1, %21, %cst_6 {dimension_numbers = #tpu.dot_dimension_numbers<[1], [1], [0], [0], [0, 0, 1, 0], [], []>} : vector<256x128xf32>, vector<128x128xf32>, vector<256x128xf32> -> vector<256x128xf32>
    %23 = tpu.iota {dimensions = array<i32: 1>} : vector<256x128xi32>
    %c8_i32_7 = arith.constant 8 : i32
    %24 = vector.broadcast %c8_i32_7 : i32 to vector<256x128xi32>
    %25 = arith.cmpi slt, %23, %24 : vector<256x128xi32>
    %cst_8 = arith.constant 0.000000e+00 : f32
    %26 = vector.broadcast %cst_8 : f32 to vector<256x128xf32>
    %27 = arith.select %25, %22, %26 : vector<256x128xi1>, vector<256x128xf32>
    %c0_9 = arith.constant 0 : index
    %c0_10 = arith.constant 0 : index
    %28 = vector.load %arg2[%c0_9, %c0_10] : memref<1x128xf32, #tpu.memory_space<vmem>>, vector<1x128xf32>
    %29 = vector.broadcast %28 : vector<1x128xf32> to vector<256x128xf32>
    %30 = arith.mulf %29, %27 : vector<256x128xf32>
    %31 = arith.addf %30, %1 : vector<256x128xf32>
    %c0_11 = arith.constant 0 : index
    %c0_12 = arith.constant 0 : index
    %c0_13 = arith.constant 0 : index
    %32 = vector.load %arg3[%c0_11, %c0_12, %c0_13] : memref<1x256x128xf32, #tpu.memory_space<vmem>>, vector<1x256x128xf32>
    %33 = vector.shape_cast %32 : vector<1x256x128xf32> to vector<256x128xf32>
    %34 = vector.shape_cast %31 : vector<256x128xf32> to vector<1x256x128xf32>
    tpu.vector_store %arg3[%c0_11, %c0_12, %c0_13], %34 {strides = array<i32>} : memref<1x256x128xf32, #tpu.memory_space<vmem>>, vector<1x256x128xf32>,
    return
  }
  func.func @transform_0(%arg0: i32) -> (i32, i32, i32) {
    %c0_i32 = arith.constant 0 : i32
    %c0_i32_0 = arith.constant 0 : i32
    %c0_i32_1 = arith.constant 0 : i32
    return %arg0, %c0_i32, %c0_i32_0 : i32, i32, i32
  }
  func.func @transform_1(%arg0: i32) -> (i32, i32) {
    %c0_i32 = arith.constant 0 : i32
    %c0_i32_0 = arith.constant 0 : i32
    %c0_i32_1 = arith.constant 0 : i32
    return %c0_i32, %c0_i32_0 : i32, i32
  }
  func.func @transform_2(%arg0: i32) -> (i32, i32, i32) {
    %c0_i32 = arith.constant 0 : i32
    %c0_i32_0 = arith.constant 0 : i32
    %c0_i32_1 = arith.constant 0 : i32
    return %arg0, %c0_i32, %c0_i32_0 : i32, i32, i32
  }
}

module attributes {stable_mosaic.version = 11 : i64} {
  func.func @_bn_act_kernel(%arg0: i32, %arg1: memref<256x256xf32, #tpu.memory_space<vmem>>, %arg2: memref<1x256xf32, #tpu.memory_space<vmem>>, %arg3: memref<1x256xf32, #tpu.memory_space<vmem>>, %arg4: memref<256x256xf32, #tpu.memory_space<vmem>>) attributes {dimension_semantics = [#tpu.dimension_semantics<parallel>], iteration_bounds = array<i64: 2>, scalar_prefetch = 0 : i64, scratch_operands = 0 : i64, tpu.core_type = #tpu.core_type<tc>, window_params = [{transform_indices = @transform_0, window_bounds = array<i64: 256, 256>}, {pipeline_mode = #tpu.pipeline_mode<synchronous>, transform_indices = @transform_1, window_bounds = array<i64: 1, 256>}, {pipeline_mode = #tpu.pipeline_mode<synchronous>, transform_indices = @transform_2, window_bounds = array<i64: 1, 256>}, {transform_indices = @transform_3, window_bounds = array<i64: 256, 256>}]} {
    %c0 = arith.constant 0 : index
    %c0_0 = arith.constant 0 : index
    %0 = vector.load %arg1[%c0, %c0_0] : memref<256x256xf32, #tpu.memory_space<vmem>>, vector<256x256xf32>
    %c0_1 = arith.constant 0 : index
    %c0_2 = arith.constant 0 : index
    %1 = vector.load %arg2[%c0_1, %c0_2] : memref<1x256xf32, #tpu.memory_space<vmem>>, vector<1x256xf32>
    %2 = vector.broadcast %1 : vector<1x256xf32> to vector<256x256xf32>
    %3 = arith.mulf %0, %2 : vector<256x256xf32>
    %c0_3 = arith.constant 0 : index
    %c0_4 = arith.constant 0 : index
    %4 = vector.load %arg3[%c0_3, %c0_4] : memref<1x256xf32, #tpu.memory_space<vmem>>, vector<1x256xf32>
    %5 = vector.broadcast %4 : vector<1x256xf32> to vector<256x256xf32>
    %6 = arith.addf %3, %5 : vector<256x256xf32>
    %cst = arith.constant 0.000000e+00 : f32
    %7 = vector.broadcast %cst : f32 to vector<256x256xf32>
    %8 = arith.maximumf %6, %7 : vector<256x256xf32>
    %c0_5 = arith.constant 0 : index
    %c0_6 = arith.constant 0 : index
    %9 = vector.load %arg4[%c0_5, %c0_6] : memref<256x256xf32, #tpu.memory_space<vmem>>, vector<256x256xf32>
    tpu.vector_store %arg4[%c0_5, %c0_6], %8 {strides = array<i32>} : memref<256x256xf32, #tpu.memory_space<vmem>>, vector<256x256xf32>,
    return
  }
  func.func @transform_0(%arg0: i32) -> (i32, i32) {
    %c0_i32 = arith.constant 0 : i32
    %c0_i32_0 = arith.constant 0 : i32
    return %arg0, %c0_i32 : i32, i32
  }
  func.func @transform_1(%arg0: i32) -> (i32, i32) {
    %c0_i32 = arith.constant 0 : i32
    %c0_i32_0 = arith.constant 0 : i32
    %c0_i32_1 = arith.constant 0 : i32
    return %c0_i32, %c0_i32_0 : i32, i32
  }
  func.func @transform_2(%arg0: i32) -> (i32, i32) {
    %c0_i32 = arith.constant 0 : i32
    %c0_i32_0 = arith.constant 0 : i32
    %c0_i32_1 = arith.constant 0 : i32
    return %c0_i32, %c0_i32_0 : i32, i32
  }
  func.func @transform_3(%arg0: i32) -> (i32, i32) {
    %c0_i32 = arith.constant 0 : i32
    %c0_i32_0 = arith.constant 0 : i32
    return %arg0, %c0_i32 : i32, i32
  }
}

module attributes {stable_mosaic.version = 11 : i64} {
  func.func @_conv3x3_stats_kernel(%arg0: i32, %arg1: memref<1x18x18x128xf32, #tpu.memory_space<vmem>>, %arg2: memref<3x3x128x128xf32, #tpu.memory_space<vmem>>, %arg3: memref<1x256x128xf32, #tpu.memory_space<vmem>>, %arg4: memref<1x8x128xf32, #tpu.memory_space<vmem>>, %arg5: memref<1x8x128xf32, #tpu.memory_space<vmem>>) attributes {dimension_semantics = [#tpu.dimension_semantics<parallel>], iteration_bounds = array<i64: 2>, scalar_prefetch = 0 : i64, scratch_operands = 0 : i64, tpu.core_type = #tpu.core_type<tc>, window_params = [{transform_indices = @transform_0, window_bounds = array<i64: 1, 18, 18, 128>}, {pipeline_mode = #tpu.pipeline_mode<synchronous>, transform_indices = @transform_1, window_bounds = array<i64: 3, 3, 128, 128>}, {transform_indices = @transform_2, window_bounds = array<i64: 1, 256, 128>}, {transform_indices = @transform_3, window_bounds = array<i64: 1, 8, 128>}, {transform_indices = @transform_4, window_bounds = array<i64: 1, 8, 128>}]} {
    %c0 = arith.constant 0 : index
    %c0_0 = arith.constant 0 : index
    %c0_1 = arith.constant 0 : index
    %c0_2 = arith.constant 0 : index
    %0 = vector.load %arg1[%c0, %c0_0, %c0_1, %c0_2] : memref<1x18x18x128xf32, #tpu.memory_space<vmem>>, vector<1x18x18x128xf32>
    %1 = vector.shape_cast %0 : vector<1x18x18x128xf32> to vector<18x18x128xf32>
    %cst = arith.constant 0.000000e+00 : f32
    %2 = vector.broadcast %cst : f32 to vector<256x128xf32>
    %3 = vector.extract_strided_slice %1 {offsets = [0, 0, 0], sizes = [16, 16, 128], strides = [1, 1, 1]} : vector<18x18x128xf32> to vector<16x16x128xf32>
    %4 = vector.shape_cast %3 : vector<16x16x128xf32> to vector<256x128xf32>
    %c0_3 = arith.constant 0 : index
    %c0_4 = arith.constant 0 : index
    %c0_5 = arith.constant 0 : index
    %c0_6 = arith.constant 0 : index
    %5 = vector.load %arg2[%c0_3, %c0_4, %c0_5, %c0_6] : memref<3x3x128x128xf32, #tpu.memory_space<vmem>>, vector<1x1x128x128xf32>
    %6 = vector.shape_cast %5 : vector<1x1x128x128xf32> to vector<128x128xf32>
    %cst_7 = arith.constant dense<0.000000e+00> : vector<256x128xf32>
    %7 = tpu.matmul %4, %6, %cst_7 {dimension_numbers = #tpu.dot_dimension_numbers<[1], [0], [0], [1], [0, 0, 1, 1], [], []>} : vector<256x128xf32>, vector<128x128xf32>, vector<256x128xf32> -> vector<256x128xf32>
    %8 = arith.addf %2, %7 : vector<256x128xf32>
    %9 = vector.extract_strided_slice %1 {offsets = [0, 1, 0], sizes = [16, 16, 128], strides = [1, 1, 1]} : vector<18x18x128xf32> to vector<16x16x128xf32>
    %10 = vector.shape_cast %9 : vector<16x16x128xf32> to vector<256x128xf32>
    %c0_8 = arith.constant 0 : index
    %c1 = arith.constant 1 : index
    %c0_9 = arith.constant 0 : index
    %c0_10 = arith.constant 0 : index
    %11 = vector.load %arg2[%c0_8, %c1, %c0_9, %c0_10] : memref<3x3x128x128xf32, #tpu.memory_space<vmem>>, vector<1x1x128x128xf32>
    %12 = vector.shape_cast %11 : vector<1x1x128x128xf32> to vector<128x128xf32>
    %cst_11 = arith.constant dense<0.000000e+00> : vector<256x128xf32>
    %13 = tpu.matmul %10, %12, %cst_11 {dimension_numbers = #tpu.dot_dimension_numbers<[1], [0], [0], [1], [0, 0, 1, 1], [], []>} : vector<256x128xf32>, vector<128x128xf32>, vector<256x128xf32> -> vector<256x128xf32>
    %14 = arith.addf %8, %13 : vector<256x128xf32>
    %15 = vector.extract_strided_slice %1 {offsets = [0, 2, 0], sizes = [16, 16, 128], strides = [1, 1, 1]} : vector<18x18x128xf32> to vector<16x16x128xf32>
    %16 = vector.shape_cast %15 : vector<16x16x128xf32> to vector<256x128xf32>
    %c0_12 = arith.constant 0 : index
    %c2 = arith.constant 2 : index
    %c0_13 = arith.constant 0 : index
    %c0_14 = arith.constant 0 : index
    %17 = vector.load %arg2[%c0_12, %c2, %c0_13, %c0_14] : memref<3x3x128x128xf32, #tpu.memory_space<vmem>>, vector<1x1x128x128xf32>
    %18 = vector.shape_cast %17 : vector<1x1x128x128xf32> to vector<128x128xf32>
    %cst_15 = arith.constant dense<0.000000e+00> : vector<256x128xf32>
    %19 = tpu.matmul %16, %18, %cst_15 {dimension_numbers = #tpu.dot_dimension_numbers<[1], [0], [0], [1], [0, 0, 1, 1], [], []>} : vector<256x128xf32>, vector<128x128xf32>, vector<256x128xf32> -> vector<256x128xf32>
    %20 = arith.addf %14, %19 : vector<256x128xf32>
    %21 = vector.extract_strided_slice %1 {offsets = [1, 0, 0], sizes = [16, 16, 128], strides = [1, 1, 1]} : vector<18x18x128xf32> to vector<16x16x128xf32>
    %22 = vector.shape_cast %21 : vector<16x16x128xf32> to vector<256x128xf32>
    %c1_16 = arith.constant 1 : index
    %c0_17 = arith.constant 0 : index
    %c0_18 = arith.constant 0 : index
    %c0_19 = arith.constant 0 : index
    %23 = vector.load %arg2[%c1_16, %c0_17, %c0_18, %c0_19] : memref<3x3x128x128xf32, #tpu.memory_space<vmem>>, vector<1x1x128x128xf32>
    %24 = vector.shape_cast %23 : vector<1x1x128x128xf32> to vector<128x128xf32>
    %cst_20 = arith.constant dense<0.000000e+00> : vector<256x128xf32>
    %25 = tpu.matmul %22, %24, %cst_20 {dimension_numbers = #tpu.dot_dimension_numbers<[1], [0], [0], [1], [0, 0, 1, 1], [], []>} : vector<256x128xf32>, vector<128x128xf32>, vector<256x128xf32> -> vector<256x128xf32>
    %26 = arith.addf %20, %25 : vector<256x128xf32>
    %27 = vector.extract_strided_slice %1 {offsets = [1, 1, 0], sizes = [16, 16, 128], strides = [1, 1, 1]} : vector<18x18x128xf32> to vector<16x16x128xf32>
    %28 = vector.shape_cast %27 : vector<16x16x128xf32> to vector<256x128xf32>
    %c1_21 = arith.constant 1 : index
    %c1_22 = arith.constant 1 : index
    %c0_23 = arith.constant 0 : index
    %c0_24 = arith.constant 0 : index
    %29 = vector.load %arg2[%c1_21, %c1_22, %c0_23, %c0_24] : memref<3x3x128x128xf32, #tpu.memory_space<vmem>>, vector<1x1x128x128xf32>
    %30 = vector.shape_cast %29 : vector<1x1x128x128xf32> to vector<128x128xf32>
    %cst_25 = arith.constant dense<0.000000e+00> : vector<256x128xf32>
    %31 = tpu.matmul %28, %30, %cst_25 {dimension_numbers = #tpu.dot_dimension_numbers<[1], [0], [0], [1], [0, 0, 1, 1], [], []>} : vector<256x128xf32>, vector<128x128xf32>, vector<256x128xf32> -> vector<256x128xf32>
    %32 = arith.addf %26, %31 : vector<256x128xf32>
    %33 = vector.extract_strided_slice %1 {offsets = [1, 2, 0], sizes = [16, 16, 128], strides = [1, 1, 1]} : vector<18x18x128xf32> to vector<16x16x128xf32>
    %34 = vector.shape_cast %33 : vector<16x16x128xf32> to vector<256x128xf32>
    %c1_26 = arith.constant 1 : index
    %c2_27 = arith.constant 2 : index
    %c0_28 = arith.constant 0 : index
    %c0_29 = arith.constant 0 : index
    %35 = vector.load %arg2[%c1_26, %c2_27, %c0_28, %c0_29] : memref<3x3x128x128xf32, #tpu.memory_space<vmem>>, vector<1x1x128x128xf32>
    %36 = vector.shape_cast %35 : vector<1x1x128x128xf32> to vector<128x128xf32>
    %cst_30 = arith.constant dense<0.000000e+00> : vector<256x128xf32>
    %37 = tpu.matmul %34, %36, %cst_30 {dimension_numbers = #tpu.dot_dimension_numbers<[1], [0], [0], [1], [0, 0, 1, 1], [], []>} : vector<256x128xf32>, vector<128x128xf32>, vector<256x128xf32> -> vector<256x128xf32>
    %38 = arith.addf %32, %37 : vector<256x128xf32>
    %39 = vector.extract_strided_slice %1 {offsets = [2, 0, 0], sizes = [16, 16, 128], strides = [1, 1, 1]} : vector<18x18x128xf32> to vector<16x16x128xf32>
    %40 = vector.shape_cast %39 : vector<16x16x128xf32> to vector<256x128xf32>
    %c2_31 = arith.constant 2 : index
    %c0_32 = arith.constant 0 : index
    %c0_33 = arith.constant 0 : index
    %c0_34 = arith.constant 0 : index
    %41 = vector.load %arg2[%c2_31, %c0_32, %c0_33, %c0_34] : memref<3x3x128x128xf32, #tpu.memory_space<vmem>>, vector<1x1x128x128xf32>
    %42 = vector.shape_cast %41 : vector<1x1x128x128xf32> to vector<128x128xf32>
    %cst_35 = arith.constant dense<0.000000e+00> : vector<256x128xf32>
    %43 = tpu.matmul %40, %42, %cst_35 {dimension_numbers = #tpu.dot_dimension_numbers<[1], [0], [0], [1], [0, 0, 1, 1], [], []>} : vector<256x128xf32>, vector<128x128xf32>, vector<256x128xf32> -> vector<256x128xf32>
    %44 = arith.addf %38, %43 : vector<256x128xf32>
    %45 = vector.extract_strided_slice %1 {offsets = [2, 1, 0], sizes = [16, 16, 128], strides = [1, 1, 1]} : vector<18x18x128xf32> to vector<16x16x128xf32>
    %46 = vector.shape_cast %45 : vector<16x16x128xf32> to vector<256x128xf32>
    %c2_36 = arith.constant 2 : index
    %c1_37 = arith.constant 1 : index
    %c0_38 = arith.constant 0 : index
    %c0_39 = arith.constant 0 : index
    %47 = vector.load %arg2[%c2_36, %c1_37, %c0_38, %c0_39] : memref<3x3x128x128xf32, #tpu.memory_space<vmem>>, vector<1x1x128x128xf32>
    %48 = vector.shape_cast %47 : vector<1x1x128x128xf32> to vector<128x128xf32>
    %cst_40 = arith.constant dense<0.000000e+00> : vector<256x128xf32>
    %49 = tpu.matmul %46, %48, %cst_40 {dimension_numbers = #tpu.dot_dimension_numbers<[1], [0], [0], [1], [0, 0, 1, 1], [], []>} : vector<256x128xf32>, vector<128x128xf32>, vector<256x128xf32> -> vector<256x128xf32>
    %50 = arith.addf %44, %49 : vector<256x128xf32>
    %51 = vector.extract_strided_slice %1 {offsets = [2, 2, 0], sizes = [16, 16, 128], strides = [1, 1, 1]} : vector<18x18x128xf32> to vector<16x16x128xf32>
    %52 = vector.shape_cast %51 : vector<16x16x128xf32> to vector<256x128xf32>
    %c2_41 = arith.constant 2 : index
    %c2_42 = arith.constant 2 : index
    %c0_43 = arith.constant 0 : index
    %c0_44 = arith.constant 0 : index
    %53 = vector.load %arg2[%c2_41, %c2_42, %c0_43, %c0_44] : memref<3x3x128x128xf32, #tpu.memory_space<vmem>>, vector<1x1x128x128xf32>
    %54 = vector.shape_cast %53 : vector<1x1x128x128xf32> to vector<128x128xf32>
    %cst_45 = arith.constant dense<0.000000e+00> : vector<256x128xf32>
    %55 = tpu.matmul %52, %54, %cst_45 {dimension_numbers = #tpu.dot_dimension_numbers<[1], [0], [0], [1], [0, 0, 1, 1], [], []>} : vector<256x128xf32>, vector<128x128xf32>, vector<256x128xf32> -> vector<256x128xf32>
    %56 = arith.addf %50, %55 : vector<256x128xf32>
    %c0_46 = arith.constant 0 : index
    %c0_47 = arith.constant 0 : index
    %c0_48 = arith.constant 0 : index
    %57 = vector.load %arg3[%c0_46, %c0_47, %c0_48] : memref<1x256x128xf32, #tpu.memory_space<vmem>>, vector<1x256x128xf32>
    %58 = vector.shape_cast %57 : vector<1x256x128xf32> to vector<256x128xf32>
    %59 = vector.shape_cast %56 : vector<256x128xf32> to vector<1x256x128xf32>
    tpu.vector_store %arg3[%c0_46, %c0_47, %c0_48], %59 {strides = array<i32>} : memref<1x256x128xf32, #tpu.memory_space<vmem>>, vector<1x256x128xf32>,
    %cst_49 = arith.constant dense<0.000000e+00> : vector<128xf32>
    %60 = vector.multi_reduction <add>, %56, %cst_49 [0] : vector<256x128xf32> to vector<128xf32>
    %61 = vector.shape_cast %60 : vector<128xf32> to vector<1x128xf32>
    %62 = arith.mulf %56, %56 : vector<256x128xf32>
    %cst_50 = arith.constant dense<0.000000e+00> : vector<128xf32>
    %63 = vector.multi_reduction <add>, %62, %cst_50 [0] : vector<256x128xf32> to vector<128xf32>
    %64 = vector.shape_cast %63 : vector<128xf32> to vector<1x128xf32>
    %65 = vector.shape_cast %61 : vector<1x128xf32> to vector<1x128xf32>
    %66 = vector.broadcast %65 : vector<1x128xf32> to vector<8x128xf32>
    %c0_51 = arith.constant 0 : index
    %c0_52 = arith.constant 0 : index
    %c0_53 = arith.constant 0 : index
    %67 = vector.load %arg4[%c0_51, %c0_52, %c0_53] : memref<1x8x128xf32, #tpu.memory_space<vmem>>, vector<1x8x128xf32>
    %68 = vector.shape_cast %67 : vector<1x8x128xf32> to vector<8x128xf32>
    %69 = vector.shape_cast %66 : vector<8x128xf32> to vector<1x8x128xf32>
    tpu.vector_store %arg4[%c0_51, %c0_52, %c0_53], %69 {strides = array<i32>} : memref<1x8x128xf32, #tpu.memory_space<vmem>>, vector<1x8x128xf32>,
    %70 = vector.shape_cast %64 : vector<1x128xf32> to vector<1x128xf32>
    %71 = vector.broadcast %70 : vector<1x128xf32> to vector<8x128xf32>
    %c0_54 = arith.constant 0 : index
    %c0_55 = arith.constant 0 : index
    %c0_56 = arith.constant 0 : index
    %72 = vector.load %arg5[%c0_54, %c0_55, %c0_56] : memref<1x8x128xf32, #tpu.memory_space<vmem>>, vector<1x8x128xf32>
    %73 = vector.shape_cast %72 : vector<1x8x128xf32> to vector<8x128xf32>
    %74 = vector.shape_cast %71 : vector<8x128xf32> to vector<1x8x128xf32>
    tpu.vector_store %arg5[%c0_54, %c0_55, %c0_56], %74 {strides = array<i32>} : memref<1x8x128xf32, #tpu.memory_space<vmem>>, vector<1x8x128xf32>,
    return
  }
  func.func @transform_0(%arg0: i32) -> (i32, i32, i32, i32) {
    %c0_i32 = arith.constant 0 : i32
    %c0_i32_0 = arith.constant 0 : i32
    %c0_i32_1 = arith.constant 0 : i32
    %c0_i32_2 = arith.constant 0 : i32
    return %arg0, %c0_i32, %c0_i32_0, %c0_i32_1 : i32, i32, i32, i32
  }
  func.func @transform_1(%arg0: i32) -> (i32, i32, i32, i32) {
    %c0_i32 = arith.constant 0 : i32
    %c0_i32_0 = arith.constant 0 : i32
    %c0_i32_1 = arith.constant 0 : i32
    %c0_i32_2 = arith.constant 0 : i32
    %c0_i32_3 = arith.constant 0 : i32
    return %c0_i32, %c0_i32_0, %c0_i32_1, %c0_i32_2 : i32, i32, i32, i32
  }
  func.func @transform_2(%arg0: i32) -> (i32, i32, i32) {
    %c0_i32 = arith.constant 0 : i32
    %c0_i32_0 = arith.constant 0 : i32
    %c0_i32_1 = arith.constant 0 : i32
    return %arg0, %c0_i32, %c0_i32_0 : i32, i32, i32
  }
  func.func @transform_3(%arg0: i32) -> (i32, i32, i32) {
    %c0_i32 = arith.constant 0 : i32
    %c0_i32_0 = arith.constant 0 : i32
    %c0_i32_1 = arith.constant 0 : i32
    return %arg0, %c0_i32, %c0_i32_0 : i32, i32, i32
  }
  func.func @transform_4(%arg0: i32) -> (i32, i32, i32) {
    %c0_i32 = arith.constant 0 : i32
    %c0_i32_0 = arith.constant 0 : i32
    %c0_i32_1 = arith.constant 0 : i32
    return %arg0, %c0_i32, %c0_i32_0 : i32, i32, i32
  }
}

module attributes {stable_mosaic.version = 11 : i64} {
  func.func @_bn_act_kernel(%arg0: i32, %arg1: memref<256x128xf32, #tpu.memory_space<vmem>>, %arg2: memref<1x128xf32, #tpu.memory_space<vmem>>, %arg3: memref<1x128xf32, #tpu.memory_space<vmem>>, %arg4: memref<256x128xf32, #tpu.memory_space<vmem>>) attributes {dimension_semantics = [#tpu.dimension_semantics<parallel>], iteration_bounds = array<i64: 2>, scalar_prefetch = 0 : i64, scratch_operands = 0 : i64, tpu.core_type = #tpu.core_type<tc>, window_params = [{transform_indices = @transform_0, window_bounds = array<i64: 256, 128>}, {pipeline_mode = #tpu.pipeline_mode<synchronous>, transform_indices = @transform_1, window_bounds = array<i64: 1, 128>}, {pipeline_mode = #tpu.pipeline_mode<synchronous>, transform_indices = @transform_2, window_bounds = array<i64: 1, 128>}, {transform_indices = @transform_3, window_bounds = array<i64: 256, 128>}]} {
    %c0 = arith.constant 0 : index
    %c0_0 = arith.constant 0 : index
    %0 = vector.load %arg1[%c0, %c0_0] : memref<256x128xf32, #tpu.memory_space<vmem>>, vector<256x128xf32>
    %c0_1 = arith.constant 0 : index
    %c0_2 = arith.constant 0 : index
    %1 = vector.load %arg2[%c0_1, %c0_2] : memref<1x128xf32, #tpu.memory_space<vmem>>, vector<1x128xf32>
    %2 = vector.broadcast %1 : vector<1x128xf32> to vector<256x128xf32>
    %3 = arith.mulf %0, %2 : vector<256x128xf32>
    %c0_3 = arith.constant 0 : index
    %c0_4 = arith.constant 0 : index
    %4 = vector.load %arg3[%c0_3, %c0_4] : memref<1x128xf32, #tpu.memory_space<vmem>>, vector<1x128xf32>
    %5 = vector.broadcast %4 : vector<1x128xf32> to vector<256x128xf32>
    %6 = arith.addf %3, %5 : vector<256x128xf32>
    %cst = arith.constant 0.000000e+00 : f32
    %7 = vector.broadcast %cst : f32 to vector<256x128xf32>
    %8 = arith.maximumf %6, %7 : vector<256x128xf32>
    %c0_5 = arith.constant 0 : index
    %c0_6 = arith.constant 0 : index
    %9 = vector.load %arg4[%c0_5, %c0_6] : memref<256x128xf32, #tpu.memory_space<vmem>>, vector<256x128xf32>
    tpu.vector_store %arg4[%c0_5, %c0_6], %8 {strides = array<i32>} : memref<256x128xf32, #tpu.memory_space<vmem>>, vector<256x128xf32>,
    return
  }
  func.func @transform_0(%arg0: i32) -> (i32, i32) {
    %c0_i32 = arith.constant 0 : i32
    %c0_i32_0 = arith.constant 0 : i32
    return %arg0, %c0_i32 : i32, i32
  }
  func.func @transform_1(%arg0: i32) -> (i32, i32) {
    %c0_i32 = arith.constant 0 : i32
    %c0_i32_0 = arith.constant 0 : i32
    %c0_i32_1 = arith.constant 0 : i32
    return %c0_i32, %c0_i32_0 : i32, i32
  }
  func.func @transform_2(%arg0: i32) -> (i32, i32) {
    %c0_i32 = arith.constant 0 : i32
    %c0_i32_0 = arith.constant 0 : i32
    %c0_i32_1 = arith.constant 0 : i32
    return %c0_i32, %c0_i32_0 : i32, i32
  }
  func.func @transform_3(%arg0: i32) -> (i32, i32) {
    %c0_i32 = arith.constant 0 : i32
    %c0_i32_0 = arith.constant 0 : i32
    return %arg0, %c0_i32 : i32, i32
  }
}

module attributes {stable_mosaic.version = 11 : i64} {
  func.func @_matmul_bias_kernel(%arg0: i32, %arg1: memref<256x128xf32, #tpu.memory_space<vmem>>, %arg2: memref<128x384xf32, #tpu.memory_space<vmem>>, %arg3: memref<1x384xf32, #tpu.memory_space<vmem>>, %arg4: memref<256x384xf32, #tpu.memory_space<vmem>>) attributes {dimension_semantics = [#tpu.dimension_semantics<parallel>], iteration_bounds = array<i64: 2>, scalar_prefetch = 0 : i64, scratch_operands = 0 : i64, tpu.core_type = #tpu.core_type<tc>, window_params = [{transform_indices = @transform_0, window_bounds = array<i64: 256, 128>}, {pipeline_mode = #tpu.pipeline_mode<synchronous>, transform_indices = @transform_1, window_bounds = array<i64: 128, 384>}, {pipeline_mode = #tpu.pipeline_mode<synchronous>, transform_indices = @transform_2, window_bounds = array<i64: 1, 384>}, {transform_indices = @transform_3, window_bounds = array<i64: 256, 384>}]} {
    %c0 = arith.constant 0 : index
    %c0_0 = arith.constant 0 : index
    %0 = vector.load %arg1[%c0, %c0_0] : memref<256x128xf32, #tpu.memory_space<vmem>>, vector<256x128xf32>
    %c0_1 = arith.constant 0 : index
    %c0_2 = arith.constant 0 : index
    %1 = vector.load %arg2[%c0_1, %c0_2] : memref<128x384xf32, #tpu.memory_space<vmem>>, vector<128x384xf32>
    %cst = arith.constant dense<0.000000e+00> : vector<256x384xf32>
    %2 = tpu.matmul %0, %1, %cst {dimension_numbers = #tpu.dot_dimension_numbers<[1], [0], [0], [1], [0, 0, 1, 1], [], []>} : vector<256x128xf32>, vector<128x384xf32>, vector<256x384xf32> -> vector<256x384xf32>
    %c0_3 = arith.constant 0 : index
    %c0_4 = arith.constant 0 : index
    %3 = vector.load %arg3[%c0_3, %c0_4] : memref<1x384xf32, #tpu.memory_space<vmem>>, vector<1x384xf32>
    %4 = vector.broadcast %3 : vector<1x384xf32> to vector<256x384xf32>
    %5 = arith.addf %2, %4 : vector<256x384xf32>
    %c0_5 = arith.constant 0 : index
    %c0_6 = arith.constant 0 : index
    %6 = vector.load %arg4[%c0_5, %c0_6] : memref<256x384xf32, #tpu.memory_space<vmem>>, vector<256x384xf32>
    tpu.vector_store %arg4[%c0_5, %c0_6], %5 {strides = array<i32>} : memref<256x384xf32, #tpu.memory_space<vmem>>, vector<256x384xf32>,
    return
  }
  func.func @transform_0(%arg0: i32) -> (i32, i32) {
    %c0_i32 = arith.constant 0 : i32
    %c0_i32_0 = arith.constant 0 : i32
    return %arg0, %c0_i32 : i32, i32
  }
  func.func @transform_1(%arg0: i32) -> (i32, i32) {
    %c0_i32 = arith.constant 0 : i32
    %c0_i32_0 = arith.constant 0 : i32
    %c0_i32_1 = arith.constant 0 : i32
    return %c0_i32, %c0_i32_0 : i32, i32
  }
  func.func @transform_2(%arg0: i32) -> (i32, i32) {
    %c0_i32 = arith.constant 0 : i32
    %c0_i32_0 = arith.constant 0 : i32
    %c0_i32_1 = arith.constant 0 : i32
    return %c0_i32, %c0_i32_0 : i32, i32
  }
  func.func @transform_3(%arg0: i32) -> (i32, i32) {
    %c0_i32 = arith.constant 0 : i32
    %c0_i32_0 = arith.constant 0 : i32
    return %arg0, %c0_i32 : i32, i32
  }
}

module attributes {stable_mosaic.version = 11 : i64} {
  func.func @_pam_kernel(%arg0: i32, %arg1: i32, %arg2: memref<1x256x128xf32, #tpu.memory_space<vmem>>, %arg3: memref<1x256x128xf32, #tpu.memory_space<vmem>>, %arg4: memref<1x256x128xf32, #tpu.memory_space<vmem>>, %arg5: memref<1x256x128xf32, #tpu.memory_space<vmem>>, %arg6: memref<1x128xf32, #tpu.memory_space<vmem>>, %arg7: memref<1x256x128xf32, #tpu.memory_space<vmem>>) attributes {dimension_semantics = [#tpu.dimension_semantics<parallel>, #tpu.dimension_semantics<parallel>], iteration_bounds = array<i64: 2, 1>, scalar_prefetch = 0 : i64, scratch_operands = 0 : i64, tpu.core_type = #tpu.core_type<tc>, window_params = [{transform_indices = @transform_0, window_bounds = array<i64: 1, 256, 128>}, {transform_indices = @transform_1, window_bounds = array<i64: 1, 256, 128>}, {transform_indices = @transform_2, window_bounds = array<i64: 1, 256, 128>}, {transform_indices = @transform_3, window_bounds = array<i64: 1, 256, 128>}, {pipeline_mode = #tpu.pipeline_mode<synchronous>, transform_indices = @transform_4, window_bounds = array<i64: 1, 128>}, {transform_indices = @transform_5, window_bounds = array<i64: 1, 256, 128>}]} {
    %c0 = arith.constant 0 : index
    %c0_0 = arith.constant 0 : index
    %c0_1 = arith.constant 0 : index
    %0 = vector.load %arg2[%c0, %c0_0, %c0_1] : memref<1x256x128xf32, #tpu.memory_space<vmem>>, vector<1x256x128xf32>
    %1 = vector.shape_cast %0 : vector<1x256x128xf32> to vector<256x128xf32>
    %c0_2 = arith.constant 0 : index
    %c0_3 = arith.constant 0 : index
    %c0_4 = arith.constant 0 : index
    %2 = vector.load %arg3[%c0_2, %c0_3, %c0_4] : memref<1x256x128xf32, #tpu.memory_space<vmem>>, vector<1x256x128xf32>
    %3 = vector.shape_cast %2 : vector<1x256x128xf32> to vector<256x128xf32>
    %c0_5 = arith.constant 0 : index
    %c0_6 = arith.constant 0 : index
    %c0_7 = arith.constant 0 : index
    %4 = vector.load %arg4[%c0_5, %c0_6, %c0_7] : memref<1x256x128xf32, #tpu.memory_space<vmem>>, vector<1x256x128xf32>
    %5 = vector.shape_cast %4 : vector<1x256x128xf32> to vector<256x128xf32>
    %cst = arith.constant dense<0.000000e+00> : vector<256x256xf32>
    %6 = tpu.matmul %1, %3, %cst {dimension_numbers = #tpu.dot_dimension_numbers<[1], [1], [0], [0], [0, 0, 1, 0], [], []>} : vector<256x128xf32>, vector<256x128xf32>, vector<256x256xf32> -> vector<256x256xf32>
    %cst_8 = arith.constant dense<0xFF800000> : vector<256xf32>
    %7 = vector.multi_reduction <maximumf>, %6, %cst_8 [1] : vector<256x256xf32> to vector<256xf32>
    %8 = vector.shape_cast %7 : vector<256xf32> to vector<256x1xf32>
    %9 = vector.broadcast %8 : vector<256x1xf32> to vector<256x256xf32>
    %10 = arith.subf %6, %9 : vector<256x256xf32>
    %11 = math.exp %10 : vector<256x256xf32>
    %cst_9 = arith.constant dense<0.000000e+00> : vector<256xf32>
    %12 = vector.multi_reduction <add>, %11, %cst_9 [1] : vector<256x256xf32> to vector<256xf32>
    %13 = vector.shape_cast %12 : vector<256xf32> to vector<256x1xf32>
    %14 = tpu.reciprocal %13 : vector<256x1xf32> -> vector<256x1xf32>
    %15 = vector.broadcast %14 : vector<256x1xf32> to vector<256x256xf32>
    %16 = arith.mulf %11, %15 : vector<256x256xf32>
    %cst_10 = arith.constant dense<0.000000e+00> : vector<256x128xf32>
    %17 = tpu.matmul %16, %5, %cst_10 {dimension_numbers = #tpu.dot_dimension_numbers<[1], [0], [0], [1], [0, 0, 1, 1], [], []>} : vector<256x256xf32>, vector<256x128xf32>, vector<256x128xf32> -> vector<256x128xf32>
    %c0_11 = arith.constant 0 : index
    %c0_12 = arith.constant 0 : index
    %18 = vector.load %arg6[%c0_11, %c0_12] : memref<1x128xf32, #tpu.memory_space<vmem>>, vector<1x128xf32>
    %19 = vector.broadcast %18 : vector<1x128xf32> to vector<256x128xf32>
    %20 = arith.mulf %19, %17 : vector<256x128xf32>
    %c0_13 = arith.constant 0 : index
    %c0_14 = arith.constant 0 : index
    %c0_15 = arith.constant 0 : index
    %21 = vector.load %arg5[%c0_13, %c0_14, %c0_15] : memref<1x256x128xf32, #tpu.memory_space<vmem>>, vector<1x256x128xf32>
    %22 = vector.shape_cast %21 : vector<1x256x128xf32> to vector<256x128xf32>
    %23 = arith.addf %20, %22 : vector<256x128xf32>
    %c0_16 = arith.constant 0 : index
    %c0_17 = arith.constant 0 : index
    %c0_18 = arith.constant 0 : index
    %24 = vector.load %arg7[%c0_16, %c0_17, %c0_18] : memref<1x256x128xf32, #tpu.memory_space<vmem>>, vector<1x256x128xf32>
    %25 = vector.shape_cast %24 : vector<1x256x128xf32> to vector<256x128xf32>
    %26 = vector.shape_cast %23 : vector<256x128xf32> to vector<1x256x128xf32>
    tpu.vector_store %arg7[%c0_16, %c0_17, %c0_18], %26 {strides = array<i32>} : memref<1x256x128xf32, #tpu.memory_space<vmem>>, vector<1x256x128xf32>,
    return
  }
  func.func @transform_0(%arg0: i32, %arg1: i32) -> (i32, i32, i32) {
    %c0_i32 = arith.constant 0 : i32
    %c0_i32_0 = arith.constant 0 : i32
    return %arg0, %arg1, %c0_i32 : i32, i32, i32
  }
  func.func @transform_1(%arg0: i32, %arg1: i32) -> (i32, i32, i32) {
    %c0_i32 = arith.constant 0 : i32
    %c0_i32_0 = arith.constant 0 : i32
    %c0_i32_1 = arith.constant 0 : i32
    return %arg0, %c0_i32, %c0_i32_0 : i32, i32, i32
  }
  func.func @transform_2(%arg0: i32, %arg1: i32) -> (i32, i32, i32) {
    %c0_i32 = arith.constant 0 : i32
    %c0_i32_0 = arith.constant 0 : i32
    %c0_i32_1 = arith.constant 0 : i32
    return %arg0, %c0_i32, %c0_i32_0 : i32, i32, i32
  }
  func.func @transform_3(%arg0: i32, %arg1: i32) -> (i32, i32, i32) {
    %c0_i32 = arith.constant 0 : i32
    %c0_i32_0 = arith.constant 0 : i32
    return %arg0, %arg1, %c0_i32 : i32, i32, i32
  }
  func.func @transform_4(%arg0: i32, %arg1: i32) -> (i32, i32) {
    %c0_i32 = arith.constant 0 : i32
    %c0_i32_0 = arith.constant 0 : i32
    %c0_i32_1 = arith.constant 0 : i32
    return %c0_i32, %c0_i32_0 : i32, i32
  }
  func.func @transform_5(%arg0: i32, %arg1: i32) -> (i32, i32, i32) {
    %c0_i32 = arith.constant 0 : i32
    %c0_i32_0 = arith.constant 0 : i32
    return %arg0, %arg1, %c0_i32 : i32, i32, i32
  }
}

module attributes {stable_mosaic.version = 11 : i64} {
  func.func @_fuse_out_kernel(%arg0: i32, %arg1: memref<256x128xf32, #tpu.memory_space<vmem>>, %arg2: memref<256x128xf32, #tpu.memory_space<vmem>>, %arg3: memref<128x128xf32, #tpu.memory_space<vmem>>, %arg4: memref<1x128xf32, #tpu.memory_space<vmem>>, %arg5: memref<256x128xf32, #tpu.memory_space<vmem>>) attributes {dimension_semantics = [#tpu.dimension_semantics<parallel>], iteration_bounds = array<i64: 2>, scalar_prefetch = 0 : i64, scratch_operands = 0 : i64, tpu.core_type = #tpu.core_type<tc>, window_params = [{transform_indices = @transform_0, window_bounds = array<i64: 256, 128>}, {transform_indices = @transform_1, window_bounds = array<i64: 256, 128>}, {pipeline_mode = #tpu.pipeline_mode<synchronous>, transform_indices = @transform_2, window_bounds = array<i64: 128, 128>}, {pipeline_mode = #tpu.pipeline_mode<synchronous>, transform_indices = @transform_3, window_bounds = array<i64: 1, 128>}, {transform_indices = @transform_4, window_bounds = array<i64: 256, 128>}]} {
    %c0 = arith.constant 0 : index
    %c0_0 = arith.constant 0 : index
    %0 = vector.load %arg1[%c0, %c0_0] : memref<256x128xf32, #tpu.memory_space<vmem>>, vector<256x128xf32>
    %c0_1 = arith.constant 0 : index
    %c0_2 = arith.constant 0 : index
    %1 = vector.load %arg2[%c0_1, %c0_2] : memref<256x128xf32, #tpu.memory_space<vmem>>, vector<256x128xf32>
    %2 = arith.addf %0, %1 : vector<256x128xf32>
    %c0_3 = arith.constant 0 : index
    %c0_4 = arith.constant 0 : index
    %3 = vector.load %arg3[%c0_3, %c0_4] : memref<128x128xf32, #tpu.memory_space<vmem>>, vector<128x128xf32>
    %cst = arith.constant dense<0.000000e+00> : vector<256x128xf32>
    %4 = tpu.matmul %2, %3, %cst {dimension_numbers = #tpu.dot_dimension_numbers<[1], [0], [0], [1], [0, 0, 1, 1], [], []>} : vector<256x128xf32>, vector<128x128xf32>, vector<256x128xf32> -> vector<256x128xf32>
    %c0_5 = arith.constant 0 : index
    %c0_6 = arith.constant 0 : index
    %5 = vector.load %arg4[%c0_5, %c0_6] : memref<1x128xf32, #tpu.memory_space<vmem>>, vector<1x128xf32>
    %6 = vector.broadcast %5 : vector<1x128xf32> to vector<256x128xf32>
    %7 = arith.addf %4, %6 : vector<256x128xf32>
    %c0_7 = arith.constant 0 : index
    %c0_8 = arith.constant 0 : index
    %8 = vector.load %arg5[%c0_7, %c0_8] : memref<256x128xf32, #tpu.memory_space<vmem>>, vector<256x128xf32>
    tpu.vector_store %arg5[%c0_7, %c0_8], %7 {strides = array<i32>} : memref<256x128xf32, #tpu.memory_space<vmem>>, vector<256x128xf32>,
    return
  }
  func.func @transform_0(%arg0: i32) -> (i32, i32) {
    %c0_i32 = arith.constant 0 : i32
    %c0_i32_0 = arith.constant 0 : i32
    return %arg0, %c0_i32 : i32, i32
  }
  func.func @transform_1(%arg0: i32) -> (i32, i32) {
    %c0_i32 = arith.constant 0 : i32
    %c0_i32_0 = arith.constant 0 : i32
    return %arg0, %c0_i32 : i32, i32
  }
  func.func @transform_2(%arg0: i32) -> (i32, i32) {
    %c0_i32 = arith.constant 0 : i32
    %c0_i32_0 = arith.constant 0 : i32
    %c0_i32_1 = arith.constant 0 : i32
    return %c0_i32, %c0_i32_0 : i32, i32
  }
  func.func @transform_3(%arg0: i32) -> (i32, i32) {
    %c0_i32 = arith.constant 0 : i32
    %c0_i32_0 = arith.constant 0 : i32
    %c0_i32_1 = arith.constant 0 : i32
    return %c0_i32, %c0_i32_0 : i32, i32
  }
  func.func @transform_4(%arg0: i32) -> (i32, i32) {
    %c0_i32 = arith.constant 0 : i32
    %c0_i32_0 = arith.constant 0 : i32
    return %arg0, %c0_i32 : i32, i32
  }
}

</mosaic_0001>

<bundles_post_ra>
// kernel: da_head_forward.11
= control target key start
LH: loop header
LB: loop body
LE: loop exit
PB: predicated region body
PF: predicated region fallthrough
CT: control target
= control target key end

     0   :  { %s632_s12 = smov 0   ;;  %s926_s0 = inlined_call_operand.vmem [shape: f32[512,256], index: 0, kind: input, shape index: {}]   ;;  %s927_s1 = inlined_call_operand.vmem [shape: f32[1,256], index: 1, kind: input, shape index: {}]   ;;  %s928_s2 = inlined_call_operand.vmem [shape: f32[1,256], index: 2, kind: input, shape index: {}]   ;;  %s929_s3 = inlined_call_operand.vmem [shape: f32[512,256], index: 3, kind: output, shape index: {}]  }
   0x1 LB: > { %s581_s13 = sadd.s32 4294967295, %s610_s12   ;;  %p585_p0 = scmp.ge.s32.totalorder %s610_s12, 1  ;;  %s610_s12 = sphi %s632_s12, %s13_s12  }
   0x2   : > { %p139_p1 = scmp.lt.s32.totalorder %s610_s12, 3 }
   0x4   : > { %p140_p2 = pnand %p585_p0, %p139_p1 }
   0x5   : > { %s586_s14 = sshll.u32 (!%p140_p2), %s581_s13, 5  ;;  %v245_v0 = vlaneseq (!%p140_p2)  ;;  %v243_v2 = vld [vmem:[%s927_s1] sm:$0x3] (!%p140_p2) }
   0x6   : > { %143 = sbr.rel (%p140_p2) target bundleno = 70 (0x46), region = 32  ;;  %p166_p3 = scmp.lt.s32.totalorder (!%p140_p2), %s586_s14, 63  ;;  %v319_v3 = vld [vmem:[%s928_s2] sm:$0x3] (!%p140_p2) }
   0x7   : > { %v246_v1 = vshrl.u32 (!%p140_p2), %v245_v0, 7 }
   0x9   : > { %v247_v4 = vsub.s32 (!%p140_p2), 0, %v246_v1  ;;  %v251_v5 = vsub.s32 (!%p140_p2), 1, %v246_v1 }
   0xb   : > { %v654_v6 = vrot.slane (!%p140_p2), %v243_v2, %v247_v4  ;;  %v656_v7 = vrot.slane (!%p140_p2), %v319_v3, %v247_v4  ;;  %v658_v8 = vrot.slane (!%p140_p2), %v243_v2, %v251_v5  ;;  %v660_v9 = vrot.slane (!%p140_p2), %v319_v3, %v251_v5 }
   0xd   : > { %s931_s14 = smov (!%p166_p3, %s586_s14), 63 }
   0xe   : > { %s594_s19 = sshll.u32 %s931_s14, 4 }
   0xf   : > { %s652_s22 = scalar_lea.vmem %s926_s0, %s594_s19  ;;  %s683_s25 = scalar_lea.vmem %s929_s3, %s594_s19 }
  0x10   : > { %v179_v10 = vld [vmem:[%s652_s22] sm:$0xff]  ;;  %v180_v11 = vld [vmem:[%s652_s22 + $0x8] sm:$0xff]  ;;  %v181_v12 = vld [vmem:[%s652_s22 + $0x10] sm:$0xff] }
  0x11   : > { %v255_v13 = vmul.f32 %v654_v6, %v179_v10  ;;  %v256_v14 = vmul.f32 %v658_v8, %v180_v11  ;;  %v257_v15 = vmul.f32 %v654_v6, %v181_v12  ;;  %v182_v16 = vld [vmem:[%s652_s22 + $0x18] sm:$0xff]  ;;  %v183_v17 = vld [vmem:[%s652_s22 + $0x20] sm:$0xff]  ;;  %v184_v18 = vld [vmem:[%s652_s22 + $0x28] sm:$0xff] }
  0x12   : > { %v258_v19 = vmul.f32 %v658_v8, %v182_v16  ;;  %v259_v20 = vmul.f32 %v654_v6, %v183_v17  ;;  %v260_v21 = vmul.f32 %v658_v8, %v184_v18  ;;  %v185_v22 = vld [vmem:[%s652_s22 + $0x30] sm:$0xff]  ;;  %v186_v23 = vld [vmem:[%s652_s22 + $0x38] sm:$0xff]  ;;  %v187_v32 = vld [vmem:[%s652_s22 + $0x40] sm:$0xff] }
  0x13   : > { %v331_v24 = vadd.f32 %v656_v7, %v255_v13  ;;  %v332_v25 = vadd.f32 %v660_v9, %v256_v14  ;;  %v333_v26 = vadd.f32 %v656_v7, %v257_v15  ;;  %v261_v27 = vmul.f32 %v654_v6, %v185_v22  ;;  %v188_v33 = vld [vmem:[%s652_s22 + $0x48] sm:$0xff]  ;;  %v189_v34 = vld [vmem:[%s652_s22 + $0x50] sm:$0xff]  ;;  %v190_v39 = vld [vmem:[%s652_s22 + $0x58] sm:$0xff] }
  0x14   : > { %v334_v28 = vadd.f32 %v660_v9, %v258_v19  ;;  %v335_v29 = vadd.f32 %v656_v7, %v259_v20  ;;  %v336_v30 = vadd.f32 %v660_v9, %v260_v21  ;;  %v262_v31 = vmul.f32 %v658_v8, %v186_v23  ;;  %v191_v40 = vld [vmem:[%s652_s22 + $0x60] sm:$0xff]  ;;  %v192_v41 = vld [vmem:[%s652_s22 + $0x68] sm:$0xff]  ;;  %v193_v46 = vld [vmem:[%s652_s22 + $0x70] sm:$0xff] }
  0x15   : > { %v395_v35 = vmax.f32 %v331_v24, 0.0  ;;  %v396_v36 = vmax.f32 %v332_v25, 0.0  ;;  %v397_v37 = vmax.f32 %v333_v26, 0.0  ;;  %v337_v38 = vadd.f32 %v656_v7, %v261_v27  ;;  %v194_v51 = vld [vmem:[%s652_s22 + $0x78] sm:$0xff]  ;;  %v195_v0 = vld [vmem:[%s652_s22 + $0x80] sm:$0xff]  ;;  %v196_v1 = vld [vmem:[%s652_s22 + $0x88] sm:$0xff] }
  0x16   : > { %v398_v42 = vmax.f32 %v334_v28, 0.0  ;;  %v399_v43 = vmax.f32 %v335_v29, 0.0  ;;  %v400_v44 = vmax.f32 %v336_v30, 0.0  ;;  %v338_v45 = vadd.f32 %v660_v9, %v262_v31  ;;  %v197_v2 = vld [vmem:[%s652_s22 + $0x90] sm:$0xff]  ;;  %v198_v11 = vld [vmem:[%s652_s22 + $0x98] sm:$0xff]  ;;  %v199_v12 = vld [vmem:[%s652_s22 + $0xa0] sm:$0xff] }
  0x17   : > { %459 = vst [vmem:[%s683_s25] sm:$0xff] %v395_v35  ;;  %460 = vst [vmem:[%s683_s25 + $0x8] sm:$0xff] %v396_v36  ;;  %v401_v47 = vmax.f32 %v337_v38, 0.0  ;;  %v263_v48 = vmul.f32 %v654_v6, %v187_v32  ;;  %v264_v49 = vmul.f32 %v658_v8, %v188_v33  ;;  %v265_v50 = vmul.f32 %v654_v6, %v189_v34  ;;  %v200_v13 = vld [vmem:[%s652_s22 + $0xa8] sm:$0xff]  ;;  %v201_v18 = vld [vmem:[%s652_s22 + $0xb0] sm:$0xff] }
  0x18   : > { %461 = vst [vmem:[%s683_s25 + $0x10] sm:$0xff] %v397_v37  ;;  %462 = vst [vmem:[%s683_s25 + $0x18] sm:$0xff] %v398_v42  ;;  %v402_v52 = vmax.f32 %v338_v45, 0.0  ;;  %v266_v53 = vmul.f32 %v658_v8, %v190_v39  ;;  %v267_v54 = vmul.f32 %v654_v6, %v191_v40  ;;  %v268_v55 = vmul.f32 %v658_v8, %v192_v41  ;;  %v202_v23 = vld [vmem:[%s652_s22 + $0xb8] sm:$0xff]  ;;  %v203_v36 = vld [vmem:[%s652_s22 + $0xc0] sm:$0xff] }
  0x19   : > { %463 = vst [vmem:[%s683_s25 + $0x20] sm:$0xff] %v399_v43  ;;  %464 = vst [vmem:[%s683_s25 + $0x28] sm:$0xff] %v400_v44  ;;  %v339_v56 = vadd.f32 %v656_v7, %v263_v48  ;;  %v340_v57 = vadd.f32 %v660_v9, %v264_v49  ;;  %v341_v58 = vadd.f32 %v656_v7, %v265_v50  ;;  %v204_v37 = vld [vmem:[%s652_s22 + $0xc8] sm:$0xff]  ;;  %v205_v38 = vld [vmem:[%s652_s22 + $0xd0] sm:$0xff] }
  0x1a   : > { %465 = vst [vmem:[%s683_s25 + $0x30] sm:$0xff] %v401_v47  ;;  %v269_v59 = vmul.f32 %v654_v6, %v193_v46  ;;  %466 = vst [vmem:[%s683_s25 + $0x38] sm:$0xff] %v402_v52  ;;  %v342_v60 = vadd.f32 %v660_v9, %v266_v53  ;;  %v343_v61 = vadd.f32 %v656_v7, %v267_v54  ;;  %v206_v43 = vld [vmem:[%s652_s22 + $0xd8] sm:$0xff]  ;;  %v207_v44 = vld [vmem:[%s652_s22 + $0xe0] sm:$0xff] }
  0x1b   : > { %v344_v62 = vadd.f32 %v660_v9, %v268_v55  ;;  %v270_v63 = vmul.f32 %v658_v8, %v194_v51  ;;  %v403_v3 = vmax.f32 %v339_v56, 0.0  ;;  %v404_v4 = vmax.f32 %v340_v57, 0.0  ;;  %v208_v45 = vld [vmem:[%s652_s22 + $0xe8] sm:$0xff]  ;;  %v209_v50 = vld [vmem:[%s652_s22 + $0xf0] sm:$0xff]  ;;  %v210_v55 = vld [vmem:[%s652_s22 + $0xf8] sm:$0xff] }
  0x1c   : > { %v405_v5 = vmax.f32 %v341_v58, 0.0  ;;  %v345_v10 = vadd.f32 %v656_v7, %v269_v59  ;;  %v406_v14 = vmax.f32 %v342_v60, 0.0  ;;  %v407_v15 = vmax.f32 %v343_v61, 0.0 }
  0x1d   : > { %v408_v16 = vmax.f32 %v344_v62, 0.0  ;;  %v346_v17 = vadd.f32 %v660_v9, %v270_v63  ;;  %467 = vst [vmem:[%s683_s25 + $0x40] sm:$0xff] %v403_v3  ;;  %468 = vst [vmem:[%s683_s25 + $0x48] sm:$0xff] %v404_v4  ;;  %v271_v20 = vmul.f32 %v654_v6, %v195_v0  ;;  %v272_v21 = vmul.f32 %v658_v8, %v196_v1  ;;  %v211_v4 = vld [vmem:[%s652_s22 + $0x100] sm:$0xff] }
  0x1e   : > { %469 = vst [vmem:[%s683_s25 + $0x50] sm:$0xff] %v405_v5  ;;  %v409_v19 = vmax.f32 %v345_v10, 0.0  ;;  %v273_v22 = vmul.f32 %v654_v6, %v197_v2  ;;  %470 = vst [vmem:[%s683_s25 + $0x58] sm:$0xff] %v406_v14  ;;  %v274_v25 = vmul.f32 %v658_v8, %v198_v11  ;;  %v275_v26 = vmul.f32 %v654_v6, %v199_v12  ;;  %v212_v5 = vld [vmem:[%s652_s22 + $0x108] sm:$0xff]  ;;  %v213_v10 = vld [vmem:[%s652_s22 + $0x110] sm:$0xff] }
  0x1f   : > { %471 = vst [vmem:[%s683_s25 + $0x60] sm:$0xff] %v407_v15  ;;  %472 = vst [vmem:[%s683_s25 + $0x68] sm:$0xff] %v408_v16  ;;  %v410_v24 = vmax.f32 %v346_v17, 0.0  ;;  %v276_v27 = vmul.f32 %v658_v8, %v200_v13  ;;  %v347_v28 = vadd.f32 %v656_v7, %v271_v20  ;;  %v348_v29 = vadd.f32 %v660_v9, %v272_v21  ;;  %v214_v15 = vld [vmem:[%s652_s22 + $0x118] sm:$0xff]  ;;  %v215_v16 = vld [vmem:[%s652_s22 + $0x120] sm:$0xff] }
  0x20   : > { %473 = vst [vmem:[%s683_s25 + $0x70] sm:$0xff] %v409_v19  ;;  %v349_v30 = vadd.f32 %v656_v7, %v273_v22  ;;  %v277_v31 = vmul.f32 %v654_v6, %v201_v18  ;;  %v350_v32 = vadd.f32 %v660_v9, %v274_v25  ;;  %v351_v33 = vadd.f32 %v656_v7, %v275_v26  ;;  %v216_v17 = vld [vmem:[%s652_s22 + $0x128] sm:$0xff]  ;;  %v217_v22 = vld [vmem:[%s652_s22 + $0x130] sm:$0xff] }
  0x21   : > { %474 = vst [vmem:[%s683_s25 + $0x78] sm:$0xff] %v410_v24  ;;  %v352_v34 = vadd.f32 %v660_v9, %v276_v27  ;;  %v278_v35 = vmul.f32 %v658_v8, %v202_v23  ;;  %v411_v39 = vmax.f32 %v347_v28, 0.0  ;;  %v412_v40 = vmax.f32 %v348_v29, 0.0  ;;  %v218_v27 = vld [vmem:[%s652_s22 + $0x138] sm:$0xff] }
  0x22   : > { %v413_v41 = vmax.f32 %v349_v30, 0.0  ;;  %v353_v42 = vadd.f32 %v656_v7, %v277_v31  ;;  %v414_v46 = vmax.f32 %v350_v32, 0.0  ;;  %v415_v47 = vmax.f32 %v351_v33, 0.0 }
  0x23   : > { %v416_v48 = vmax.f32 %v352_v34, 0.0  ;;  %v354_v49 = vadd.f32 %v660_v9, %v278_v35  ;;  %475 = vst [vmem:[%s683_s25 + $0x80] sm:$0xff] %v411_v39  ;;  %476 = vst [vmem:[%s683_s25 + $0x88] sm:$0xff] %v412_v40  ;;  %v279_v52 = vmul.f32 %v654_v6, %v203_v36  ;;  %v280_v53 = vmul.f32 %v658_v8, %v204_v37  ;;  %v219_v40 = vld [vmem:[%s652_s22 + $0x140] sm:$0xff] }
  0x24   : > { %477 = vst [vmem:[%s683_s25 + $0x90] sm:$0xff] %v413_v41  ;;  %v417_v51 = vmax.f32 %v353_v42, 0.0  ;;  %v281_v54 = vmul.f32 %v654_v6, %v205_v38  ;;  %478 = vst [vmem:[%s683_s25 + $0x98] sm:$0xff] %v414_v46  ;;  %v282_v57 = vmul.f32 %v658_v8, %v206_v43  ;;  %v283_v58 = vmul.f32 %v654_v6, %v207_v44  ;;  %v220_v41 = vld [vmem:[%s652_s22 + $0x148] sm:$0xff]  ;;  %v221_v42 = vld [vmem:[%s652_s22 + $0x150] sm:$0xff] }
  0x25   : > { %479 = vst [vmem:[%s683_s25 + $0xa0] sm:$0xff] %v415_v47  ;;  %480 = vst [vmem:[%s683_s25 + $0xa8] sm:$0xff] %v416_v48  ;;  %v418_v56 = vmax.f32 %v354_v49, 0.0  ;;  %v284_v59 = vmul.f32 %v658_v8, %v208_v45  ;;  %v355_v60 = vadd.f32 %v656_v7, %v279_v52  ;;  %v356_v61 = vadd.f32 %v660_v9, %v280_v53  ;;  %v222_v47 = vld [vmem:[%s652_s22 + $0x158] sm:$0xff]  ;;  %v223_v48 = vld [vmem:[%s652_s22 + $0x160] sm:$0xff] }
  0x26   : > { %481 = vst [vmem:[%s683_s25 + $0xb0] sm:$0xff] %v417_v51  ;;  %v357_v62 = vadd.f32 %v656_v7, %v281_v54  ;;  %v285_v63 = vmul.f32 %v654_v6, %v209_v50  ;;  %v358_v0 = vadd.f32 %v660_v9, %v282_v57  ;;  %v359_v1 = vadd.f32 %v656_v7, %v283_v58  ;;  %v224_v49 = vld [vmem:[%s652_s22 + $0x168] sm:$0xff]  ;;  %v225_v54 = vld [vmem:[%s652_s22 + $0x170] sm:$0xff] }
  0x27   : > { %482 = vst [vmem:[%s683_s25 + $0xb8] sm:$0xff] %v418_v56  ;;  %v360_v2 = vadd.f32 %v660_v9, %v284_v59  ;;  %v286_v3 = vmul.f32 %v658_v8, %v210_v55  ;;  %v419_v11 = vmax.f32 %v355_v60, 0.0  ;;  %v420_v12 = vmax.f32 %v356_v61, 0.0  ;;  %v226_v59 = vld [vmem:[%s652_s22 + $0x178] sm:$0xff] }
  0x28   : > { %v421_v13 = vmax.f32 %v357_v62, 0.0  ;;  %v361_v14 = vadd.f32 %v656_v7, %v285_v63  ;;  %v422_v18 = vmax.f32 %v358_v0, 0.0  ;;  %v423_v19 = vmax.f32 %v359_v1, 0.0 }
  0x29   : > { %v424_v20 = vmax.f32 %v360_v2, 0.0  ;;  %v362_v21 = vadd.f32 %v660_v9, %v286_v3  ;;  %483 = vst [vmem:[%s683_s25 + $0xc0] sm:$0xff] %v419_v11  ;;  %484 = vst [vmem:[%s683_s25 + $0xc8] sm:$0xff] %v420_v12  ;;  %v287_v24 = vmul.f32 %v654_v6, %v211_v4  ;;  %v288_v25 = vmul.f32 %v658_v8, %v212_v5  ;;  %v227_v12 = vld [vmem:[%s652_s22 + $0x180] sm:$0xff] }
  0x2a   : > { %485 = vst [vmem:[%s683_s25 + $0xd0] sm:$0xff] %v421_v13  ;;  %v425_v23 = vmax.f32 %v361_v14, 0.0  ;;  %v289_v26 = vmul.f32 %v654_v6, %v213_v10  ;;  %486 = vst [vmem:[%s683_s25 + $0xd8] sm:$0xff] %v422_v18  ;;  %v290_v29 = vmul.f32 %v658_v8, %v214_v15  ;;  %v291_v30 = vmul.f32 %v654_v6, %v215_v16  ;;  %v228_v13 = vld [vmem:[%s652_s22 + $0x188] sm:$0xff]  ;;  %v229_v14 = vld [vmem:[%s652_s22 + $0x190] sm:$0xff] }
  0x2b   : > { %487 = vst [vmem:[%s683_s25 + $0xe0] sm:$0xff] %v423_v19  ;;  %488 = vst [vmem:[%s683_s25 + $0xe8] sm:$0xff] %v424_v20  ;;  %v426_v28 = vmax.f32 %v362_v21, 0.0  ;;  %v292_v31 = vmul.f32 %v658_v8, %v216_v17  ;;  %v363_v32 = vadd.f32 %v656_v7, %v287_v24  ;;  %v364_v33 = vadd.f32 %v660_v9, %v288_v25  ;;  %v230_v19 = vld [vmem:[%s652_s22 + $0x198] sm:$0xff]  ;;  %v231_v20 = vld [vmem:[%s652_s22 + $0x1a0] sm:$0xff] }
  0x2c   : > { %489 = vst [vmem:[%s683_s25 + $0xf0] sm:$0xff] %v425_v23  ;;  %v365_v34 = vadd.f32 %v656_v7, %v289_v26  ;;  %v293_v35 = vmul.f32 %v654_v6, %v217_v22  ;;  %v366_v36 = vadd.f32 %v660_v9, %v290_v29  ;;  %v367_v37 = vadd.f32 %v656_v7, %v291_v30  ;;  %v232_v21 = vld [vmem:[%s652_s22 + $0x1a8] sm:$0xff]  ;;  %v233_v26 = vld [vmem:[%s652_s22 + $0x1b0] sm:$0xff] }
  0x2d   : > { %490 = vst [vmem:[%s683_s25 + $0xf8] sm:$0xff] %v426_v28  ;;  %v368_v38 = vadd.f32 %v660_v9, %v292_v31  ;;  %v294_v39 = vmul.f32 %v658_v8, %v218_v27  ;;  %v427_v43 = vmax.f32 %v363_v32, 0.0  ;;  %v428_v44 = vmax.f32 %v364_v33, 0.0  ;;  %v234_v31 = vld [vmem:[%s652_s22 + $0x1b8] sm:$0xff] }
  0x2e   : > { %v429_v45 = vmax.f32 %v365_v34, 0.0  ;;  %v369_v46 = vadd.f32 %v656_v7, %v293_v35  ;;  %v430_v50 = vmax.f32 %v366_v36, 0.0  ;;  %v431_v51 = vmax.f32 %v367_v37, 0.0 }
  0x2f   : > { %v432_v52 = vmax.f32 %v368_v38, 0.0  ;;  %v370_v53 = vadd.f32 %v660_v9, %v294_v39  ;;  %491 = vst [vmem:[%s683_s25 + $0x100] sm:$0xff] %v427_v43  ;;  %492 = vst [vmem:[%s683_s25 + $0x108] sm:$0xff] %v428_v44  ;;  %v295_v56 = vmul.f32 %v654_v6, %v219_v40  ;;  %v296_v57 = vmul.f32 %v658_v8, %v220_v41  ;;  %v235_v44 = vld [vmem:[%s652_s22 + $0x1c0] sm:$0xff] }
  0x30   : > { %493 = vst [vmem:[%s683_s25 + $0x110] sm:$0xff] %v429_v45  ;;  %v433_v55 = vmax.f32 %v369_v46, 0.0  ;;  %v297_v58 = vmul.f32 %v654_v6, %v221_v42  ;;  %494 = vst [vmem:[%s683_s25 + $0x118] sm:$0xff] %v430_v50  ;;  %v298_v61 = vmul.f32 %v658_v8, %v222_v47  ;;  %v299_v62 = vmul.f32 %v654_v6, %v223_v48  ;;  %v236_v45 = vld [vmem:[%s652_s22 + $0x1c8] sm:$0xff]  ;;  %v237_v46 = vld [vmem:[%s652_s22 + $0x1d0] sm:$0xff] }
  0x31   : > { %495 = vst [vmem:[%s683_s25 + $0x120] sm:$0xff] %v431_v51  ;;  %496 = vst [vmem:[%s683_s25 + $0x128] sm:$0xff] %v432_v52  ;;  %v434_v60 = vmax.f32 %v370_v53, 0.0  ;;  %v300_v63 = vmul.f32 %v658_v8, %v224_v49  ;;  %v371_v0 = vadd.f32 %v656_v7, %v295_v56  ;;  %v372_v1 = vadd.f32 %v660_v9, %v296_v57  ;;  %v238_v51 = vld [vmem:[%s652_s22 + $0x1d8] sm:$0xff]  ;;  %v239_v52 = vld [vmem:[%s652_s22 + $0x1e0] sm:$0xff] }
  0x32   : > { %497 = vst [vmem:[%s683_s25 + $0x130] sm:$0xff] %v433_v55  ;;  %v373_v2 = vadd.f32 %v656_v7, %v297_v58  ;;  %v301_v3 = vmul.f32 %v654_v6, %v225_v54  ;;  %v374_v4 = vadd.f32 %v660_v9, %v298_v61  ;;  %v375_v5 = vadd.f32 %v656_v7, %v299_v62  ;;  %v240_v53 = vld [vmem:[%s652_s22 + $0x1e8] sm:$0xff]  ;;  %v241_v58 = vld [vmem:[%s652_s22 + $0x1f0] sm:$0xff] }
  0x33   : > { %498 = vst [vmem:[%s683_s25 + $0x138] sm:$0xff] %v434_v60  ;;  %v376_v10 = vadd.f32 %v660_v9, %v300_v63  ;;  %v302_v11 = vmul.f32 %v658_v8, %v226_v59  ;;  %v435_v15 = vmax.f32 %v371_v0, 0.0  ;;  %v436_v16 = vmax.f32 %v372_v1, 0.0  ;;  %v242_v63 = vld [vmem:[%s652_s22 + $0x1f8] sm:$0xff] }
  0x34   : > { %v437_v17 = vmax.f32 %v373_v2, 0.0  ;;  %v377_v18 = vadd.f32 %v656_v7, %v301_v3  ;;  %v438_v22 = vmax.f32 %v374_v4, 0.0  ;;  %v439_v23 = vmax.f32 %v375_v5, 0.0 }
  0x35   : > { %v440_v24 = vmax.f32 %v376_v10, 0.0  ;;  %v378_v25 = vadd.f32 %v660_v9, %v302_v11  ;;  %499 = vst [vmem:[%s683_s25 + $0x140] sm:$0xff] %v435_v15  ;;  %500 = vst [vmem:[%s683_s25 + $0x148] sm:$0xff] %v436_v16  ;;  %v303_v28 = vmul.f32 %v654_v6, %v227_v12  ;;  %v304_v29 = vmul.f32 %v658_v8, %v228_v13 }
  0x36   : > { %501 = vst [vmem:[%s683_s25 + $0x150] sm:$0xff] %v437_v17  ;;  %v441_v27 = vmax.f32 %v377_v18, 0.0  ;;  %v305_v30 = vmul.f32 %v654_v6, %v229_v14  ;;  %502 = vst [vmem:[%s683_s25 + $0x158] sm:$0xff] %v438_v22  ;;  %v306_v33 = vmul.f32 %v658_v8, %v230_v19  ;;  %v307_v34 = vmul.f32 %v654_v6, %v231_v20 }
  0x37   : > { %503 = vst [vmem:[%s683_s25 + $0x160] sm:$0xff] %v439_v23  ;;  %504 = vst [vmem:[%s683_s25 + $0x168] sm:$0xff] %v440_v24  ;;  %v442_v32 = vmax.f32 %v378_v25, 0.0  ;;  %v308_v35 = vmul.f32 %v658_v8, %v232_v21  ;;  %v379_v36 = vadd.f32 %v656_v7, %v303_v28  ;;  %v380_v37 = vadd.f32 %v660_v9, %v304_v29 }
  0x38   : > { %505 = vst [vmem:[%s683_s25 + $0x170] sm:$0xff] %v441_v27  ;;  %v381_v38 = vadd.f32 %v656_v7, %v305_v30  ;;  %v309_v39 = vmul.f32 %v654_v6, %v233_v26  ;;  %v382_v40 = vadd.f32 %v660_v9, %v306_v33  ;;  %v383_v41 = vadd.f32 %v656_v7, %v307_v34 }
  0x39   : > { %506 = vst [vmem:[%s683_s25 + $0x178] sm:$0xff] %v442_v32  ;;  %v384_v42 = vadd.f32 %v660_v9, %v308_v35  ;;  %v310_v43 = vmul.f32 %v658_v8, %v234_v31  ;;  %v443_v47 = vmax.f32 %v379_v36, 0.0  ;;  %v444_v48 = vmax.f32 %v380_v37, 0.0 }
  0x3a   : > { %v445_v49 = vmax.f32 %v381_v38, 0.0  ;;  %v385_v50 = vadd.f32 %v656_v7, %v309_v39  ;;  %v446_v54 = vmax.f32 %v382_v40, 0.0  ;;  %v447_v55 = vmax.f32 %v383_v41, 0.0 }
  0x3b   : > { %v448_v56 = vmax.f32 %v384_v42, 0.0  ;;  %v386_v57 = vadd.f32 %v660_v9, %v310_v43  ;;  %507 = vst [vmem:[%s683_s25 + $0x180] sm:$0xff] %v443_v47  ;;  %508 = vst [vmem:[%s683_s25 + $0x188] sm:$0xff] %v444_v48  ;;  %v311_v60 = vmul.f32 %v654_v6, %v235_v44  ;;  %v312_v61 = vmul.f32 %v658_v8, %v236_v45 }
  0x3c   : > { %509 = vst [vmem:[%s683_s25 + $0x190] sm:$0xff] %v445_v49  ;;  %v449_v59 = vmax.f32 %v385_v50, 0.0  ;;  %v313_v62 = vmul.f32 %v654_v6, %v237_v46  ;;  %510 = vst [vmem:[%s683_s25 + $0x198] sm:$0xff] %v446_v54  ;;  %v314_v1 = vmul.f32 %v658_v8, %v238_v51  ;;  %v315_v2 = vmul.f32 %v654_v6, %v239_v52 }
  0x3d   : > { %511 = vst [vmem:[%s683_s25 + $0x1a0] sm:$0xff] %v447_v55  ;;  %512 = vst [vmem:[%s683_s25 + $0x1a8] sm:$0xff] %v448_v56  ;;  %v450_v0 = vmax.f32 %v386_v57, 0.0  ;;  %v316_v3 = vmul.f32 %v658_v8, %v240_v53  ;;  %v387_v4 = vadd.f32 %v656_v7, %v311_v60  ;;  %v388_v5 = vadd.f32 %v660_v9, %v312_v61 }
  0x3e   : > { %513 = vst [vmem:[%s683_s25 + $0x1b0] sm:$0xff] %v449_v59  ;;  %v389_v10 = vadd.f32 %v656_v7, %v313_v62  ;;  %v317_v11 = vmul.f32 %v654_v6, %v241_v58  ;;  %v390_v12 = vadd.f32 %v660_v9, %v314_v1  ;;  %v391_v13 = vadd.f32 %v656_v7, %v315_v2 }
  0x3f   : > { %514 = vst [vmem:[%s683_s25 + $0x1b8] sm:$0xff] %v450_v0  ;;  %v392_v14 = vadd.f32 %v660_v9, %v316_v3  ;;  %v318_v15 = vmul.f32 %v658_v8, %v242_v63  ;;  %v451_v16 = vmax.f32 %v387_v4, 0.0  ;;  %v452_v17 = vmax.f32 %v388_v5, 0.0 }
  0x40   : > { %v453_v18 = vmax.f32 %v389_v10, 0.0  ;;  %v393_v6 = vadd.f32 %v656_v7, %v317_v11  ;;  %v454_v19 = vmax.f32 %v390_v12, 0.0  ;;  %v455_v20 = vmax.f32 %v391_v13, 0.0 }
  0x41   : > { %v456_v21 = vmax.f32 %v392_v14, 0.0  ;;  %v394_v22 = vadd.f32 %v660_v9, %v318_v15  ;;  %515 = vst [vmem:[%s683_s25 + $0x1c0] sm:$0xff] %v451_v16  ;;  %516 = vst [vmem:[%s683_s25 + $0x1c8] sm:$0xff] %v452_v17 }
  0x42   : > { %517 = vst [vmem:[%s683_s25 + $0x1d0] sm:$0xff] %v453_v18  ;;  %v457_v23 = vmax.f32 %v393_v6, 0.0  ;;  %518 = vst [vmem:[%s683_s25 + $0x1d8] sm:$0xff] %v454_v19 }
  0x43   : > { %519 = vst [vmem:[%s683_s25 + $0x1e0] sm:$0xff] %v455_v20  ;;  %520 = vst [vmem:[%s683_s25 + $0x1e8] sm:$0xff] %v456_v21  ;;  %v458_v8 = vmax.f32 %v394_v22, 0.0 }
  0x44   : > { %521 = vst [vmem:[%s683_s25 + $0x1f0] sm:$0xff] %v457_v23 }
  0x45   : > { %522 = vst [vmem:[%s683_s25 + $0x1f8] sm:$0xff] %v458_v8 }
  0x46 PF: > { %s13_s12 = sadd.s32 1, %s610_s12  }
  0x47   : > { %p10_p4 = scmp.ge.s32.totalorder %s13_s12, 4  }
  0x49   :  { %12 = sbr.rel (!%p10_p4) target bundleno = 1 (0x1), region = 62 }

// kernel: da_head_forward.16
= control target key start
LH: loop header
LB: loop body
LE: loop exit
PB: predicated region body
PF: predicated region fallthrough
CT: control target
= control target key end

     0   :  { %s1552_s9 = smov 0   ;;  %s2145_s0 = inlined_call_operand.vmem [shape: f32[2,256,128], index: 0, kind: input, shape index: {}]   ;;  %s2146_s1 = inlined_call_operand.vmem [shape: f32[1,128], index: 1, kind: input, shape index: {}]   ;;  %s2147_s2 = inlined_call_operand.vmem [shape: f32[2,256,128], index: 2, kind: output, shape index: {}]  }
   0x1 LB: > { %s1011_s10 = sadd.s32 4294967295, %s1535_s9   ;;  %p1015_p0 = scmp.ge.s32.totalorder %s1535_s9, 1  ;;  %s1535_s9 = sphi %s1552_s9, %s12_s9  }
   0x2   : > { %p112_p1 = scmp.lt.s32.totalorder %s1535_s9, 3 }
   0x4   : > { %p113_p2 = pnand %p1015_p0, %p112_p1 }
   0x5   : > { %p134_p3 = scmp.lt.s32.totalorder (!%p113_p2), %s1011_s10, 1 }
   0x6   : > { %116 = sbr.rel (%p113_p2) target bundleno = 1157 (0x485), region = 28 }
   0xd   : > { %s2149_s10 = smov (!%p134_p3, %s1011_s10), 1 }
   0xe   : > { %s1023_s11 = sshll.u32 %s2149_s10, 8 }
   0xf   : > { %s1568_s14 = scalar_lea.vmem %s2145_s0, %s1023_s11  ;;  %s1990_s19 = scalar_lea.vmem %s2147_s2, %s1023_s11 }
  0x10   : > { %v1571_v0 = vld [vmem:[%s1568_s14] sm:$0xff]  ;;  %v145_v2 = vld [vmem:[%s1568_s14 + $0x8] sm:$0xff]  ;;  %v162_v6 = vld [vmem:[%s1568_s14 + $0x90] sm:$0xff] }
  0x11   : > { %v160_v1 = vld [vmem:[%s1568_s14 + $0x80] sm:$0xff]  ;;  %v161_v4 = vld [vmem:[%s1568_s14 + $0x88] sm:$0xff]  ;;  %v1235_v5 = vpack.c.bf16 %v145_v2, %v1571_v0  ;;  %v163_v7 = vld [vmem:[%s1568_s14 + $0x98] sm:$0xff] }
  0x12   : > { %v1321_v3 = vpack.i.bf16 %v1571_v0, %v160_v1  ;;  %v1233_v8 = vpack.c.bf16 %v161_v4, %v160_v1  ;;  %v1323_v9 = vpack.i.bf16 %v145_v2, %v161_v4  ;;  %v1237_v10 = vpack.c.bf16 %v163_v7, %v162_v6  ;;  %v146_v11 = vld [vmem:[%s1568_s14 + $0x10] sm:$0xff]  ;;  %v147_v12 = vld [vmem:[%s1568_s14 + $0x18] sm:$0xff]  ;;  %v164_v13 = vld [vmem:[%s1568_s14 + $0xa0] sm:$0xff] }
  0x13   : > { %v165_v14 = vld [vmem:[%s1568_s14 + $0xa8] sm:$0xff]  ;;  %v1585_v15 = vld [vmem:[%s1568_s14 + $0x40] sm:$0xff]  ;;  %v1239_v16 = vpack.c.bf16 %v147_v12, %v146_v11  ;;  %v1325_v18 = vpack.i.bf16 %v146_v11, %v162_v6  ;;  %v166_v21 = vld [vmem:[%s1568_s14 + $0xb0] sm:$0xff]  ;;  %v1327_v25 = vpack.i.bf16 %v147_v12, %v163_v7 }
  0x14   : > { %1322 = vxpose.xlu0.b32.start [1/16] %v1321_v3, 128  ;;  %1234 = vmatprep.subr.bf16.mxu0 %v1233_v8  ;;  %v1241_v17 = vpack.c.bf16 %v165_v14, %v164_v13  ;;  %v148_v19 = vld [vmem:[%s1568_s14 + $0x20] sm:$0xff]  ;;  %v149_v20 = vld [vmem:[%s1568_s14 + $0x28] sm:$0xff]  ;;  %v167_v22 = vld [vmem:[%s1568_s14 + $0xb8] sm:$0xff] }
  0x15   : > { %1236 = vmatpush3.bf16.msra.mxu0 %v1235_v5  ;;  %1197 = vmatprep.mubr.f32.mxu1 %v1585_v15  ;;  %v1243_v23 = vpack.c.bf16 %v149_v20, %v148_v19  ;;  %v1245_v24 = vpack.c.bf16 %v167_v22, %v166_v21  ;;  %v150_v26 = vld [vmem:[%s1568_s14 + $0x30] sm:$0xff]  ;;  %v151_v27 = vld [vmem:[%s1568_s14 + $0x38] sm:$0xff]  ;;  %v168_v28 = vld [vmem:[%s1568_s14 + $0xc0] sm:$0xff]  ;;  %v1329_v32 = vpack.i.bf16 %v148_v19, %v164_v13 }
  0x16   : > { %1238 = vmatprep.subr.bf16.mxu0 %v1237_v10  ;;  %v169_v29 = vld [vmem:[%s1568_s14 + $0xc8] sm:$0xff]  ;;  %v1247_v30 = vpack.c.bf16 %v151_v27, %v150_v26  ;;  %v170_v34 = vld [vmem:[%s1568_s14 + $0xd0] sm:$0xff]  ;;  %v171_v35 = vld [vmem:[%s1568_s14 + $0xd8] sm:$0xff]  ;;  %v1331_v38 = vpack.i.bf16 %v149_v20, %v165_v14  ;;  %v1333_v45 = vpack.i.bf16 %v150_v26, %v166_v21  ;;  %v1335_v52 = vpack.i.bf16 %v151_v27, %v167_v22 }
  0x17   : > { %v1249_v31 = vpack.c.bf16 %v169_v29, %v168_v28  ;;  %v1597_v33 = vld [vmem:[%s1568_s14 + $0x48] sm:$0xff]  ;;  %v1253_v37 = vpack.c.bf16 %v171_v35, %v170_v34  ;;  %v1604_v39 = vld [vmem:[%s1568_s14 + $0x50] sm:$0xff]  ;;  %v1607_v40 = vld [vmem:[%s1568_s14 + $0x58] sm:$0xff]  ;;  %v1337_v56 = vpack.i.bf16 %v1585_v15, %v168_v28 }
  0x18   : > { %1324 = vxpose.xlu0.b32.cont [2/16] %v1323_v9, 128  ;;  %v1251_v36 = vpack.c.bf16 %v1597_v33, %v1585_v15  ;;  %v1610_v41 = vld [vmem:[%s1568_s14 + $0xe0] sm:$0xff]  ;;  %v1613_v42 = vld [vmem:[%s1568_s14 + $0xe8] sm:$0xff]  ;;  %v1255_v43 = vpack.c.bf16 %v1607_v40, %v1604_v39  ;;  %v1626_v48 = vld [vmem:[%s1568_s14 + $0xf0] sm:$0xff]  ;;  %v1339_v57 = vpack.i.bf16 %v1597_v33, %v169_v29  ;;  %v1341_v58 = vpack.i.bf16 %v1604_v39, %v170_v34 }
  0x19   : > { %1240 = vmatpush3.bf16.msra.mxu0 %v1239_v16  ;;  %v1257_v44 = vpack.c.bf16 %v1613_v42, %v1610_v41  ;;  %v1620_v46 = vld [vmem:[%s1568_s14 + $0x60] sm:$0xff]  ;;  %v1623_v47 = vld [vmem:[%s1568_s14 + $0x68] sm:$0xff]  ;;  %v1629_v49 = vld [vmem:[%s1568_s14 + $0xf8] sm:$0xff]  ;;  %v1343_v59 = vpack.i.bf16 %v1607_v40, %v171_v35 }
  0x1a   : > { %1242 = vmatprep.subr.bf16.mxu0 %v1241_v17  ;;  %v1259_v50 = vpack.c.bf16 %v1623_v47, %v1620_v46  ;;  %v1261_v51 = vpack.c.bf16 %v1629_v49, %v1626_v48  ;;  %v1636_v53 = vld [vmem:[%s1568_s14 + $0x70] sm:$0xff]  ;;  %v1639_v54 = vld [vmem:[%s1568_s14 + $0x78] sm:$0xff]  ;;  %v1345_v60 = vpack.i.bf16 %v1620_v46, %v1610_v41  ;;  %v1347_v61 = vpack.i.bf16 %v1623_v47, %v1613_v42 }
  0x1b   : > { %v1263_v55 = vpack.c.bf16 %v1639_v54, %v1636_v53  ;;  %v1349_v62 = vpack.i.bf16 %v1636_v53, %v1626_v48  ;;  %v1351_v63 = vpack.i.bf16 %v1639_v54, %v1629_v49 }
  0x1c   : > { %1326 = vxpose.xlu0.b32.cont [3/16] %v1325_v18, 128 }
  0x1d   : > { %1244 = vmatpush3.bf16.msra.mxu0 %v1243_v23 }
  0x1e   : > { %1246 = vmatprep.subr.bf16.mxu0 %v1245_v24 }
  0x20   : > { %1328 = vxpose.xlu0.b32.cont [4/16] %v1327_v25, 128 }
  0x21   : > { %1248 = vmatpush3.bf16.msra.mxu0 %v1247_v30 }
  0x22   : > { %1250 = vmatprep.subr.bf16.mxu0 %v1249_v31 }
  0x24   : > { %1330 = vxpose.xlu0.b32.cont [5/16] %v1329_v32, 128 }
  0x25   : > { %1252 = vmatpush3.bf16.msra.mxu0 %v1251_v36 }
  0x26   : > { %1254 = vmatprep.subr.bf16.mxu0 %v1253_v37 }
  0x28   : > { %1332 = vxpose.xlu0.b32.cont [6/16] %v1331_v38, 128 }
  0x29   : > { %1256 = vmatpush3.bf16.msra.mxu0 %v1255_v43 }
  0x2a   : > { %1258 = vmatprep.subr.bf16.mxu0 %v1257_v44 }
  0x2c   : > { %1334 = vxpose.xlu0.b32.cont [7/16] %v1333_v45, 128 }
  0x2d   : > { %1260 = vmatpush3.bf16.msra.mxu0 %v1259_v50 }
  0x2e   : > { %1262 = vmatprep.subr.bf16.mxu0 %v1261_v51 }
  0x30   : > { %1336 = vxpose.xlu0.b32.cont [8/16] %v1335_v52, 128 }
  0x31   : > { %1264 = vmatpush3.bf16.msra.mxu0 %v1263_v55 }
  0x34   : > { %1338 = vxpose.xlu0.b32.cont [9/16] %v1337_v56, 128 }
  0x38   : > { %1340 = vxpose.xlu0.b32.cont [10/16] %v1339_v57, 128 }
  0x3c   : > { %1342 = vxpose.xlu0.b32.cont [11/16] %v1341_v58, 128 }
  0x40   : > { %1344 = vxpose.xlu0.b32.cont [12/16] %v1343_v59, 128 }
  0x44   : > { %1346 = vxpose.xlu0.b32.cont [13/16] %v1345_v60, 128 }
  0x48   : > { %1348 = vxpose.xlu0.b32.cont [14/16] %v1347_v61, 128 }
  0x4c   : > { %1350 = vxpose.xlu0.b32.cont [15/16] %v1349_v62, 128 }
  0x50   : > { %1352 = vxpose.xlu0.b32.end [16/16] %v1351_v63, 128 }
  0x94   : > { %v1353_v1 = vpop.trf.xlu0 }
  0x95   : > { %v1354_v2 = vunpack.i.l.bf16 %v1353_v1  ;;  %v1357_v3 = vunpack.i.h.bf16 %v1353_v1 }
  0x97   : > { %304 = vmatprep.mubr.f32.mxu0 %v1354_v2 }
  0x98   : > { %v1358_v4 = vpop.trf.xlu0  ;;  %305 = vmatmul.mubr.f32.vlgmr.msra.gmra.mrb[0].mxu0 %v1357_v3 }
  0x99   : > { %v1359_v5 = vunpack.i.l.bf16 %v1358_v4  ;;  %v1362_v6 = vunpack.i.h.bf16 %v1358_v4 }
  0x9b   : > { %309 = vmatprep.mubr.f32.mxu0 %v1359_v5 }
  0x9c   : > { %v1363_v7 = vpop.trf.xlu0  ;;  %310 = vmatmul.mubr.f32.gmra.mrb[2].mxu0 %v1362_v6 }
  0x9d   : > { %v1364_v8 = vunpack.i.l.bf16 %v1363_v7  ;;  %v1367_v9 = vunpack.i.h.bf16 %v1363_v7 }
  0x9f   : > { %314 = vmatprep.mubr.f32.mxu0 %v1364_v8 }
  0xa0   : > { %v1368_v10 = vpop.trf.xlu0  ;;  %315 = vmatmul.mubr.f32.gmra.mrb[4].mxu0 %v1367_v9 }
  0xa1   : > { %v1369_v11 = vunpack.i.l.bf16 %v1368_v10  ;;  %v1372_v12 = vunpack.i.h.bf16 %v1368_v10 }
  0xa3   : > { %319 = vmatprep.mubr.f32.mxu0 %v1369_v11 }
  0xa4   : > { %v1373_v13 = vpop.trf.xlu0  ;;  %320 = vmatmul.mubr.f32.gmra.mrb[6].mxu0 %v1372_v12 }
  0xa5   : > { %v1374_v14 = vunpack.i.l.bf16 %v1373_v13  ;;  %v1377_v15 = vunpack.i.h.bf16 %v1373_v13 }
  0xa7   : > { %324 = vmatprep.mubr.f32.mxu0 %v1374_v14 }
  0xa8   : > { %v1378_v16 = vpop.trf.xlu0  ;;  %325 = vmatmul.mubr.f32.gmra.mrb[8].mxu0 %v1377_v15 }
  0xa9   : > { %v1379_v17 = vunpack.i.l.bf16 %v1378_v16  ;;  %v1382_v18 = vunpack.i.h.bf16 %v1378_v16 }
  0xab   : > { %329 = vmatprep.mubr.f32.mxu0 %v1379_v17 }
  0xac   : > { %v1383_v19 = vpop.trf.xlu0  ;;  %330 = vmatmul.mubr.f32.gmra.mrb[10].mxu0 %v1382_v18 }
  0xad   : > { %v1384_v20 = vunpack.i.l.bf16 %v1383_v19  ;;  %v1387_v21 = vunpack.i.h.bf16 %v1383_v19 }
  0xaf   : > { %334 = vmatprep.mubr.f32.mxu0 %v1384_v20 }
  0xb0   : > { %v1388_v22 = vpop.trf.xlu0  ;;  %335 = vmatmul.mubr.f32.gmra.mrb[12].mxu0 %v1387_v21 }
  0xb1   : > { %v1389_v23 = vunpack.i.l.bf16 %v1388_v22  ;;  %v1392_v24 = vunpack.i.h.bf16 %v1388_v22 }
  0xb3   : > { %339 = vmatprep.mubr.f32.mxu0 %v1389_v23 }
  0xb4   : > { %v1393_v25 = vpop.trf.xlu0  ;;  %340 = vmatmul.mubr.f32.gmra.mrb[14].mxu0 %v1392_v24 }
  0xb5   : > { %v1394_v26 = vunpack.i.l.bf16 %v1393_v25  ;;  %v1397_v27 = vunpack.i.h.bf16 %v1393_v25 }
  0xb7   : > { %344 = vmatprep.mubr.f32.mxu0 %v1394_v26 }
  0xb8   : > { %v1398_v28 = vpop.trf.xlu0  ;;  %345 = vmatmul.mubr.f32.gmra.mrb[16].mxu0 %v1397_v27 }
  0xb9   : > { %v1399_v29 = vunpack.i.l.bf16 %v1398_v28  ;;  %v1402_v30 = vunpack.i.h.bf16 %v1398_v28 }
  0xbb   : > { %349 = vmatprep.mubr.f32.mxu0 %v1399_v29 }
  0xbc   : > { %v1403_v31 = vpop.trf.xlu0  ;;  %350 = vmatmul.mubr.f32.gmra.mrb[18].mxu0 %v1402_v30 }
  0xbd   : > { %v1404_v32 = vunpack.i.l.bf16 %v1403_v31  ;;  %v1407_v34 = vunpack.i.h.bf16 %v1403_v31 }
  0xbf   : > { %354 = vmatprep.mubr.f32.mxu0 %v1404_v32 }
  0xc0   : > { %v1408_v35 = vpop.trf.xlu0  ;;  %355 = vmatmul.mubr.f32.gmra.mrb[20].mxu0 %v1407_v34 }
  0xc1   : > { %v1409_v36 = vunpack.i.l.bf16 %v1408_v35  ;;  %v1412_v37 = vunpack.i.h.bf16 %v1408_v35 }
  0xc3   : > { %359 = vmatprep.mubr.f32.mxu0 %v1409_v36 }
  0xc4   : > { %v1413_v38 = vpop.trf.xlu0  ;;  %360 = vmatmul.mubr.f32.gmra.mrb[22].mxu0 %v1412_v37 }
  0xc5   : > { %v1414_v43 = vunpack.i.l.bf16 %v1413_v38  ;;  %v1417_v44 = vunpack.i.h.bf16 %v1413_v38 }
  0xc7   : > { %364 = vmatprep.mubr.f32.mxu0 %v1414_v43 }
  0xc8   : > { %v1418_v45 = vpop.trf.xlu0  ;;  %365 = vmatmul.mubr.f32.gmra.mrb[24].mxu0 %v1417_v44 }
  0xc9   : > { %v1419_v50 = vunpack.i.l.bf16 %v1418_v45  ;;  %v1422_v51 = vunpack.i.h.bf16 %v1418_v45 }
  0xcb   : > { %369 = vmatprep.mubr.f32.mxu0 %v1419_v50 }
  0xcc   : > { %v1423_v52 = vpop.trf.xlu0  ;;  %370 = vmatmul.mubr.f32.gmra.mrb[26].mxu0 %v1422_v51 }
  0xcd   : > { %v1424_v55 = vunpack.i.l.bf16 %v1423_v52  ;;  %v1427_v56 = vunpack.i.h.bf16 %v1423_v52 }
  0xcf   : > { %374 = vmatprep.mubr.f32.mxu0 %v1424_v55  ;;  %v433_v55 = vlaneseq }
  0xd0   : > { %v1428_v57 = vpop.trf.xlu0  ;;  %375 = vmatmul.mubr.f32.gmra.mrb[28].mxu0 %v1427_v56 }
  0xd1   : > { %v1429_v58 = vunpack.i.l.bf16 %v1428_v57  ;;  %v1432_v59 = vunpack.i.h.bf16 %v1428_v57  ;;  %v1704_v56 = vand.u32 127, %v433_v55 }
  0xd3   : > { %379 = vmatprep.mubr.f32.mxu0 %v1429_v58  ;;  %vm435_vm0 = vcmp.lt.s32.totalorder %v1704_v56, 8 }
  0xd4   : > { %380 = vmatmul.mubr.f32.gmra.mrb[30].mxu0 %v1432_v59 }
  0xd5   : > { %1185 = vmatprep.mubr.f32.mxu0 %v1571_v0 }
 0x16b   : > { %v1057_v60 = vpop.f32.mrb[0].mxu0 }
 0x16c   : > { %v1058_v61 = vpop.f32.mrb[1].mxu0 }
 0x16d   : > { %v1656_v62 = vadd.f32 %v1058_v61, %v1057_v60 }
 0x16f   : > { %v1060_v63 = vpop.f32.mrb[2].mxu0  ;;  %385 = vmax.xlane.f32.xlu1 %v1656_v62 }
 0x170   : > { %v1061_v1 = vpop.f32.mrb[3].mxu0 }
 0x171   : > { %v1659_v2 = vadd.f32 %v1061_v1, %v1060_v63 }
 0x173   : > { %v1063_v3 = vpop.f32.mrb[4].mxu0  ;;  %387 = vmax.xlane.f32.xlu1 %v1659_v2 }
 0x174   : > { %v1064_v4 = vpop.f32.mrb[5].mxu0 }
 0x175   : > { %v1662_v5 = vadd.f32 %v1064_v4, %v1063_v3 }
 0x177   : > { %v1066_v6 = vpop.f32.mrb[6].mxu0  ;;  %389 = vmax.xlane.f32.xlu1 %v1662_v5 }
 0x178   : > { %v1067_v0 = vpop.f32.mrb[7].mxu0 }
 0x179   : > { %v1665_v7 = vadd.f32 %v1067_v0, %v1066_v6 }
 0x17b   : > { %v1069_v8 = vpop.f32.mrb[8].mxu0  ;;  %391 = vmax.xlane.f32.xlu1 %v1665_v7 }
 0x17c   : > { %v1070_v9 = vpop.f32.mrb[9].mxu0 }
 0x17d   : > { %v1668_v10 = vadd.f32 %v1070_v9, %v1069_v8 }
 0x17f   : > { %v1072_v11 = vpop.f32.mrb[10].mxu0  ;;  %393 = vmax.xlane.f32.xlu1 %v1668_v10 }
 0x180   : > { %v1073_v12 = vpop.f32.mrb[11].mxu0 }
 0x181   : > { %v1671_v13 = vadd.f32 %v1073_v12, %v1072_v11 }
 0x183   : > { %v1075_v14 = vpop.f32.mrb[12].mxu0  ;;  %395 = vmax.xlane.f32.xlu1 %v1671_v13 }
 0x184   : > { %v1076_v15 = vpop.f32.mrb[13].mxu0 }
 0x185   : > { %v1674_v16 = vadd.f32 %v1076_v15, %v1075_v14 }
 0x187   : > { %v1078_v17 = vpop.f32.mrb[14].mxu0  ;;  %397 = vmax.xlane.f32.xlu1 %v1674_v16 }
 0x188   : > { %v1079_v18 = vpop.f32.mrb[15].mxu0 }
 0x189   : > { %v1677_v19 = vadd.f32 %v1079_v18, %v1078_v17 }
 0x18b   : > { %v1081_v20 = vpop.f32.mrb[16].mxu0  ;;  %399 = vmax.xlane.f32.xlu1 %v1677_v19 }
 0x18c   : > { %v1082_v21 = vpop.f32.mrb[17].mxu0 }
 0x18d   : > { %v1680_v22 = vadd.f32 %v1082_v21, %v1081_v20 }
 0x18f   : > { %v1084_v23 = vpop.f32.mrb[18].mxu0  ;;  %401 = vmax.xlane.f32.xlu1 %v1680_v22 }
 0x190   : > { %v1085_v24 = vpop.f32.mrb[19].mxu0 }
 0x191   : > { %v1683_v25 = vadd.f32 %v1085_v24, %v1084_v23 }
 0x193   : > { %v1087_v26 = vpop.f32.mrb[20].mxu0  ;;  %403 = vmax.xlane.f32.xlu1 %v1683_v25 }
 0x194   : > { %v1088_v27 = vpop.f32.mrb[21].mxu0 }
 0x195   : > { %v1686_v28 = vadd.f32 %v1088_v27, %v1087_v26 }
 0x197   : > { %v1090_v29 = vpop.f32.mrb[22].mxu0  ;;  %405 = vmax.xlane.f32.xlu1 %v1686_v28 }
 0x198   : > { %v1091_v30 = vpop.f32.mrb[23].mxu0 }
 0x199   : > { %v1689_v31 = vadd.f32 %v1091_v30, %v1090_v29 }
 0x19b   : > { %v1093_v32 = vpop.f32.mrb[24].mxu0  ;;  %407 = vmax.xlane.f32.xlu1 %v1689_v31 }
 0x19c   : > { %v1094_v34 = vpop.f32.mrb[25].mxu0 }
 0x19d   : > { %v1692_v35 = vadd.f32 %v1094_v34, %v1093_v32 }
 0x19f   : > { %v1096_v36 = vpop.f32.mrb[26].mxu0  ;;  %409 = vmax.xlane.f32.xlu1 %v1692_v35 }
 0x1a0   : > { %v1097_v37 = vpop.f32.mrb[27].mxu0 }
 0x1a1   : > { %v1695_v38 = vadd.f32 %v1097_v37, %v1096_v36 }
 0x1a3   : > { %v1099_v43 = vpop.f32.mrb[28].mxu0  ;;  %411 = vmax.xlane.f32.xlu1 %v1695_v38 }
 0x1a4   : > { %v1100_v44 = vpop.f32.mrb[29].mxu0 }
 0x1a5   : > { %v1698_v45 = vadd.f32 %v1100_v44, %v1099_v43 }
 0x1a7   : > { %v1102_v50 = vpop.f32.mrb[30].mxu0  ;;  %413 = vmax.xlane.f32.xlu1 %v1698_v45 }
 0x1a8   : > { %v1103_v51 = vpop.f32.mrb[31].mxu0 }
 0x1a9   : > { %v1701_v52 = vadd.f32 %v1103_v51, %v1102_v50 }
 0x1ab   : > { %415 = vmax.xlane.f32.xlu1 %v1701_v52 }
 0x1fc   : > { %v386_v57 = vpop.xlane.xlu1 %385 }
 0x1fd   : > { %v417_v58 = vsub.f32 %v386_v57, %v1656_v62 }
 0x1ff   : > { %v1710_v59 = vsel %vm435_vm0, %v417_v58, -inf }
 0x200   : > { %452 = vmax.xlane.f32.xlu0 %v1710_v59  ;;  %v388_v60 = vpop.xlane.xlu1 %387 }
 0x201   : > { %v418_v61 = vsub.f32 %v388_v60, %v1659_v2 }
 0x203   : > { %v1716_v63 = vsel %vm435_vm0, %v418_v61, -inf }
 0x204   : > { %454 = vmax.xlane.f32.xlu1 %v1716_v63  ;;  %v390_v1 = vpop.xlane.xlu1 %389 }
 0x205   : > { %v419_v3 = vsub.f32 %v390_v1, %v1662_v5 }
 0x207   : > { %v1722_v62 = vsel %vm435_vm0, %v419_v3, -inf }
 0x208   : > { %456 = vmax.xlane.f32.xlu1 %v1722_v62  ;;  %v392_v4 = vpop.xlane.xlu1 %391 }
 0x209   : > { %v420_v6 = vsub.f32 %v392_v4, %v1665_v7 }
 0x20b   : > { %v1728_v2 = vsel %vm435_vm0, %v420_v6, -inf }
 0x20c   : > { %458 = vmax.xlane.f32.xlu1 %v1728_v2  ;;  %v394_v0 = vpop.xlane.xlu1 %393 }
 0x20d   : > { %v421_v8 = vsub.f32 %v394_v0, %v1668_v10 }
 0x20f   : > { %v1734_v5 = vsel %vm435_vm0, %v421_v8, -inf }
 0x210   : > { %460 = vmax.xlane.f32.xlu1 %v1734_v5  ;;  %v396_v9 = vpop.xlane.xlu1 %395 }
 0x211   : > { %v422_v11 = vsub.f32 %v396_v9, %v1671_v13 }
 0x213   : > { %v1740_v7 = vsel %vm435_vm0, %v422_v11, -inf }
 0x214   : > { %462 = vmax.xlane.f32.xlu1 %v1740_v7  ;;  %v398_v12 = vpop.xlane.xlu1 %397 }
 0x215   : > { %v423_v14 = vsub.f32 %v398_v12, %v1674_v16 }
 0x217   : > { %v1746_v10 = vsel %vm435_vm0, %v423_v14, -inf }
 0x218   : > { %464 = vmax.xlane.f32.xlu1 %v1746_v10  ;;  %v400_v15 = vpop.xlane.xlu1 %399 }
 0x219   : > { %v424_v17 = vsub.f32 %v400_v15, %v1677_v19 }
 0x21b   : > { %v1752_v13 = vsel %vm435_vm0, %v424_v17, -inf }
 0x21c   : > { %466 = vmax.xlane.f32.xlu1 %v1752_v13  ;;  %v402_v18 = vpop.xlane.xlu1 %401 }
 0x21d   : > { %v425_v20 = vsub.f32 %v402_v18, %v1680_v22 }
 0x21f   : > { %v1758_v16 = vsel %vm435_vm0, %v425_v20, -inf }
 0x220   : > { %468 = vmax.xlane.f32.xlu1 %v1758_v16  ;;  %v404_v21 = vpop.xlane.xlu1 %403 }
 0x221   : > { %v426_v23 = vsub.f32 %v404_v21, %v1683_v25 }
 0x223   : > { %v1764_v19 = vsel %vm435_vm0, %v426_v23, -inf }
 0x224   : > { %470 = vmax.xlane.f32.xlu1 %v1764_v19  ;;  %v406_v24 = vpop.xlane.xlu1 %405 }
 0x225   : > { %v427_v26 = vsub.f32 %v406_v24, %v1686_v28 }
 0x227   : > { %v1770_v22 = vsel %vm435_vm0, %v427_v26, -inf }
 0x228   : > { %472 = vmax.xlane.f32.xlu1 %v1770_v22  ;;  %v408_v27 = vpop.xlane.xlu1 %407 }
 0x229   : > { %v428_v29 = vsub.f32 %v408_v27, %v1689_v31 }
 0x22b   : > { %v1776_v25 = vsel %vm435_vm0, %v428_v29, -inf }
 0x22c   : > { %474 = vmax.xlane.f32.xlu1 %v1776_v25  ;;  %v410_v30 = vpop.xlane.xlu1 %409 }
 0x22d   : > { %v429_v32 = vsub.f32 %v410_v30, %v1692_v35 }
 0x22f   : > { %v1782_v28 = vsel %vm435_vm0, %v429_v32, -inf }
 0x230   : > { %476 = vmax.xlane.f32.xlu1 %v1782_v28  ;;  %v412_v34 = vpop.xlane.xlu1 %411 }
 0x231   : > { %v430_v36 = vsub.f32 %v412_v34, %v1695_v38 }
 0x233   : > { %v1788_v31 = vsel %vm435_vm0, %v430_v36, -inf }
 0x234   : > { %478 = vmax.xlane.f32.xlu0 %v1788_v31  ;;  %v414_v37 = vpop.xlane.xlu1 %413 }
 0x235   : > { %v431_v43 = vsub.f32 %v414_v37, %v1698_v45 }
 0x237   : > { %v1794_v35 = vsel %vm435_vm0, %v431_v43, -inf }
 0x238   : > { %480 = vmax.xlane.f32.xlu1 %v1794_v35  ;;  %v416_v44 = vpop.xlane.xlu1 %415 }
 0x239   : > { %v432_v50 = vsub.f32 %v416_v44, %v1701_v52 }
 0x23b   : > { %v1800_v38 = vsel %vm435_vm0, %v432_v50, -inf }
 0x23c   : > { %482 = vmax.xlane.f32.xlu0 %v1800_v38 }
 0x28d   : > { %v453_v51 = vpop.xlane.xlu0 %452 }
 0x28e   : > { %v484_v55 = vsub.f32 %v1710_v59, %v453_v51 }
 0x290   : > { %v500_v57 = vmul.f32 1.442695, %v484_v55 }
 0x291   : > { %v455_v45 = vpop.xlane.xlu1 %454 }
 0x292   : > { %1433 = vpow2.f32 %v500_v57  ;;  %v485_v58 = vsub.f32 %v1716_v63, %v455_v45 }
 0x294   : > { %v502_v60 = vmul.f32 1.442695, %v485_v58 }
 0x295   : > { %v457_v61 = vpop.xlane.xlu1 %456 }
 0x296   : > { %1435 = vpow2.f32 %v502_v60  ;;  %v486_v1 = vsub.f32 %v1722_v62, %v457_v61 }
 0x298   : > { %v504_v52 = vmul.f32 1.442695, %v486_v1 }
 0x299   : > { %v459_v3 = vpop.xlane.xlu1 %458 }
 0x29a   : > { %1437 = vpow2.f32 %v504_v52  ;;  %v487_v4 = vsub.f32 %v1728_v2, %v459_v3 }
 0x29c   : > { %v1807_v6 = vpop.eup %1433  ;;  %v506_v0 = vmul.f32 1.442695, %v487_v4 }
 0x29d   : > { %532 = vadd.xlane.f32.xlu1 %v1807_v6  ;;  %v461_v59 = vpop.xlane.xlu1 %460 }
 0x29e   : > { %1439 = vpow2.f32 %v506_v0  ;;  %v488_v8 = vsub.f32 %v1734_v5, %v461_v59 }
 0x2a0   : > { %v1811_v63 = vpop.eup %1435  ;;  %v508_v9 = vmul.f32 1.442695, %v488_v8 }
 0x2a1   : > { %534 = vadd.xlane.f32.xlu0 %v1811_v63  ;;  %v463_v62 = vpop.xlane.xlu1 %462 }
 0x2a2   : > { %1441 = vpow2.f32 %v508_v9  ;;  %v489_v11 = vsub.f32 %v1740_v7, %v463_v62 }
 0x2a4   : > { %v1815_v12 = vpop.eup %1437  ;;  %v510_v2 = vmul.f32 1.442695, %v489_v11 }
 0x2a5   : > { %536 = vadd.xlane.f32.xlu1 %v1815_v12  ;;  %v465_v14 = vpop.xlane.xlu1 %464 }
 0x2a6   : > { %1443 = vpow2.f32 %v510_v2  ;;  %v490_v15 = vsub.f32 %v1746_v10, %v465_v14 }
 0x2a8   : > { %v1819_v17 = vpop.eup %1439  ;;  %v512_v5 = vmul.f32 1.442695, %v490_v15 }
 0x2a9   : > { %538 = vadd.xlane.f32.xlu0 %v1819_v17  ;;  %v467_v18 = vpop.xlane.xlu1 %466 }
 0x2aa   : > { %1445 = vpow2.f32 %v512_v5  ;;  %v491_v20 = vsub.f32 %v1752_v13, %v467_v18 }
 0x2ac   : > { %v1823_v21 = vpop.eup %1441  ;;  %v514_v7 = vmul.f32 1.442695, %v491_v20 }
 0x2ad   : > { %540 = vadd.xlane.f32.xlu1 %v1823_v21  ;;  %v469_v23 = vpop.xlane.xlu1 %468 }
 0x2ae   : > { %1447 = vpow2.f32 %v514_v7  ;;  %v492_v24 = vsub.f32 %v1758_v16, %v469_v23 }
 0x2b0   : > { %v1827_v26 = vpop.eup %1443  ;;  %v516_v10 = vmul.f32 1.442695, %v492_v24 }
 0x2b1   : > { %542 = vadd.xlane.f32.xlu0 %v1827_v26  ;;  %v471_v27 = vpop.xlane.xlu1 %470 }
 0x2b2   : > { %1449 = vpow2.f32 %v516_v10  ;;  %v493_v29 = vsub.f32 %v1764_v19, %v471_v27 }
 0x2b4   : > { %v1831_v30 = vpop.eup %1445  ;;  %v518_v13 = vmul.f32 1.442695, %v493_v29 }
 0x2b5   : > { %544 = vadd.xlane.f32.xlu1 %v1831_v30  ;;  %v473_v32 = vpop.xlane.xlu1 %472 }
 0x2b6   : > { %1451 = vpow2.f32 %v518_v13  ;;  %v494_v34 = vsub.f32 %v1770_v22, %v473_v32 }
 0x2b8   : > { %v1835_v36 = vpop.eup %1447  ;;  %v520_v16 = vmul.f32 1.442695, %v494_v34 }
 0x2b9   : > { %546 = vadd.xlane.f32.xlu0 %v1835_v36  ;;  %v475_v37 = vpop.xlane.xlu1 %474 }
 0x2ba   : > { %1453 = vpow2.f32 %v520_v16  ;;  %v495_v43 = vsub.f32 %v1776_v25, %v475_v37 }
 0x2bc   : > { %v1839_v44 = vpop.eup %1449  ;;  %v522_v19 = vmul.f32 1.442695, %v495_v43 }
 0x2bd   : > { %548 = vadd.xlane.f32.xlu1 %v1839_v44  ;;  %v477_v50 = vpop.xlane.xlu1 %476 }
 0x2be   : > { %1455 = vpow2.f32 %v522_v19  ;;  %v496_v51 = vsub.f32 %v1782_v28, %v477_v50 }
 0x2c0   : > { %v1843_v55 = vpop.eup %1451  ;;  %v524_v22 = vmul.f32 1.442695, %v496_v51 }
 0x2c1   : > { %v479_v57 = vpop.xlane.xlu0 %478  ;;  %550 = vadd.xlane.f32.xlu0 %v1843_v55 }
 0x2c2   : > { %1457 = vpow2.f32 %v524_v22  ;;  %v497_v45 = vsub.f32 %v1788_v31, %v479_v57 }
 0x2c4   : > { %v1847_v58 = vpop.eup %1453  ;;  %v526_v25 = vmul.f32 1.442695, %v497_v45 }
 0x2c5   : > { %552 = vadd.xlane.f32.xlu1 %v1847_v58  ;;  %v481_v60 = vpop.xlane.xlu1 %480 }
 0x2c6   : > { %1459 = vpow2.f32 %v526_v25  ;;  %v498_v61 = vsub.f32 %v1794_v35, %v481_v60 }
 0x2c8   : > { %v1851_v1 = vpop.eup %1455  ;;  %v528_v28 = vmul.f32 1.442695, %v498_v61 }
 0x2c9   : > { %v483_v52 = vpop.xlane.xlu0 %482  ;;  %554 = vadd.xlane.f32.xlu0 %v1851_v1 }
 0x2ca   : > { %1461 = vpow2.f32 %v528_v28  ;;  %v499_v3 = vsub.f32 %v1800_v38, %v483_v52 }
 0x2cc   : > { %v1855_v4 = vpop.eup %1457  ;;  %v530_v31 = vmul.f32 1.442695, %v499_v3 }
 0x2cd   : > { %556 = vadd.xlane.f32.xlu1 %v1855_v4 }
 0x2ce   : > { %1463 = vpow2.f32 %v530_v31 }
 0x2d0   : > { %v1858_v0 = vpop.eup %1459 }
 0x2d1   : > { %558 = vadd.xlane.f32.xlu0 %v1858_v0 }
 0x2d4   : > { %v1861_v35 = vpop.eup %1461 }
 0x2d5   : > { %560 = vadd.xlane.f32.xlu1 %v1861_v35 }
 0x2d8   : > { %v1864_v59 = vpop.eup %1463 }
 0x2d9   : > { %562 = vadd.xlane.f32.xlu0 %v1864_v59 }
 0x32a   : > { %v533_v8 = vpop.xlane.xlu1 %532 }
 0x32b   : > { %1465 = vrcp.f32 %v533_v8 }
 0x32e   : > { %v535_v38 = vpop.xlane.xlu0 %534 }
 0x32f   : > { %1467 = vrcp.f32 %v535_v38 }
 0x332   : > { %v537_v9 = vpop.xlane.xlu1 %536 }
 0x333   : > { %1469 = vrcp.f32 %v537_v9 }
 0x335   : > { %v1466_v11 = vpop.eup %1465 }
 0x336   : > { %v539_v62 = vpop.xlane.xlu0 %538  ;;  %v580_v15 = vmul.f32 %v1466_v11, %v1807_v6 }
 0x337   : > { %1471 = vrcp.f32 %v539_v62 }
 0x339   : > { %v1468_v2 = vpop.eup %1467 }
 0x33a   : > { %v541_v14 = vpop.xlane.xlu1 %540  ;;  %v581_v5 = vmul.f32 %v1468_v2, %v1811_v63 }
 0x33b   : > { %1473 = vrcp.f32 %v541_v14 }
 0x33c   : > { %v1265_v18 = vpack.c.bf16 %v581_v5, %v580_v15  ;;  %v1935_v5 = vld [vmem:[%s1568_s14 + $0xa0] sm:$0xff] }
 0x33d   : > { %v1470_v7 = vpop.eup %1469 }
 0x33e   : > { %v543_v20 = vpop.xlane.xlu0 %542  ;;  %1266 = vmatprep.subr.bf16.mxu0 %v1265_v18  ;;  %1297 = vmatprep.subr.bf16.mxu1 %v1265_v18  ;;  %v582_v10 = vmul.f32 %v1470_v7, %v1815_v12  ;;  %v1947_v7 = vld [vmem:[%s1568_s14 + $0xb8] sm:$0xff] }
 0x33f   : > { %1475 = vrcp.f32 %v543_v20  ;;  %1268 = vmatpush3.bf16.xpose.msra.mxu0 %v1265_v18  ;;  %1305 = vmatpush3.bf16.xpose.msra.mxu1 %v1265_v18  ;;  %v1939_v18 = vld [vmem:[%s1568_s14 + $0xa8] sm:$0xff]  ;;  %v1943_v20 = vld [vmem:[%s1568_s14 + $0xb0] sm:$0xff] }
 0x341   : > { %v1472_v23 = vpop.eup %1471 }
 0x342   : > { %v545_v24 = vpop.xlane.xlu1 %544  ;;  %v583_v27 = vmul.f32 %v1472_v23, %v1819_v17  ;;  %v1951_v23 = vld [vmem:[%s1568_s14 + $0xc0] sm:$0xff] }
 0x343   : > { %1477 = vrcp.f32 %v545_v24  ;;  %v1955_v24 = vld [vmem:[%s1568_s14 + $0xc8] sm:$0xff] }
 0x344   : > { %v1269_v29 = vpack.c.bf16 %v583_v27, %v582_v10  ;;  %v1959_v10 = vld [vmem:[%s1568_s14 + $0xd0] sm:$0xff]  ;;  %v1963_v27 = vld [vmem:[%s1568_s14 + $0xd8] sm:$0xff] }
 0x345   : > { %v1474_v63 = vpop.eup %1473 }
 0x346   : > { %v547_v6 = vpop.xlane.xlu0 %546  ;;  %1270 = vmatprep.subr.bf16.mxu0 %v1269_v29  ;;  %1298 = vmatprep.subr.bf16.mxu1 %v1269_v29  ;;  %v584_v34 = vmul.f32 %v1474_v63, %v1823_v21 }
 0x347   : > { %1479 = vrcp.f32 %v547_v6  ;;  %1272 = vmatpush3.bf16.xpose.msra.mxu0 %v1269_v29  ;;  %1306 = vmatpush3.bf16.xpose.msra.mxu1 %v1269_v29  ;;  %v1973_v29 = vld [vmem:[%s2146_s1] ss:$0 sm:$0xff] }
 0x349   : > { %v1476_v13 = vpop.eup %1475 }
 0x34a   : > { %v549_v32 = vpop.xlane.xlu1 %548  ;;  %v585_v16 = vmul.f32 %v1476_v13, %v1827_v26 }
 0x34b   : > { %1481 = vrcp.f32 %v549_v32 }
 0x34c   : > { %v1273_v37 = vpack.c.bf16 %v585_v16, %v584_v34 }
 0x34d   : > { %v1478_v17 = vpop.eup %1477 }
 0x34e   : > { %v551_v12 = vpop.xlane.xlu0 %550  ;;  %1274 = vmatprep.subr.bf16.mxu0 %v1273_v37  ;;  %1299 = vmatprep.subr.bf16.mxu1 %v1273_v37  ;;  %v586_v50 = vmul.f32 %v1478_v17, %v1831_v30  ;;  %v1516_v17 = vld [vmem:[%s1568_s14 + $0x48] sm:$0xff] }
 0x34f   : > { %1483 = vrcp.f32 %v551_v12  ;;  %1276 = vmatpush3.bf16.xpose.msra.mxu0 %v1273_v37  ;;  %1307 = vmatpush3.bf16.xpose.msra.mxu1 %v1273_v37 }
 0x351   : > { %v1480_v43 = vpop.eup %1479 }
 0x352   : > { %v553_v19 = vpop.xlane.xlu1 %552  ;;  %v587_v51 = vmul.f32 %v1480_v43, %v1835_v36 }
 0x353   : > { %1485 = vrcp.f32 %v553_v19 }
 0x354   : > { %v1277_v22 = vpack.c.bf16 %v587_v51, %v586_v50 }
 0x355   : > { %v1482_v26 = vpop.eup %1481 }
 0x356   : > { %v555_v21 = vpop.xlane.xlu0 %554  ;;  %1278 = vmatprep.subr.bf16.mxu0 %v1277_v22  ;;  %1300 = vmatprep.subr.bf16.mxu1 %v1277_v22  ;;  %v588_v25 = vmul.f32 %v1482_v26, %v1839_v44 }
 0x357   : > { %1487 = vrcp.f32 %v555_v21  ;;  %1280 = vmatpush3.bf16.xpose.msra.mxu0 %v1277_v22  ;;  %1308 = vmatpush3.bf16.xpose.msra.mxu1 %v1277_v22  ;;  %v1517_v22 = vld [vmem:[%s1568_s14 + $0x40] sm:$0xff] }
 0x359   : > { %v1484_v57 = vpop.eup %1483 }
 0x35a   : > { %v557_v45 = vpop.xlane.xlu1 %556  ;;  %v589_v60 = vmul.f32 %v1484_v57, %v1843_v55 }
 0x35b   : > { %1489 = vrcp.f32 %v557_v45  ;;  %v1518_v45 = vld [vmem:[%s1568_s14] sm:$0xff] }
 0x35c   : > { %v1281_v61 = vpack.c.bf16 %v589_v60, %v588_v25 }
 0x35d   : > { %v1486_v36 = vpop.eup %1485 }
 0x35e   : > { %v559_v30 = vpop.xlane.xlu0 %558  ;;  %1282 = vmatprep.subr.bf16.mxu0 %v1281_v61  ;;  %1301 = vmatprep.subr.bf16.mxu1 %v1281_v61  ;;  %v590_v3 = vmul.f32 %v1486_v36, %v1847_v58 }
 0x35f   : > { %1491 = vrcp.f32 %v559_v30  ;;  %1284 = vmatpush3.bf16.xpose.msra.mxu0 %v1281_v61  ;;  %1309 = vmatpush3.bf16.xpose.msra.mxu1 %v1281_v61 }
 0x361   : > { %v1488_v28 = vpop.eup %1487 }
 0x362   : > { %v561_v52 = vpop.xlane.xlu1 %560  ;;  %v591_v31 = vmul.f32 %v1488_v28, %v1851_v1 }
 0x363   : > { %1493 = vrcp.f32 %v561_v52 }
 0x364   : > { %v1285_v8 = vpack.c.bf16 %v591_v31, %v590_v3 }
 0x365   : > { %v1490_v55 = vpop.eup %1489 }
 0x366   : > { %v563_v44 = vpop.xlane.xlu0 %562  ;;  %1286 = vmatprep.subr.bf16.mxu0 %v1285_v8  ;;  %1302 = vmatprep.subr.bf16.mxu1 %v1285_v8  ;;  %v592_v9 = vmul.f32 %v1490_v55, %v1855_v4  ;;  %v1885_v4 = vld [vmem:[%s1568_s14 + $0x8] sm:$0xff] }
 0x367   : > { %1495 = vrcp.f32 %v563_v44  ;;  %1288 = vmatpush3.bf16.xpose.msra.mxu0 %v1285_v8  ;;  %1310 = vmatpush3.bf16.xpose.msra.mxu1 %v1285_v8  ;;  %v1519_v8 = vld [vmem:[%s1568_s14 + $0x58] sm:$0xff] }
 0x369   : > { %v1492_v38 = vpop.eup %1491 }
 0x36a   : > { %v593_v62 = vmul.f32 %v1492_v38, %v1858_v0  ;;  %v1890_v0 = vld [vmem:[%s1568_s14 + $0x10] sm:$0xff] }
 0x36c   : > { %v1289_v11 = vpack.c.bf16 %v593_v62, %v592_v9  ;;  %v1520_v62 = vld [vmem:[%s1568_s14 + $0x50] sm:$0xff] }
 0x36d   : > { %v1494_v58 = vpop.eup %1493 }
 0x36e   : > { %1290 = vmatprep.subr.bf16.mxu0 %v1289_v11  ;;  %1303 = vmatprep.subr.bf16.mxu1 %v1289_v11  ;;  %v594_v2 = vmul.f32 %v1494_v58, %v1861_v35  ;;  %v1895_v35 = vld [vmem:[%s1568_s14 + $0x18] sm:$0xff] }
 0x36f   : > { %1292 = vmatpush3.bf16.xpose.msra.mxu0 %v1289_v11  ;;  %1311 = vmatpush3.bf16.xpose.msra.mxu1 %v1289_v11 }
 0x371   : > { %v1496_v1 = vpop.eup %1495 }
 0x372   : > { %v595_v14 = vmul.f32 %v1496_v1, %v1864_v59  ;;  %v1923_v59 = vld [vmem:[%s1568_s14 + $0x88] sm:$0xff] }
 0x374   : > { %v1293_v15 = vpack.c.bf16 %v595_v14, %v594_v2 }
 0x376   : > { %1294 = vmatprep.subr.bf16.mxu0 %v1293_v15  ;;  %1304 = vmatprep.subr.bf16.mxu1 %v1293_v15 }
 0x377   : > { %1296 = vmatpush3.bf16.xpose.msra.mxu0 %v1293_v15  ;;  %1312 = vmatpush3.bf16.xpose.msra.mxu1 %v1293_v15 }
 0x37e   : > { %1198 = vmatmul.mubr.f32.vlgmr.msra.gmra.mrb[0].mxu1 %v1597_v33  ;;  %1186 = vmatmul.mubr.f32.vlgmr.msra.gmra.mrb[32].mxu0 %v1885_v4  ;;  %v1900_v33 = vld [vmem:[%s1568_s14 + $0x20] sm:$0xff] }
 0x37f   : > { %1200 = vmatprep.mubr.f32.mxu1 %v1604_v39  ;;  %1188 = vmatprep.mubr.f32.mxu0 %v1890_v0  ;;  %v1905_v39 = vld [vmem:[%s1568_s14 + $0x28] sm:$0xff] }
 0x382   : > { %1201 = vmatmul.mubr.f32.gmra.mrb[2].mxu1 %v1607_v40  ;;  %1189 = vmatmul.mubr.f32.gmra.mrb[34].mxu0 %v1895_v35  ;;  %v1910_v40 = vld [vmem:[%s1568_s14 + $0x30] sm:$0xff] }
 0x383   : > { %1203 = vmatprep.mubr.f32.mxu1 %v1620_v46  ;;  %1191 = vmatprep.mubr.f32.mxu0 %v1900_v33  ;;  %v1915_v46 = vld [vmem:[%s1568_s14 + $0x38] sm:$0xff] }
 0x386   : > { %1204 = vmatmul.mubr.f32.gmra.mrb[4].mxu1 %v1623_v47  ;;  %1192 = vmatmul.mubr.f32.gmra.mrb[36].mxu0 %v1905_v39  ;;  %v1919_v47 = vld [vmem:[%s1568_s14 + $0x80] sm:$0xff] }
 0x387   : > { %1206 = vmatprep.mubr.f32.mxu1 %v1636_v53  ;;  %1194 = vmatprep.mubr.f32.mxu0 %v1910_v40  ;;  %v1927_v53 = vld [vmem:[%s1568_s14 + $0x90] sm:$0xff] }
 0x38a   : > { %1207 = vmatmul.mubr.f32.gmra.mrb[6].mxu1 %v1639_v54  ;;  %1195 = vmatmul.mubr.f32.gmra.mrb[38].mxu0 %v1915_v46  ;;  %v1931_v54 = vld [vmem:[%s1568_s14 + $0x98] sm:$0xff] }
 0x38b   : > { %1209 = vmatprep.mubr.f32.mxu1 %v1919_v47 }
 0x38e   : > { %1210 = vmatmul.mubr.f32.gmra.mrb[8].mxu1 %v1923_v59 }
 0x38f   : > { %1212 = vmatprep.mubr.f32.mxu1 %v1927_v53 }
 0x392   : > { %1213 = vmatmul.mubr.f32.gmra.mrb[10].mxu1 %v1931_v54 }
 0x393   : > { %1215 = vmatprep.mubr.f32.mxu1 %v1935_v5 }
 0x396   : > { %1216 = vmatmul.mubr.f32.gmra.mrb[12].mxu1 %v1939_v18 }
 0x397   : > { %1218 = vmatprep.mubr.f32.mxu1 %v1943_v20 }
 0x39a   : > { %1219 = vmatmul.mubr.f32.gmra.mrb[14].mxu1 %v1947_v7 }
 0x39b   : > { %1221 = vmatprep.mubr.f32.mxu1 %v1951_v23 }
 0x39e   : > { %1222 = vmatmul.mubr.f32.gmra.mrb[16].mxu1 %v1955_v24 }
 0x39f   : > { %1224 = vmatprep.mubr.f32.mxu1 %v1959_v10 }
 0x3a2   : > { %1225 = vmatmul.mubr.f32.gmra.mrb[18].mxu1 %v1963_v27 }
 0x3a3   : > { %1227 = vmatprep.mubr.f32.mxu1 %v1610_v41 }
 0x3a6   : > { %1228 = vmatmul.mubr.f32.gmra.mrb[20].mxu1 %v1613_v42 }
 0x3a7   : > { %1230 = vmatprep.mubr.f32.mxu1 %v1626_v48 }
 0x3aa   : > { %1231 = vmatmul.mubr.f32.gmra.mrb[22].mxu1 %v1629_v49 }
 0x451   : > { %v1199_v6 = vpop.f32.mrb[0].mxu1  ;;  %v1187_v63 = vpop.f32.mrb[32].mxu0 }
 0x452   : > { %v830_v13 = vsel %vm435_vm0, %v1199_v6, 0.0  ;;  %v702_v32 = vpop.f32.mrb[1].mxu1  ;;  %v822_v41 = vsel %vm435_vm0, %v1187_v63, 0.0  ;;  %v662_v42 = vpop.f32.mrb[33].mxu0 }
 0x453   : > { %v869_v48 = vmul.f32 %v1973_v29, %v830_v13  ;;  %v829_v49 = vsel %vm435_vm0, %v702_v32, 0.0  ;;  %v861_v34 = vmul.f32 %v1973_v29, %v822_v41  ;;  %v821_v16 = vsel %vm435_vm0, %v662_v42, 0.0  ;;  %v1521_v32 = vld [vmem:[%s1568_s14 + $0x68] sm:$0xff] }
 0x454   : > { %v868_v37 = vmul.f32 %v1973_v29, %v829_v49  ;;  %v860_v12 = vmul.f32 %v1973_v29, %v821_v16 }
 0x455   : > { %v901_v43 = vadd.f32 %v1516_v17, %v869_v48  ;;  %v1202_v19 = vpop.f32.mrb[2].mxu1  ;;  %v893_v50 = vadd.f32 %v1885_v4, %v861_v34  ;;  %v1190_v51 = vpop.f32.mrb[34].mxu0  ;;  %v1522_v34 = vld [vmem:[%s1568_s14 + $0x60] sm:$0xff] }
 0x456   : > { %v900_v21 = vadd.f32 %v1517_v22, %v868_v37  ;;  %v832_v26 = vsel %vm435_vm0, %v1202_v19, 0.0  ;;  %v712_v57 = vpop.f32.mrb[3].mxu1  ;;  %v892_v25 = vadd.f32 %v1518_v45, %v860_v12  ;;  %v824_v60 = vsel %vm435_vm0, %v1190_v51, 0.0  ;;  %v672_v61 = vpop.f32.mrb[35].mxu0 }
 0x457   : > { %933 = vst [vmem:[%s1990_s19 + $0x48] sm:$0xff] %v901_v43  ;;  %v871_v30 = vmul.f32 %v1973_v29, %v832_v26  ;;  %v831_v36 = vsel %vm435_vm0, %v712_v57, 0.0  ;;  %925 = vst [vmem:[%s1990_s19 + $0x8] sm:$0xff] %v893_v50  ;;  %v863_v28 = vmul.f32 %v1973_v29, %v824_v60  ;;  %v823_v52 = vsel %vm435_vm0, %v672_v61, 0.0  ;;  %v1523_v26 = vld [vmem:[%s1568_s14 + $0x78] sm:$0xff]  ;;  %v1524_v60 = vld [vmem:[%s1568_s14 + $0x70] sm:$0xff] }
 0x458   : > { %932 = vst [vmem:[%s1990_s19 + $0x40] sm:$0xff] %v900_v21  ;;  %v870_v3 = vmul.f32 %v1973_v29, %v831_v36  ;;  %924 = vst [vmem:[%s1990_s19] sm:$0xff] %v892_v25  ;;  %v862_v31 = vmul.f32 %v1973_v29, %v823_v52 }
 0x459   : > { %v903_v44 = vadd.f32 %v1519_v8, %v871_v30  ;;  %v1205_v55 = vpop.f32.mrb[4].mxu1  ;;  %v895_v38 = vadd.f32 %v1895_v35, %v863_v28  ;;  %v1193_v9 = vpop.f32.mrb[36].mxu0 }
 0x45a   : > { %v902_v11 = vadd.f32 %v1520_v62, %v870_v3  ;;  %v834_v58 = vsel %vm435_vm0, %v1205_v55, 0.0  ;;  %v722_v1 = vpop.f32.mrb[5].mxu1  ;;  %v894_v2 = vadd.f32 %v1890_v0, %v862_v31  ;;  %v826_v14 = vsel %vm435_vm0, %v1193_v9, 0.0  ;;  %v682_v15 = vpop.f32.mrb[37].mxu0 }
 0x45b   : > { %935 = vst [vmem:[%s1990_s19 + $0x58] sm:$0xff] %v903_v44  ;;  %v873_v4 = vmul.f32 %v1973_v29, %v834_v58  ;;  %v833_v35 = vsel %vm435_vm0, %v722_v1, 0.0  ;;  %927 = vst [vmem:[%s1990_s19 + $0x18] sm:$0xff] %v895_v38  ;;  %v865_v6 = vmul.f32 %v1973_v29, %v826_v14  ;;  %v825_v63 = vsel %vm435_vm0, %v682_v15, 0.0 }
 0x45c   : > { %934 = vst [vmem:[%s1990_s19 + $0x50] sm:$0xff] %v902_v11  ;;  %v872_v0 = vmul.f32 %v1973_v29, %v833_v35  ;;  %926 = vst [vmem:[%s1990_s19 + $0x10] sm:$0xff] %v894_v2  ;;  %v864_v13 = vmul.f32 %v1973_v29, %v825_v63 }
 0x45d   : > { %v905_v41 = vadd.f32 %v1521_v32, %v873_v4  ;;  %v1208_v42 = vpop.f32.mrb[6].mxu1  ;;  %v897_v48 = vadd.f32 %v1905_v39, %v865_v6  ;;  %v1196_v49 = vpop.f32.mrb[38].mxu0 }
 0x45e   : > { %v904_v16 = vadd.f32 %v1522_v34, %v872_v0  ;;  %v836_v37 = vsel %vm435_vm0, %v1208_v42, 0.0  ;;  %v732_v12 = vpop.f32.mrb[7].mxu1  ;;  %v896_v17 = vadd.f32 %v1900_v33, %v864_v13  ;;  %v828_v43 = vsel %vm435_vm0, %v1196_v49, 0.0  ;;  %v692_v19 = vpop.f32.mrb[39].mxu0 }
 0x45f   : > { %937 = vst [vmem:[%s1990_s19 + $0x68] sm:$0xff] %v905_v41  ;;  %v875_v50 = vmul.f32 %v1973_v29, %v836_v37  ;;  %v835_v39 = vsel %vm435_vm0, %v732_v12, 0.0  ;;  %929 = vst [vmem:[%s1990_s19 + $0x28] sm:$0xff] %v897_v48  ;;  %v867_v51 = vmul.f32 %v1973_v29, %v828_v43  ;;  %v827_v22 = vsel %vm435_vm0, %v692_v19, 0.0 }
 0x460   : > { %936 = vst [vmem:[%s1990_s19 + $0x60] sm:$0xff] %v904_v16  ;;  %v874_v33 = vmul.f32 %v1973_v29, %v835_v39  ;;  %928 = vst [vmem:[%s1990_s19 + $0x20] sm:$0xff] %v896_v17  ;;  %v866_v21 = vmul.f32 %v1973_v29, %v827_v22 }
 0x461   : > { %v907_v57 = vadd.f32 %v1523_v26, %v875_v50  ;;  %v1211_v45 = vpop.f32.mrb[8].mxu1  ;;  %v899_v25 = vadd.f32 %v1915_v46, %v867_v51 }
 0x462   : > { %v906_v61 = vadd.f32 %v1524_v60, %v874_v33  ;;  %v838_v30 = vsel %vm435_vm0, %v1211_v45, 0.0  ;;  %v742_v36 = vpop.f32.mrb[9].mxu1  ;;  %v898_v28 = vadd.f32 %v1910_v40, %v866_v21  ;;  %v1525_v21 = vld [vmem:[%s1568_s14 + $0xe8] sm:$0xff] }
 0x463   : > { %939 = vst [vmem:[%s1990_s19 + $0x78] sm:$0xff] %v907_v57  ;;  %v877_v52 = vmul.f32 %v1973_v29, %v838_v30  ;;  %v837_v3 = vsel %vm435_vm0, %v742_v36, 0.0  ;;  %931 = vst [vmem:[%s1990_s19 + $0x38] sm:$0xff] %v899_v25  ;;  %v1526_v57 = vld [vmem:[%s1568_s14 + $0xe0] sm:$0xff] }
 0x464   : > { %938 = vst [vmem:[%s1990_s19 + $0x70] sm:$0xff] %v906_v61  ;;  %v876_v46 = vmul.f32 %v1973_v29, %v837_v3  ;;  %930 = vst [vmem:[%s1990_s19 + $0x30] sm:$0xff] %v898_v28  ;;  %v1527_v28 = vld [vmem:[%s1568_s14 + $0xf8] sm:$0xff]  ;;  %v1528_v3 = vld [vmem:[%s1568_s14 + $0xf0] sm:$0xff] }
 0x465   : > { %v909_v31 = vadd.f32 %v1923_v59, %v877_v52  ;;  %v1214_v8 = vpop.f32.mrb[10].mxu1 }
 0x466   : > { %v908_v44 = vadd.f32 %v1919_v47, %v876_v46  ;;  %v840_v40 = vsel %vm435_vm0, %v1214_v8, 0.0  ;;  %v752_v55 = vpop.f32.mrb[11].mxu1 }
 0x467   : > { %941 = vst [vmem:[%s1990_s19 + $0x88] sm:$0xff] %v909_v31  ;;  %v879_v38 = vmul.f32 %v1973_v29, %v840_v40  ;;  %v839_v9 = vsel %vm435_vm0, %v752_v55, 0.0 }
 0x468   : > { %940 = vst [vmem:[%s1990_s19 + $0x80] sm:$0xff] %v908_v44  ;;  %v878_v62 = vmul.f32 %v1973_v29, %v839_v9 }
 0x469   : > { %v911_v59 = vadd.f32 %v1931_v54, %v879_v38  ;;  %v1217_v11 = vpop.f32.mrb[12].mxu1 }
 0x46a   : > { %v910_v47 = vadd.f32 %v1927_v53, %v878_v62  ;;  %v842_v58 = vsel %vm435_vm0, %v1217_v11, 0.0  ;;  %v762_v1 = vpop.f32.mrb[13].mxu1 }
 0x46b   : > { %943 = vst [vmem:[%s1990_s19 + $0x98] sm:$0xff] %v911_v59  ;;  %v881_v2 = vmul.f32 %v1973_v29, %v842_v58  ;;  %v841_v14 = vsel %vm435_vm0, %v762_v1, 0.0 }
 0x46c   : > { %942 = vst [vmem:[%s1990_s19 + $0x90] sm:$0xff] %v910_v47  ;;  %v880_v15 = vmul.f32 %v1973_v29, %v841_v14 }
 0x46d   : > { %v913_v54 = vadd.f32 %v1939_v18, %v881_v2  ;;  %v1220_v4 = vpop.f32.mrb[14].mxu1 }
 0x46e   : > { %v912_v53 = vadd.f32 %v1935_v5, %v880_v15  ;;  %v844_v35 = vsel %vm435_vm0, %v1220_v4, 0.0  ;;  %v772_v6 = vpop.f32.mrb[15].mxu1 }
 0x46f   : > { %945 = vst [vmem:[%s1990_s19 + $0xa8] sm:$0xff] %v913_v54  ;;  %v883_v63 = vmul.f32 %v1973_v29, %v844_v35  ;;  %v843_v0 = vsel %vm435_vm0, %v772_v6, 0.0 }
 0x470   : > { %944 = vst [vmem:[%s1990_s19 + $0xa0] sm:$0xff] %v912_v53  ;;  %v882_v13 = vmul.f32 %v1973_v29, %v843_v0 }
 0x471   : > { %v915_v18 = vadd.f32 %v1947_v7, %v883_v63  ;;  %v1223_v32 = vpop.f32.mrb[16].mxu1 }
 0x472   : > { %v914_v5 = vadd.f32 %v1943_v20, %v882_v13  ;;  %v846_v41 = vsel %vm435_vm0, %v1223_v32, 0.0  ;;  %v782_v42 = vpop.f32.mrb[17].mxu1 }
 0x473   : > { %947 = vst [vmem:[%s1990_s19 + $0xb8] sm:$0xff] %v915_v18  ;;  %v885_v48 = vmul.f32 %v1973_v29, %v846_v41  ;;  %v845_v49 = vsel %vm435_vm0, %v782_v42, 0.0 }
 0x474   : > { %946 = vst [vmem:[%s1990_s19 + $0xb0] sm:$0xff] %v914_v5  ;;  %v884_v34 = vmul.f32 %v1973_v29, %v845_v49 }
 0x475   : > { %v917_v7 = vadd.f32 %v1955_v24, %v885_v48  ;;  %v1226_v16 = vpop.f32.mrb[18].mxu1 }
 0x476   : > { %v916_v20 = vadd.f32 %v1951_v23, %v884_v34  ;;  %v848_v37 = vsel %vm435_vm0, %v1226_v16, 0.0  ;;  %v792_v12 = vpop.f32.mrb[19].mxu1 }
 0x477   : > { %949 = vst [vmem:[%s1990_s19 + $0xc8] sm:$0xff] %v917_v7  ;;  %v887_v17 = vmul.f32 %v1973_v29, %v848_v37  ;;  %v847_v43 = vsel %vm435_vm0, %v792_v12, 0.0 }
 0x478   : > { %948 = vst [vmem:[%s1990_s19 + $0xc0] sm:$0xff] %v916_v20  ;;  %v886_v19 = vmul.f32 %v1973_v29, %v847_v43 }
 0x479   : > { %v919_v24 = vadd.f32 %v1963_v27, %v887_v17  ;;  %v1229_v50 = vpop.f32.mrb[20].mxu1 }
 0x47a   : > { %v918_v23 = vadd.f32 %v1959_v10, %v886_v19  ;;  %v850_v39 = vsel %vm435_vm0, %v1229_v50, 0.0  ;;  %v802_v51 = vpop.f32.mrb[21].mxu1 }
 0x47b   : > { %951 = vst [vmem:[%s1990_s19 + $0xd8] sm:$0xff] %v919_v24  ;;  %v889_v22 = vmul.f32 %v1973_v29, %v850_v39  ;;  %v849_v33 = vsel %vm435_vm0, %v802_v51, 0.0 }
 0x47c   : > { %950 = vst [vmem:[%s1990_s19 + $0xd0] sm:$0xff] %v918_v23  ;;  %v888_v27 = vmul.f32 %v1973_v29, %v849_v33 }
 0x47d   : > { %v921_v26 = vadd.f32 %v1525_v21, %v889_v22  ;;  %v1232_v10 = vpop.f32.mrb[22].mxu1 }
 0x47e   : > { %v920_v45 = vadd.f32 %v1526_v57, %v888_v27  ;;  %v852_v25 = vsel %vm435_vm0, %v1232_v10, 0.0  ;;  %v812_v60 = vpop.f32.mrb[23].mxu1 }
 0x47f   : > { %953 = vst [vmem:[%s1990_s19 + $0xe8] sm:$0xff] %v921_v26  ;;  %v891_v61 = vmul.f32 %v1973_v29, %v852_v25  ;;  %v851_v30 = vsel %vm435_vm0, %v812_v60, 0.0 }
 0x480   : > { %952 = vst [vmem:[%s1990_s19 + $0xe0] sm:$0xff] %v920_v45  ;;  %v890_v36 = vmul.f32 %v1973_v29, %v851_v30 }
 0x481   : > { %v923_v52 = vadd.f32 %v1527_v28, %v891_v61 }
 0x482   : > { %v922_v46 = vadd.f32 %v1528_v3, %v890_v36 }
 0x483   : > { %955 = vst [vmem:[%s1990_s19 + $0xf8] sm:$0xff] %v923_v52 }
 0x484   : > { %954 = vst [vmem:[%s1990_s19 + $0xf0] sm:$0xff] %v922_v46 }
 0x485 PF: > { %s12_s9 = sadd.s32 1, %s1535_s9  }
 0x486   : > { %p9_p4 = scmp.ge.s32.totalorder %s12_s9, 4  }
 0x488   :  { %11 = sbr.rel (!%p9_p4) target bundleno = 1 (0x1), region = 58 }

// kernel: da_head_forward.18
= control target key start
LH: loop header
LB: loop body
LE: loop exit
PB: predicated region body
PF: predicated region fallthrough
CT: control target
= control target key end

     0   :  { %s453_s12 = smov 0   ;;  %s612_s0 = inlined_call_operand.vmem [shape: f32[512,128], index: 0, kind: input, shape index: {}]   ;;  %s613_s1 = inlined_call_operand.vmem [shape: f32[1,128], index: 1, kind: input, shape index: {}]   ;;  %s614_s2 = inlined_call_operand.vmem [shape: f32[1,128], index: 2, kind: input, shape index: {}]   ;;  %s615_s3 = inlined_call_operand.vmem [shape: f32[512,128], index: 3, kind: output, shape index: {}]  }
   0x1 LB: > { %s404_s13 = sadd.s32 4294967295, %s431_s12   ;;  %p408_p0 = scmp.ge.s32.totalorder %s431_s12, 1  ;;  %s431_s12 = sphi %s453_s12, %s13_s12  }
   0x2   : > { %p138_p1 = scmp.lt.s32.totalorder %s431_s12, 3 }
   0x4   : > { %p139_p2 = pnand %p408_p0, %p138_p1 }
   0x5   : > { %s409_s14 = sshll.u32 (!%p139_p2), %s404_s13, 5  ;;  %v464_v0 = vld [vmem:[%s613_s1] ss:$0 sm:$0xff] (!%p139_p2) }
   0x6   : > { %142 = sbr.rel (%p139_p2) target bundleno = 46 (0x2e), region = 32  ;;  %p163_p3 = scmp.lt.s32.totalorder (!%p139_p2), %s409_s14, 63  ;;  %v474_v1 = vld [vmem:[%s614_s2] ss:$0 sm:$0xff] (!%p139_p2) }
   0xd   : > { %s617_s14 = smov (!%p163_p3, %s409_s14), 63 }
   0xe   : > { %s410_s15 = sshll.u32 %s617_s14, 3 }
   0xf   : > { %s469_s20 = scalar_lea.vmem %s612_s0, %s410_s15  ;;  %s497_s25 = scalar_lea.vmem %s615_s3, %s410_s15 }
  0x10   : > { %v174_v2 = vld [vmem:[%s469_s20] sm:$0xff]  ;;  %v175_v3 = vld [vmem:[%s469_s20 + $0x8] sm:$0xff]  ;;  %v176_v4 = vld [vmem:[%s469_s20 + $0x10] sm:$0xff] }
  0x11   : > { %v213_v5 = vmul.f32 %v464_v0, %v174_v2  ;;  %v214_v6 = vmul.f32 %v464_v0, %v175_v3  ;;  %v215_v7 = vmul.f32 %v464_v0, %v176_v4  ;;  %v177_v8 = vld [vmem:[%s469_s20 + $0x18] sm:$0xff]  ;;  %v178_v9 = vld [vmem:[%s469_s20 + $0x20] sm:$0xff]  ;;  %v179_v10 = vld [vmem:[%s469_s20 + $0x28] sm:$0xff] }
  0x12   : > { %v216_v11 = vmul.f32 %v464_v0, %v177_v8  ;;  %v217_v12 = vmul.f32 %v464_v0, %v178_v9  ;;  %v218_v13 = vmul.f32 %v464_v0, %v179_v10  ;;  %v180_v14 = vld [vmem:[%s469_s20 + $0x30] sm:$0xff]  ;;  %v181_v15 = vld [vmem:[%s469_s20 + $0x38] sm:$0xff]  ;;  %v182_v24 = vld [vmem:[%s469_s20 + $0x40] sm:$0xff] }
  0x13   : > { %v252_v16 = vadd.f32 %v474_v1, %v213_v5  ;;  %v253_v17 = vadd.f32 %v474_v1, %v214_v6  ;;  %v254_v18 = vadd.f32 %v474_v1, %v215_v7  ;;  %v219_v19 = vmul.f32 %v464_v0, %v180_v14  ;;  %v183_v25 = vld [vmem:[%s469_s20 + $0x48] sm:$0xff]  ;;  %v184_v26 = vld [vmem:[%s469_s20 + $0x50] sm:$0xff]  ;;  %v185_v31 = vld [vmem:[%s469_s20 + $0x58] sm:$0xff] }
  0x14   : > { %v255_v20 = vadd.f32 %v474_v1, %v216_v11  ;;  %v256_v21 = vadd.f32 %v474_v1, %v217_v12  ;;  %v257_v22 = vadd.f32 %v474_v1, %v218_v13  ;;  %v220_v23 = vmul.f32 %v464_v0, %v181_v15  ;;  %v186_v32 = vld [vmem:[%s469_s20 + $0x60] sm:$0xff]  ;;  %v187_v33 = vld [vmem:[%s469_s20 + $0x68] sm:$0xff]  ;;  %v188_v38 = vld [vmem:[%s469_s20 + $0x70] sm:$0xff] }
  0x15   : > { %v284_v27 = vmax.f32 %v252_v16, 0.0  ;;  %v285_v28 = vmax.f32 %v253_v17, 0.0  ;;  %v286_v29 = vmax.f32 %v254_v18, 0.0  ;;  %v258_v30 = vadd.f32 %v474_v1, %v219_v19  ;;  %v189_v43 = vld [vmem:[%s469_s20 + $0x78] sm:$0xff]  ;;  %v190_v56 = vld [vmem:[%s469_s20 + $0x80] sm:$0xff]  ;;  %v191_v57 = vld [vmem:[%s469_s20 + $0x88] sm:$0xff] }
  0x16   : > { %v287_v34 = vmax.f32 %v255_v20, 0.0  ;;  %v288_v35 = vmax.f32 %v256_v21, 0.0  ;;  %v289_v36 = vmax.f32 %v257_v22, 0.0  ;;  %v259_v37 = vadd.f32 %v474_v1, %v220_v23  ;;  %v192_v58 = vld [vmem:[%s469_s20 + $0x90] sm:$0xff]  ;;  %v193_v63 = vld [vmem:[%s469_s20 + $0x98] sm:$0xff]  ;;  %v194_v2 = vld [vmem:[%s469_s20 + $0xa0] sm:$0xff] }
  0x17   : > { %316 = vst [vmem:[%s497_s25] sm:$0xff] %v284_v27  ;;  %317 = vst [vmem:[%s497_s25 + $0x8] sm:$0xff] %v285_v28  ;;  %v290_v39 = vmax.f32 %v258_v30, 0.0  ;;  %v221_v40 = vmul.f32 %v464_v0, %v182_v24  ;;  %v222_v41 = vmul.f32 %v464_v0, %v183_v25  ;;  %v223_v42 = vmul.f32 %v464_v0, %v184_v26  ;;  %v195_v3 = vld [vmem:[%s469_s20 + $0xa8] sm:$0xff]  ;;  %v196_v8 = vld [vmem:[%s469_s20 + $0xb0] sm:$0xff] }
  0x18   : > { %318 = vst [vmem:[%s497_s25 + $0x10] sm:$0xff] %v286_v29  ;;  %319 = vst [vmem:[%s497_s25 + $0x18] sm:$0xff] %v287_v34  ;;  %v291_v44 = vmax.f32 %v259_v37, 0.0  ;;  %v224_v45 = vmul.f32 %v464_v0, %v185_v31  ;;  %v225_v46 = vmul.f32 %v464_v0, %v186_v32  ;;  %v226_v47 = vmul.f32 %v464_v0, %v187_v33  ;;  %v197_v13 = vld [vmem:[%s469_s20 + $0xb8] sm:$0xff]  ;;  %v198_v26 = vld [vmem:[%s469_s20 + $0xc0] sm:$0xff] }
  0x19   : > { %320 = vst [vmem:[%s497_s25 + $0x20] sm:$0xff] %v288_v35  ;;  %321 = vst [vmem:[%s497_s25 + $0x28] sm:$0xff] %v289_v36  ;;  %v260_v48 = vadd.f32 %v474_v1, %v221_v40  ;;  %v261_v49 = vadd.f32 %v474_v1, %v222_v41  ;;  %v262_v50 = vadd.f32 %v474_v1, %v223_v42  ;;  %v199_v27 = vld [vmem:[%s469_s20 + $0xc8] sm:$0xff]  ;;  %v200_v28 = vld [vmem:[%s469_s20 + $0xd0] sm:$0xff] }
  0x1a   : > { %322 = vst [vmem:[%s497_s25 + $0x30] sm:$0xff] %v290_v39  ;;  %v227_v51 = vmul.f32 %v464_v0, %v188_v38  ;;  %323 = vst [vmem:[%s497_s25 + $0x38] sm:$0xff] %v291_v44  ;;  %v263_v52 = vadd.f32 %v474_v1, %v224_v45  ;;  %v264_v53 = vadd.f32 %v474_v1, %v225_v46  ;;  %v201_v33 = vld [vmem:[%s469_s20 + $0xd8] sm:$0xff]  ;;  %v202_v34 = vld [vmem:[%s469_s20 + $0xe0] sm:$0xff] }
  0x1b   : > { %v265_v54 = vadd.f32 %v474_v1, %v226_v47  ;;  %v228_v55 = vmul.f32 %v464_v0, %v189_v43  ;;  %v292_v59 = vmax.f32 %v260_v48, 0.0  ;;  %v293_v60 = vmax.f32 %v261_v49, 0.0  ;;  %v203_v35 = vld [vmem:[%s469_s20 + $0xe8] sm:$0xff]  ;;  %v204_v40 = vld [vmem:[%s469_s20 + $0xf0] sm:$0xff]  ;;  %v205_v45 = vld [vmem:[%s469_s20 + $0xf8] sm:$0xff] }
  0x1c   : > { %v294_v61 = vmax.f32 %v262_v50, 0.0  ;;  %v266_v62 = vadd.f32 %v474_v1, %v227_v51  ;;  %v295_v4 = vmax.f32 %v263_v52, 0.0  ;;  %v296_v5 = vmax.f32 %v264_v53, 0.0 }
  0x1d   : > { %v297_v6 = vmax.f32 %v265_v54, 0.0  ;;  %v267_v7 = vadd.f32 %v474_v1, %v228_v55  ;;  %324 = vst [vmem:[%s497_s25 + $0x40] sm:$0xff] %v292_v59  ;;  %325 = vst [vmem:[%s497_s25 + $0x48] sm:$0xff] %v293_v60  ;;  %v229_v10 = vmul.f32 %v464_v0, %v190_v56  ;;  %v230_v11 = vmul.f32 %v464_v0, %v191_v57 }
  0x1e   : > { %326 = vst [vmem:[%s497_s25 + $0x50] sm:$0xff] %v294_v61  ;;  %v298_v9 = vmax.f32 %v266_v62, 0.0  ;;  %v231_v12 = vmul.f32 %v464_v0, %v192_v58  ;;  %327 = vst [vmem:[%s497_s25 + $0x58] sm:$0xff] %v295_v4  ;;  %v232_v15 = vmul.f32 %v464_v0, %v193_v63  ;;  %v233_v16 = vmul.f32 %v464_v0, %v194_v2 }
  0x1f   : > { %328 = vst [vmem:[%s497_s25 + $0x60] sm:$0xff] %v296_v5  ;;  %329 = vst [vmem:[%s497_s25 + $0x68] sm:$0xff] %v297_v6  ;;  %v299_v14 = vmax.f32 %v267_v7, 0.0  ;;  %v234_v17 = vmul.f32 %v464_v0, %v195_v3  ;;  %v268_v18 = vadd.f32 %v474_v1, %v229_v10  ;;  %v269_v19 = vadd.f32 %v474_v1, %v230_v11 }
  0x20   : > { %330 = vst [vmem:[%s497_s25 + $0x70] sm:$0xff] %v298_v9  ;;  %v270_v20 = vadd.f32 %v474_v1, %v231_v12  ;;  %v235_v21 = vmul.f32 %v464_v0, %v196_v8  ;;  %v271_v22 = vadd.f32 %v474_v1, %v232_v15  ;;  %v272_v23 = vadd.f32 %v474_v1, %v233_v16 }
  0x21   : > { %331 = vst [vmem:[%s497_s25 + $0x78] sm:$0xff] %v299_v14  ;;  %v273_v24 = vadd.f32 %v474_v1, %v234_v17  ;;  %v236_v25 = vmul.f32 %v464_v0, %v197_v13  ;;  %v300_v29 = vmax.f32 %v268_v18, 0.0  ;;  %v301_v30 = vmax.f32 %v269_v19, 0.0 }
  0x22   : > { %v302_v31 = vmax.f32 %v270_v20, 0.0  ;;  %v274_v32 = vadd.f32 %v474_v1, %v235_v21  ;;  %v303_v36 = vmax.f32 %v271_v22, 0.0  ;;  %v304_v37 = vmax.f32 %v272_v23, 0.0 }
  0x23   : > { %v305_v38 = vmax.f32 %v273_v24, 0.0  ;;  %v275_v39 = vadd.f32 %v474_v1, %v236_v25  ;;  %332 = vst [vmem:[%s497_s25 + $0x80] sm:$0xff] %v300_v29  ;;  %333 = vst [vmem:[%s497_s25 + $0x88] sm:$0xff] %v301_v30  ;;  %v237_v42 = vmul.f32 %v464_v0, %v198_v26  ;;  %v238_v43 = vmul.f32 %v464_v0, %v199_v27 }
  0x24   : > { %334 = vst [vmem:[%s497_s25 + $0x90] sm:$0xff] %v302_v31  ;;  %v306_v41 = vmax.f32 %v274_v32, 0.0  ;;  %v239_v44 = vmul.f32 %v464_v0, %v200_v28  ;;  %335 = vst [vmem:[%s497_s25 + $0x98] sm:$0xff] %v303_v36  ;;  %v240_v47 = vmul.f32 %v464_v0, %v201_v33  ;;  %v241_v48 = vmul.f32 %v464_v0, %v202_v34 }
  0x25   : > { %336 = vst [vmem:[%s497_s25 + $0xa0] sm:$0xff] %v304_v37  ;;  %337 = vst [vmem:[%s497_s25 + $0xa8] sm:$0xff] %v305_v38  ;;  %v307_v46 = vmax.f32 %v275_v39, 0.0  ;;  %v242_v49 = vmul.f32 %v464_v0, %v203_v35  ;;  %v276_v50 = vadd.f32 %v474_v1, %v237_v42  ;;  %v277_v51 = vadd.f32 %v474_v1, %v238_v43 }
  0x26   : > { %338 = vst [vmem:[%s497_s25 + $0xb0] sm:$0xff] %v306_v41  ;;  %v278_v52 = vadd.f32 %v474_v1, %v239_v44  ;;  %v243_v53 = vmul.f32 %v464_v0, %v204_v40  ;;  %v279_v54 = vadd.f32 %v474_v1, %v240_v47  ;;  %v280_v55 = vadd.f32 %v474_v1, %v241_v48 }
  0x27   : > { %339 = vst [vmem:[%s497_s25 + $0xb8] sm:$0xff] %v307_v46  ;;  %v281_v56 = vadd.f32 %v474_v1, %v242_v49  ;;  %v244_v57 = vmul.f32 %v464_v0, %v205_v45  ;;  %v308_v58 = vmax.f32 %v276_v50, 0.0  ;;  %v309_v59 = vmax.f32 %v277_v51, 0.0 }
  0x28   : > { %v310_v60 = vmax.f32 %v278_v52, 0.0  ;;  %v282_v61 = vadd.f32 %v474_v1, %v243_v53  ;;  %v311_v62 = vmax.f32 %v279_v54, 0.0  ;;  %v312_v63 = vmax.f32 %v280_v55, 0.0 }
  0x29   : > { %v313_v2 = vmax.f32 %v281_v56, 0.0  ;;  %v283_v3 = vadd.f32 %v474_v1, %v244_v57  ;;  %340 = vst [vmem:[%s497_s25 + $0xc0] sm:$0xff] %v308_v58  ;;  %341 = vst [vmem:[%s497_s25 + $0xc8] sm:$0xff] %v309_v59 }
  0x2a   : > { %342 = vst [vmem:[%s497_s25 + $0xd0] sm:$0xff] %v310_v60  ;;  %v314_v4 = vmax.f32 %v282_v61, 0.0  ;;  %343 = vst [vmem:[%s497_s25 + $0xd8] sm:$0xff] %v311_v62 }
  0x2b   : > { %344 = vst [vmem:[%s497_s25 + $0xe0] sm:$0xff] %v312_v63  ;;  %345 = vst [vmem:[%s497_s25 + $0xe8] sm:$0xff] %v313_v2  ;;  %v315_v0 = vmax.f32 %v283_v3, 0.0 }
  0x2c   : > { %346 = vst [vmem:[%s497_s25 + $0xf0] sm:$0xff] %v314_v4 }
  0x2d   : > { %347 = vst [vmem:[%s497_s25 + $0xf8] sm:$0xff] %v315_v0 }
  0x2e PF: > { %s13_s12 = sadd.s32 1, %s431_s12  }
  0x2f   : > { %p10_p4 = scmp.ge.s32.totalorder %s13_s12, 4  }
  0x31   :  { %12 = sbr.rel (!%p10_p4) target bundleno = 1 (0x1), region = 62 }

// kernel: da_head_forward.10
= control target key start
LH: loop header
LB: loop body
LE: loop exit
PB: predicated region body
PF: predicated region fallthrough
CT: control target
= control target key end

     0   :  { %s5212_s15 = smov 0   ;;  %s7393_s0 = inlined_call_operand.vmem [shape: f32[2,18,18,128], index: 0, kind: input, shape index: {}]   ;;  %s7394_s1 = inlined_call_operand.vmem [shape: f32[3,3,128,256], index: 1, kind: input, shape index: {}]   ;;  %s7395_s2 = inlined_call_operand.vmem [shape: f32[2,256,256], index: 2, kind: output, shape index: {0}]   ;;  %s7396_s3 = inlined_call_operand.vmem [shape: f32[2,8,256], index: 3, kind: output, shape index: {1}]   ;;  %s7397_s4 = inlined_call_operand.vmem [shape: f32[2,8,256], index: 4, kind: output, shape index: {2}]  }
   0x1 LB: > { %s4043_s16 = sadd.s32 4294967295, %s5184_s15   ;;  %p4047_p0 = scmp.ge.s32.totalorder %s5184_s15, 1  ;;  %s5184_s15 = sphi %s5212_s15, %s15_s15  }
   0x2   : > { %p167_p1 = scmp.lt.s32.totalorder %s5184_s15, 3 }
   0x4   : > { %p168_p2 = pnand %p4047_p0, %p167_p1 }
   0x6   : > { %171 = sbr.rel (%p168_p2) target bundleno = 853 (0x355), region = 28 }
   0xd   : > { %v4056_v0 = vld [vmem:[%s7394_s1 + $0x108] sm:$0xff]  ;;  %v4058_v1 = vld [vmem:[%s7394_s1 + $0x118] sm:$0xff]  ;;  %v4055_v5 = vld [vmem:[%s7394_s1 + $0x100] sm:$0xff]  ;;  %v7400_v7 = vmov 0.0   ;;  %p5342_p3 = scmp.lt.s32.totalorder %s4043_s16, 1  ;;  %vm357_vm0 = vcmask 1046528  }
   0xe   : > { %v4152_v2 = vld [vmem:[%s7394_s1 + $0x408] sm:$0xff]  ;;  %v4316_v3 = vpack.c.bf16 %v4058_v1, %v4056_v0  ;;  %v4154_v4 = vld [vmem:[%s7394_s1 + $0x418] sm:$0xff]  ;;  %v4057_v6 = vld [vmem:[%s7394_s1 + $0x110] sm:$0xff]  ;;  %567 = vmatprep.mubr.f32.mxu1 %v7400_v7  ;;  %1945 = vmatprep.mubr.f32.mxu0 %v7400_v7  ;;  %vm1017_vm1 = vcmask 1045504  }
   0xf   : > { %v5240_v8 = vpack.c.bf16 %v4154_v4, %v4152_v2  ;;  %v4318_v9 = vpack.c.bf16 %v4057_v6, %v4055_v5  ;;  %v4151_v10 = vld [vmem:[%s7394_s1 + $0x400] sm:$0xff]  ;;  %v4153_v11 = vld [vmem:[%s7394_s1 + $0x410] sm:$0xff]  ;;  %v4060_v12 = vld [vmem:[%s7394_s1 + $0x128] sm:$0xff]  ;;  %s7598_s16 = smov (!%p5342_p3, %s4043_s16), 1 }
  0x10   : > { %4317 = vmatprep.subr.bf16.mxu1 %v4316_v3  ;;  %v5251_v13 = vpack.c.bf16 %v4153_v11, %v4151_v10  ;;  %v4062_v14 = vld [vmem:[%s7394_s1 + $0x138] sm:$0xff]  ;;  %v4156_v15 = vld [vmem:[%s7394_s1 + $0x428] sm:$0xff]  ;;  %v4059_v19 = vld [vmem:[%s7394_s1 + $0x120] sm:$0xff]  ;;  %s5132_s22 = smul.u32 432, %s7598_s16  ;;  %s4314_s21 = sshll.u32 %s7598_s16, 4 }
  0x11   : > { %v4158_v16 = vld [vmem:[%s7394_s1 + $0x438] sm:$0xff]  ;;  %4445 = vmatprep.subr.bf16.mxu0 %v5240_v8  ;;  %4319 = vmatpush1.bf16.msra.mxu1 %v4318_v9  ;;  %v4320_v17 = vpack.c.bf16 %v4062_v14, %v4060_v12  ;;  %v4061_v20 = vld [vmem:[%s7394_s1 + $0x130] sm:$0xff]  ;;  %v4155_v21 = vld [vmem:[%s7394_s1 + $0x420] sm:$0xff]  ;;  %s222_s27 = scalar_lea.vmem %s7397_s4, %s4314_s21 }
  0x12   : > { %7479 = vst [vmem:[#allocation2_spill] sm:$0xff] %v5251_v13  ;;  %v5263_v18 = vpack.c.bf16 %v4158_v16, %v4156_v15  ;;  %4447 = vmatpush1.bf16.msra.mxu0 %v5251_v13  ;;  %v4322_v22 = vpack.c.bf16 %v4061_v20, %v4059_v19  ;;  %v4157_v23 = vld [vmem:[%s7394_s1 + $0x430] sm:$0xff]  ;;  %v4064_v24 = vld [vmem:[%s7394_s1 + $0x148] sm:$0xff]  ;;  %v4066_v25 = vld [vmem:[%s7394_s1 + $0x158] sm:$0xff]  ;;  %s5449_s17 = scalar_lea.vmem %s7393_s0, %s5132_s22  ;;  %s217_s22 = scalar_lea.vmem %s7396_s3, %s4314_s21 }
  0x13   : > { %4321 = vmatprep.subr.bf16.mxu1 %v4320_v17  ;;  %v5285_v26 = vpack.c.bf16 %v4157_v23, %v4155_v21  ;;  %v4324_v27 = vpack.c.bf16 %v4066_v25, %v4064_v24  ;;  %v4160_v28 = vld [vmem:[%s7394_s1 + $0x448] sm:$0xff]  ;;  %v4162_v29 = vld [vmem:[%s7394_s1 + $0x458] sm:$0xff]  ;;  %v4063_v30 = vld [vmem:[%s7394_s1 + $0x140] sm:$0xff] }
  0x14   : > { %7480 = vst [vmem:[#allocation3_spill] sm:$0xff] %v5263_v18  ;;  %4449 = vmatprep.subr.bf16.mxu0 %v5263_v18  ;;  %v5296_v31 = vpack.c.bf16 %v4162_v29, %v4160_v28  ;;  %v4065_v32 = vld [vmem:[%s7394_s1 + $0x150] sm:$0xff]  ;;  %v4159_v33 = vld [vmem:[%s7394_s1 + $0x440] sm:$0xff]  ;;  %v4068_v36 = vld [vmem:[%s7394_s1 + $0x168] sm:$0xff] }
  0x15   : > { %7481 = vst [vmem:[#allocation4_spill] sm:$0xff] %v5285_v26  ;;  %v4161_v34 = vld [vmem:[%s7394_s1 + $0x450] sm:$0xff]  ;;  %4323 = vmatpush1.bf16.msra.mxu1 %v4322_v22  ;;  %v4326_v35 = vpack.c.bf16 %v4065_v32, %v4063_v30  ;;  %v4070_v37 = vld [vmem:[%s7394_s1 + $0x178] sm:$0xff]  ;;  %v4164_v38 = vld [vmem:[%s7394_s1 + $0x468] sm:$0xff] }
  0x16   : > { %7482 = vst [vmem:[#allocation5_spill] sm:$0xff] %v5296_v31  ;;  %4451 = vmatpush1.bf16.msra.mxu0 %v5285_v26  ;;  %4325 = vmatprep.subr.bf16.mxu1 %v4324_v27  ;;  %v5317_v39 = vpack.c.bf16 %v4161_v34, %v4159_v33  ;;  %v4328_v40 = vpack.c.bf16 %v4070_v37, %v4068_v36  ;;  %v4166_v41 = vld [vmem:[%s7394_s1 + $0x478] sm:$0xff]  ;;  %v4067_v42 = vld [vmem:[%s7394_s1 + $0x160] sm:$0xff]  ;;  %v4069_v43 = vld [vmem:[%s7394_s1 + $0x170] sm:$0xff] }
  0x17   : > { %4453 = vmatprep.subr.bf16.mxu0 %v5296_v31  ;;  %v5329_v44 = vpack.c.bf16 %v4166_v41, %v4164_v38  ;;  %v4163_v45 = vld [vmem:[%s7394_s1 + $0x460] sm:$0xff]  ;;  %v4165_v46 = vld [vmem:[%s7394_s1 + $0x470] sm:$0xff]  ;;  %v4072_v47 = vld [vmem:[%s7394_s1 + $0x188] sm:$0xff]  ;;  %v4330_v51 = vpack.c.bf16 %v4069_v43, %v4067_v42 }
  0x18   : > { %7483 = vst [vmem:[#allocation6_spill] sm:$0xff] %v5317_v39  ;;  %v4074_v48 = vld [vmem:[%s7394_s1 + $0x198] sm:$0xff]  ;;  %v4168_v49 = vld [vmem:[%s7394_s1 + $0x488] sm:$0xff]  ;;  %v5356_v52 = vpack.c.bf16 %v4165_v46, %v4163_v45  ;;  %v4071_v54 = vld [vmem:[%s7394_s1 + $0x180] sm:$0xff] }
  0x19   : > { %7484 = vst [vmem:[#allocation7_spill] sm:$0xff] %v5329_v44  ;;  %v4170_v50 = vld [vmem:[%s7394_s1 + $0x498] sm:$0xff]  ;;  %4327 = vmatpush1.bf16.msra.mxu1 %v4326_v35  ;;  %v4332_v53 = vpack.c.bf16 %v4074_v48, %v4072_v47  ;;  %v4073_v55 = vld [vmem:[%s7394_s1 + $0x190] sm:$0xff]  ;;  %v4167_v56 = vld [vmem:[%s7394_s1 + $0x480] sm:$0xff] }
  0x1a   : > { %4455 = vmatpush1.bf16.msra.mxu0 %v5317_v39  ;;  %4329 = vmatprep.subr.bf16.mxu1 %v4328_v40  ;;  %7486 = vst [vmem:[#allocation8_spill] sm:$0xff] %v5356_v52  ;;  %v5368_v57 = vpack.c.bf16 %v4170_v50, %v4168_v49  ;;  %v4169_v58 = vld [vmem:[%s7394_s1 + $0x490] sm:$0xff]  ;;  %v4076_v59 = vld [vmem:[%s7394_s1 + $0x1a8] sm:$0xff]  ;;  %v4078_v60 = vld [vmem:[%s7394_s1 + $0x1b8] sm:$0xff]  ;;  %v4334_v63 = vpack.c.bf16 %v4073_v55, %v4071_v54 }
  0x1b   : > { %4457 = vmatprep.subr.bf16.mxu0 %v5329_v44  ;;  %v4172_v61 = vld [vmem:[%s7394_s1 + $0x4a8] sm:$0xff]  ;;  %v4174_v62 = vld [vmem:[%s7394_s1 + $0x4b8] sm:$0xff]  ;;  %v5392_v0 = vpack.c.bf16 %v4169_v58, %v4167_v56  ;;  %v4336_v1 = vpack.c.bf16 %v4078_v60, %v4076_v59  ;;  %v4075_v2 = vld [vmem:[%s7394_s1 + $0x1a0] sm:$0xff] }
  0x1c   : > { %7487 = vst [vmem:[#allocation9_spill] sm:$0xff] %v5368_v57  ;;  %v4077_v3 = vld [vmem:[%s7394_s1 + $0x1b0] sm:$0xff]  ;;  %v4171_v4 = vld [vmem:[%s7394_s1 + $0x4a0] sm:$0xff]  ;;  %v5404_v5 = vpack.c.bf16 %v4174_v62, %v4172_v61  ;;  %v4080_v9 = vld [vmem:[%s7394_s1 + $0x1c8] sm:$0xff] }
  0x1d   : > { %4331 = vmatpush1.bf16.msra.mxu1 %v4330_v51  ;;  %7488 = vst [vmem:[#allocation10_spill] sm:$0xff] %v5392_v0  ;;  %v4173_v6 = vld [vmem:[%s7394_s1 + $0x4b0] sm:$0xff]  ;;  %v4082_v10 = vld [vmem:[%s7394_s1 + $0x1d8] sm:$0xff]  ;;  %v4176_v11 = vld [vmem:[%s7394_s1 + $0x4c8] sm:$0xff]  ;;  %v4338_v14 = vpack.c.bf16 %v4077_v3, %v4075_v2 }
  0x1e   : > { %4459 = vmatpush1.bf16.msra.mxu0 %v5356_v52  ;;  %4333 = vmatprep.subr.bf16.mxu1 %v4332_v53  ;;  %7489 = vst [vmem:[#allocation11_spill] sm:$0xff] %v5404_v5  ;;  %v4178_v12 = vld [vmem:[%s7394_s1 + $0x4d8] sm:$0xff]  ;;  %v5423_v15 = vpack.c.bf16 %v4173_v6, %v4171_v4  ;;  %v4340_v16 = vpack.c.bf16 %v4082_v10, %v4080_v9  ;;  %v4079_v17 = vld [vmem:[%s7394_s1 + $0x1c0] sm:$0xff]  ;;  %v4081_v19 = vld [vmem:[%s7394_s1 + $0x1d0] sm:$0xff] }
  0x1f   : > { %4461 = vmatprep.subr.bf16.mxu0 %v5368_v57  ;;  %v4175_v20 = vld [vmem:[%s7394_s1 + $0x4c0] sm:$0xff]  ;;  %v5435_v21 = vpack.c.bf16 %v4178_v12, %v4176_v11  ;;  %v4177_v22 = vld [vmem:[%s7394_s1 + $0x4d0] sm:$0xff]  ;;  %v4084_v23 = vld [vmem:[%s7394_s1 + $0x1e8] sm:$0xff]  ;;  %v4342_v29 = vpack.c.bf16 %v4081_v19, %v4079_v17 }
  0x20   : > { %7490 = vst [vmem:[#allocation12_spill] sm:$0xff] %v5423_v15  ;;  %v4086_v24 = vld [vmem:[%s7394_s1 + $0x1f8] sm:$0xff]  ;;  %v4180_v25 = vld [vmem:[%s7394_s1 + $0x4e8] sm:$0xff]  ;;  %v4083_v28 = vld [vmem:[%s7394_s1 + $0x1e0] sm:$0xff]  ;;  %v5470_v34 = vpack.c.bf16 %v4177_v22, %v4175_v20 }
  0x21   : > { %4335 = vmatpush1.bf16.msra.mxu1 %v4334_v63  ;;  %7491 = vst [vmem:[#allocation13_spill] sm:$0xff] %v5435_v21  ;;  %v4182_v27 = vld [vmem:[%s7394_s1 + $0x4f8] sm:$0xff]  ;;  %v4085_v30 = vld [vmem:[%s7394_s1 + $0x1f0] sm:$0xff]  ;;  %v4179_v32 = vld [vmem:[%s7394_s1 + $0x4e0] sm:$0xff]  ;;  %v4344_v35 = vpack.c.bf16 %v4086_v24, %v4084_v23 }
  0x22   : > { %4463 = vmatpush1.bf16.msra.mxu0 %v5392_v0  ;;  %4337 = vmatprep.subr.bf16.mxu1 %v4336_v1  ;;  %v4181_v33 = vld [vmem:[%s7394_s1 + $0x4f0] sm:$0xff]  ;;  %7492 = vst [vmem:[#allocation14_spill] sm:$0xff] %v5470_v34  ;;  %v223_v36 = vld [vmem:[%s5449_s17] sm:$0xff]  ;;  %v224_v37 = vld [vmem:[%s5449_s17 + $0x8] sm:$0xff]  ;;  %v5478_v40 = vpack.c.bf16 %v4182_v27, %v4180_v25  ;;  %v4346_v47 = vpack.c.bf16 %v4085_v30, %v4083_v28 }
  0x23   : > { %4465 = vmatprep.subr.bf16.mxu0 %v5404_v5  ;;  %v278_v38 = vld [vmem:[%s7394_s1 + $0x8] sm:$0xff]  ;;  %v280_v41 = vld [vmem:[%s7394_s1 + $0x18] sm:$0xff]  ;;  %v5487_v43 = vld [vmem:[%s5449_s17 + $0x20] sm:$0xff]  ;;  %v358_v48 = vrot.slane %v223_v36, 1  ;;  %v359_v49 = vrot.slane %v224_v37, 1  ;;  %v5496_v50 = vpack.c.bf16 %v4181_v33, %v4179_v32 }
  0x24   : > { %7493 = vst [vmem:[#allocation15_spill] sm:$0xff] %v5478_v40  ;;  %v5484_v42 = vld [vmem:[%s5449_s17 + $0x18] sm:$0xff]  ;;  %v4184_v45 = vld [vmem:[%s7394_s1 + $0x508] sm:$0xff]  ;;  %v4348_v51 = vpack.c.bf16 %v280_v41, %v278_v38  ;;  %v364_v54 = vrot.slane %v5487_v43, 1  ;;  %v277_v55 = vld [vmem:[%s7394_s1] sm:$0xff] }
  0x25   : > { %4339 = vmatpush1.bf16.msra.mxu1 %v4338_v14  ;;  %v4186_v46 = vld [vmem:[%s7394_s1 + $0x518] sm:$0xff]  ;;  %7494 = vst [vmem:[#allocation16_spill] sm:$0xff] %v5496_v50  ;;  %v363_v53 = vrot.slane %v5484_v42, 1  ;;  %v279_v56 = vld [vmem:[%s7394_s1 + $0x10] sm:$0xff]  ;;  %v4183_v60 = vld [vmem:[%s7394_s1 + $0x500] sm:$0xff]  ;;  %v360_v2 = vsel %vm357_vm0, %v358_v48, %v359_v49 }
  0x26   : > { %4467 = vmatpush1.bf16.msra.mxu0 %v5423_v15  ;;  %4341 = vmatprep.subr.bf16.mxu1 %v4340_v16  ;;  %v225_v58 = vld [vmem:[%s5449_s17 + $0x10] sm:$0x3]  ;;  %v4476_v59 = vpack.c.bf16 %v4186_v46, %v4184_v45  ;;  %v5515_v62 = vld [vmem:[%s5449_s17 + $0x28] sm:$0x3]  ;;  %v4190_v1 = vld [vmem:[%s7394_s1 + $0x538] sm:$0xff]  ;;  %v4350_v3 = vpack.c.bf16 %v279_v56, %v277_v55 }
  0x27   : > { %4469 = vmatprep.subr.bf16.mxu0 %v5435_v21  ;;  %v4185_v61 = vld [vmem:[%s7394_s1 + $0x510] sm:$0xff]  ;;  %v4188_v63 = vld [vmem:[%s7394_s1 + $0x528] sm:$0xff]  ;;  %v361_v4 = vrot.slane %v225_v58, 1  ;;  %v284_v9 = vld [vmem:[%s7394_s1 + $0x38] sm:$0xff]  ;;  %v365_v10 = vsel %vm357_vm0, %v363_v53, %v364_v54  ;;  %v366_v12 = vrot.slane %v5515_v62, 1 }
  0x28   : > { %v282_v6 = vld [vmem:[%s7394_s1 + $0x28] sm:$0xff]  ;;  %v4478_v11 = vpack.c.bf16 %v4185_v61, %v4183_v60  ;;  %v5534_v14 = vld [vmem:[%s5449_s17 + $0x30] sm:$0xff]  ;;  %v5537_v16 = vld [vmem:[%s5449_s17 + $0x38] sm:$0xff]  ;;  %v4480_v17 = vpack.c.bf16 %v4190_v1, %v4188_v63 }
  0x29   : > { %4343 = vmatpush1.bf16.msra.mxu1 %v4342_v29  ;;  %v4187_v19 = vld [vmem:[%s7394_s1 + $0x520] sm:$0xff]  ;;  %v4189_v20 = vld [vmem:[%s7394_s1 + $0x530] sm:$0xff]  ;;  %v4192_v22 = vld [vmem:[%s7394_s1 + $0x548] sm:$0xff]  ;;  %v4352_v23 = vpack.c.bf16 %v284_v9, %v282_v6  ;;  %v362_v28 = vsel %vm357_vm0, %v359_v49, %v361_v4  ;;  %v367_v32 = vsel %vm357_vm0, %v364_v54, %v366_v12  ;;  %v368_v33 = vrot.slane %v5534_v14, 1 }
  0x2a   : > { %4471 = vmatpush1.bf16.msra.mxu0 %v5470_v34  ;;  %4345 = vmatprep.subr.bf16.mxu1 %v4344_v35  ;;  %v4194_v24 = vld [vmem:[%s7394_s1 + $0x558] sm:$0xff]  ;;  %v281_v25 = vld [vmem:[%s7394_s1 + $0x20] sm:$0xff]  ;;  %v283_v27 = vld [vmem:[%s7394_s1 + $0x30] sm:$0xff]  ;;  %v369_v35 = vrot.slane %v5537_v16, 1  ;;  %v4482_v36 = vpack.c.bf16 %v4189_v20, %v4187_v19  ;;  %v1028_v34 = vrot.slane %v5534_v14, 2  ;;  %v1029_v21 = vrot.slane %v5537_v16, 2 }
  0x2b   : > { %4473 = vmatprep.subr.bf16.mxu0 %v5478_v40  ;;  %v286_v29 = vld [vmem:[%s7394_s1 + $0x48] sm:$0xff]  ;;  %v288_v30 = vld [vmem:[%s7394_s1 + $0x58] sm:$0xff]  ;;  %v5569_v37 = vld [vmem:[%s5449_s17 + $0x40] sm:$0x3]  ;;  %v4484_v38 = vpack.c.bf16 %v4194_v24, %v4192_v22  ;;  %v4354_v41 = vpack.c.bf16 %v283_v27, %v281_v25 }
  0x2c   : > { %v4191_v45 = vld [vmem:[%s7394_s1 + $0x540] sm:$0xff]  ;;  %v4193_v46 = vld [vmem:[%s7394_s1 + $0x550] sm:$0xff]  ;;  %v4198_v48 = vld [vmem:[%s7394_s1 + $0x578] sm:$0xff]  ;;  %v4356_v49 = vpack.c.bf16 %v288_v30, %v286_v29  ;;  %v5599_v56 = vsel %vm357_vm0, %v368_v33, %v369_v35  ;;  %v371_v58 = vrot.slane %v5569_v37, 1  ;;  %v5958_v16 = vsel %vm1017_vm1, %v1028_v34, %v1029_v21 }
  0x2d   : > { %4347 = vmatpush1.bf16.msra.mxu1 %v4346_v47  ;;  %v4196_v47 = vld [vmem:[%s7394_s1 + $0x568] sm:$0xff]  ;;  %v287_v53 = vld [vmem:[%s7394_s1 + $0x50] sm:$0xff]  ;;  %v292_v55 = vld [vmem:[%s7394_s1 + $0x78] sm:$0xff]  ;;  %7495 = vst [vmem:[#allocation17_spill] sm:$0xff] %v5599_v56  ;;  %v4486_v61 = vpack.c.bf16 %v4193_v46, %v4191_v45 }
  0x2e   : > { %4475 = vmatpush1.bf16.msra.mxu0 %v5496_v50  ;;  %4349 = vmatprep.subr.bf16.mxu1 %v4348_v51  ;;  %v285_v51 = vld [vmem:[%s7394_s1 + $0x40] sm:$0xff]  ;;  %v290_v54 = vld [vmem:[%s7394_s1 + $0x68] sm:$0xff]  ;;  %v5606_v60 = vld [vmem:[%s5449_s17 + $0x50] sm:$0xff]  ;;  %v4488_v63 = vpack.c.bf16 %v4198_v48, %v4196_v47 }
  0x2f   : > { %4477 = vmatprep.subr.bf16.mxu0 %v4476_v59  ;;  %v5603_v59 = vld [vmem:[%s5449_s17 + $0x48] sm:$0xff]  ;;  %v4195_v1 = vld [vmem:[%s7394_s1 + $0x560] sm:$0xff]  ;;  %v4358_v4 = vpack.c.bf16 %v287_v53, %v285_v51  ;;  %v4202_v6 = vld [vmem:[%s7394_s1 + $0x598] sm:$0xff]  ;;  %v4360_v9 = vpack.c.bf16 %v292_v55, %v290_v54  ;;  %v374_v19 = vrot.slane %v5606_v60, 1  ;;  %v1034_v44 = vrot.slane %v5606_v60, 2 }
  0x30   : > { %568 = vmatmul.mubr.f32.vlgmr.msra.gmra.mrb[0].mxu1 %v360_v2  ;;  %v4197_v2 = vld [vmem:[%s7394_s1 + $0x570] sm:$0xff]  ;;  %v5635_v20 = vld [vmem:[%s5449_s17 + $0x58] sm:$0x3]  ;;  %v4204_v30 = vld [vmem:[%s7394_s1 + $0x5a8] sm:$0xff] }
  0x31   : > { %1946 = vmatmul.mubr.f32.vlgmr.msra.gmra.mrb[0].mxu0 %v365_v10  ;;  %4351 = vmatpush1.bf16.msra.mxu1 %v4350_v3  ;;  %v4200_v3 = vld [vmem:[%s7394_s1 + $0x588] sm:$0xff]  ;;  %v291_v12 = vld [vmem:[%s7394_s1 + $0x70] sm:$0xff]  ;;  %v4490_v22 = vpack.c.bf16 %v4197_v2, %v4195_v1  ;;  %v296_v29 = vld [vmem:[%s7394_s1 + $0x98] sm:$0xff] }
  0x32   : > { %4479 = vmatpush1.bf16.msra.mxu0 %v4478_v11  ;;  %573 = vmatprep.mubr.f32.mxu1 %v7400_v7  ;;  %v289_v11 = vld [vmem:[%s7394_s1 + $0x60] sm:$0xff]  ;;  %v4492_v24 = vpack.c.bf16 %v4202_v6, %v4200_v3  ;;  %v4201_v25 = vld [vmem:[%s7394_s1 + $0x590] sm:$0xff]  ;;  %v4206_v33 = vld [vmem:[%s7394_s1 + $0x5b8] sm:$0xff] }
  0x33   : > { %1951 = vmatprep.mubr.f32.mxu0 %v7400_v7  ;;  %4481 = vmatprep.subr.bf16.mxu0 %v4480_v17  ;;  %v373_v17 = vrot.slane %v5603_v59, 1  ;;  %v4362_v27 = vpack.c.bf16 %v291_v12, %v289_v11  ;;  %v5669_v45 = vld [vmem:[%s5449_s17 + $0x60] sm:$0xff]  ;;  %v5672_v46 = vld [vmem:[%s5449_s17 + $0x68] sm:$0xff]  ;;  %v4496_v48 = vpack.c.bf16 %v4206_v33, %v4204_v30  ;;  %v4205_v51 = vld [vmem:[%s7394_s1 + $0x5b0] sm:$0xff] }
  0x34   : > { %574 = vmatmul.mubr.f32.gmra.mrb[2].mxu1 %v362_v28  ;;  %4353 = vmatprep.subr.bf16.mxu1 %v4352_v23  ;;  %v4199_v23 = vld [vmem:[%s7394_s1 + $0x580] sm:$0xff]  ;;  %v294_v28 = vld [vmem:[%s7394_s1 + $0x88] sm:$0xff]  ;;  %v299_v2 = vld [vmem:[%s7394_s1 + $0xb0] sm:$0xff]  ;;  %v379_v6 = vrot.slane %v5672_v46, 1  ;;  %v1039_v18 = vrot.slane %v5672_v46, 2 }
  0x35   : > { %1952 = vmatmul.mubr.f32.gmra.mrb[2].mxu0 %v367_v32  ;;  %579 = vmatprep.mubr.f32.mxu1 %v7400_v7  ;;  %v4494_v47 = vpack.c.bf16 %v4201_v25, %v4199_v23  ;;  %v298_v54 = vld [vmem:[%s7394_s1 + $0xa8] sm:$0xff]  ;;  %v297_v1 = vld [vmem:[%s7394_s1 + $0xa0] sm:$0xff]  ;;  %v4229_v34 = vld [vmem:[%s7394_s1 + $0x670] sm:$0xff] }
  0x36   : > { %1957 = vmatprep.mubr.f32.mxu0 %v7400_v7  ;;  %4483 = vmatpush1.bf16.msra.mxu0 %v4482_v36  ;;  %v293_v36 = vld [vmem:[%s7394_s1 + $0x80] sm:$0xff]  ;;  %v4208_v55 = vld [vmem:[%s7394_s1 + $0x5c8] sm:$0xff]  ;;  %v4370_v23 = vpack.c.bf16 %v299_v2, %v297_v1  ;;  %v6053_v13 = vld [vmem:[%s5449_s17 + $0x118] sm:$0x3] }
  0x37   : > { %4485 = vmatprep.subr.bf16.mxu0 %v4484_v38  ;;  %4355 = vmatpush1.bf16.msra.mxu1 %v4354_v41  ;;  %v5665_v38 = vsel %vm357_vm0, %v373_v17, %v374_v19  ;;  %v376_v41 = vrot.slane %v5635_v20, 1  ;;  %v4207_v17 = vld [vmem:[%s7394_s1 + $0x5c0] sm:$0xff]  ;;  %v302_v25 = vld [vmem:[%s7394_s1 + $0xc8] sm:$0xff] }
  0x38   : > { %580 = vmatmul.mubr.f32.gmra.mrb[4].mxu1 %v365_v10  ;;  %4357 = vmatprep.subr.bf16.mxu1 %v4356_v49  ;;  %v5630_v10 = vsel %vm357_vm0, %v369_v35, %v371_v58  ;;  %v4364_v35 = vpack.c.bf16 %v296_v29, %v294_v28  ;;  %7497 = vst [vmem:[#allocation19_spill] sm:$0xff] %v5665_v38  ;;  %v4203_v49 = vld [vmem:[%s7394_s1 + $0x5a0] sm:$0xff]  ;;  %v4210_v58 = vld [vmem:[%s7394_s1 + $0x5d8] sm:$0xff]  ;;  %v5935_v15 = vld [vmem:[%s5449_s17 + $0xe8] sm:$0x3] }
  0x39   : > { %1958 = vmatmul.mubr.f32.gmra.mrb[4].mxu0 %v5599_v56  ;;  %585 = vmatprep.mubr.f32.mxu1 %v7400_v7  ;;  %7496 = vst [vmem:[#allocation18_spill] sm:$0xff] %v5630_v10  ;;  %v5703_v3 = vsel %vm357_vm0, %v374_v19, %v376_v41  ;;  %v4498_v11 = vpack.c.bf16 %v4205_v51, %v4203_v49  ;;  %v4212_v19 = vld [vmem:[%s7394_s1 + $0x5e8] sm:$0xff]  ;;  %v301_v29 = vld [vmem:[%s7394_s1 + $0xc0] sm:$0xff]  ;;  %v4213_v49 = vld [vmem:[%s7394_s1 + $0x5f0] sm:$0xff] }
  0x3a   : > { %1963 = vmatprep.mubr.f32.mxu0 %v7400_v7  ;;  %4487 = vmatpush1.bf16.msra.mxu0 %v4486_v61  ;;  %v300_v61 = vld [vmem:[%s7394_s1 + $0xb8] sm:$0xff]  ;;  %7498 = vst [vmem:[#allocation20_spill] sm:$0xff] %v5703_v3  ;;  %v4500_v12 = vpack.c.bf16 %v4210_v58, %v4208_v55  ;;  %v5746_v41 = vld [vmem:[%s5449_s17 + $0x80] sm:$0xff]  ;;  %v306_v58 = vld [vmem:[%s7394_s1 + $0xe8] sm:$0xff] }
  0x3b   : > { %4489 = vmatprep.subr.bf16.mxu0 %v4488_v63  ;;  %4359 = vmatpush1.bf16.msra.mxu1 %v4358_v4  ;;  %v4368_v63 = vpack.c.bf16 %v300_v61, %v298_v54  ;;  %v378_v4 = vrot.slane %v5669_v45, 1  ;;  %v4218_v54 = vld [vmem:[%s7394_s1 + $0x618] sm:$0xff]  ;;  %v384_v1 = vrot.slane %v5746_v41, 1  ;;  %v4219_v40 = vld [vmem:[%s7394_s1 + $0x620] sm:$0xff]  ;;  %v4228_v14 = vld [vmem:[%s7394_s1 + $0x668] sm:$0xff] }
  0x3c   : > { %586 = vmatmul.mubr.f32.gmra.mrb[6].mxu1 %v367_v32  ;;  %4361 = vmatprep.subr.bf16.mxu1 %v4360_v9  ;;  %v295_v32 = vld [vmem:[%s7394_s1 + $0x90] sm:$0xff]  ;;  %v308_v61 = vld [vmem:[%s7394_s1 + $0xf8] sm:$0xff]  ;;  %v5994_v39 = vld [vmem:[%s5449_s17 + $0x100] sm:$0x3] }
  0x3d   : > { %1964 = vmatmul.mubr.f32.gmra.mrb[6].mxu0 %v5630_v10  ;;  %591 = vmatprep.mubr.f32.mxu1 %v7400_v7  ;;  %v4366_v53 = vpack.c.bf16 %v295_v32, %v293_v36  ;;  %v5708_v9 = vld [vmem:[%s5449_s17 + $0x70] sm:$0x3]  ;;  %v5736_v30 = vsel %vm357_vm0, %v378_v4, %v379_v6  ;;  %v4376_v4 = vpack.c.bf16 %v308_v61, %v306_v58  ;;  %v5840_v61 = vld [vmem:[%s5449_s17 + $0xb8] sm:$0x3]  ;;  %v411_v60 = vrot.slane %v5994_v39, 1 }
  0x3e   : > { %1969 = vmatprep.mubr.f32.mxu0 %v7400_v7  ;;  %4491 = vmatpush1.bf16.msra.mxu0 %v4490_v22  ;;  %v4209_v22 = vld [vmem:[%s7394_s1 + $0x5d0] sm:$0xff]  ;;  %7499 = vst [vmem:[#allocation21_spill] sm:$0xff] %v5736_v30  ;;  %v381_v33 = vrot.slane %v5708_v9, 1 }
  0x3f   : > { %4493 = vmatprep.subr.bf16.mxu0 %v4492_v24  ;;  %4363 = vmatpush1.bf16.msra.mxu1 %v4362_v27  ;;  %v4214_v24 = vld [vmem:[%s7394_s1 + $0x5f8] sm:$0xff]  ;;  %v4502_v36 = vpack.c.bf16 %v4209_v22, %v4207_v17  ;;  %v303_v32 = vld [vmem:[%s7394_s1 + $0xd0] sm:$0xff] }
  0x40   : > { %592 = vmatmul.mubr.f32.gmra.mrb[8].mxu1 %v5599_v56  ;;  %4365 = vmatprep.subr.bf16.mxu1 %v4364_v35  ;;  %v304_v27 = vld [vmem:[%s7394_s1 + $0xd8] sm:$0xff]  ;;  %v4374_v51 = vpack.c.bf16 %v303_v32, %v301_v29 }
  0x41   : > { %1970 = vmatmul.mubr.f32.gmra.mrb[8].mxu0 %v5665_v38  ;;  %597 = vmatprep.mubr.f32.mxu1 %v7400_v7  ;;  %v4372_v28 = vpack.c.bf16 %v304_v27, %v302_v25  ;;  %v5740_v35 = vld [vmem:[%s5449_s17 + $0x78] sm:$0xff]  ;;  %v5799_v27 = vld [vmem:[%s5449_s17 + $0x90] sm:$0xff] }
  0x42   : > { %1975 = vmatprep.mubr.f32.mxu0 %v7400_v7  ;;  %4495 = vmatpush1.bf16.msra.mxu0 %v4494_v47  ;;  %v4504_v47 = vpack.c.bf16 %v4214_v24, %v4212_v19  ;;  %v383_v55 = vrot.slane %v5740_v35, 1  ;;  %v4088_v19 = vld [vmem:[%s7394_s1 + $0x208] sm:$0xff]  ;;  %v4090_v25 = vld [vmem:[%s7394_s1 + $0x218] sm:$0xff] }
  0x43   : > { %4497 = vmatprep.subr.bf16.mxu0 %v4496_v48  ;;  %4367 = vmatpush1.bf16.msra.mxu1 %v4366_v53  ;;  %v4211_v48 = vld [vmem:[%s7394_s1 + $0x5e0] sm:$0xff]  ;;  %v4216_v53 = vld [vmem:[%s7394_s1 + $0x608] sm:$0xff]  ;;  %v4380_v29 = vpack.c.bf16 %v4090_v25, %v4088_v19  ;;  %v5866_v19 = vld [vmem:[%s5449_s17 + $0xd0] sm:$0x3] }
  0x44   : > { %598 = vmatmul.mubr.f32.gmra.mrb[10].mxu1 %v5630_v10  ;;  %4369 = vmatprep.subr.bf16.mxu1 %v4368_v63  ;;  %v5772_v63 = vsel %vm357_vm0, %v379_v6, %v381_v33  ;;  %v4506_v2 = vpack.c.bf16 %v4213_v49, %v4211_v48  ;;  %v4508_v17 = vpack.c.bf16 %v4218_v54, %v4216_v53  ;;  %v307_v6 = vld [vmem:[%s7394_s1 + $0xf0] sm:$0xff]  ;;  %v401_v25 = vrot.slane %v5866_v19, 1  ;;  %v5144_v56 = vld [vmem:[%s5449_s17 + $0x18] sm:$0xff] }
  0x45   : > { %1976 = vmatmul.mubr.f32.gmra.mrb[10].mxu0 %v5703_v3  ;;  %603 = vmatprep.mubr.f32.mxu1 %v7400_v7  ;;  %7500 = vst [vmem:[#allocation22_spill] sm:$0xff] %v5772_v63  ;;  %v5828_v53 = vld [vmem:[%s5449_s17 + $0xb0] sm:$0xff] }
  0x46   : > { %1981 = vmatprep.mubr.f32.mxu0 %v7400_v7  ;;  %4499 = vmatpush1.bf16.msra.mxu0 %v4498_v11  ;;  %v305_v11 = vld [vmem:[%s7394_s1 + $0xe0] sm:$0xff]  ;;  %v394_v58 = vrot.slane %v5828_v53, 1 }
  0x47   : > { %4501 = vmatprep.subr.bf16.mxu0 %v4500_v12  ;;  %4371 = vmatpush1.bf16.msra.mxu1 %v4370_v23  ;;  %v5779_v12 = vld [vmem:[%s5449_s17 + $0x88] sm:$0x3]  ;;  %v4378_v22 = vpack.c.bf16 %v307_v6, %v305_v11  ;;  %v5792_v23 = vsel %vm357_vm0, %v383_v55, %v384_v1 }
  0x48   : > { %604 = vmatmul.mubr.f32.gmra.mrb[12].mxu1 %v5665_v38  ;;  %4373 = vmatprep.subr.bf16.mxu1 %v4372_v28  ;;  %7501 = vst [vmem:[#allocation23_spill] sm:$0xff] %v5792_v23  ;;  %v386_v24 = vrot.slane %v5779_v12, 1  ;;  %v5802_v28 = vld [vmem:[%s5449_s17 + $0x98] sm:$0xff]  ;;  %v5854_v11 = vld [vmem:[%s5449_s17 + $0xc8] sm:$0xff]  ;;  %v6270_v38 = vld [vmem:[%s5449_s17] sm:$0xff] }
  0x49   : > { %1982 = vmatmul.mubr.f32.gmra.mrb[12].mxu0 %v5736_v30  ;;  %609 = vmatprep.mubr.f32.mxu1 %v7400_v7  ;;  %v389_v32 = vrot.slane %v5802_v28, 1 }
  0x4a   : > { %1987 = vmatprep.mubr.f32.mxu0 %v7400_v7  ;;  %4503 = vmatpush1.bf16.msra.mxu0 %v4502_v36  ;;  %v5809_v33 = vsel %vm357_vm0, %v384_v1, %v386_v24  ;;  %v388_v36 = vrot.slane %v5799_v27, 1 }
  0x4b   : > { %4505 = vmatprep.subr.bf16.mxu0 %v4504_v47  ;;  %4375 = vmatpush1.bf16.msra.mxu1 %v4374_v51  ;;  %7502 = vst [vmem:[#allocation24_spill] sm:$0xff] %v5809_v33  ;;  %v5814_v47 = vld [vmem:[%s5449_s17 + $0xa0] sm:$0x3]  ;;  %v5825_v51 = vld [vmem:[%s5449_s17 + $0xa8] sm:$0xff] }
  0x4c   : > { %610 = vmatmul.mubr.f32.gmra.mrb[14].mxu1 %v5703_v3  ;;  %4377 = vmatprep.subr.bf16.mxu1 %v4376_v4  ;;  %v5821_v48 = vsel %vm357_vm0, %v388_v36, %v389_v32  ;;  %v391_v49 = vrot.slane %v5814_v47, 1  ;;  %v393_v55 = vrot.slane %v5825_v51, 1  ;;  %v5851_v4 = vld [vmem:[%s5449_s17 + $0xc0] sm:$0xff]  ;;  %v1023_v36 = vrot.slane %v5484_v42, 2  ;;  %v4222_v42 = vld [vmem:[%s7394_s1 + $0x638] sm:$0xff]  ;;  %v4093_v3 = vld [vmem:[%s7394_s1 + $0x230] sm:$0xff] }
  0x4d   : > { %1988 = vmatmul.mubr.f32.gmra.mrb[14].mxu0 %v5772_v63  ;;  %615 = vmatprep.mubr.f32.mxu1 %v7400_v7  ;;  %7503 = vst [vmem:[#allocation25_spill] sm:$0xff] %v5821_v48  ;;  %v398_v6 = vrot.slane %v5851_v4, 1 }
  0x4e   : > { %1993 = vmatprep.mubr.f32.mxu0 %v7400_v7  ;;  %4507 = vmatpush1.bf16.msra.mxu0 %v4506_v2  ;;  %v5835_v54 = vsel %vm357_vm0, %v389_v32, %v391_v49  ;;  %v5847_v1 = vsel %vm357_vm0, %v393_v55, %v394_v58  ;;  %v396_v2 = vrot.slane %v5840_v61, 1  ;;  %v1024_v32 = vrot.slane %v5487_v43, 2  ;;  %v4215_v49 = vld [vmem:[%s7394_s1 + $0x600] sm:$0xff]  ;;  %v4217_v55 = vld [vmem:[%s7394_s1 + $0x610] sm:$0xff] }
  0x4f   : > { %4509 = vmatprep.subr.bf16.mxu0 %v4508_v17  ;;  %4379 = vmatpush1.bf16.msra.mxu1 %v4378_v22  ;;  %7504 = vst [vmem:[#allocation26_spill] sm:$0xff] %v5835_v54  ;;  %7505 = vst [vmem:[#allocation27_spill] sm:$0xff] %v5847_v1  ;;  %v399_v22 = vrot.slane %v5854_v11, 1 }
  0x50   : > { %616 = vmatmul.mubr.f32.gmra.mrb[16].mxu1 %v5736_v30  ;;  %4381 = vmatprep.subr.bf16.mxu1 %v4380_v29  ;;  %v5861_v17 = vsel %vm357_vm0, %v394_v58, %v396_v2  ;;  %v4220_v58 = vld [vmem:[%s7394_s1 + $0x628] sm:$0xff]  ;;  %v5902_v43 = vsel %vm1017_vm1, %v1023_v36, %v1024_v32  ;;  %v4510_v2 = vpack.c.bf16 %v4217_v55, %v4215_v49  ;;  %v4226_v36 = vld [vmem:[%s7394_s1 + $0x658] sm:$0xff]  ;;  %v7509_v49 = vmov 0.0   ;;  %v4091_v30 = vld [vmem:[%s7394_s1 + $0x220] sm:$0xff] }
  0x51   : > { %1994 = vmatmul.mubr.f32.gmra.mrb[16].mxu0 %v5792_v23  ;;  %621 = vmatprep.mubr.f32.mxu1 %v7400_v7  ;;  %7506 = vst [vmem:[#allocation28_spill] sm:$0xff] %v5861_v17  ;;  %v5873_v24 = vsel %vm357_vm0, %v398_v6, %v399_v22  ;;  %v5881_v29 = vsel %vm357_vm0, %v399_v22, %v401_v25  ;;  %v1026_v6 = vrot.slane %v5515_v62, 2  ;;  %v5906_v22 = vld [vmem:[%s5449_s17 + $0xd8] sm:$0xff]  ;;  %v5909_v25 = vld [vmem:[%s5449_s17 + $0xe0] sm:$0xff]  ;;  %v4224_v62 = vld [vmem:[%s7394_s1 + $0x648] sm:$0xff] }
  0x52   : > { %1999 = vmatprep.mubr.f32.mxu0 %v7400_v7  ;;  %7507 = vst [vmem:[#allocation29_spill] sm:$0xff] %v5873_v24  ;;  %7508 = vst [vmem:[#allocation30_spill] sm:$0xff] %v5881_v29  ;;  %v4512_v50 = vpack.c.bf16 %v4222_v42, %v4220_v58  ;;  %v403_v55 = vrot.slane %v5906_v22, 1  ;;  %v404_v58 = vrot.slane %v5909_v25, 1  ;;  %v4516_v0 = vpack.c.bf16 %v4226_v36, %v4224_v62  ;;  %v5962_v62 = vld [vmem:[%s5449_s17 + $0xf0] sm:$0xff]  ;;  %v5965_v36 = vld [vmem:[%s5449_s17 + $0xf8] sm:$0xff] }
  0x53   : > { %v5930_v42 = vsel %vm1017_vm1, %v1024_v32, %v1026_v6  ;;  %v4225_v32 = vld [vmem:[%s7394_s1 + $0x650] sm:$0xff]  ;;  %v1031_v6 = vrot.slane %v5569_v37, 2  ;;  %v4232_v37 = vld [vmem:[%s7394_s1 + $0x688] sm:$0xff] }
  0x54   : > { %622 = vmatmul.mubr.f32.gmra.mrb[18].mxu1 %v5772_v63 }
  0x55   : > { %2000 = vmatmul.mubr.f32.gmra.mrb[18].mxu0 %v5809_v33  ;;  %627 = vmatprep.mubr.f32.mxu1 %v7400_v7 }
  0x56   : > { %2005 = vmatprep.mubr.f32.mxu0 %v7400_v7 }
  0x58   : > { %628 = vmatmul.mubr.f32.gmra.mrb[20].mxu1 %v5792_v23  ;;  %v1063_v23 = vrot.slane %v5906_v22, 2 }
  0x59   : > { %2006 = vmatmul.mubr.f32.gmra.mrb[20].mxu0 %v5821_v48  ;;  %633 = vmatprep.mubr.f32.mxu1 %v7400_v7 }
  0x5a   : > { %2011 = vmatprep.mubr.f32.mxu0 %v7400_v7 }
  0x5c   : > { %634 = vmatmul.mubr.f32.gmra.mrb[22].mxu1 %v5809_v33  ;;  %v6217_v33 = vld [vmem:[%s5449_s17 + $0x178] sm:$0x3] }
  0x5d   : > { %2012 = vmatmul.mubr.f32.gmra.mrb[22].mxu0 %v5835_v54  ;;  %639 = vmatprep.mubr.f32.mxu1 %v7400_v7 }
  0x5e   : > { %2017 = vmatprep.mubr.f32.mxu0 %v7400_v7 }
  0x60   : > { %640 = vmatmul.mubr.f32.gmra.mrb[24].mxu1 %v5821_v48  ;;  %v1058_v48 = vrot.slane %v5851_v4, 2 }
  0x61   : > { %2018 = vmatmul.mubr.f32.gmra.mrb[24].mxu0 %v5847_v1  ;;  %645 = vmatprep.mubr.f32.mxu1 %v7400_v7 }
  0x62   : > { %2023 = vmatprep.mubr.f32.mxu0 %v7400_v7 }
  0x64   : > { %646 = vmatmul.mubr.f32.gmra.mrb[26].mxu1 %v5835_v54 }
  0x65   : > { %2024 = vmatmul.mubr.f32.gmra.mrb[26].mxu0 %v5861_v17  ;;  %651 = vmatprep.mubr.f32.mxu1 %v7400_v7 }
  0x66   : > { %2029 = vmatprep.mubr.f32.mxu0 %v7400_v7 }
  0x68   : > { %652 = vmatmul.mubr.f32.gmra.mrb[28].mxu1 %v5847_v1  ;;  %v6197_v1 = vld [vmem:[%s5449_s17 + $0x168] sm:$0xff] }
  0x69   : > { %2030 = vmatmul.mubr.f32.gmra.mrb[28].mxu0 %v5873_v24  ;;  %657 = vmatprep.mubr.f32.mxu1 %v7400_v7  ;;  %v433_v54 = vrot.slane %v6197_v1, 1 }
  0x6a   : > { %2035 = vmatprep.mubr.f32.mxu0 %v7400_v7 }
  0x6c   : > { %658 = vmatmul.mubr.f32.gmra.mrb[30].mxu1 %v5861_v17  ;;  %v6182_v17 = vld [vmem:[%s5449_s17 + $0x160] sm:$0x3] }
  0x6d   : > { %2036 = vmatmul.mubr.f32.gmra.mrb[30].mxu0 %v5881_v29  ;;  %663 = vmatprep.mubr.f32.mxu1 %v7400_v7 }
  0x6e   : > { %2306 = vmatprep.mubr.f32.mxu0 %v7400_v7  ;;  %v4221_v7 = vld [vmem:[%s7394_s1 + $0x630] sm:$0xff] }
  0x6f   : > { %v4514_v5 = vpack.c.bf16 %v4221_v7, %v4219_v40  ;;  %v4230_v7 = vld [vmem:[%s7394_s1 + $0x678] sm:$0xff]  ;;  %v5953_v40 = vsel %vm357_vm0, %v403_v55, %v404_v58  ;;  %v4227_v55 = vld [vmem:[%s7394_s1 + $0x660] sm:$0xff] }
  0x70   : > { %664 = vmatmul.mubr.f32.gmra.mrb[32].mxu1 %v5873_v24  ;;  %7510 = vst [vmem:[#allocation31_spill] sm:$0xff] %v5953_v40  ;;  %v4520_v52 = vpack.c.bf16 %v4230_v7, %v4228_v14  ;;  %v5989_v14 = vsel %vm1017_vm1, %v1029_v21, %v1031_v6  ;;  %v1033_v7 = vrot.slane %v5603_v59, 2  ;;  %v4522_v31 = vpack.c.bf16 %v4229_v34, %v4227_v55  ;;  %v4233_v21 = vld [vmem:[%s7394_s1 + $0x690] sm:$0xff]  ;;  %v4236_v59 = vld [vmem:[%s7394_s1 + $0x6a8] sm:$0xff] }
  0x71   : > { %2307 = vmatmul.mubr.f32.vlgmr.msra.gmra.mrb[0].mxu0 %v5902_v43  ;;  %669 = vmatprep.mubr.f32.mxu1 %v7509_v49  ;;  %v1036_v55 = vrot.slane %v5635_v20, 2  ;;  %v6021_v34 = vld [vmem:[%s5449_s17 + $0x108] sm:$0xff] }
  0x72   : > { %4511 = vmatpush1.bf16.msra.mxu0 %v4510_v2  ;;  %2312 = vmatprep.mubr.f32.mxu0 %v7509_v49  ;;  %v4223_v2 = vld [vmem:[%s7394_s1 + $0x640] sm:$0xff]  ;;  %v6017_v6 = vsel %vm1017_vm1, %v1033_v7, %v1034_v44  ;;  %v4237_v7 = vld [vmem:[%s7394_s1 + $0x6b0] sm:$0xff]  ;;  %v4240_v20 = vld [vmem:[%s7394_s1 + $0x6c8] sm:$0xff] }
  0x73   : > { %4513 = vmatprep.subr.bf16.mxu0 %v4512_v50  ;;  %v406_v50 = vrot.slane %v5935_v15, 1  ;;  %v4518_v57 = vpack.c.bf16 %v4225_v32, %v4223_v2  ;;  %v408_v2 = vrot.slane %v5962_v62, 1  ;;  %v409_v32 = vrot.slane %v5965_v36, 1 }
  0x74   : > { %670 = vmatmul.mubr.f32.gmra.mrb[34].mxu1 %v5881_v29  ;;  %v6112_v29 = vld [vmem:[%s5449_s17 + $0x130] sm:$0x3] }
  0x75   : > { %2313 = vmatmul.mubr.f32.gmra.mrb[2].mxu0 %v5930_v42  ;;  %675 = vmatprep.mubr.f32.mxu1 %v7509_v49 }
  0x76   : > { %2318 = vmatprep.mubr.f32.mxu0 %v7509_v49  ;;  %4515 = vmatpush1.bf16.msra.mxu0 %v4514_v5  ;;  %v5983_v5 = vsel %vm357_vm0, %v404_v58, %v406_v50  ;;  %v4231_v50 = vld [vmem:[%s7394_s1 + $0x680] sm:$0xff] }
  0x77   : > { %4517 = vmatprep.subr.bf16.mxu0 %v4516_v0  ;;  %v4234_v0 = vld [vmem:[%s7394_s1 + $0x698] sm:$0xff]  ;;  %7511 = vst [vmem:[#allocation32_spill] sm:$0xff] %v5983_v5 }
  0x78   : > { %676 = vmatmul.mubr.f32.gmra.mrb[36].mxu1 %v5953_v40  ;;  %v4524_v58 = vpack.c.bf16 %v4234_v0, %v4232_v37  ;;  %v6024_v37 = vld [vmem:[%s5449_s17 + $0x110] sm:$0xff]  ;;  %v4526_v0 = vpack.c.bf16 %v4233_v21, %v4231_v50  ;;  %v413_v50 = vrot.slane %v6021_v34, 1 }
  0x79   : > { %2319 = vmatmul.mubr.f32.gmra.mrb[4].mxu0 %v5958_v16  ;;  %681 = vmatprep.mubr.f32.mxu1 %v7509_v49  ;;  %v414_v21 = vrot.slane %v6024_v37, 1 }
  0x7a   : > { %2324 = vmatprep.mubr.f32.mxu0 %v7509_v49  ;;  %4519 = vmatpush1.bf16.msra.mxu0 %v4518_v57  ;;  %v4238_v57 = vld [vmem:[%s7394_s1 + $0x6b8] sm:$0xff] }
  0x7b   : > { %4521 = vmatprep.subr.bf16.mxu0 %v4520_v52  ;;  %v6012_v52 = vsel %vm357_vm0, %v408_v2, %v409_v32  ;;  %v4528_v26 = vpack.c.bf16 %v4238_v57, %v4236_v59  ;;  %v4235_v2 = vld [vmem:[%s7394_s1 + $0x6a0] sm:$0xff]  ;;  %v6048_v59 = vsel %vm1017_vm1, %v1034_v44, %v1036_v55  ;;  %v1038_v57 = vrot.slane %v5669_v45, 2  ;;  %v4241_v44 = vld [vmem:[%s7394_s1 + $0x6d0] sm:$0xff]  ;;  %v4244_v55 = vld [vmem:[%s7394_s1 + $0x6e8] sm:$0xff] }
  0x7c   : > { %682 = vmatmul.mubr.f32.gmra.mrb[38].mxu1 %v5983_v5  ;;  %7512 = vst [vmem:[#allocation33_spill] sm:$0xff] %v6012_v52 }
  0x7d   : > { %2325 = vmatmul.mubr.f32.gmra.mrb[6].mxu0 %v5989_v14  ;;  %687 = vmatprep.mubr.f32.mxu1 %v7509_v49 }
  0x7e   : > { %2330 = vmatprep.mubr.f32.mxu0 %v7509_v49  ;;  %4523 = vmatpush1.bf16.msra.mxu0 %v4522_v31  ;;  %v4242_v31 = vld [vmem:[%s7394_s1 + $0x6d8] sm:$0xff] }
  0x7f   : > { %4525 = vmatprep.subr.bf16.mxu0 %v4524_v58  ;;  %v6042_v58 = vsel %vm357_vm0, %v409_v32, %v411_v60  ;;  %v4532_v32 = vpack.c.bf16 %v4242_v31, %v4240_v20  ;;  %v4239_v60 = vld [vmem:[%s7394_s1 + $0x6c0] sm:$0xff]  ;;  %v1041_v20 = vrot.slane %v5708_v9, 2  ;;  %v4248_v9 = vld [vmem:[%s7394_s1 + $0x708] sm:$0xff] }
  0x80   : > { %688 = vmatmul.mubr.f32.gmra.mrb[40].mxu1 %v6012_v52  ;;  %7513 = vst [vmem:[#allocation34_spill] sm:$0xff] %v6042_v58  ;;  %v4530_v52 = vpack.c.bf16 %v4237_v7, %v4235_v2  ;;  %v416_v2 = vrot.slane %v6053_v13, 1  ;;  %v6076_v7 = vsel %vm1017_vm1, %v1038_v57, %v1039_v18  ;;  %v6080_v31 = vld [vmem:[%s5449_s17 + $0x120] sm:$0xff]  ;;  %v4534_v5 = vpack.c.bf16 %v4241_v44, %v4239_v60  ;;  %v4245_v57 = vld [vmem:[%s7394_s1 + $0x6f0] sm:$0xff] }
  0x81   : > { %2331 = vmatmul.mubr.f32.gmra.mrb[8].mxu0 %v6017_v6  ;;  %693 = vmatprep.mubr.f32.mxu1 %v7509_v49  ;;  %v418_v60 = vrot.slane %v6080_v31, 1 }
  0x82   : > { %2336 = vmatprep.mubr.f32.mxu0 %v7509_v49  ;;  %4527 = vmatpush1.bf16.msra.mxu0 %v4526_v0  ;;  %v4246_v0 = vld [vmem:[%s7394_s1 + $0x6f8] sm:$0xff] }
  0x83   : > { %4529 = vmatprep.subr.bf16.mxu0 %v4528_v26  ;;  %v6071_v26 = vsel %vm357_vm0, %v413_v50, %v414_v21  ;;  %v4536_v40 = vpack.c.bf16 %v4246_v0, %v4244_v55  ;;  %v4243_v50 = vld [vmem:[%s7394_s1 + $0x6e0] sm:$0xff]  ;;  %v6107_v55 = vsel %vm1017_vm1, %v1039_v18, %v1041_v20  ;;  %v1043_v0 = vrot.slane %v5740_v35, 2 }
  0x84   : > { %694 = vmatmul.mubr.f32.gmra.mrb[42].mxu1 %v6042_v58  ;;  %7514 = vst [vmem:[#allocation35_spill] sm:$0xff] %v6071_v26  ;;  %v6083_v58 = vld [vmem:[%s5449_s17 + $0x128] sm:$0xff]  ;;  %v421_v20 = vrot.slane %v6112_v29, 1 }
  0x85   : > { %2337 = vmatmul.mubr.f32.gmra.mrb[10].mxu0 %v6048_v59  ;;  %699 = vmatprep.mubr.f32.mxu1 %v7509_v49  ;;  %v419_v44 = vrot.slane %v6083_v58, 1 }
  0x86   : > { %2342 = vmatprep.mubr.f32.mxu0 %v7509_v49  ;;  %4531 = vmatpush1.bf16.msra.mxu0 %v4530_v52  ;;  %v4250_v52 = vld [vmem:[%s7394_s1 + $0x718] sm:$0xff] }
  0x87   : > { %4533 = vmatprep.subr.bf16.mxu0 %v4532_v32  ;;  %v6101_v32 = vsel %vm357_vm0, %v414_v21, %v416_v2  ;;  %v4538_v21 = vpack.c.bf16 %v4245_v57, %v4243_v50  ;;  %v4540_v2 = vpack.c.bf16 %v4250_v52, %v4248_v9  ;;  %v6118_v18 = vsel %vm357_vm0, %v418_v60, %v419_v44  ;;  %v6130_v50 = vld [vmem:[%s5449_s17 + $0x140] sm:$0xff] }
  0x88   : > { %700 = vmatmul.mubr.f32.gmra.mrb[44].mxu1 %v6071_v26  ;;  %7515 = vst [vmem:[#allocation36_spill] sm:$0xff] %v6101_v32  ;;  %v1044_v26 = vrot.slane %v5746_v41, 2  ;;  %7516 = vst [vmem:[#allocation37_spill] sm:$0xff] %v6118_v18  ;;  %v6136_v57 = vsel %vm357_vm0, %v419_v44, %v421_v20  ;;  %v1048_v60 = vrot.slane %v5799_v27, 2  ;;  %v1051_v20 = vrot.slane %v5814_v47, 2 }
  0x89   : > { %2343 = vmatmul.mubr.f32.gmra.mrb[12].mxu0 %v6076_v7  ;;  %705 = vmatprep.mubr.f32.mxu1 %v7509_v49  ;;  %7517 = vst [vmem:[#allocation38_spill] sm:$0xff] %v6136_v57 }
  0x8a   : > { %2348 = vmatprep.mubr.f32.mxu0 %v7509_v49  ;;  %4535 = vmatpush1.bf16.msra.mxu0 %v4534_v5  ;;  %v6123_v24 = vsel %vm1017_vm1, %v1043_v0, %v1044_v26  ;;  %v6127_v5 = vld [vmem:[%s5449_s17 + $0x138] sm:$0xff]  ;;  %v1049_v0 = vrot.slane %v5802_v28, 2 }
  0x8b   : > { %4537 = vmatprep.subr.bf16.mxu0 %v4536_v40  ;;  %v1046_v40 = vrot.slane %v5779_v12, 2  ;;  %v423_v9 = vrot.slane %v6127_v5, 1  ;;  %v424_v12 = vrot.slane %v6130_v50, 1 }
  0x8c   : > { %706 = vmatmul.mubr.f32.gmra.mrb[46].mxu1 %v6101_v32  ;;  %v6177_v47 = vsel %vm1017_vm1, %v1049_v0, %v1051_v20  ;;  %v1054_v32 = vrot.slane %v5828_v53, 2  ;;  %v1056_v20 = vrot.slane %v5840_v61, 2 }
  0x8d   : > { %2349 = vmatmul.mubr.f32.gmra.mrb[14].mxu0 %v6107_v55  ;;  %711 = vmatprep.mubr.f32.mxu1 %v7509_v49  ;;  %v6142_v52 = vsel %vm1017_vm1, %v1044_v26, %v1046_v40  ;;  %v6153_v44 = vsel %vm357_vm0, %v423_v9, %v424_v12  ;;  %v6158_v26 = vsel %vm1017_vm1, %v1048_v60, %v1049_v0  ;;  %v6162_v40 = vld [vmem:[%s5449_s17 + $0x150] sm:$0xff] }
  0x8e   : > { %2354 = vmatprep.mubr.f32.mxu0 %v7509_v49  ;;  %4539 = vmatpush1.bf16.msra.mxu0 %v4538_v21  ;;  %v6147_v21 = vld [vmem:[%s5449_s17 + $0x148] sm:$0x3]  ;;  %7518 = vst [vmem:[#allocation39_spill] sm:$0xff] %v6153_v44  ;;  %v6212_v61 = vsel %vm1017_vm1, %v1054_v32, %v1056_v20  ;;  %v1061_v20 = vrot.slane %v5866_v19, 2  ;;  %v4087_v19 = vld [vmem:[%s7394_s1 + $0x200] sm:$0xff] }
  0x8f   : > { %4541 = vmatprep.subr.bf16.mxu0 %v4540_v2  ;;  %v426_v2 = vrot.slane %v6147_v21, 1 }
  0x90   : > { %712 = vmatmul.mubr.f32.gmra.mrb[48].mxu1 %v6118_v18  ;;  %v428_v18 = vrot.slane %v6162_v40, 1 }
  0x91   : > { %2355 = vmatmul.mubr.f32.gmra.mrb[16].mxu0 %v6123_v24  ;;  %717 = vmatprep.mubr.f32.mxu1 %v7509_v49  ;;  %v6171_v9 = vsel %vm357_vm0, %v424_v12, %v426_v2  ;;  %v431_v2 = vrot.slane %v6182_v17, 1 }
  0x92   : > { %2360 = vmatprep.mubr.f32.mxu0 %v7509_v49  ;;  %7519 = vst [vmem:[#allocation40_spill] sm:$0xff] %v6171_v9 }
  0x94   : > { %718 = vmatmul.mubr.f32.gmra.mrb[50].mxu1 %v6136_v57  ;;  %v6165_v57 = vld [vmem:[%s5449_s17 + $0x158] sm:$0xff] }
  0x95   : > { %2361 = vmatmul.mubr.f32.gmra.mrb[18].mxu0 %v6142_v52  ;;  %723 = vmatprep.mubr.f32.mxu1 %v7509_v49  ;;  %v429_v60 = vrot.slane %v6165_v57, 1 }
  0x96   : > { %2366 = vmatprep.mubr.f32.mxu0 %v7509_v49 }
  0x97   : > { %v6188_v12 = vsel %vm357_vm0, %v428_v18, %v429_v60  ;;  %v6206_v18 = vsel %vm357_vm0, %v429_v60, %v431_v2  ;;  %v436_v2 = vrot.slane %v6217_v33, 1 }
  0x98   : > { %724 = vmatmul.mubr.f32.gmra.mrb[52].mxu1 %v6153_v44  ;;  %v1053_v44 = vrot.slane %v5825_v51, 2  ;;  %7520 = vst [vmem:[#allocation41_spill] sm:$0xff] %v6188_v12  ;;  %7521 = vst [vmem:[#allocation42_spill] sm:$0xff] %v6206_v18 }
  0x99   : > { %2367 = vmatmul.mubr.f32.gmra.mrb[20].mxu0 %v6158_v26  ;;  %729 = vmatprep.mubr.f32.mxu1 %v7509_v49 }
  0x9a   : > { %2372 = vmatprep.mubr.f32.mxu0 %v7509_v49  ;;  %v6193_v0 = vsel %vm1017_vm1, %v1053_v44, %v1054_v32 }
  0x9c   : > { %730 = vmatmul.mubr.f32.gmra.mrb[54].mxu1 %v6171_v9  ;;  %v6200_v9 = vld [vmem:[%s5449_s17 + $0x170] sm:$0xff] }
  0x9d   : > { %2373 = vmatmul.mubr.f32.gmra.mrb[22].mxu0 %v6177_v47  ;;  %735 = vmatprep.mubr.f32.mxu1 %v7509_v49  ;;  %v434_v44 = vrot.slane %v6200_v9, 1 }
  0x9e   : > { %2378 = vmatprep.mubr.f32.mxu0 %v7509_v49 }
  0x9f   : > { %v6223_v60 = vsel %vm357_vm0, %v433_v54, %v434_v44 }
  0xa0   : > { %736 = vmatmul.mubr.f32.gmra.mrb[56].mxu1 %v6188_v12  ;;  %v1059_v12 = vrot.slane %v5854_v11, 2  ;;  %7522 = vst [vmem:[#allocation43_spill] sm:$0xff] %v6223_v60 }
  0xa1   : > { %2379 = vmatmul.mubr.f32.gmra.mrb[24].mxu0 %v6193_v0  ;;  %741 = vmatprep.mubr.f32.mxu1 %v7509_v49 }
  0xa2   : > { %2384 = vmatprep.mubr.f32.mxu0 %v7509_v49  ;;  %v6228_v32 = vsel %vm1017_vm1, %v1058_v48, %v1059_v12  ;;  %v6239_v54 = vsel %vm1017_vm1, %v1059_v12, %v1061_v20  ;;  %v1064_v48 = vrot.slane %v5909_v25, 2  ;;  %v4092_v12 = vld [vmem:[%s7394_s1 + $0x228] sm:$0xff] }
  0xa3   : > { %7524 = vst [vmem:[#allocation45_spill] sm:$0xff] %v6239_v54 }
  0xa4   : > { %742 = vmatmul.mubr.f32.gmra.mrb[58].mxu1 %v6206_v18  ;;  %v6235_v18 = vsel %vm357_vm0, %v434_v44, %v436_v2  ;;  %v4094_v44 = vld [vmem:[%s7394_s1 + $0x238] sm:$0xff]  ;;  %v6260_v20 = vsel %vm1017_vm1, %v1063_v23, %v1064_v48  ;;  %v4096_v23 = vld [vmem:[%s7394_s1 + $0x248] sm:$0xff] }
  0xa5   : > { %2385 = vmatmul.mubr.f32.gmra.mrb[26].mxu0 %v6212_v61  ;;  %747 = vmatprep.mubr.f32.mxu1 %v7509_v49  ;;  %7523 = vst [vmem:[#allocation44_spill] sm:$0xff] %v6235_v18  ;;  %7525 = vst [vmem:[#allocation46_spill] sm:$0xff] %v6260_v20  ;;  %v4384_v63 = vpack.c.bf16 %v4094_v44, %v4092_v12  ;;  %v1069_v12 = vrot.slane %v5965_v36, 2  ;;  %v4386_v44 = vpack.c.bf16 %v4093_v3, %v4091_v30  ;;  %v4102_v3 = vld [vmem:[%s7394_s1 + $0x278] sm:$0xff] }
  0xa6   : > { %2390 = vmatprep.mubr.f32.mxu0 %v7509_v49 }
  0xa8   : > { %748 = vmatmul.mubr.f32.gmra.mrb[60].mxu1 %v6223_v60  ;;  %v4089_v60 = vld [vmem:[%s7394_s1 + $0x210] sm:$0xff] }
  0xa9   : > { %2391 = vmatmul.mubr.f32.gmra.mrb[28].mxu0 %v6228_v32  ;;  %753 = vmatprep.mubr.f32.mxu1 %v7509_v49  ;;  %v4382_v2 = vpack.c.bf16 %v4089_v60, %v4087_v19  ;;  %v1068_v19 = vrot.slane %v5962_v62, 2 }
  0xaa   : > { %2396 = vmatprep.mubr.f32.mxu0 %v7509_v49 }
  0xab   : > { %v6307_v30 = vsel %vm1017_vm1, %v1068_v19, %v1069_v12  ;;  %v4104_v19 = vld [vmem:[%s7394_s1 + $0x288] sm:$0xff] }
  0xac   : > { %754 = vmatmul.mubr.f32.gmra.mrb[62].mxu1 %v6235_v18  ;;  %v1066_v18 = vrot.slane %v5935_v15, 2  ;;  %v4098_v15 = vld [vmem:[%s7394_s1 + $0x258] sm:$0xff]  ;;  %7527 = vst [vmem:[#allocation48_spill] sm:$0xff] %v6307_v30 }
  0xad   : > { %2397 = vmatmul.mubr.f32.gmra.mrb[30].mxu0 %v6239_v54  ;;  %824 = vmatprep.mubr.f32.mxu1 %v7509_v49  ;;  %v4388_v10 = vpack.c.bf16 %v4098_v15, %v4096_v23  ;;  %v4095_v54 = vld [vmem:[%s7394_s1 + $0x240] sm:$0xff] }
  0xae   : > { %2402 = vmatprep.mubr.f32.mxu0 %v7509_v49  ;;  %v6283_v60 = vsel %vm1017_vm1, %v1064_v48, %v1066_v18  ;;  %v4100_v18 = vld [vmem:[%s7394_s1 + $0x268] sm:$0xff]  ;;  %v4099_v15 = vld [vmem:[%s7394_s1 + $0x260] sm:$0xff] }
  0xaf   : > { %7526 = vst [vmem:[#allocation47_spill] sm:$0xff] %v6283_v60  ;;  %v4392_v23 = vpack.c.bf16 %v4102_v3, %v4100_v18  ;;  %v4103_v18 = vld [vmem:[%s7394_s1 + $0x280] sm:$0xff]  ;;  %v4105_v3 = vld [vmem:[%s7394_s1 + $0x290] sm:$0xff] }
  0xb0   : > { %825 = vmatmul.mubr.f32.vlgmr.msra.gmra.mrb[0].mxu1 %v6270_v38 }
  0xb1   : > { %2403 = vmatmul.mubr.f32.gmra.mrb[32].mxu0 %v6260_v20  ;;  %4383 = vmatpush1.bf16.msra.mxu1 %v4382_v2  ;;  %v4097_v2 = vld [vmem:[%s7394_s1 + $0x250] sm:$0xff]  ;;  %v6294_v20 = vld [vmem:[%s5449_s17 + $0x8] sm:$0xff] }
  0xb2   : > { %830 = vmatprep.mubr.f32.mxu1 %v7509_v49  ;;  %2408 = vmatprep.mubr.f32.mxu0 %v7509_v49  ;;  %v4390_v48 = vpack.c.bf16 %v4097_v2, %v4095_v54  ;;  %v1073_v54 = vrot.slane %v6021_v34, 2 }
  0xb3   : > { %4385 = vmatprep.subr.bf16.mxu1 %v4384_v63  ;;  %v1071_v63 = vrot.slane %v5994_v39, 2  ;;  %v4106_v39 = vld [vmem:[%s7394_s1 + $0x298] sm:$0xff] }
  0xb4   : > { %831 = vmatmul.mubr.f32.gmra.mrb[2].mxu1 %v6294_v20  ;;  %v4396_v2 = vpack.c.bf16 %v4106_v39, %v4104_v19  ;;  %v4107_v19 = vld [vmem:[%s7394_s1 + $0x2a0] sm:$0xff]  ;;  %v4109_v39 = vld [vmem:[%s7394_s1 + $0x2b0] sm:$0xff] }
  0xb5   : > { %2409 = vmatmul.mubr.f32.gmra.mrb[34].mxu0 %v6283_v60  ;;  %836 = vmatprep.mubr.f32.mxu1 %v7509_v49  ;;  %v4101_v60 = vld [vmem:[%s7394_s1 + $0x270] sm:$0xff] }
  0xb6   : > { %2414 = vmatprep.mubr.f32.mxu0 %v7509_v49  ;;  %4387 = vmatpush1.bf16.msra.mxu1 %v4386_v44  ;;  %v4394_v44 = vpack.c.bf16 %v4101_v60, %v4099_v15  ;;  %v4110_v60 = vld [vmem:[%s7394_s1 + $0x2b8] sm:$0xff] }
  0xb7   : > { %4389 = vmatprep.subr.bf16.mxu1 %v4388_v10  ;;  %v6327_v10 = vsel %vm1017_vm1, %v1069_v12, %v1071_v63  ;;  %v4108_v12 = vld [vmem:[%s7394_s1 + $0x2a8] sm:$0xff] }
  0xb8   : > { %837 = vmatmul.mubr.f32.gmra.mrb[4].mxu1 %v5144_v56  ;;  %7528 = vst [vmem:[#allocation49_spill] sm:$0xff] %v6327_v10  ;;  %v1074_v56 = vrot.slane %v6024_v37, 2  ;;  %v4400_v15 = vpack.c.bf16 %v4110_v60, %v4108_v12  ;;  %v4111_v60 = vld [vmem:[%s7394_s1 + $0x2c0] sm:$0xff] }
  0xb9   : > { %2415 = vmatmul.mubr.f32.gmra.mrb[36].mxu0 %v6307_v30  ;;  %842 = vmatprep.mubr.f32.mxu1 %v7509_v49  ;;  %v6338_v30 = vld [vmem:[%s5449_s17 + $0x20] sm:$0xff] }
  0xba   : > { %2420 = vmatprep.mubr.f32.mxu0 %v7509_v49  ;;  %4391 = vmatpush1.bf16.msra.mxu1 %v4390_v48  ;;  %7529 = vst [vmem:[#allocation50_spill] sm:$0xff] %v6338_v30  ;;  %v6351_v63 = vsel %vm1017_vm1, %v1073_v54, %v1074_v56  ;;  %v1076_v48 = vrot.slane %v6053_v13, 2  ;;  %v4112_v13 = vld [vmem:[%s7394_s1 + $0x2c8] sm:$0xff]  ;;  %v4114_v54 = vld [vmem:[%s7394_s1 + $0x2d8] sm:$0xff] }
  0xbb   : > { %4393 = vmatprep.subr.bf16.mxu1 %v4392_v23  ;;  %7530 = vst [vmem:[#allocation51_spill] sm:$0xff] %v6351_v63  ;;  %v4398_v23 = vpack.c.bf16 %v4105_v3, %v4103_v18  ;;  %v1079_v18 = vrot.slane %v6083_v58, 2  ;;  %v4402_v3 = vpack.c.bf16 %v4109_v39, %v4107_v19  ;;  %v4404_v12 = vpack.c.bf16 %v4114_v54, %v4112_v13  ;;  %v4115_v13 = vld [vmem:[%s7394_s1 + $0x2e0] sm:$0xff]  ;;  %v4117_v54 = vld [vmem:[%s7394_s1 + $0x2f0] sm:$0xff] }
  0xbc   : > { %843 = vmatmul.mubr.f32.gmra.mrb[6].mxu1 %v6338_v30  ;;  %v6361_v30 = vld [vmem:[%s5449_s17 + $0x30] sm:$0xff] }
  0xbd   : > { %2421 = vmatmul.mubr.f32.gmra.mrb[38].mxu0 %v6327_v10  ;;  %848 = vmatprep.mubr.f32.mxu1 %v7509_v49  ;;  %v6385_v10 = vld [vmem:[%s5449_s17 + $0x38] sm:$0xff] }
  0xbe   : > { %2426 = vmatprep.mubr.f32.mxu0 %v7509_v49  ;;  %4395 = vmatpush1.bf16.msra.mxu1 %v4394_v44  ;;  %v6374_v44 = vsel %vm1017_vm1, %v1074_v56, %v1076_v48  ;;  %v4116_v56 = vld [vmem:[%s7394_s1 + $0x2e8] sm:$0xff]  ;;  %v4118_v48 = vld [vmem:[%s7394_s1 + $0x2f8] sm:$0xff] }
  0xbf   : > { %4397 = vmatprep.subr.bf16.mxu1 %v4396_v2  ;;  %7531 = vst [vmem:[#allocation52_spill] sm:$0xff] %v6374_v44  ;;  %v1078_v2 = vrot.slane %v6080_v31, 2  ;;  %v4408_v39 = vpack.c.bf16 %v4118_v48, %v4116_v56  ;;  %v6426_v48 = vld [vmem:[%s5449_s17 + $0x50] sm:$0xff] }
  0xc0   : > { %849 = vmatmul.mubr.f32.gmra.mrb[8].mxu1 %v6361_v30 }
  0xc1   : > { %2427 = vmatmul.mubr.f32.gmra.mrb[40].mxu0 %v6351_v63  ;;  %854 = vmatprep.mubr.f32.mxu1 %v7509_v49  ;;  %v4113_v63 = vld [vmem:[%s7394_s1 + $0x2d0] sm:$0xff] }
  0xc2   : > { %2432 = vmatprep.mubr.f32.mxu0 %v7509_v49  ;;  %4399 = vmatpush1.bf16.msra.mxu1 %v4398_v23  ;;  %v6398_v23 = vsel %vm1017_vm1, %v1078_v2, %v1079_v18  ;;  %v4406_v19 = vpack.c.bf16 %v4113_v63, %v4111_v60  ;;  %v4122_v63 = vld [vmem:[%s7394_s1 + $0x318] sm:$0xff]  ;;  %v4410_v60 = vpack.c.bf16 %v4117_v54, %v4115_v13  ;;  %v1089_v13 = vrot.slane %v6165_v57, 2 }
  0xc3   : > { %4401 = vmatprep.subr.bf16.mxu1 %v4400_v15  ;;  %v1081_v15 = vrot.slane %v6112_v29, 2  ;;  %v4120_v29 = vld [vmem:[%s7394_s1 + $0x308] sm:$0xff]  ;;  %v1093_v54 = vrot.slane %v6197_v1, 2 }
  0xc4   : > { %855 = vmatmul.mubr.f32.gmra.mrb[10].mxu1 %v6385_v10  ;;  %v4412_v56 = vpack.c.bf16 %v4122_v63, %v4120_v29  ;;  %v1094_v29 = vrot.slane %v6200_v9, 2  ;;  %v6471_v63 = vld [vmem:[%s5449_s17 + $0x180] sm:$0xff] }
  0xc5   : > { %2433 = vmatmul.mubr.f32.gmra.mrb[42].mxu0 %v6374_v44  ;;  %860 = vmatprep.mubr.f32.mxu1 %v7509_v49  ;;  %v6408_v44 = vld [vmem:[%s5449_s17 + $0x48] sm:$0xff]  ;;  %v6421_v2 = vsel %vm1017_vm1, %v1079_v18, %v1081_v15  ;;  %v1086_v15 = vrot.slane %v6147_v21, 2  ;;  %v1091_v21 = vrot.slane %v6182_v17, 2  ;;  %v1096_v17 = vrot.slane %v6217_v33, 2  ;;  %v6486_v33 = vld [vmem:[%s5449_s17 + $0x190] sm:$0x3] }
  0xc6   : > { %2438 = vmatprep.mubr.f32.mxu0 %v7509_v49  ;;  %4403 = vmatpush1.bf16.msra.mxu1 %v4402_v3  ;;  %v1083_v3 = vrot.slane %v6127_v5, 2 }
  0xc7   : > { %4405 = vmatprep.subr.bf16.mxu1 %v4404_v12  ;;  %v1084_v12 = vrot.slane %v6130_v50, 2 }
  0xc8   : > { %861 = vmatmul.mubr.f32.gmra.mrb[12].mxu1 %v6408_v44 }
  0xc9   : > { %2439 = vmatmul.mubr.f32.gmra.mrb[44].mxu0 %v6398_v23  ;;  %866 = vmatprep.mubr.f32.mxu1 %v7509_v49  ;;  %v6433_v18 = vsel %vm1017_vm1, %v1083_v3, %v1084_v12  ;;  %v6474_v3 = vld [vmem:[%s5449_s17 + $0x188] sm:$0xff] }
  0xca   : > { %2444 = vmatprep.mubr.f32.mxu0 %v7509_v49  ;;  %4407 = vmatpush1.bf16.msra.mxu1 %v4406_v19  ;;  %v6441_v19 = vsel %vm1017_vm1, %v1084_v12, %v1086_v15  ;;  %v2202_v12 = vrot.slane %v6471_v63, 2  ;;  %v4247_v15 = vld [vmem:[%s7394_s1 + $0x700] sm:$0xff] }
  0xcb   : > { %4409 = vmatprep.subr.bf16.mxu1 %v4408_v39  ;;  %v1088_v39 = vrot.slane %v6162_v40, 2 }
  0xcc   : > { %867 = vmatmul.mubr.f32.gmra.mrb[14].mxu1 %v6426_v48 }
  0xcd   : > { %2445 = vmatmul.mubr.f32.gmra.mrb[46].mxu0 %v6421_v2  ;;  %872 = vmatprep.mubr.f32.mxu1 %v7509_v49 }
  0xce   : > { %2450 = vmatprep.mubr.f32.mxu0 %v7509_v49  ;;  %4411 = vmatpush1.bf16.msra.mxu1 %v4410_v60  ;;  %v2203_v60 = vrot.slane %v6474_v3, 2 }
  0xcf   : > { %4413 = vmatprep.subr.bf16.mxu1 %v4412_v56  ;;  %v2205_v56 = vrot.slane %v6486_v33, 2 }
  0xd0   : > { %873 = vmatmul.mubr.f32.gmra.mrb[16].mxu1 %v5669_v45  ;;  %v6450_v45 = vsel %vm1017_vm1, %v1088_v39, %v1089_v13  ;;  %v4249_v39 = vld [vmem:[%s7394_s1 + $0x710] sm:$0xff] }
  0xd1   : > { %2451 = vmatmul.mubr.f32.gmra.mrb[48].mxu0 %v6433_v18  ;;  %878 = vmatprep.mubr.f32.mxu1 %v7509_v49 }
  0xd2   : > { %2456 = vmatprep.mubr.f32.mxu0 %v7509_v49 }
  0xd4   : > { %879 = vmatmul.mubr.f32.gmra.mrb[18].mxu1 %v5672_v46  ;;  %v6458_v46 = vsel %vm1017_vm1, %v1089_v13, %v1091_v21  ;;  %v4254_v13 = vld [vmem:[%s7394_s1 + $0x738] sm:$0xff]  ;;  %v4542_v21 = vpack.c.bf16 %v4249_v39, %v4247_v15  ;;  %v4257_v15 = vld [vmem:[%s7394_s1 + $0x750] sm:$0xff]  ;;  %v4260_v39 = vld [vmem:[%s7394_s1 + $0x768] sm:$0xff] }
  0xd5   : > { %2457 = vmatmul.mubr.f32.gmra.mrb[50].mxu0 %v6441_v19  ;;  %884 = vmatprep.mubr.f32.mxu1 %v7509_v49 }
  0xd6   : > { %2462 = vmatprep.mubr.f32.mxu0 %v7509_v49 }
  0xd8   : > { %885 = vmatmul.mubr.f32.gmra.mrb[20].mxu1 %v5740_v35  ;;  %v6467_v35 = vsel %vm1017_vm1, %v1093_v54, %v1094_v29 }
  0xd9   : > { %2463 = vmatmul.mubr.f32.gmra.mrb[52].mxu0 %v6450_v45  ;;  %890 = vmatprep.mubr.f32.mxu1 %v7509_v49 }
  0xda   : > { %2468 = vmatprep.mubr.f32.mxu0 %v7509_v49 }
  0xdc   : > { %891 = vmatmul.mubr.f32.gmra.mrb[22].mxu1 %v5746_v41  ;;  %v6481_v41 = vsel %vm1017_vm1, %v1094_v29, %v1096_v17  ;;  %v4253_v29 = vld [vmem:[%s7394_s1 + $0x730] sm:$0xff]  ;;  %v4256_v17 = vld [vmem:[%s7394_s1 + $0x748] sm:$0xff] }
  0xdd   : > { %2469 = vmatmul.mubr.f32.gmra.mrb[54].mxu0 %v6458_v46  ;;  %896 = vmatprep.mubr.f32.mxu1 %v7509_v49 }
  0xde   : > { %2474 = vmatprep.mubr.f32.mxu0 %v7509_v49 }
  0xe0   : > { %897 = vmatmul.mubr.f32.gmra.mrb[24].mxu1 %v5799_v27  ;;  %v6493_v27 = vsel %vm1017_vm1, %v2202_v12, %v2203_v60  ;;  %v4258_v12 = vld [vmem:[%s7394_s1 + $0x758] sm:$0xff] }
  0xe1   : > { %2475 = vmatmul.mubr.f32.gmra.mrb[56].mxu0 %v6467_v35  ;;  %902 = vmatprep.mubr.f32.mxu1 %v7509_v49  ;;  %7532 = vst [vmem:[#allocation53_spill] sm:$0xff] %v6493_v27 }
  0xe2   : > { %2480 = vmatprep.mubr.f32.mxu0 %v7509_v49 }
  0xe4   : > { %903 = vmatmul.mubr.f32.gmra.mrb[26].mxu1 %v5802_v28  ;;  %v6501_v28 = vsel %vm1017_vm1, %v2203_v60, %v2205_v56  ;;  %v4548_v56 = vpack.c.bf16 %v4258_v12, %v4256_v17 }
  0xe5   : > { %2481 = vmatmul.mubr.f32.gmra.mrb[58].mxu0 %v6481_v41  ;;  %908 = vmatprep.mubr.f32.mxu1 %v7509_v49  ;;  %7533 = vst [vmem:[#allocation54_spill] sm:$0xff] %v6501_v28 }
  0xe6   : > { %2486 = vmatprep.mubr.f32.mxu0 %v7509_v49 }
  0xe8   : > { %909 = vmatmul.mubr.f32.gmra.mrb[28].mxu1 %v5825_v51  ;;  %v4252_v51 = vld [vmem:[%s7394_s1 + $0x728] sm:$0xff] }
  0xe9   : > { %2487 = vmatmul.mubr.f32.gmra.mrb[60].mxu0 %v6493_v27  ;;  %914 = vmatprep.mubr.f32.mxu1 %v7509_v49  ;;  %v4544_v54 = vpack.c.bf16 %v4254_v13, %v4252_v51  ;;  %v4262_v51 = vld [vmem:[%s7394_s1 + $0x778] sm:$0xff]  ;;  %v5161_v27 = vld [vmem:[%s5449_s17 + $0x10] sm:$0x3] }
  0xea   : > { %2492 = vmatprep.mubr.f32.mxu0 %v7509_v49 }
  0xec   : > { %915 = vmatmul.mubr.f32.gmra.mrb[30].mxu1 %v5828_v53  ;;  %v4251_v53 = vld [vmem:[%s7394_s1 + $0x720] sm:$0xff] }
  0xed   : > { %2493 = vmatmul.mubr.f32.gmra.mrb[62].mxu0 %v6501_v28  ;;  %920 = vmatprep.mubr.f32.mxu1 %v7509_v49  ;;  %v4546_v60 = vpack.c.bf16 %v4253_v29, %v4251_v53  ;;  %v4264_v53 = vld [vmem:[%s7394_s1 + $0x788] sm:$0xff]  ;;  %v4266_v29 = vld [vmem:[%s7394_s1 + $0x798] sm:$0xff] }
  0xee   : > { %2660 = vmatprep.mubr.f32.mxu0 %v7509_v49  ;;  %v4556_v12 = vpack.c.bf16 %v4266_v29, %v4264_v53 }
  0xf0   : > { %921 = vmatmul.mubr.f32.gmra.mrb[32].mxu1 %v5851_v4  ;;  %v4255_v4 = vld [vmem:[%s7394_s1 + $0x740] sm:$0xff] }
  0xf1   : > { %2661 = vmatmul.mubr.f32.vlgmr.msra.gmra.mrb[0].mxu0 %v6361_v30  ;;  %926 = vmatprep.mubr.f32.mxu1 %v7509_v49  ;;  %v4550_v13 = vpack.c.bf16 %v4257_v15, %v4255_v4  ;;  %v4268_v4 = vld [vmem:[%s7394_s1 + $0x7a8] sm:$0xff]  ;;  %v4270_v15 = vld [vmem:[%s7394_s1 + $0x7b8] sm:$0xff] }
  0xf2   : > { %4543 = vmatpush1.bf16.msra.mxu0 %v4542_v21  ;;  %2666 = vmatprep.mubr.f32.mxu0 %v7509_v49  ;;  %v4552_v21 = vpack.c.bf16 %v4262_v51, %v4260_v39  ;;  %v4560_v51 = vpack.c.bf16 %v4270_v15, %v4268_v4  ;;  %v6616_v4 = vld [vmem:[%s5449_s17 + $0x68] sm:$0xff] }
  0xf3   : > { %4545 = vmatprep.subr.bf16.mxu0 %v4544_v54  ;;  %v4261_v54 = vld [vmem:[%s7394_s1 + $0x770] sm:$0xff] }
  0xf4   : > { %927 = vmatmul.mubr.f32.gmra.mrb[34].mxu1 %v5854_v11  ;;  %v4259_v11 = vld [vmem:[%s7394_s1 + $0x760] sm:$0xff] }
  0xf5   : > { %2667 = vmatmul.mubr.f32.gmra.mrb[2].mxu0 %v6385_v10  ;;  %932 = vmatprep.mubr.f32.mxu1 %v7509_v49  ;;  %v4554_v17 = vpack.c.bf16 %v4261_v54, %v4259_v11  ;;  %v4274_v11 = vld [vmem:[%s7394_s1 + $0x7d8] sm:$0xff]  ;;  %v6597_v54 = vld [vmem:[%s5449_s17 + $0x60] sm:$0xff] }
  0xf6   : > { %2672 = vmatprep.mubr.f32.mxu0 %v7509_v49  ;;  %4547 = vmatpush1.bf16.msra.mxu0 %v4546_v60  ;;  %v4263_v60 = vld [vmem:[%s7394_s1 + $0x780] sm:$0xff] }
  0xf7   : > { %4549 = vmatprep.subr.bf16.mxu0 %v4548_v56  ;;  %v4265_v56 = vld [vmem:[%s7394_s1 + $0x790] sm:$0xff] }
  0xf8   : > { %933 = vmatmul.mubr.f32.gmra.mrb[36].mxu1 %v5906_v22  ;;  %v4558_v39 = vpack.c.bf16 %v4265_v56, %v4263_v60  ;;  %v4276_v60 = vld [vmem:[%s7394_s1 + $0x7e8] sm:$0xff]  ;;  %v4278_v56 = vld [vmem:[%s7394_s1 + $0x7f8] sm:$0xff] }
  0xf9   : > { %2673 = vmatmul.mubr.f32.gmra.mrb[4].mxu0 %v6408_v44  ;;  %938 = vmatprep.mubr.f32.mxu1 %v7509_v49 }
  0xfa   : > { %2678 = vmatprep.mubr.f32.mxu0 %v7509_v49  ;;  %4551 = vmatpush1.bf16.msra.mxu0 %v4550_v13  ;;  %v4269_v13 = vld [vmem:[%s7394_s1 + $0x7b0] sm:$0xff] }
  0xfb   : > { %4553 = vmatprep.subr.bf16.mxu0 %v4552_v21  ;;  %v4272_v21 = vld [vmem:[%s7394_s1 + $0x7c8] sm:$0xff] }
  0xfc   : > { %939 = vmatmul.mubr.f32.gmra.mrb[38].mxu1 %v5909_v25  ;;  %v4267_v25 = vld [vmem:[%s7394_s1 + $0x7a0] sm:$0xff]  ;;  %v4564_v29 = vpack.c.bf16 %v4274_v11, %v4272_v21  ;;  %v4282_v21 = vld [vmem:[%s7394_s1 + $0x818] sm:$0xff] }
  0xfd   : > { %2679 = vmatmul.mubr.f32.gmra.mrb[6].mxu0 %v6426_v48  ;;  %944 = vmatprep.mubr.f32.mxu1 %v7509_v49  ;;  %v4562_v53 = vpack.c.bf16 %v4269_v13, %v4267_v25  ;;  %v4277_v25 = vld [vmem:[%s7394_s1 + $0x7f0] sm:$0xff]  ;;  %v4280_v13 = vld [vmem:[%s7394_s1 + $0x808] sm:$0xff]  ;;  %v6635_v11 = vld [vmem:[%s5449_s17 + $0x78] sm:$0xff] }
  0xfe   : > { %2684 = vmatprep.mubr.f32.mxu0 %v7509_v49  ;;  %4555 = vmatpush1.bf16.msra.mxu0 %v4554_v17  ;;  %v4271_v17 = vld [vmem:[%s7394_s1 + $0x7c0] sm:$0xff] }
  0xff   : > { %4557 = vmatprep.subr.bf16.mxu0 %v4556_v12  ;;  %v4273_v12 = vld [vmem:[%s7394_s1 + $0x7d0] sm:$0xff] }
 0x100   : > { %945 = vmatmul.mubr.f32.gmra.mrb[40].mxu1 %v5962_v62  ;;  %v4566_v15 = vpack.c.bf16 %v4273_v12, %v4271_v17  ;;  %v6642_v17 = vld [vmem:[%s5449_s17 + $0x80] sm:$0xff]  ;;  %v6649_v12 = vld [vmem:[%s5449_s17 + $0x90] sm:$0xff] }
 0x101   : > { %2685 = vmatmul.mubr.f32.gmra.mrb[8].mxu0 %v6597_v54  ;;  %950 = vmatprep.mubr.f32.mxu1 %v7509_v49 }
 0x102   : > { %2690 = vmatprep.mubr.f32.mxu0 %v7509_v49  ;;  %4559 = vmatpush1.bf16.msra.mxu0 %v4558_v39  ;;  %v4568_v39 = vpack.c.bf16 %v4278_v56, %v4276_v60  ;;  %v6656_v60 = vld [vmem:[%s5449_s17 + $0x98] sm:$0xff]  ;;  %v6663_v56 = vld [vmem:[%s5449_s17 + $0xa8] sm:$0xff] }
 0x103   : > { %4561 = vmatprep.subr.bf16.mxu0 %v4560_v51  ;;  %v4275_v51 = vld [vmem:[%s7394_s1 + $0x7e0] sm:$0xff]  ;;  %7534 = vst [vmem:[#allocation55_spill] sm:$0xff] %v6663_v56 }
 0x104   : > { %951 = vmatmul.mubr.f32.gmra.mrb[42].mxu1 %v5965_v36 }
 0x105   : > { %2691 = vmatmul.mubr.f32.gmra.mrb[10].mxu0 %v6616_v4  ;;  %956 = vmatprep.mubr.f32.mxu1 %v7509_v49 }
 0x106   : > { %2696 = vmatprep.mubr.f32.mxu0 %v7509_v49  ;;  %4563 = vmatpush1.bf16.msra.mxu0 %v4562_v53  ;;  %v4570_v53 = vpack.c.bf16 %v4277_v25, %v4275_v51  ;;  %v6684_v51 = vld [vmem:[%s5449_s17 + $0xc8] sm:$0xff]  ;;  %v1018_v25 = vrot.slane %v6270_v38, 2  ;;  %v4126_v38 = vld [vmem:[%s7394_s1 + $0x338] sm:$0xff] }
 0x107   : > { %4565 = vmatprep.subr.bf16.mxu0 %v4564_v29  ;;  %v4572_v29 = vpack.c.bf16 %v4282_v21, %v4280_v13  ;;  %7537 = vst [vmem:[#allocation58_spill] sm:$0xff] %v6684_v51  ;;  %v1019_v13 = vrot.slane %v6294_v20, 2  ;;  %v4119_v21 = vld [vmem:[%s7394_s1 + $0x300] sm:$0xff] }
 0x108   : > { %957 = vmatmul.mubr.f32.gmra.mrb[44].mxu1 %v6021_v34  ;;  %v6709_v20 = vld [vmem:[%s5449_s17 + $0xe0] sm:$0xff] }
 0x109   : > { %2697 = vmatmul.mubr.f32.gmra.mrb[12].mxu0 %v6635_v11  ;;  %962 = vmatprep.mubr.f32.mxu1 %v7509_v49  ;;  %7538 = vst [vmem:[#allocation59_spill] sm:$0xff] %v6709_v20 }
 0x10a   : > { %2702 = vmatprep.mubr.f32.mxu0 %v7509_v49  ;;  %4567 = vmatpush1.bf16.msra.mxu0 %v4566_v15  ;;  %v6670_v15 = vld [vmem:[%s5449_s17 + $0xb0] sm:$0xff] }
 0x10b   : > { %4569 = vmatprep.subr.bf16.mxu0 %v4568_v39  ;;  %7535 = vst [vmem:[#allocation56_spill] sm:$0xff] %v6670_v15  ;;  %v6677_v39 = vld [vmem:[%s5449_s17 + $0xc0] sm:$0xff] }
 0x10c   : > { %963 = vmatmul.mubr.f32.gmra.mrb[46].mxu1 %v6024_v37  ;;  %7536 = vst [vmem:[#allocation57_spill] sm:$0xff] %v6677_v39 }
 0x10d   : > { %2703 = vmatmul.mubr.f32.gmra.mrb[14].mxu0 %v6642_v17  ;;  %968 = vmatprep.mubr.f32.mxu1 %v7509_v49 }
 0x10e   : > { %2708 = vmatprep.mubr.f32.mxu0 %v7509_v49  ;;  %4571 = vmatpush1.bf16.msra.mxu0 %v4570_v53  ;;  %v4121_v53 = vld [vmem:[%s7394_s1 + $0x310] sm:$0xff] }
 0x10f   : > { %4573 = vmatprep.subr.bf16.mxu0 %v4572_v29  ;;  %v1020_v29 = vsel %vm1017_vm1, %v1018_v25, %v1019_v13  ;;  %v4414_v28 = vpack.c.bf16 %v4121_v53, %v4119_v21 }
 0x110   : > { %969 = vmatmul.mubr.f32.gmra.mrb[48].mxu1 %v6080_v31 }
 0x111   : > { %2709 = vmatmul.mubr.f32.gmra.mrb[16].mxu0 %v6649_v12  ;;  %974 = vmatprep.mubr.f32.mxu1 %v7509_v49 }
 0x112   : > { %2714 = vmatprep.mubr.f32.mxu0 %v7509_v49 }
 0x114   : > { %975 = vmatmul.mubr.f32.gmra.mrb[50].mxu1 %v6083_v58 }
 0x115   : > { %2715 = vmatmul.mubr.f32.gmra.mrb[18].mxu0 %v6656_v60  ;;  %980 = vmatprep.mubr.f32.mxu1 %v7509_v49 }
 0x116   : > { %2720 = vmatprep.mubr.f32.mxu0 %v7509_v49 }
 0x118   : > { %981 = vmatmul.mubr.f32.gmra.mrb[52].mxu1 %v6127_v5 }
 0x119   : > { %2721 = vmatmul.mubr.f32.gmra.mrb[20].mxu0 %v6663_v56  ;;  %986 = vmatprep.mubr.f32.mxu1 %v7509_v49  ;;  %v4125_v56 = vld [vmem:[%s7394_s1 + $0x330] sm:$0xff] }
 0x11a   : > { %2726 = vmatprep.mubr.f32.mxu0 %v7509_v49 }
 0x11c   : > { %987 = vmatmul.mubr.f32.gmra.mrb[54].mxu1 %v6130_v50 }
 0x11d   : > { %2727 = vmatmul.mubr.f32.gmra.mrb[22].mxu0 %v6670_v15  ;;  %992 = vmatprep.mubr.f32.mxu1 %v7509_v49  ;;  %v4123_v15 = vld [vmem:[%s7394_s1 + $0x320] sm:$0xff] }
 0x11e   : > { %2732 = vmatprep.mubr.f32.mxu0 %v7509_v49  ;;  %v4418_v21 = vpack.c.bf16 %v4125_v56, %v4123_v15 }
 0x120   : > { %993 = vmatmul.mubr.f32.gmra.mrb[56].mxu1 %v6162_v40 }
 0x121   : > { %2733 = vmatmul.mubr.f32.gmra.mrb[24].mxu0 %v6677_v39  ;;  %998 = vmatprep.mubr.f32.mxu1 %v7509_v49 }
 0x122   : > { %2738 = vmatprep.mubr.f32.mxu0 %v7509_v49 }
 0x124   : > { %999 = vmatmul.mubr.f32.gmra.mrb[58].mxu1 %v6165_v57 }
 0x125   : > { %2739 = vmatmul.mubr.f32.gmra.mrb[26].mxu0 %v6684_v51  ;;  %1004 = vmatprep.mubr.f32.mxu1 %v7509_v49  ;;  %v1021_v51 = vrot.slane %v5161_v27, 2  ;;  %v4130_v27 = vld [vmem:[%s7394_s1 + $0x358] sm:$0xff] }
 0x126   : > { %2744 = vmatprep.mubr.f32.mxu0 %v7509_v49 }
 0x127   : > { %v1022_v25 = vsel %vm1017_vm1, %v1019_v13, %v1021_v51  ;;  %v4133_v51 = vld [vmem:[%s7394_s1 + $0x370] sm:$0xff]  ;;  %v4138_v13 = vld [vmem:[%s7394_s1 + $0x398] sm:$0xff] }
 0x128   : > { %1005 = vmatmul.mubr.f32.gmra.mrb[60].mxu1 %v6197_v1 }
 0x129   : > { %2745 = vmatmul.mubr.f32.gmra.mrb[28].mxu0 %v5906_v22  ;;  %1010 = vmatprep.mubr.f32.mxu1 %v7509_v49  ;;  %v4124_v22 = vld [vmem:[%s7394_s1 + $0x328] sm:$0xff] }
 0x12a   : > { %2750 = vmatprep.mubr.f32.mxu0 %v7509_v49  ;;  %v4416_v39 = vpack.c.bf16 %v4126_v38, %v4124_v22  ;;  %v4127_v22 = vld [vmem:[%s7394_s1 + $0x340] sm:$0xff]  ;;  %v4129_v38 = vld [vmem:[%s7394_s1 + $0x350] sm:$0xff] }
 0x12b   : > { %v4422_v56 = vpack.c.bf16 %v4129_v38, %v4127_v22  ;;  %v4141_v22 = vld [vmem:[%s7394_s1 + $0x3b0] sm:$0xff]  ;;  %v4146_v38 = vld [vmem:[%s7394_s1 + $0x3d8] sm:$0xff] }
 0x12c   : > { %1011 = vmatmul.mubr.f32.gmra.mrb[62].mxu1 %v6200_v9 }
 0x12d   : > { %2751 = vmatmul.mubr.f32.gmra.mrb[30].mxu0 %v6709_v20  ;;  %1227 = vmatprep.mubr.f32.mxu1 %v7509_v49  ;;  %v4128_v20 = vld [vmem:[%s7394_s1 + $0x348] sm:$0xff] }
 0x12e   : > { %2756 = vmatprep.mubr.f32.mxu0 %v7509_v49  ;;  %v4420_v53 = vpack.c.bf16 %v4130_v27, %v4128_v20  ;;  %v4137_v27 = vld [vmem:[%s7394_s1 + $0x390] sm:$0xff] }
 0x130   : > { %1228 = vmatmul.mubr.f32.vlgmr.msra.gmra.mrb[0].mxu1 %v1020_v29 }
 0x131   : > { %2757 = vmatmul.mubr.f32.gmra.mrb[32].mxu0 %v5962_v62  ;;  %4415 = vmatpush1.bf16.msra.mxu1 %v4414_v28  ;;  %v4132_v62 = vld [vmem:[%s7394_s1 + $0x368] sm:$0xff]  ;;  %v4134_v28 = vld [vmem:[%s7394_s1 + $0x378] sm:$0xff] }
 0x132   : > { %1233 = vmatprep.mubr.f32.mxu1 %v7509_v49  ;;  %2762 = vmatprep.mubr.f32.mxu0 %v7509_v49  ;;  %v4424_v15 = vpack.c.bf16 %v4134_v28, %v4132_v62 }
 0x133   : > { %4417 = vmatprep.subr.bf16.mxu1 %v4416_v39  ;;  %v4131_v39 = vld [vmem:[%s7394_s1 + $0x360] sm:$0xff] }
 0x134   : > { %1234 = vmatmul.mubr.f32.gmra.mrb[2].mxu1 %v1022_v25  ;;  %v4426_v20 = vpack.c.bf16 %v4133_v51, %v4131_v39  ;;  %v4142_v25 = vld [vmem:[%s7394_s1 + $0x3b8] sm:$0xff] }
 0x135   : > { %2763 = vmatmul.mubr.f32.gmra.mrb[34].mxu0 %v5965_v36  ;;  %1239 = vmatprep.mubr.f32.mxu1 %v7509_v49  ;;  %v4136_v36 = vld [vmem:[%s7394_s1 + $0x388] sm:$0xff]  ;;  %v4150_v39 = vld [vmem:[%s7394_s1 + $0x3f8] sm:$0xff] }
 0x136   : > { %2768 = vmatprep.mubr.f32.mxu0 %v7509_v49  ;;  %4419 = vmatpush1.bf16.msra.mxu1 %v4418_v21  ;;  %v4428_v29 = vpack.c.bf16 %v4138_v13, %v4136_v36  ;;  %v4147_v13 = vld [vmem:[%s7394_s1 + $0x3e0] sm:$0xff] }
 0x137   : > { %4421 = vmatprep.subr.bf16.mxu1 %v4420_v53 }
 0x138   : > { %1240 = vmatmul.mubr.f32.gmra.mrb[4].mxu1 %v5902_v43  ;;  %v4135_v43 = vld [vmem:[%s7394_s1 + $0x380] sm:$0xff] }
 0x139   : > { %2769 = vmatmul.mubr.f32.gmra.mrb[36].mxu0 %v6021_v34  ;;  %1245 = vmatprep.mubr.f32.mxu1 %v7509_v49  ;;  %v4140_v34 = vld [vmem:[%s7394_s1 + $0x3a8] sm:$0xff]  ;;  %v4430_v21 = vpack.c.bf16 %v4137_v27, %v4135_v43  ;;  %v4283_v43 = vld [vmem:[%s7394_s1 + $0x820] sm:$0xff]  ;;  %v4285_v27 = vld [vmem:[%s7394_s1 + $0x830] sm:$0xff] }
 0x13a   : > { %2774 = vmatprep.mubr.f32.mxu0 %v7509_v49  ;;  %4423 = vmatpush1.bf16.msra.mxu1 %v4422_v56  ;;  %v4432_v53 = vpack.c.bf16 %v4142_v25, %v4140_v34  ;;  %v4143_v56 = vld [vmem:[%s7394_s1 + $0x3c0] sm:$0xff]  ;;  %v4288_v34 = vld [vmem:[%s7394_s1 + $0x848] sm:$0xff]  ;;  %v4290_v25 = vld [vmem:[%s7394_s1 + $0x858] sm:$0xff] }
 0x13b   : > { %4425 = vmatprep.subr.bf16.mxu1 %v4424_v15  ;;  %v4145_v15 = vld [vmem:[%s7394_s1 + $0x3d0] sm:$0xff] }
 0x13c   : > { %1246 = vmatmul.mubr.f32.gmra.mrb[6].mxu1 %v5930_v42  ;;  %v4139_v42 = vld [vmem:[%s7394_s1 + $0x3a0] sm:$0xff]  ;;  %v4438_v51 = vpack.c.bf16 %v4145_v15, %v4143_v56 }
 0x13d   : > { %2775 = vmatmul.mubr.f32.gmra.mrb[38].mxu0 %v6024_v37  ;;  %1251 = vmatprep.mubr.f32.mxu1 %v7509_v49  ;;  %v4144_v37 = vld [vmem:[%s7394_s1 + $0x3c8] sm:$0xff]  ;;  %v4434_v62 = vpack.c.bf16 %v4141_v22, %v4139_v42  ;;  %v4580_v42 = vpack.c.bf16 %v4290_v25, %v4288_v34  ;;  %v4287_v22 = vld [vmem:[%s7394_s1 + $0x840] sm:$0xff] }
 0x13e   : > { %2780 = vmatprep.mubr.f32.mxu0 %v7509_v49  ;;  %4427 = vmatpush1.bf16.msra.mxu1 %v4426_v20  ;;  %v4436_v28 = vpack.c.bf16 %v4146_v38, %v4144_v37  ;;  %v4149_v20 = vld [vmem:[%s7394_s1 + $0x3f0] sm:$0xff]  ;;  %v7540_v38 = vld [vmem:[#allocation45_spill] sm:$0xff]  ;;  %v7541_v56 = vld [vmem:[#allocation18_spill] sm:$0xff] }
 0x13f   : > { %4429 = vmatprep.subr.bf16.mxu1 %v4428_v29  ;;  %v4289_v37 = vld [vmem:[%s7394_s1 + $0x850] sm:$0xff] }
 0x140   : > { %1252 = vmatmul.mubr.f32.gmra.mrb[8].mxu1 %v5958_v16  ;;  %v4582_v15 = vpack.c.bf16 %v4289_v37, %v4287_v22  ;;  %v4304_v22 = vld [vmem:[%s7394_s1 + $0x8c8] sm:$0xff]  ;;  %v4306_v37 = vld [vmem:[%s7394_s1 + $0x8d8] sm:$0xff] }
 0x141   : > { %2781 = vmatmul.mubr.f32.gmra.mrb[40].mxu0 %v6080_v31  ;;  %1257 = vmatprep.mubr.f32.mxu1 %v7509_v49  ;;  %v4148_v31 = vld [vmem:[%s7394_s1 + $0x3e8] sm:$0xff] }
 0x142   : > { %2786 = vmatprep.mubr.f32.mxu0 %v7509_v49  ;;  %4431 = vmatpush1.bf16.msra.mxu1 %v4430_v21  ;;  %v4440_v36 = vpack.c.bf16 %v4150_v39, %v4148_v31  ;;  %v7539_v21 = vld [vmem:[#allocation17_spill] sm:$0xff]  ;;  %v4291_v39 = vld [vmem:[%s7394_s1 + $0x860] sm:$0xff] }
 0x143   : > { %4433 = vmatprep.subr.bf16.mxu1 %v4432_v53  ;;  %v4578_v53 = vpack.c.bf16 %v4285_v27, %v4283_v43  ;;  %v4302_v43 = vld [vmem:[%s7394_s1 + $0x8b8] sm:$0xff]  ;;  %v7545_v27 = vld [vmem:[#allocation20_spill] sm:$0xff] }
 0x144   : > { %1258 = vmatmul.mubr.f32.gmra.mrb[10].mxu1 %v5989_v14 }
 0x145   : > { %2787 = vmatmul.mubr.f32.gmra.mrb[42].mxu0 %v6083_v58  ;;  %1263 = vmatprep.mubr.f32.mxu1 %v7509_v49  ;;  %v4442_v58 = vpack.c.bf16 %v4149_v20, %v4147_v13  ;;  %v4296_v13 = vld [vmem:[%s7394_s1 + $0x888] sm:$0xff]  ;;  %v4298_v20 = vld [vmem:[%s7394_s1 + $0x898] sm:$0xff] }
 0x146   : > { %2792 = vmatprep.mubr.f32.mxu0 %v7509_v49  ;;  %4435 = vmatpush1.bf16.msra.mxu1 %v4434_v62  ;;  %v4292_v62 = vld [vmem:[%s7394_s1 + $0x868] sm:$0xff] }
 0x147   : > { %4437 = vmatprep.subr.bf16.mxu1 %v4436_v28  ;;  %v4294_v28 = vld [vmem:[%s7394_s1 + $0x878] sm:$0xff] }
 0x148   : > { %1264 = vmatmul.mubr.f32.gmra.mrb[12].mxu1 %v6017_v6  ;;  %v4584_v31 = vpack.c.bf16 %v4294_v28, %v4292_v62  ;;  %v7547_v62 = vld [vmem:[#allocation21_spill] sm:$0xff] }
 0x149   : > { %2793 = vmatmul.mubr.f32.gmra.mrb[44].mxu0 %v6127_v5  ;;  %1269 = vmatprep.mubr.f32.mxu1 %v7509_v49  ;;  %v4279_v5 = vld [vmem:[%s7394_s1 + $0x800] sm:$0xff] }
 0x14a   : > { %2798 = vmatprep.mubr.f32.mxu0 %v7509_v49  ;;  %4439 = vmatpush1.bf16.msra.mxu1 %v4438_v51  ;;  %v4293_v51 = vld [vmem:[%s7394_s1 + $0x870] sm:$0xff] }
 0x14b   : > { %4441 = vmatprep.subr.bf16.mxu1 %v4440_v36  ;;  %v7542_v36 = vld [vmem:[#allocation46_spill] sm:$0xff] }
 0x14c   : > { %1270 = vmatmul.mubr.f32.gmra.mrb[14].mxu1 %v6048_v59 }
 0x14d   : > { %2799 = vmatmul.mubr.f32.gmra.mrb[46].mxu0 %v6130_v50  ;;  %1275 = vmatprep.mubr.f32.mxu1 %v7509_v49  ;;  %v4281_v50 = vld [vmem:[%s7394_s1 + $0x810] sm:$0xff] }
 0x14e   : > { %2804 = vmatprep.mubr.f32.mxu0 %v7509_v49  ;;  %4443 = vmatpush1.bf16.msra.mxu1 %v4442_v58  ;;  %v7543_v58 = vld [vmem:[#allocation19_spill] sm:$0xff] }
 0x14f   : > { %4604 = vmatprep.subr.bf16.mxu1 %v5240_v8  ;;  %v6851_v8 = vld [vmem:[%s5449_s17 + $0x198] sm:$0xff] }
 0x150   : > { %1276 = vmatmul.mubr.f32.gmra.mrb[16].mxu1 %v6076_v7 }
 0x151   : > { %2805 = vmatmul.mubr.f32.gmra.mrb[48].mxu0 %v6162_v40  ;;  %1281 = vmatprep.mubr.f32.mxu1 %v7509_v49  ;;  %v4286_v40 = vld [vmem:[%s7394_s1 + $0x838] sm:$0xff] }
 0x152   : > { %2810 = vmatprep.mubr.f32.mxu0 %v7509_v49 }
 0x154   : > { %1282 = vmatmul.mubr.f32.gmra.mrb[18].mxu1 %v6107_v55 }
 0x155   : > { %2811 = vmatmul.mubr.f32.gmra.mrb[50].mxu0 %v6165_v57  ;;  %1287 = vmatprep.mubr.f32.mxu1 %v7509_v49  ;;  %v4284_v57 = vld [vmem:[%s7394_s1 + $0x828] sm:$0xff] }
 0x156   : > { %2816 = vmatprep.mubr.f32.mxu0 %v7509_v49  ;;  %v4576_v29 = vpack.c.bf16 %v4286_v40, %v4284_v57  ;;  %v4295_v57 = vld [vmem:[%s7394_s1 + $0x880] sm:$0xff]  ;;  %v4297_v40 = vld [vmem:[%s7394_s1 + $0x890] sm:$0xff] }
 0x157   : > { %v4590_v34 = vpack.c.bf16 %v4297_v40, %v4295_v57  ;;  %v4309_v57 = vld [vmem:[%s7394_s1 + $0x8f0] sm:$0xff]  ;;  %v7550_v40 = vld [vmem:[#allocation51_spill] sm:$0xff] }
 0x158   : > { %1288 = vmatmul.mubr.f32.gmra.mrb[20].mxu1 %v6123_v24 }
 0x159   : > { %2817 = vmatmul.mubr.f32.gmra.mrb[52].mxu0 %v6197_v1  ;;  %1293 = vmatprep.mubr.f32.mxu1 %v7509_v49  ;;  %v6858_v1 = vld [vmem:[%s5449_s17 + $0x1a0] sm:$0xff] }
 0x15a   : > { %2822 = vmatprep.mubr.f32.mxu0 %v7509_v49 }
 0x15c   : > { %1294 = vmatmul.mubr.f32.gmra.mrb[22].mxu1 %v6142_v52 }
 0x15d   : > { %2823 = vmatmul.mubr.f32.gmra.mrb[54].mxu0 %v6200_v9  ;;  %1299 = vmatprep.mubr.f32.mxu1 %v7509_v49  ;;  %v4574_v9 = vpack.c.bf16 %v4281_v50, %v4279_v5  ;;  %v4586_v5 = vpack.c.bf16 %v4293_v51, %v4291_v39  ;;  %v4588_v50 = vpack.c.bf16 %v4298_v20, %v4296_v13  ;;  %v7548_v39 = vld [vmem:[#allocation49_spill] sm:$0xff]  ;;  %v4308_v51 = vld [vmem:[%s7394_s1 + $0x8e8] sm:$0xff]  ;;  %v7549_v20 = vld [vmem:[#allocation22_spill] sm:$0xff] }
 0x15e   : > { %2828 = vmatprep.mubr.f32.mxu0 %v7509_v49  ;;  %v4310_v13 = vld [vmem:[%s7394_s1 + $0x8f8] sm:$0xff] }
 0x160   : > { %1300 = vmatmul.mubr.f32.gmra.mrb[24].mxu1 %v6158_v26 }
 0x161   : > { %2829 = vmatmul.mubr.f32.gmra.mrb[56].mxu0 %v6471_v63  ;;  %1305 = vmatprep.mubr.f32.mxu1 %v7509_v49 }
 0x162   : > { %2834 = vmatprep.mubr.f32.mxu0 %v7509_v49 }
 0x164   : > { %1306 = vmatmul.mubr.f32.gmra.mrb[26].mxu1 %v6177_v47 }
 0x165   : > { %2835 = vmatmul.mubr.f32.gmra.mrb[58].mxu0 %v6474_v3  ;;  %1311 = vmatprep.mubr.f32.mxu1 %v7509_v49 }
 0x166   : > { %2840 = vmatprep.mubr.f32.mxu0 %v7509_v49 }
 0x168   : > { %1312 = vmatmul.mubr.f32.gmra.mrb[28].mxu1 %v6193_v0 }
 0x169   : > { %2841 = vmatmul.mubr.f32.gmra.mrb[60].mxu0 %v6851_v8  ;;  %1317 = vmatprep.mubr.f32.mxu1 %v7509_v49 }
 0x16a   : > { %2846 = vmatprep.mubr.f32.mxu0 %v7509_v49 }
 0x16c   : > { %1318 = vmatmul.mubr.f32.gmra.mrb[30].mxu1 %v6212_v61 }
 0x16d   : > { %2847 = vmatmul.mubr.f32.gmra.mrb[62].mxu0 %v6858_v1  ;;  %1323 = vmatprep.mubr.f32.mxu1 %v7509_v49 }
 0x16e   : > { %3024 = vmatprep.mubr.f32.mxu0 %v7509_v49 }
 0x170   : > { %1324 = vmatmul.mubr.f32.gmra.mrb[32].mxu1 %v6228_v32 }
 0x171   : > { %3025 = vmatmul.mubr.f32.vlgmr.msra.gmra.mrb[0].mxu0 %v7539_v21  ;;  %1329 = vmatprep.mubr.f32.mxu1 %v7509_v49  ;;  %v4299_v21 = vld [vmem:[%s7394_s1 + $0x8a0] sm:$0xff] }
 0x172   : > { %4575 = vmatpush1.bf16.msra.mxu0 %v4574_v9  ;;  %3030 = vmatprep.mubr.f32.mxu0 %v7509_v49  ;;  %v7544_v9 = vld [vmem:[#allocation47_spill] sm:$0xff] }
 0x173   : > { %4577 = vmatprep.subr.bf16.mxu0 %v4576_v29  ;;  %v4300_v29 = vld [vmem:[%s7394_s1 + $0x8a8] sm:$0xff] }
 0x174   : > { %1330 = vmatmul.mubr.f32.gmra.mrb[34].mxu1 %v7540_v38  ;;  %v4592_v25 = vpack.c.bf16 %v4302_v43, %v4300_v29  ;;  %v7551_v29 = vld [vmem:[#allocation23_spill] sm:$0xff] }
 0x175   : > { %3031 = vmatmul.mubr.f32.gmra.mrb[2].mxu0 %v7541_v56  ;;  %1335 = vmatprep.mubr.f32.mxu1 %v7509_v49  ;;  %v4596_v56 = vpack.c.bf16 %v4306_v37, %v4304_v22  ;;  %v7557_v22 = vld [vmem:[#allocation28_spill] sm:$0xff]  ;;  %v7558_v37 = vld [vmem:[#allocation29_spill] sm:$0xff] }
 0x176   : > { %3036 = vmatprep.mubr.f32.mxu0 %v7509_v49  ;;  %4579 = vmatpush1.bf16.msra.mxu0 %v4578_v53  ;;  %v4301_v53 = vld [vmem:[%s7394_s1 + $0x8b0] sm:$0xff] }
 0x177   : > { %4581 = vmatprep.subr.bf16.mxu0 %v4580_v42  ;;  %v7546_v42 = vld [vmem:[#allocation48_spill] sm:$0xff]  ;;  %v4594_v28 = vpack.c.bf16 %v4301_v53, %v4299_v21  ;;  %v7555_v21 = vld [vmem:[#allocation26_spill] sm:$0xff]  ;;  %v7556_v53 = vld [vmem:[#allocation27_spill] sm:$0xff] }
 0x178   : > { %1336 = vmatmul.mubr.f32.gmra.mrb[36].mxu1 %v7542_v36 }
 0x179   : > { %3037 = vmatmul.mubr.f32.gmra.mrb[4].mxu0 %v7543_v58  ;;  %1341 = vmatprep.mubr.f32.mxu1 %v7509_v49 }
 0x17a   : > { %3042 = vmatprep.mubr.f32.mxu0 %v7509_v49  ;;  %4583 = vmatpush1.bf16.msra.mxu0 %v4582_v15  ;;  %v4303_v15 = vld [vmem:[%s7394_s1 + $0x8c0] sm:$0xff] }
 0x17b   : > { %4585 = vmatprep.subr.bf16.mxu0 %v4584_v31  ;;  %v4305_v31 = vld [vmem:[%s7394_s1 + $0x8d0] sm:$0xff] }
 0x17c   : > { %1342 = vmatmul.mubr.f32.gmra.mrb[38].mxu1 %v7544_v9  ;;  %v4598_v58 = vpack.c.bf16 %v4305_v31, %v4303_v15  ;;  %v5162_v15 = vld [vmem:[%s5449_s17 + $0x18] sm:$0xff] }
 0x17d   : > { %3043 = vmatmul.mubr.f32.gmra.mrb[6].mxu0 %v7545_v27  ;;  %1347 = vmatprep.mubr.f32.mxu1 %v7509_v49  ;;  %v7552_v27 = vld [vmem:[#allocation52_spill] sm:$0xff]  ;;  %v7562_v31 = vld [vmem:[#allocation33_spill] sm:$0xff] }
 0x17e   : > { %3048 = vmatprep.mubr.f32.mxu0 %v7509_v49  ;;  %4587 = vmatpush1.bf16.msra.mxu0 %v4586_v5  ;;  %v4600_v5 = vpack.c.bf16 %v4310_v13, %v4308_v51  ;;  %v7563_v51 = vld [vmem:[#allocation2_spill] sm:$0xff]  ;;  %v7564_v13 = vld [vmem:[#allocation3_spill] sm:$0xff] }
 0x17f   : > { %4589 = vmatprep.subr.bf16.mxu0 %v4588_v50  ;;  %v4307_v50 = vld [vmem:[%s7394_s1 + $0x8e0] sm:$0xff] }
 0x180   : > { %1348 = vmatmul.mubr.f32.gmra.mrb[40].mxu1 %v7546_v42  ;;  %v4602_v43 = vpack.c.bf16 %v4309_v57, %v4307_v50  ;;  %v7568_v50 = vld [vmem:[#allocation5_spill] sm:$0xff]  ;;  %v7569_v57 = vld [vmem:[#allocation35_spill] sm:$0xff] }
 0x181   : > { %3049 = vmatmul.mubr.f32.gmra.mrb[8].mxu0 %v7547_v62  ;;  %1353 = vmatprep.mubr.f32.mxu1 %v7509_v49  ;;  %v7559_v62 = vld [vmem:[#allocation30_spill] sm:$0xff] }
 0x182   : > { %3054 = vmatprep.mubr.f32.mxu0 %v7509_v49  ;;  %4591 = vmatpush1.bf16.msra.mxu0 %v4590_v34  ;;  %v7553_v34 = vld [vmem:[#allocation24_spill] sm:$0xff] }
 0x183   : > { %4593 = vmatprep.subr.bf16.mxu0 %v4592_v25  ;;  %v7554_v25 = vld [vmem:[#allocation25_spill] sm:$0xff] }
 0x184   : > { %1354 = vmatmul.mubr.f32.gmra.mrb[42].mxu1 %v7548_v39 }
 0x185   : > { %3055 = vmatmul.mubr.f32.gmra.mrb[10].mxu0 %v7549_v20  ;;  %1359 = vmatprep.mubr.f32.mxu1 %v7509_v49  ;;  %v7565_v20 = vld [vmem:[#allocation50_spill] sm:$0xff] }
 0x186   : > { %3060 = vmatprep.mubr.f32.mxu0 %v7509_v49  ;;  %4595 = vmatpush1.bf16.msra.mxu0 %v4594_v28  ;;  %v7560_v28 = vld [vmem:[#allocation31_spill] sm:$0xff] }
 0x187   : > { %4597 = vmatprep.subr.bf16.mxu0 %v4596_v56  ;;  %v7561_v56 = vld [vmem:[#allocation32_spill] sm:$0xff] }
 0x188   : > { %1360 = vmatmul.mubr.f32.gmra.mrb[44].mxu1 %v7550_v40 }
 0x189   : > { %3061 = vmatmul.mubr.f32.gmra.mrb[12].mxu0 %v7551_v29  ;;  %1365 = vmatprep.mubr.f32.mxu1 %v7509_v49  ;;  %v7570_v29 = vld [vmem:[#allocation6_spill] sm:$0xff] }
 0x18a   : > { %3066 = vmatprep.mubr.f32.mxu0 %v7509_v49  ;;  %4599 = vmatpush1.bf16.msra.mxu0 %v4598_v58  ;;  %v7566_v58 = vld [vmem:[#allocation34_spill] sm:$0xff] }
 0x18b   : > { %4601 = vmatprep.subr.bf16.mxu0 %v4600_v5  ;;  %v7567_v5 = vld [vmem:[#allocation4_spill] sm:$0xff] }
 0x18c   : > { %1366 = vmatmul.mubr.f32.gmra.mrb[46].mxu1 %v7552_v27 }
 0x18d   : > { %3067 = vmatmul.mubr.f32.gmra.mrb[14].mxu0 %v7553_v34  ;;  %1371 = vmatprep.mubr.f32.mxu1 %v7509_v49  ;;  %v7572_v34 = vld [vmem:[#allocation36_spill] sm:$0xff] }
 0x18e   : > { %3072 = vmatprep.mubr.f32.mxu0 %v7509_v49  ;;  %4603 = vmatpush1.bf16.msra.mxu0 %v4602_v43  ;;  %v7571_v43 = vld [vmem:[#allocation7_spill] sm:$0xff] }
 0x190   : > { %1372 = vmatmul.mubr.f32.gmra.mrb[48].mxu1 %v6398_v23 }
 0x191   : > { %3073 = vmatmul.mubr.f32.gmra.mrb[16].mxu0 %v7554_v25  ;;  %1377 = vmatprep.mubr.f32.mxu1 %v7509_v49  ;;  %v7573_v25 = vld [vmem:[#allocation8_spill] sm:$0xff] }
 0x192   : > { %3078 = vmatprep.mubr.f32.mxu0 %v7509_v49 }
 0x194   : > { %1378 = vmatmul.mubr.f32.gmra.mrb[50].mxu1 %v6421_v2 }
 0x195   : > { %3079 = vmatmul.mubr.f32.gmra.mrb[18].mxu0 %v7555_v21  ;;  %1383 = vmatprep.mubr.f32.mxu1 %v7509_v49  ;;  %v7575_v21 = vld [vmem:[#allocation37_spill] sm:$0xff] }
 0x196   : > { %3084 = vmatprep.mubr.f32.mxu0 %v7509_v49 }
 0x198   : > { %1384 = vmatmul.mubr.f32.gmra.mrb[52].mxu1 %v6433_v18 }
 0x199   : > { %3085 = vmatmul.mubr.f32.gmra.mrb[20].mxu0 %v7556_v53  ;;  %1389 = vmatprep.mubr.f32.mxu1 %v7509_v49  ;;  %v7576_v53 = vld [vmem:[#allocation10_spill] sm:$0xff] }
 0x19a   : > { %3090 = vmatprep.mubr.f32.mxu0 %v7509_v49 }
 0x19c   : > { %1390 = vmatmul.mubr.f32.gmra.mrb[54].mxu1 %v6441_v19 }
 0x19d   : > { %3091 = vmatmul.mubr.f32.gmra.mrb[22].mxu0 %v7557_v22  ;;  %1395 = vmatprep.mubr.f32.mxu1 %v7509_v49  ;;  %v7578_v22 = vld [vmem:[#allocation38_spill] sm:$0xff] }
 0x19e   : > { %3096 = vmatprep.mubr.f32.mxu0 %v7509_v49 }
 0x1a0   : > { %1396 = vmatmul.mubr.f32.gmra.mrb[56].mxu1 %v6450_v45 }
 0x1a1   : > { %3097 = vmatmul.mubr.f32.gmra.mrb[24].mxu0 %v7558_v37  ;;  %1401 = vmatprep.mubr.f32.mxu1 %v7509_v49  ;;  %v7579_v37 = vld [vmem:[#allocation12_spill] sm:$0xff] }
 0x1a2   : > { %3102 = vmatprep.mubr.f32.mxu0 %v7509_v49 }
 0x1a4   : > { %1402 = vmatmul.mubr.f32.gmra.mrb[58].mxu1 %v6458_v46 }
 0x1a5   : > { %3103 = vmatmul.mubr.f32.gmra.mrb[26].mxu0 %v7559_v62  ;;  %1407 = vmatprep.mubr.f32.mxu1 %v7509_v49  ;;  %v7581_v62 = vld [vmem:[#allocation39_spill] sm:$0xff] }
 0x1a6   : > { %3108 = vmatprep.mubr.f32.mxu0 %v7509_v49 }
 0x1a8   : > { %1408 = vmatmul.mubr.f32.gmra.mrb[60].mxu1 %v6467_v35 }
 0x1a9   : > { %3109 = vmatmul.mubr.f32.gmra.mrb[28].mxu0 %v7560_v28  ;;  %1413 = vmatprep.mubr.f32.mxu1 %v7509_v49 }
 0x1aa   : > { %3114 = vmatprep.mubr.f32.mxu0 %v7509_v49 }
 0x1ac   : > { %1414 = vmatmul.mubr.f32.gmra.mrb[62].mxu1 %v6481_v41 }
 0x1ad   : > { %3115 = vmatmul.mubr.f32.gmra.mrb[30].mxu0 %v7561_v56  ;;  %1581 = vmatprep.mubr.f32.mxu1 %v7509_v49 }
 0x1ae   : > { %3120 = vmatprep.mubr.f32.mxu0 %v7509_v49 }
 0x1b0   : > { %1582 = vmatmul.mubr.f32.vlgmr.msra.gmra.mrb[0].mxu1 %v5162_v15  ;;  %v7582_v15 = vld [vmem:[#allocation14_spill] sm:$0xff] }
 0x1b1   : > { %3121 = vmatmul.mubr.f32.gmra.mrb[32].mxu0 %v7562_v31  ;;  %4612 = vmatpush1.bf16.msra.mxu1 %v7563_v51  ;;  %v7584_v51 = vld [vmem:[#allocation40_spill] sm:$0xff] }
 0x1b2   : > { %1587 = vmatprep.mubr.f32.mxu1 %v7509_v49  ;;  %3126 = vmatprep.mubr.f32.mxu0 %v7509_v49 }
 0x1b3   : > { %4605 = vmatprep.subr.bf16.mxu1 %v7564_v13  ;;  %v7585_v13 = vld [vmem:[#allocation16_spill] sm:$0xff] }
 0x1b4   : > { %1588 = vmatmul.mubr.f32.gmra.mrb[2].mxu1 %v7565_v20  ;;  %v7587_v20 = vld [vmem:[#allocation42_spill] sm:$0xff] }
 0x1b5   : > { %3127 = vmatmul.mubr.f32.gmra.mrb[34].mxu0 %v7566_v58  ;;  %1593 = vmatprep.mubr.f32.mxu1 %v7509_v49 }
 0x1b6   : > { %3132 = vmatprep.mubr.f32.mxu0 %v7509_v49  ;;  %4613 = vmatpush1.bf16.msra.mxu1 %v7567_v5  ;;  %v1842_v5 = vrot.slane %v6474_v3, 1  ;;  %v2921_v3 = vrot.slane %v6858_v1, 1 }
 0x1b7   : > { %4606 = vmatprep.subr.bf16.mxu1 %v7568_v50  ;;  %v1844_v50 = vrot.slane %v6486_v33, 1 }
 0x1b8   : > { %1594 = vmatmul.mubr.f32.gmra.mrb[4].mxu1 %v6361_v30  ;;  %v7574_v30 = vld [vmem:[#allocation9_spill] sm:$0xff] }
 0x1b9   : > { %3133 = vmatmul.mubr.f32.gmra.mrb[36].mxu0 %v7569_v57  ;;  %1599 = vmatprep.mubr.f32.mxu1 %v7509_v49 }
 0x1ba   : > { %3138 = vmatprep.mubr.f32.mxu0 %v7509_v49  ;;  %4614 = vmatpush1.bf16.msra.mxu1 %v7570_v29  ;;  %v7590_v29 = vld [vmem:[#allocation55_spill] sm:$0xff] }
 0x1bb   : > { %4607 = vmatprep.subr.bf16.mxu1 %v7571_v43  ;;  %v7097_v43 = vld [vmem:[%s5449_s17 + $0x1a8] sm:$0x3] }
 0x1bc   : > { %1600 = vmatmul.mubr.f32.gmra.mrb[6].mxu1 %v6385_v10  ;;  %v7577_v10 = vld [vmem:[#allocation11_spill] sm:$0xff] }
 0x1bd   : > { %3139 = vmatmul.mubr.f32.gmra.mrb[38].mxu0 %v7572_v34  ;;  %1605 = vmatprep.mubr.f32.mxu1 %v7509_v49 }
 0x1be   : > { %3144 = vmatprep.mubr.f32.mxu0 %v7509_v49  ;;  %4615 = vmatpush1.bf16.msra.mxu1 %v7573_v25  ;;  %v7591_v25 = vld [vmem:[#allocation56_spill] sm:$0xff] }
 0x1bf   : > { %4608 = vmatprep.subr.bf16.mxu1 %v7574_v30  ;;  %v2923_v30 = vrot.slane %v7097_v43, 1 }
 0x1c0   : > { %1606 = vmatmul.mubr.f32.gmra.mrb[8].mxu1 %v6408_v44  ;;  %v7580_v44 = vld [vmem:[#allocation13_spill] sm:$0xff] }
 0x1c1   : > { %3145 = vmatmul.mubr.f32.gmra.mrb[40].mxu0 %v7575_v21  ;;  %1611 = vmatprep.mubr.f32.mxu1 %v7509_v49 }
 0x1c2   : > { %3150 = vmatprep.mubr.f32.mxu0 %v7509_v49  ;;  %4616 = vmatpush1.bf16.msra.mxu1 %v7576_v53  ;;  %v7592_v53 = vld [vmem:[#allocation57_spill] sm:$0xff] }
 0x1c3   : > { %4609 = vmatprep.subr.bf16.mxu1 %v7577_v10  ;;  %v2924_v10 = vsel %vm357_vm0, %v2921_v3, %v2923_v30 }
 0x1c4   : > { %1612 = vmatmul.mubr.f32.gmra.mrb[10].mxu1 %v6426_v48  ;;  %v7583_v48 = vld [vmem:[#allocation15_spill] sm:$0xff] }
 0x1c5   : > { %3151 = vmatmul.mubr.f32.gmra.mrb[42].mxu0 %v7578_v22  ;;  %1617 = vmatprep.mubr.f32.mxu1 %v7509_v49 }
 0x1c6   : > { %3156 = vmatprep.mubr.f32.mxu0 %v7509_v49  ;;  %4617 = vmatpush1.bf16.msra.mxu1 %v7579_v37  ;;  %v7593_v37 = vld [vmem:[#allocation58_spill] sm:$0xff] }
 0x1c7   : > { %4610 = vmatprep.subr.bf16.mxu1 %v7580_v44  ;;  %v5163_v44 = vld [vmem:[%s5449_s17 + $0xd8] sm:$0xff] }
 0x1c8   : > { %1618 = vmatmul.mubr.f32.gmra.mrb[12].mxu1 %v6597_v54  ;;  %v7586_v54 = vld [vmem:[#allocation41_spill] sm:$0xff] }
 0x1c9   : > { %3157 = vmatmul.mubr.f32.gmra.mrb[44].mxu0 %v7581_v62  ;;  %1623 = vmatprep.mubr.f32.mxu1 %v7509_v49 }
 0x1ca   : > { %3162 = vmatprep.mubr.f32.mxu0 %v7509_v49  ;;  %4618 = vmatpush1.bf16.msra.mxu1 %v7582_v15  ;;  %v7594_v15 = vld [vmem:[#allocation59_spill] sm:$0xff] }
 0x1cb   : > { %4611 = vmatprep.subr.bf16.mxu1 %v7583_v48  ;;  %v5164_v48 = vld [vmem:[%s5449_s17 + $0xf0] sm:$0xff] }
 0x1cc   : > { %1624 = vmatmul.mubr.f32.gmra.mrb[14].mxu1 %v6616_v4  ;;  %v7588_v4 = vld [vmem:[#allocation43_spill] sm:$0xff] }
 0x1cd   : > { %3163 = vmatmul.mubr.f32.gmra.mrb[46].mxu0 %v7584_v51  ;;  %1629 = vmatprep.mubr.f32.mxu1 %v7509_v49 }
 0x1ce   : > { %3168 = vmatprep.mubr.f32.mxu0 %v7509_v49  ;;  %4619 = vmatpush1.bf16.msra.mxu1 %v7585_v13 }
 0x1d0   : > { %1630 = vmatmul.mubr.f32.gmra.mrb[16].mxu1 %v6635_v11  ;;  %v1841_v11 = vrot.slane %v6471_v63, 1  ;;  %v2920_v63 = vrot.slane %v6851_v8, 1 }
 0x1d1   : > { %3169 = vmatmul.mubr.f32.gmra.mrb[48].mxu0 %v7586_v54  ;;  %1635 = vmatprep.mubr.f32.mxu1 %v7509_v49 }
 0x1d2   : > { %3174 = vmatprep.mubr.f32.mxu0 %v7509_v49  ;;  %v2922_v33 = vsel %vm357_vm0, %v2920_v63, %v2921_v3 }
 0x1d4   : > { %1636 = vmatmul.mubr.f32.gmra.mrb[18].mxu1 %v6642_v17  ;;  %v7589_v17 = vld [vmem:[#allocation44_spill] sm:$0xff] }
 0x1d5   : > { %3175 = vmatmul.mubr.f32.gmra.mrb[50].mxu0 %v7587_v20  ;;  %1641 = vmatprep.mubr.f32.mxu1 %v7509_v49 }
 0x1d6   : > { %3180 = vmatprep.mubr.f32.mxu0 %v7509_v49 }
 0x1d8   : > { %1642 = vmatmul.mubr.f32.gmra.mrb[20].mxu1 %v6649_v12  ;;  %v7084_v12 = vsel %vm357_vm0, %v1841_v11, %v1842_v5 }
 0x1d9   : > { %3181 = vmatmul.mubr.f32.gmra.mrb[52].mxu0 %v7588_v4  ;;  %1647 = vmatprep.mubr.f32.mxu1 %v7509_v49 }
 0x1da   : > { %3186 = vmatprep.mubr.f32.mxu0 %v7509_v49 }
 0x1dc   : > { %1648 = vmatmul.mubr.f32.gmra.mrb[22].mxu1 %v6656_v60  ;;  %v7094_v60 = vsel %vm357_vm0, %v1842_v5, %v1844_v50 }
 0x1dd   : > { %3187 = vmatmul.mubr.f32.gmra.mrb[54].mxu0 %v7589_v17  ;;  %1653 = vmatprep.mubr.f32.mxu1 %v7509_v49 }
 0x1de   : > { %3192 = vmatprep.mubr.f32.mxu0 %v7509_v49 }
 0x1e0   : > { %1654 = vmatmul.mubr.f32.gmra.mrb[24].mxu1 %v7590_v29 }
 0x1e1   : > { %3193 = vmatmul.mubr.f32.gmra.mrb[56].mxu0 %v7084_v12  ;;  %1659 = vmatprep.mubr.f32.mxu1 %v7509_v49 }
 0x1e2   : > { %3198 = vmatprep.mubr.f32.mxu0 %v7509_v49 }
 0x1e4   : > { %1660 = vmatmul.mubr.f32.gmra.mrb[26].mxu1 %v7591_v25 }
 0x1e5   : > { %3199 = vmatmul.mubr.f32.gmra.mrb[58].mxu0 %v7094_v60  ;;  %1665 = vmatprep.mubr.f32.mxu1 %v7509_v49 }
 0x1e6   : > { %3204 = vmatprep.mubr.f32.mxu0 %v7509_v49 }
 0x1e8   : > { %1666 = vmatmul.mubr.f32.gmra.mrb[28].mxu1 %v7592_v53 }
 0x1e9   : > { %3205 = vmatmul.mubr.f32.gmra.mrb[60].mxu0 %v2922_v33  ;;  %1671 = vmatprep.mubr.f32.mxu1 %v7509_v49 }
 0x1ea   : > { %3210 = vmatprep.mubr.f32.mxu0 %v7509_v49 }
 0x1ec   : > { %1672 = vmatmul.mubr.f32.gmra.mrb[30].mxu1 %v7593_v37 }
 0x1ed   : > { %3211 = vmatmul.mubr.f32.gmra.mrb[62].mxu0 %v2924_v10  ;;  %1677 = vmatprep.mubr.f32.mxu1 %v7509_v49 }
 0x1ee   : > { %3385 = vmatprep.mubr.f32.mxu0 %v7509_v49 }
 0x1f0   : > { %1678 = vmatmul.mubr.f32.gmra.mrb[32].mxu1 %v5163_v44 }
 0x1f1   : > { %3386 = vmatmul.mubr.f32.vlgmr.msra.gmra.mrb[0].mxu0 %v5958_v16  ;;  %1683 = vmatprep.mubr.f32.mxu1 %v7509_v49  ;;  %v5165_v16 = vld [vmem:[%s5449_s17 + $0xf8] sm:$0xff] }
 0x1f2   : > { %3391 = vmatprep.mubr.f32.mxu0 %v7509_v49 }
 0x1f4   : > { %1684 = vmatmul.mubr.f32.gmra.mrb[34].mxu1 %v7594_v15 }
 0x1f5   : > { %3392 = vmatmul.mubr.f32.gmra.mrb[2].mxu0 %v5989_v14  ;;  %1689 = vmatprep.mubr.f32.mxu1 %v7509_v49  ;;  %v5166_v14 = vld [vmem:[%s5449_s17 + $0x108] sm:$0xff] }
 0x1f6   : > { %3397 = vmatprep.mubr.f32.mxu0 %v7509_v49 }
 0x1f8   : > { %1690 = vmatmul.mubr.f32.gmra.mrb[36].mxu1 %v5164_v48 }
 0x1f9   : > { %3398 = vmatmul.mubr.f32.gmra.mrb[4].mxu0 %v6017_v6  ;;  %1695 = vmatprep.mubr.f32.mxu1 %v7509_v49  ;;  %v5167_v6 = vld [vmem:[%s5449_s17 + $0x110] sm:$0xff] }
 0x1fa   : > { %3403 = vmatprep.mubr.f32.mxu0 %v7509_v49 }
 0x1fc   : > { %1696 = vmatmul.mubr.f32.gmra.mrb[38].mxu1 %v5165_v16 }
 0x1fd   : > { %3404 = vmatmul.mubr.f32.gmra.mrb[6].mxu0 %v6048_v59  ;;  %1701 = vmatprep.mubr.f32.mxu1 %v7509_v49  ;;  %v5168_v59 = vld [vmem:[%s5449_s17 + $0x120] sm:$0xff] }
 0x1fe   : > { %3409 = vmatprep.mubr.f32.mxu0 %v7509_v49 }
 0x200   : > { %1702 = vmatmul.mubr.f32.gmra.mrb[40].mxu1 %v5166_v14 }
 0x201   : > { %3410 = vmatmul.mubr.f32.gmra.mrb[8].mxu0 %v6076_v7  ;;  %1707 = vmatprep.mubr.f32.mxu1 %v7509_v49  ;;  %v5169_v7 = vld [vmem:[%s5449_s17 + $0x128] sm:$0xff] }
 0x202   : > { %3415 = vmatprep.mubr.f32.mxu0 %v7509_v49 }
 0x204   : > { %1708 = vmatmul.mubr.f32.gmra.mrb[42].mxu1 %v5167_v6 }
 0x205   : > { %3416 = vmatmul.mubr.f32.gmra.mrb[10].mxu0 %v6107_v55  ;;  %1713 = vmatprep.mubr.f32.mxu1 %v7509_v49  ;;  %v5170_v55 = vld [vmem:[%s5449_s17 + $0x138] sm:$0xff] }
 0x206   : > { %3421 = vmatprep.mubr.f32.mxu0 %v7509_v49 }
 0x208   : > { %1714 = vmatmul.mubr.f32.gmra.mrb[44].mxu1 %v5168_v59 }
 0x209   : > { %3422 = vmatmul.mubr.f32.gmra.mrb[12].mxu0 %v6123_v24  ;;  %1719 = vmatprep.mubr.f32.mxu1 %v7509_v49  ;;  %v5171_v24 = vld [vmem:[%s5449_s17 + $0x140] sm:$0xff] }
 0x20a   : > { %3427 = vmatprep.mubr.f32.mxu0 %v7509_v49 }
 0x20c   : > { %1720 = vmatmul.mubr.f32.gmra.mrb[46].mxu1 %v5169_v7 }
 0x20d   : > { %3428 = vmatmul.mubr.f32.gmra.mrb[14].mxu0 %v6142_v52  ;;  %1725 = vmatprep.mubr.f32.mxu1 %v7509_v49  ;;  %v5172_v52 = vld [vmem:[%s5449_s17 + $0x150] sm:$0xff] }
 0x20e   : > { %3433 = vmatprep.mubr.f32.mxu0 %v7509_v49 }
 0x210   : > { %1726 = vmatmul.mubr.f32.gmra.mrb[48].mxu1 %v5170_v55 }
 0x211   : > { %3434 = vmatmul.mubr.f32.gmra.mrb[16].mxu0 %v6158_v26  ;;  %1731 = vmatprep.mubr.f32.mxu1 %v7509_v49  ;;  %v5173_v26 = vld [vmem:[%s5449_s17 + $0x158] sm:$0xff] }
 0x212   : > { %3439 = vmatprep.mubr.f32.mxu0 %v7509_v49 }
 0x214   : > { %1732 = vmatmul.mubr.f32.gmra.mrb[50].mxu1 %v5171_v24 }
 0x215   : > { %3440 = vmatmul.mubr.f32.gmra.mrb[18].mxu0 %v6177_v47  ;;  %1737 = vmatprep.mubr.f32.mxu1 %v7509_v49  ;;  %v5174_v47 = vld [vmem:[%s5449_s17 + $0x168] sm:$0xff] }
 0x216   : > { %3445 = vmatprep.mubr.f32.mxu0 %v7509_v49 }
 0x218   : > { %1738 = vmatmul.mubr.f32.gmra.mrb[52].mxu1 %v5172_v52 }
 0x219   : > { %3446 = vmatmul.mubr.f32.gmra.mrb[20].mxu0 %v6193_v0  ;;  %1743 = vmatprep.mubr.f32.mxu1 %v7509_v49  ;;  %v5175_v0 = vld [vmem:[%s5449_s17 + $0x170] sm:$0xff] }
 0x21a   : > { %3451 = vmatprep.mubr.f32.mxu0 %v7509_v49 }
 0x21c   : > { %1744 = vmatmul.mubr.f32.gmra.mrb[54].mxu1 %v5173_v26 }
 0x21d   : > { %3452 = vmatmul.mubr.f32.gmra.mrb[22].mxu0 %v6212_v61  ;;  %1749 = vmatprep.mubr.f32.mxu1 %v7509_v49  ;;  %v5176_v61 = vld [vmem:[%s5449_s17 + $0x180] sm:$0xff] }
 0x21e   : > { %3457 = vmatprep.mubr.f32.mxu0 %v7509_v49 }
 0x220   : > { %1750 = vmatmul.mubr.f32.gmra.mrb[56].mxu1 %v5174_v47 }
 0x221   : > { %3458 = vmatmul.mubr.f32.gmra.mrb[24].mxu0 %v6228_v32  ;;  %1755 = vmatprep.mubr.f32.mxu1 %v7509_v49  ;;  %v5177_v32 = vld [vmem:[%s5449_s17 + $0x188] sm:$0xff]  ;;  %s4313_s17 = sshll.u32 %s7598_s16, 9 }
 0x222   : > { %3463 = vmatprep.mubr.f32.mxu0 %v7509_v49  ;;  %s7293_s20 = scalar_lea.vmem %s7395_s2, %s4313_s17 }
 0x224   : > { %1756 = vmatmul.mubr.f32.gmra.mrb[58].mxu1 %v5175_v0 }
 0x225   : > { %3464 = vmatmul.mubr.f32.gmra.mrb[26].mxu0 %v7540_v38  ;;  %1761 = vmatprep.mubr.f32.mxu1 %v7509_v49 }
 0x226   : > { %3469 = vmatprep.mubr.f32.mxu0 %v7509_v49 }
 0x228   : > { %1762 = vmatmul.mubr.f32.gmra.mrb[60].mxu1 %v5176_v61 }
 0x229   : > { %3470 = vmatmul.mubr.f32.gmra.mrb[28].mxu0 %v7542_v36  ;;  %1767 = vmatprep.mubr.f32.mxu1 %v7509_v49 }
 0x22a   : > { %3475 = vmatprep.mubr.f32.mxu0 %v7509_v49 }
 0x22c   : > { %1768 = vmatmul.mubr.f32.gmra.mrb[62].mxu1 %v5177_v32 }
 0x22d   : > { %3476 = vmatmul.mubr.f32.gmra.mrb[30].mxu0 %v7544_v9  ;;  %2041 = vmatprep.mubr.f32.mxu1 %v7509_v49 }
 0x22e   : > { %3481 = vmatprep.mubr.f32.mxu0 %v7509_v49 }
 0x230   : > { %2042 = vmatmul.mubr.f32.vlgmr.msra.gmra.mrb[32].mxu1 %v7560_v28 }
 0x231   : > { %3482 = vmatmul.mubr.f32.gmra.mrb[32].mxu0 %v7546_v42  ;;  %2047 = vmatprep.mubr.f32.mxu1 %v7509_v49 }
 0x232   : > { %3487 = vmatprep.mubr.f32.mxu0 %v7509_v49 }
 0x234   : > { %2048 = vmatmul.mubr.f32.gmra.mrb[34].mxu1 %v7561_v56 }
 0x235   : > { %3488 = vmatmul.mubr.f32.gmra.mrb[34].mxu0 %v7548_v39  ;;  %2053 = vmatprep.mubr.f32.mxu1 %v7509_v49 }
 0x236   : > { %3493 = vmatprep.mubr.f32.mxu0 %v7509_v49 }
 0x238   : > { %2054 = vmatmul.mubr.f32.gmra.mrb[36].mxu1 %v7562_v31 }
 0x239   : > { %3494 = vmatmul.mubr.f32.gmra.mrb[36].mxu0 %v7550_v40  ;;  %2059 = vmatprep.mubr.f32.mxu1 %v7509_v49 }
 0x23a   : > { %3499 = vmatprep.mubr.f32.mxu0 %v7509_v49 }
 0x23c   : > { %2060 = vmatmul.mubr.f32.gmra.mrb[38].mxu1 %v7566_v58 }
 0x23d   : > { %3500 = vmatmul.mubr.f32.gmra.mrb[38].mxu0 %v7552_v27  ;;  %2065 = vmatprep.mubr.f32.mxu1 %v7509_v49 }
 0x23e   : > { %3505 = vmatprep.mubr.f32.mxu0 %v7509_v49 }
 0x240   : > { %2066 = vmatmul.mubr.f32.gmra.mrb[40].mxu1 %v7569_v57 }
 0x241   : > { %3506 = vmatmul.mubr.f32.gmra.mrb[40].mxu0 %v6398_v23  ;;  %2071 = vmatprep.mubr.f32.mxu1 %v7509_v49  ;;  %v7595_v23 = vld [vmem:[#allocation53_spill] sm:$0xff] }
 0x242   : > { %3511 = vmatprep.mubr.f32.mxu0 %v7509_v49 }
 0x244   : > { %2072 = vmatmul.mubr.f32.gmra.mrb[42].mxu1 %v7572_v34 }
 0x245   : > { %3512 = vmatmul.mubr.f32.gmra.mrb[42].mxu0 %v6421_v2  ;;  %2077 = vmatprep.mubr.f32.mxu1 %v7509_v49  ;;  %v3281_v2 = vrot.slane %v6851_v8, 2 }
 0x246   : > { %3517 = vmatprep.mubr.f32.mxu0 %v7509_v49 }
 0x248   : > { %2078 = vmatmul.mubr.f32.gmra.mrb[44].mxu1 %v7575_v21 }
 0x249   : > { %3518 = vmatmul.mubr.f32.gmra.mrb[44].mxu0 %v6433_v18  ;;  %2083 = vmatprep.mubr.f32.mxu1 %v7509_v49  ;;  %v3282_v18 = vrot.slane %v6858_v1, 2 }
 0x24a   : > { %3523 = vmatprep.mubr.f32.mxu0 %v7509_v49 }
 0x24c   : > { %2084 = vmatmul.mubr.f32.gmra.mrb[46].mxu1 %v7578_v22 }
 0x24d   : > { %3524 = vmatmul.mubr.f32.gmra.mrb[46].mxu0 %v6441_v19  ;;  %2089 = vmatprep.mubr.f32.mxu1 %v7509_v49  ;;  %v7596_v19 = vld [vmem:[#allocation54_spill] sm:$0xff] }
 0x24e   : > { %3529 = vmatprep.mubr.f32.mxu0 %v7509_v49 }
 0x250   : > { %2090 = vmatmul.mubr.f32.gmra.mrb[48].mxu1 %v7581_v62 }
 0x251   : > { %3530 = vmatmul.mubr.f32.gmra.mrb[48].mxu0 %v6450_v45  ;;  %2095 = vmatprep.mubr.f32.mxu1 %v7509_v49  ;;  %v3283_v45 = vsel %vm1017_vm1, %v3281_v2, %v3282_v18 }
 0x252   : > { %3535 = vmatprep.mubr.f32.mxu0 %v7509_v49 }
 0x254   : > { %2096 = vmatmul.mubr.f32.gmra.mrb[50].mxu1 %v7584_v51 }
 0x255   : > { %3536 = vmatmul.mubr.f32.gmra.mrb[50].mxu0 %v6458_v46  ;;  %2101 = vmatprep.mubr.f32.mxu1 %v7509_v49  ;;  %v3284_v46 = vrot.slane %v7097_v43, 2 }
 0x256   : > { %3541 = vmatprep.mubr.f32.mxu0 %v7509_v49 }
 0x258   : > { %2102 = vmatmul.mubr.f32.gmra.mrb[52].mxu1 %v7586_v54 }
 0x259   : > { %3542 = vmatmul.mubr.f32.gmra.mrb[52].mxu0 %v6467_v35  ;;  %2107 = vmatprep.mubr.f32.mxu1 %v7509_v49  ;;  %v3285_v35 = vsel %vm1017_vm1, %v3282_v18, %v3284_v46 }
 0x25a   : > { %3547 = vmatprep.mubr.f32.mxu0 %v7509_v49 }
 0x25c   : > { %2108 = vmatmul.mubr.f32.gmra.mrb[54].mxu1 %v7587_v20 }
 0x25d   : > { %3548 = vmatmul.mubr.f32.gmra.mrb[54].mxu0 %v6481_v41  ;;  %2113 = vmatprep.mubr.f32.mxu1 %v7509_v49 }
 0x25e   : > { %3553 = vmatprep.mubr.f32.mxu0 %v7509_v49 }
 0x260   : > { %2114 = vmatmul.mubr.f32.gmra.mrb[56].mxu1 %v7588_v4 }
 0x261   : > { %3554 = vmatmul.mubr.f32.gmra.mrb[56].mxu0 %v7595_v23  ;;  %2119 = vmatprep.mubr.f32.mxu1 %v7509_v49 }
 0x262   : > { %3559 = vmatprep.mubr.f32.mxu0 %v7509_v49 }
 0x264   : > { %2120 = vmatmul.mubr.f32.gmra.mrb[58].mxu1 %v7589_v17 }
 0x265   : > { %3560 = vmatmul.mubr.f32.gmra.mrb[58].mxu0 %v7596_v19  ;;  %2125 = vmatprep.mubr.f32.mxu1 %v7509_v49 }
 0x266   : > { %3565 = vmatprep.mubr.f32.mxu0 %v7509_v49 }
 0x268   : > { %2126 = vmatmul.mubr.f32.gmra.mrb[60].mxu1 %v7084_v12 }
 0x269   : > { %3566 = vmatmul.mubr.f32.gmra.mrb[60].mxu0 %v3283_v45  ;;  %2131 = vmatprep.mubr.f32.mxu1 %v7509_v49 }
 0x26a   : > { %3571 = vmatprep.mubr.f32.mxu0 %v7509_v49 }
 0x26c   : > { %2132 = vmatmul.mubr.f32.gmra.mrb[62].mxu1 %v7094_v60 }
 0x26d   : > { %3572 = vmatmul.mubr.f32.gmra.mrb[62].mxu0 %v3285_v35 }
 0x283   : > { %v1583_v41 = vpop.f32.mrb[0].mxu1 }
 0x284   : > { %v1585_v8 = vpop.f32.mrb[1].mxu1 }
 0x287   : > { %v1589_v1 = vpop.f32.mrb[2].mxu1 }
 0x288   : > { %v1591_v38 = vpop.f32.mrb[3].mxu1 }
 0x28b   : > { %v1595_v36 = vpop.f32.mrb[4].mxu1 }
 0x28c   : > { %v1597_v9 = vpop.f32.mrb[5].mxu1 }
 0x28f   : > { %v1601_v42 = vpop.f32.mrb[6].mxu1 }
 0x290   : > { %v1603_v39 = vpop.f32.mrb[7].mxu1 }
 0x293   : > { %v7241_v40 = vpop.f32.mrb[8].mxu1 }
 0x294   : > { %v7243_v27 = vpop.f32.mrb[9].mxu1 }
 0x297   : > { %v7245_v28 = vpop.f32.mrb[10].mxu1 }
 0x298   : > { %v7247_v49 = vpop.f32.mrb[11].mxu1 }
 0x29b   : > { %v7249_v56 = vpop.f32.mrb[12].mxu1 }
 0x29c   : > { %v7251_v31 = vpop.f32.mrb[13].mxu1 }
 0x29f   : > { %v7253_v58 = vpop.f32.mrb[14].mxu1 }
 0x2a0   : > { %v7255_v57 = vpop.f32.mrb[15].mxu1 }
 0x2a3   : > { %v7257_v34 = vpop.f32.mrb[16].mxu1 }
 0x2a4   : > { %v7259_v21 = vpop.f32.mrb[17].mxu1 }
 0x2a7   : > { %v7261_v22 = vpop.f32.mrb[18].mxu1 }
 0x2a8   : > { %v7263_v62 = vpop.f32.mrb[19].mxu1 }
 0x2ab   : > { %v7265_v51 = vpop.f32.mrb[20].mxu1 }
 0x2ac   : > { %v7267_v13 = vpop.f32.mrb[21].mxu1 }
 0x2af   : > { %v7269_v54 = vpop.f32.mrb[22].mxu1 }
 0x2b0   : > { %v7271_v20 = vpop.f32.mrb[23].mxu1 }
 0x2b3   : > { %v7273_v4 = vpop.f32.mrb[24].mxu1 }
 0x2b4   : > { %v7275_v11 = vpop.f32.mrb[25].mxu1 }
 0x2b7   : > { %v7277_v5 = vpop.f32.mrb[26].mxu1 }
 0x2b8   : > { %v7279_v17 = vpop.f32.mrb[27].mxu1 }
 0x2bb   : > { %v7281_v12 = vpop.f32.mrb[28].mxu1 }
 0x2bc   : > { %v7283_v50 = vpop.f32.mrb[29].mxu1 }
 0x2bf   : > { %v7285_v29 = vpop.f32.mrb[30].mxu1 }
 0x2c0   : > { %v7287_v63 = vpop.f32.mrb[31].mxu1 }
 0x2c4   : > { %v3387_v3 = vpop.f32.mrb[0].mxu0 }
 0x2c5   : > { %v4620_v60 = vadd.f32 %v3387_v3, %v1583_v41  ;;  %v3389_v43 = vpop.f32.mrb[1].mxu0 }
 0x2c6   : > { %v4621_v25 = vadd.f32 %v3389_v43, %v1585_v8 }
 0x2c7   : > { %3642 = vst [vmem:[%s7293_s20] sm:$0xff] %v4620_v60  ;;  %v3780_v37 = vmul.f32 %v4620_v60, %v4620_v60 }
 0x2c8   : > { %3643 = vst [vmem:[%s7293_s20 + $0x8] sm:$0xff] %v4621_v25  ;;  %v3393_v33 = vpop.f32.mrb[2].mxu0  ;;  %v3781_v48 = vmul.f32 %v4621_v25, %v4621_v25 }
 0x2c9   : > { %v4622_v30 = vadd.f32 %v3393_v33, %v1589_v1  ;;  %v3395_v53 = vpop.f32.mrb[3].mxu0 }
 0x2ca   : > { %v4623_v10 = vadd.f32 %v3395_v53, %v1591_v38 }
 0x2cb   : > { %3644 = vst [vmem:[%s7293_s20 + $0x10] sm:$0xff] %v4622_v30  ;;  %v3706_v44 = vadd.f32 %v4622_v30, %v4620_v60  ;;  %v3782_v15 = vmul.f32 %v4622_v30, %v4622_v30 }
 0x2cc   : > { %3645 = vst [vmem:[%s7293_s20 + $0x18] sm:$0xff] %v4623_v10  ;;  %v3743_v16 = vadd.f32 %v4623_v10, %v4621_v25  ;;  %v3783_v14 = vmul.f32 %v4623_v10, %v4623_v10  ;;  %v3399_v6 = vpop.f32.mrb[4].mxu0 }
 0x2cd   : > { %v3844_v59 = vadd.f32 %v3782_v15, %v3780_v37  ;;  %v4624_v7 = vadd.f32 %v3399_v6, %v1595_v36  ;;  %v3401_v55 = vpop.f32.mrb[5].mxu0 }
 0x2ce   : > { %v3881_v24 = vadd.f32 %v3783_v14, %v3781_v48  ;;  %v4625_v52 = vadd.f32 %v3401_v55, %v1597_v9 }
 0x2cf   : > { %3646 = vst [vmem:[%s7293_s20 + $0x20] sm:$0xff] %v4624_v7  ;;  %v3707_v26 = vadd.f32 %v4624_v7, %v3706_v44  ;;  %v3784_v47 = vmul.f32 %v4624_v7, %v4624_v7 }
 0x2d0   : > { %3647 = vst [vmem:[%s7293_s20 + $0x28] sm:$0xff] %v4625_v52  ;;  %v3744_v0 = vadd.f32 %v4625_v52, %v3743_v16  ;;  %v3785_v61 = vmul.f32 %v4625_v52, %v4625_v52  ;;  %v3405_v32 = vpop.f32.mrb[6].mxu0 }
 0x2d1   : > { %v3845_v23 = vadd.f32 %v3844_v59, %v3784_v47  ;;  %v4626_v2 = vadd.f32 %v3405_v32, %v1601_v42  ;;  %v3407_v18 = vpop.f32.mrb[7].mxu0 }
 0x2d2   : > { %v3882_v19 = vadd.f32 %v3881_v24, %v3785_v61  ;;  %v4627_v45 = vadd.f32 %v3407_v18, %v1603_v39 }
 0x2d3   : > { %3648 = vst [vmem:[%s7293_s20 + $0x30] sm:$0xff] %v4626_v2  ;;  %v3708_v46 = vadd.f32 %v4626_v2, %v3707_v26  ;;  %v3786_v35 = vmul.f32 %v4626_v2, %v4626_v2 }
 0x2d4   : > { %3649 = vst [vmem:[%s7293_s20 + $0x38] sm:$0xff] %v4627_v45  ;;  %v3745_v41 = vadd.f32 %v4627_v45, %v3744_v0  ;;  %v3787_v8 = vmul.f32 %v4627_v45, %v4627_v45  ;;  %v3411_v1 = vpop.f32.mrb[8].mxu0 }
 0x2d5   : > { %v3846_v38 = vadd.f32 %v3845_v23, %v3786_v35  ;;  %v4628_v36 = vadd.f32 %v3411_v1, %v7241_v40  ;;  %v3413_v9 = vpop.f32.mrb[9].mxu0 }
 0x2d6   : > { %v3883_v3 = vadd.f32 %v3882_v19, %v3787_v8  ;;  %v4629_v42 = vadd.f32 %v3413_v9, %v7243_v27 }
 0x2d7   : > { %3650 = vst [vmem:[%s7293_s20 + $0x40] sm:$0xff] %v4628_v36  ;;  %v3709_v60 = vadd.f32 %v4628_v36, %v3708_v46  ;;  %v3788_v39 = vmul.f32 %v4628_v36, %v4628_v36 }
 0x2d8   : > { %3651 = vst [vmem:[%s7293_s20 + $0x48] sm:$0xff] %v4629_v42  ;;  %v3746_v43 = vadd.f32 %v4629_v42, %v3745_v41  ;;  %v3789_v25 = vmul.f32 %v4629_v42, %v4629_v42  ;;  %v3417_v33 = vpop.f32.mrb[10].mxu0 }
 0x2d9   : > { %v3847_v30 = vadd.f32 %v3846_v38, %v3788_v39  ;;  %v4630_v53 = vadd.f32 %v3417_v33, %v7245_v28  ;;  %v3419_v10 = vpop.f32.mrb[11].mxu0 }
 0x2da   : > { %v3884_v37 = vadd.f32 %v3883_v3, %v3789_v25  ;;  %v4631_v40 = vadd.f32 %v3419_v10, %v7247_v49 }
 0x2db   : > { %3652 = vst [vmem:[%s7293_s20 + $0x50] sm:$0xff] %v4630_v53  ;;  %v3710_v44 = vadd.f32 %v4630_v53, %v3709_v60  ;;  %v3790_v27 = vmul.f32 %v4630_v53, %v4630_v53 }
 0x2dc   : > { %3653 = vst [vmem:[%s7293_s20 + $0x58] sm:$0xff] %v4631_v40  ;;  %v3747_v15 = vadd.f32 %v4631_v40, %v3746_v43  ;;  %v3791_v48 = vmul.f32 %v4631_v40, %v4631_v40  ;;  %v3423_v16 = vpop.f32.mrb[12].mxu0 }
 0x2dd   : > { %v3848_v14 = vadd.f32 %v3847_v30, %v3790_v27  ;;  %v4632_v6 = vadd.f32 %v3423_v16, %v7249_v56  ;;  %v3425_v59 = vpop.f32.mrb[13].mxu0 }
 0x2de   : > { %v3885_v7 = vadd.f32 %v3884_v37, %v3791_v48  ;;  %v4633_v28 = vadd.f32 %v3425_v59, %v7251_v31 }
 0x2df   : > { %3654 = vst [vmem:[%s7293_s20 + $0x60] sm:$0xff] %v4632_v6  ;;  %v3711_v55 = vadd.f32 %v4632_v6, %v3710_v44  ;;  %v3792_v49 = vmul.f32 %v4632_v6, %v4632_v6 }
 0x2e0   : > { %3655 = vst [vmem:[%s7293_s20 + $0x68] sm:$0xff] %v4633_v28  ;;  %v3748_v24 = vadd.f32 %v4633_v28, %v3747_v15  ;;  %v3793_v52 = vmul.f32 %v4633_v28, %v4633_v28  ;;  %v3429_v26 = vpop.f32.mrb[14].mxu0 }
 0x2e1   : > { %v3849_v47 = vadd.f32 %v3848_v14, %v3792_v49  ;;  %v4634_v0 = vadd.f32 %v3429_v26, %v7253_v58  ;;  %v3431_v61 = vpop.f32.mrb[15].mxu0 }
 0x2e2   : > { %v3886_v32 = vadd.f32 %v3885_v7, %v3793_v52  ;;  %v4635_v56 = vadd.f32 %v3431_v61, %v7255_v57 }
 0x2e3   : > { %3656 = vst [vmem:[%s7293_s20 + $0x70] sm:$0xff] %v4634_v0  ;;  %v3712_v23 = vadd.f32 %v4634_v0, %v3711_v55  ;;  %v3794_v31 = vmul.f32 %v4634_v0, %v4634_v0 }
 0x2e4   : > { %3657 = vst [vmem:[%s7293_s20 + $0x78] sm:$0xff] %v4635_v56  ;;  %v3749_v2 = vadd.f32 %v4635_v56, %v3748_v24  ;;  %v3795_v18 = vmul.f32 %v4635_v56, %v4635_v56  ;;  %v3435_v19 = vpop.f32.mrb[16].mxu0 }
 0x2e5   : > { %v3850_v45 = vadd.f32 %v3849_v47, %v3794_v31  ;;  %v4636_v46 = vadd.f32 %v3435_v19, %v7257_v34  ;;  %v3437_v35 = vpop.f32.mrb[17].mxu0 }
 0x2e6   : > { %v3887_v41 = vadd.f32 %v3886_v32, %v3795_v18  ;;  %v4637_v58 = vadd.f32 %v3437_v35, %v7259_v21 }
 0x2e7   : > { %3658 = vst [vmem:[%s7293_s20 + $0x80] sm:$0xff] %v4636_v46  ;;  %v3713_v8 = vadd.f32 %v4636_v46, %v3712_v23  ;;  %v3796_v57 = vmul.f32 %v4636_v46, %v4636_v46 }
 0x2e8   : > { %3659 = vst [vmem:[%s7293_s20 + $0x88] sm:$0xff] %v4637_v58  ;;  %v3750_v1 = vadd.f32 %v4637_v58, %v3749_v2  ;;  %v3797_v38 = vmul.f32 %v4637_v58, %v4637_v58  ;;  %v3441_v36 = vpop.f32.mrb[18].mxu0 }
 0x2e9   : > { %v3851_v9 = vadd.f32 %v3850_v45, %v3796_v57  ;;  %v4638_v3 = vadd.f32 %v3441_v36, %v7261_v22  ;;  %v3443_v42 = vpop.f32.mrb[19].mxu0 }
 0x2ea   : > { %v3888_v60 = vadd.f32 %v3887_v41, %v3797_v38  ;;  %v4639_v34 = vadd.f32 %v3443_v42, %v7263_v62 }
 0x2eb   : > { %3660 = vst [vmem:[%s7293_s20 + $0x90] sm:$0xff] %v4638_v3  ;;  %v3714_v39 = vadd.f32 %v4638_v3, %v3713_v8  ;;  %v3798_v21 = vmul.f32 %v4638_v3, %v4638_v3 }
 0x2ec   : > { %3661 = vst [vmem:[%s7293_s20 + $0x98] sm:$0xff] %v4639_v34  ;;  %v3751_v43 = vadd.f32 %v4639_v34, %v3750_v1  ;;  %v3799_v25 = vmul.f32 %v4639_v34, %v4639_v34  ;;  %v3447_v33 = vpop.f32.mrb[20].mxu0 }
 0x2ed   : > { %v3852_v30 = vadd.f32 %v3851_v9, %v3798_v21  ;;  %v4640_v53 = vadd.f32 %v3447_v33, %v7265_v51  ;;  %v3449_v10 = vpop.f32.mrb[21].mxu0 }
 0x2ee   : > { %v3889_v37 = vadd.f32 %v3888_v60, %v3799_v25  ;;  %v4641_v22 = vadd.f32 %v3449_v10, %v7267_v13 }
 0x2ef   : > { %3662 = vst [vmem:[%s7293_s20 + $0xa0] sm:$0xff] %v4640_v53  ;;  %v3715_v40 = vadd.f32 %v4640_v53, %v3714_v39  ;;  %v3800_v62 = vmul.f32 %v4640_v53, %v4640_v53 }
 0x2f0   : > { %3663 = vst [vmem:[%s7293_s20 + $0xa8] sm:$0xff] %v4641_v22  ;;  %v3752_v44 = vadd.f32 %v4641_v22, %v3751_v43  ;;  %v3801_v27 = vmul.f32 %v4641_v22, %v4641_v22  ;;  %v3453_v15 = vpop.f32.mrb[22].mxu0 }
 0x2f1   : > { %v3853_v48 = vadd.f32 %v3852_v30, %v3800_v62  ;;  %v4642_v16 = vadd.f32 %v3453_v15, %v7269_v54  ;;  %v3455_v14 = vpop.f32.mrb[23].mxu0 }
 0x2f2   : > { %v3890_v6 = vadd.f32 %v3889_v37, %v3801_v27  ;;  %v4643_v51 = vadd.f32 %v3455_v14, %v7271_v20 }
 0x2f3   : > { %3664 = vst [vmem:[%s7293_s20 + $0xb0] sm:$0xff] %v4642_v16  ;;  %v3716_v59 = vadd.f32 %v4642_v16, %v3715_v40  ;;  %v3802_v13 = vmul.f32 %v4642_v16, %v4642_v16 }
 0x2f4   : > { %3665 = vst [vmem:[%s7293_s20 + $0xb8] sm:$0xff] %v4643_v51  ;;  %v3753_v7 = vadd.f32 %v4643_v51, %v3752_v44  ;;  %v3803_v28 = vmul.f32 %v4643_v51, %v4643_v51  ;;  %v3459_v55 = vpop.f32.mrb[24].mxu0 }
 0x2f5   : > { %v3854_v49 = vadd.f32 %v3853_v48, %v3802_v13  ;;  %v4644_v24 = vadd.f32 %v3459_v55, %v7273_v4  ;;  %v3461_v52 = vpop.f32.mrb[25].mxu0 }
 0x2f6   : > { %v3891_v26 = vadd.f32 %v3890_v6, %v3803_v28  ;;  %v4645_v54 = vadd.f32 %v3461_v52, %v7275_v11 }
 0x2f7   : > { %3666 = vst [vmem:[%s7293_s20 + $0xc0] sm:$0xff] %v4644_v24  ;;  %v3717_v47 = vadd.f32 %v4644_v24, %v3716_v59  ;;  %v3804_v20 = vmul.f32 %v4644_v24, %v4644_v24 }
 0x2f8   : > { %3667 = vst [vmem:[%s7293_s20 + $0xc8] sm:$0xff] %v4645_v54  ;;  %v3754_v0 = vadd.f32 %v4645_v54, %v3753_v7  ;;  %v3805_v61 = vmul.f32 %v4645_v54, %v4645_v54  ;;  %v3465_v32 = vpop.f32.mrb[26].mxu0 }
 0x2f9   : > { %v3855_v56 = vadd.f32 %v3854_v49, %v3804_v20  ;;  %v4646_v23 = vadd.f32 %v3465_v32, %v7277_v5  ;;  %v3467_v31 = vpop.f32.mrb[27].mxu0 }
 0x2fa   : > { %v3892_v2 = vadd.f32 %v3891_v26, %v3805_v61  ;;  %v4647_v4 = vadd.f32 %v3467_v31, %v7279_v17 }
 0x2fb   : > { %3668 = vst [vmem:[%s7293_s20 + $0xd0] sm:$0xff] %v4646_v23  ;;  %v3718_v18 = vadd.f32 %v4646_v23, %v3717_v47  ;;  %v3806_v11 = vmul.f32 %v4646_v23, %v4646_v23 }
 0x2fc   : > { %3669 = vst [vmem:[%s7293_s20 + $0xd8] sm:$0xff] %v4647_v4  ;;  %v3755_v19 = vadd.f32 %v4647_v4, %v3754_v0  ;;  %v3807_v45 = vmul.f32 %v4647_v4, %v4647_v4  ;;  %v3471_v46 = vpop.f32.mrb[28].mxu0 }
 0x2fd   : > { %v3856_v35 = vadd.f32 %v3855_v56, %v3806_v11  ;;  %v4648_v41 = vadd.f32 %v3471_v46, %v7281_v12  ;;  %v3473_v58 = vpop.f32.mrb[29].mxu0 }
 0x2fe   : > { %v3893_v8 = vadd.f32 %v3892_v2, %v3807_v45  ;;  %v4649_v5 = vadd.f32 %v3473_v58, %v7283_v50 }
 0x2ff   : > { %3670 = vst [vmem:[%s7293_s20 + $0xe0] sm:$0xff] %v4648_v41  ;;  %v3719_v57 = vadd.f32 %v4648_v41, %v3718_v18  ;;  %v3808_v17 = vmul.f32 %v4648_v41, %v4648_v41 }
 0x300   : > { %3671 = vst [vmem:[%s7293_s20 + $0xe8] sm:$0xff] %v4649_v5  ;;  %v3756_v1 = vadd.f32 %v4649_v5, %v3755_v19  ;;  %v3809_v38 = vmul.f32 %v4649_v5, %v4649_v5  ;;  %v3477_v36 = vpop.f32.mrb[30].mxu0 }
 0x301   : > { %v3857_v9 = vadd.f32 %v3856_v35, %v3808_v17  ;;  %v4650_v3 = vadd.f32 %v3477_v36, %v7285_v29  ;;  %v3479_v42 = vpop.f32.mrb[31].mxu0 }
 0x302   : > { %v3894_v60 = vadd.f32 %v3893_v8, %v3809_v38  ;;  %v4651_v12 = vadd.f32 %v3479_v42, %v7287_v63 }
 0x303   : > { %3672 = vst [vmem:[%s7293_s20 + $0xf0] sm:$0xff] %v4650_v3  ;;  %v3720_v34 = vadd.f32 %v4650_v3, %v3719_v57  ;;  %v3810_v39 = vmul.f32 %v4650_v3, %v4650_v3  ;;  %v2043_v50 = vpop.f32.mrb[32].mxu1 }
 0x304   : > { %3673 = vst [vmem:[%s7293_s20 + $0xf8] sm:$0xff] %v4651_v12  ;;  %v3757_v21 = vadd.f32 %v4651_v12, %v3756_v1  ;;  %v3811_v43 = vmul.f32 %v4651_v12, %v4651_v12  ;;  %v3483_v25 = vpop.f32.mrb[32].mxu0  ;;  %v2045_v33 = vpop.f32.mrb[33].mxu1 }
 0x305   : > { %v3858_v30 = vadd.f32 %v3857_v9, %v3810_v39  ;;  %v4652_v53 = vadd.f32 %v3483_v25, %v2043_v50  ;;  %v3485_v10 = vpop.f32.mrb[33].mxu0 }
 0x306   : > { %v3895_v37 = vadd.f32 %v3894_v60, %v3811_v43  ;;  %v4653_v29 = vadd.f32 %v3485_v10, %v2045_v33 }
 0x307   : > { %3674 = vst [vmem:[%s7293_s20 + $0x100] sm:$0xff] %v4652_v53  ;;  %v3721_v22 = vadd.f32 %v4652_v53, %v3720_v34  ;;  %v3812_v40 = vmul.f32 %v4652_v53, %v4652_v53  ;;  %v2049_v63 = vpop.f32.mrb[34].mxu1 }
 0x308   : > { %3675 = vst [vmem:[%s7293_s20 + $0x108] sm:$0xff] %v4653_v29  ;;  %v3758_v62 = vadd.f32 %v4653_v29, %v3757_v21  ;;  %v3813_v44 = vmul.f32 %v4653_v29, %v4653_v29  ;;  %v3489_v27 = vpop.f32.mrb[34].mxu0  ;;  %v2051_v15 = vpop.f32.mrb[35].mxu1 }
 0x309   : > { %v3859_v48 = vadd.f32 %v3858_v30, %v3812_v40  ;;  %v4654_v16 = vadd.f32 %v3489_v27, %v2049_v63  ;;  %v3491_v14 = vpop.f32.mrb[35].mxu0 }
 0x30a   : > { %v3896_v6 = vadd.f32 %v3895_v37, %v3813_v44  ;;  %v4655_v51 = vadd.f32 %v3491_v14, %v2051_v15 }
 0x30b   : > { %3676 = vst [vmem:[%s7293_s20 + $0x110] sm:$0xff] %v4654_v16  ;;  %v3722_v59 = vadd.f32 %v4654_v16, %v3721_v22  ;;  %v3814_v13 = vmul.f32 %v4654_v16, %v4654_v16  ;;  %v2055_v7 = vpop.f32.mrb[36].mxu1 }
 0x30c   : > { %3677 = vst [vmem:[%s7293_s20 + $0x118] sm:$0xff] %v4655_v51  ;;  %v3759_v28 = vadd.f32 %v4655_v51, %v3758_v62  ;;  %v3815_v55 = vmul.f32 %v4655_v51, %v4655_v51  ;;  %v3495_v49 = vpop.f32.mrb[36].mxu0  ;;  %v2057_v24 = vpop.f32.mrb[37].mxu1 }
 0x30d   : > { %v3860_v52 = vadd.f32 %v3859_v48, %v3814_v13  ;;  %v4656_v26 = vadd.f32 %v3495_v49, %v2055_v7  ;;  %v3497_v54 = vpop.f32.mrb[37].mxu0 }
 0x30e   : > { %v3897_v47 = vadd.f32 %v3896_v6, %v3815_v55  ;;  %v4657_v20 = vadd.f32 %v3497_v54, %v2057_v24 }
 0x30f   : > { %3678 = vst [vmem:[%s7293_s20 + $0x120] sm:$0xff] %v4656_v26  ;;  %v3723_v0 = vadd.f32 %v4656_v26, %v3722_v59  ;;  %v3816_v61 = vmul.f32 %v4656_v26, %v4656_v26  ;;  %v2061_v32 = vpop.f32.mrb[38].mxu1 }
 0x310   : > { %3679 = vst [vmem:[%s7293_s20 + $0x128] sm:$0xff] %v4657_v20  ;;  %v3760_v56 = vadd.f32 %v4657_v20, %v3759_v28  ;;  %v3817_v23 = vmul.f32 %v4657_v20, %v4657_v20  ;;  %v3501_v31 = vpop.f32.mrb[38].mxu0  ;;  %v2063_v2 = vpop.f32.mrb[39].mxu1 }
 0x311   : > { %v3861_v4 = vadd.f32 %v3860_v52, %v3816_v61  ;;  %v4658_v18 = vadd.f32 %v3501_v31, %v2061_v32  ;;  %v3503_v11 = vpop.f32.mrb[39].mxu0 }
 0x312   : > { %v3898_v19 = vadd.f32 %v3897_v47, %v3817_v23  ;;  %v4659_v45 = vadd.f32 %v3503_v11, %v2063_v2 }
 0x313   : > { %3680 = vst [vmem:[%s7293_s20 + $0x130] sm:$0xff] %v4658_v18  ;;  %v3724_v46 = vadd.f32 %v4658_v18, %v3723_v0  ;;  %v3818_v35 = vmul.f32 %v4658_v18, %v4658_v18  ;;  %v2067_v41 = vpop.f32.mrb[40].mxu1 }
 0x314   : > { %3681 = vst [vmem:[%s7293_s20 + $0x138] sm:$0xff] %v4659_v45  ;;  %v3761_v58 = vadd.f32 %v4659_v45, %v3760_v56  ;;  %v3819_v8 = vmul.f32 %v4659_v45, %v4659_v45  ;;  %v3507_v5 = vpop.f32.mrb[40].mxu0  ;;  %v2069_v57 = vpop.f32.mrb[41].mxu1 }
 0x315   : > { %v3862_v17 = vadd.f32 %v3861_v4, %v3818_v35  ;;  %v4660_v1 = vadd.f32 %v3507_v5, %v2067_v41  ;;  %v3509_v38 = vpop.f32.mrb[41].mxu0 }
 0x316   : > { %v3899_v36 = vadd.f32 %v3898_v19, %v3819_v8  ;;  %v4661_v9 = vadd.f32 %v3509_v38, %v2069_v57 }
 0x317   : > { %3682 = vst [vmem:[%s7293_s20 + $0x140] sm:$0xff] %v4660_v1  ;;  %v3725_v3 = vadd.f32 %v4660_v1, %v3724_v46  ;;  %v3820_v42 = vmul.f32 %v4660_v1, %v4660_v1  ;;  %v2073_v60 = vpop.f32.mrb[42].mxu1 }
 0x318   : > { %3683 = vst [vmem:[%s7293_s20 + $0x148] sm:$0xff] %v4661_v9  ;;  %v3762_v12 = vadd.f32 %v4661_v9, %v3761_v58  ;;  %v3821_v34 = vmul.f32 %v4661_v9, %v4661_v9  ;;  %v3513_v39 = vpop.f32.mrb[42].mxu0  ;;  %v2075_v50 = vpop.f32.mrb[43].mxu1 }
 0x319   : > { %v3863_v21 = vadd.f32 %v3862_v17, %v3820_v42  ;;  %v4662_v43 = vadd.f32 %v3513_v39, %v2073_v60  ;;  %v3515_v25 = vpop.f32.mrb[43].mxu0 }
 0x31a   : > { %v3900_v33 = vadd.f32 %v3899_v36, %v3821_v34  ;;  %v4663_v30 = vadd.f32 %v3515_v25, %v2075_v50 }
 0x31b   : > { %3684 = vst [vmem:[%s7293_s20 + $0x150] sm:$0xff] %v4662_v43  ;;  %v3726_v53 = vadd.f32 %v4662_v43, %v3725_v3  ;;  %v3822_v10 = vmul.f32 %v4662_v43, %v4662_v43  ;;  %v2079_v37 = vpop.f32.mrb[44].mxu1 }
 0x31c   : > { %3685 = vst [vmem:[%s7293_s20 + $0x158] sm:$0xff] %v4663_v30  ;;  %v3763_v29 = vadd.f32 %v4663_v30, %v3762_v12  ;;  %v3823_v22 = vmul.f32 %v4663_v30, %v4663_v30  ;;  %v3519_v40 = vpop.f32.mrb[44].mxu0  ;;  %v2081_v63 = vpop.f32.mrb[45].mxu1 }
 0x31d   : > { %v3864_v62 = vadd.f32 %v3863_v21, %v3822_v10  ;;  %v4664_v44 = vadd.f32 %v3519_v40, %v2079_v37  ;;  %v3521_v27 = vpop.f32.mrb[45].mxu0 }
 0x31e   : > { %v3901_v15 = vadd.f32 %v3900_v33, %v3823_v22  ;;  %v4665_v48 = vadd.f32 %v3521_v27, %v2081_v63 }
 0x31f   : > { %3686 = vst [vmem:[%s7293_s20 + $0x160] sm:$0xff] %v4664_v44  ;;  %v3727_v16 = vadd.f32 %v4664_v44, %v3726_v53  ;;  %v3824_v14 = vmul.f32 %v4664_v44, %v4664_v44  ;;  %v2085_v6 = vpop.f32.mrb[46].mxu1 }
 0x320   : > { %3687 = vst [vmem:[%s7293_s20 + $0x168] sm:$0xff] %v4665_v48  ;;  %v3764_v51 = vadd.f32 %v4665_v48, %v3763_v29  ;;  %v3825_v59 = vmul.f32 %v4665_v48, %v4665_v48  ;;  %v3525_v13 = vpop.f32.mrb[46].mxu0  ;;  %v2087_v7 = vpop.f32.mrb[47].mxu1 }
 0x321   : > { %v3865_v28 = vadd.f32 %v3864_v62, %v3824_v14  ;;  %v4666_v55 = vadd.f32 %v3525_v13, %v2085_v6  ;;  %v3527_v49 = vpop.f32.mrb[47].mxu0 }
 0x322   : > { %v3902_v24 = vadd.f32 %v3901_v15, %v3825_v59  ;;  %v4667_v52 = vadd.f32 %v3527_v49, %v2087_v7 }
 0x323   : > { %3688 = vst [vmem:[%s7293_s20 + $0x170] sm:$0xff] %v4666_v55  ;;  %v3728_v26 = vadd.f32 %v4666_v55, %v3727_v16  ;;  %v3826_v54 = vmul.f32 %v4666_v55, %v4666_v55  ;;  %v2091_v47 = vpop.f32.mrb[48].mxu1 }
 0x324   : > { %3689 = vst [vmem:[%s7293_s20 + $0x178] sm:$0xff] %v4667_v52  ;;  %v3765_v20 = vadd.f32 %v4667_v52, %v3764_v51  ;;  %v3827_v0 = vmul.f32 %v4667_v52, %v4667_v52  ;;  %v3531_v61 = vpop.f32.mrb[48].mxu0  ;;  %v2093_v32 = vpop.f32.mrb[49].mxu1 }
 0x325   : > { %v3866_v56 = vadd.f32 %v3865_v28, %v3826_v54  ;;  %v4668_v23 = vadd.f32 %v3531_v61, %v2091_v47  ;;  %v3533_v31 = vpop.f32.mrb[49].mxu0 }
 0x326   : > { %v3903_v2 = vadd.f32 %v3902_v24, %v3827_v0  ;;  %v4669_v4 = vadd.f32 %v3533_v31, %v2093_v32 }
 0x327   : > { %3690 = vst [vmem:[%s7293_s20 + $0x180] sm:$0xff] %v4668_v23  ;;  %v3729_v18 = vadd.f32 %v4668_v23, %v3728_v26  ;;  %v3828_v11 = vmul.f32 %v4668_v23, %v4668_v23  ;;  %v2097_v19 = vpop.f32.mrb[50].mxu1 }
 0x328   : > { %3691 = vst [vmem:[%s7293_s20 + $0x188] sm:$0xff] %v4669_v4  ;;  %v3766_v45 = vadd.f32 %v4669_v4, %v3765_v20  ;;  %v3829_v46 = vmul.f32 %v4669_v4, %v4669_v4  ;;  %v3537_v35 = vpop.f32.mrb[50].mxu0  ;;  %v2099_v41 = vpop.f32.mrb[51].mxu1 }
 0x329   : > { %v3867_v58 = vadd.f32 %v3866_v56, %v3828_v11  ;;  %v4670_v8 = vadd.f32 %v3537_v35, %v2097_v19  ;;  %v3539_v5 = vpop.f32.mrb[51].mxu0 }
 0x32a   : > { %v3904_v57 = vadd.f32 %v3903_v2, %v3829_v46  ;;  %v4671_v17 = vadd.f32 %v3539_v5, %v2099_v41 }
 0x32b   : > { %3692 = vst [vmem:[%s7293_s20 + $0x190] sm:$0xff] %v4670_v8  ;;  %v3730_v1 = vadd.f32 %v4670_v8, %v3729_v18  ;;  %v3830_v38 = vmul.f32 %v4670_v8, %v4670_v8  ;;  %v2103_v36 = vpop.f32.mrb[52].mxu1 }
 0x32c   : > { %3693 = vst [vmem:[%s7293_s20 + $0x198] sm:$0xff] %v4671_v17  ;;  %v3767_v9 = vadd.f32 %v4671_v17, %v3766_v45  ;;  %v3831_v3 = vmul.f32 %v4671_v17, %v4671_v17  ;;  %v3543_v42 = vpop.f32.mrb[52].mxu0  ;;  %v2105_v60 = vpop.f32.mrb[53].mxu1 }
 0x32d   : > { %v3868_v12 = vadd.f32 %v3867_v58, %v3830_v38  ;;  %v4672_v34 = vadd.f32 %v3543_v42, %v2103_v36  ;;  %v3545_v39 = vpop.f32.mrb[53].mxu0 }
 0x32e   : > { %v3905_v50 = vadd.f32 %v3904_v57, %v3831_v3  ;;  %v4673_v21 = vadd.f32 %v3545_v39, %v2105_v60 }
 0x32f   : > { %3694 = vst [vmem:[%s7293_s20 + $0x1a0] sm:$0xff] %v4672_v34  ;;  %v3731_v43 = vadd.f32 %v4672_v34, %v3730_v1  ;;  %v3832_v25 = vmul.f32 %v4672_v34, %v4672_v34  ;;  %v2109_v33 = vpop.f32.mrb[54].mxu1 }
 0x330   : > { %3695 = vst [vmem:[%s7293_s20 + $0x1a8] sm:$0xff] %v4673_v21  ;;  %v3768_v30 = vadd.f32 %v4673_v21, %v3767_v9  ;;  %v3833_v53 = vmul.f32 %v4673_v21, %v4673_v21  ;;  %v3549_v10 = vpop.f32.mrb[54].mxu0  ;;  %v2111_v37 = vpop.f32.mrb[55].mxu1 }
 0x331   : > { %v3869_v29 = vadd.f32 %v3868_v12, %v3832_v25  ;;  %v4674_v22 = vadd.f32 %v3549_v10, %v2109_v33  ;;  %v3551_v40 = vpop.f32.mrb[55].mxu0 }
 0x332   : > { %v3906_v63 = vadd.f32 %v3905_v50, %v3833_v53  ;;  %v4675_v62 = vadd.f32 %v3551_v40, %v2111_v37 }
 0x333   : > { %3696 = vst [vmem:[%s7293_s20 + $0x1b0] sm:$0xff] %v4674_v22  ;;  %v3732_v44 = vadd.f32 %v4674_v22, %v3731_v43  ;;  %v3834_v27 = vmul.f32 %v4674_v22, %v4674_v22  ;;  %v2115_v15 = vpop.f32.mrb[56].mxu1 }
 0x334   : > { %3697 = vst [vmem:[%s7293_s20 + $0x1b8] sm:$0xff] %v4675_v62  ;;  %v3769_v48 = vadd.f32 %v4675_v62, %v3768_v30  ;;  %v3835_v16 = vmul.f32 %v4675_v62, %v4675_v62  ;;  %v3555_v14 = vpop.f32.mrb[56].mxu0  ;;  %v2117_v6 = vpop.f32.mrb[57].mxu1 }
 0x335   : > { %v3870_v51 = vadd.f32 %v3869_v29, %v3834_v27  ;;  %v4676_v59 = vadd.f32 %v3555_v14, %v2115_v15  ;;  %v3557_v13 = vpop.f32.mrb[57].mxu0 }
 0x336   : > { %v3907_v7 = vadd.f32 %v3906_v63, %v3835_v16  ;;  %v4677_v28 = vadd.f32 %v3557_v13, %v2117_v6 }
 0x337   : > { %3698 = vst [vmem:[%s7293_s20 + $0x1c0] sm:$0xff] %v4676_v59  ;;  %v3733_v55 = vadd.f32 %v4676_v59, %v3732_v44  ;;  %v3836_v49 = vmul.f32 %v4676_v59, %v4676_v59  ;;  %v2121_v24 = vpop.f32.mrb[58].mxu1 }
 0x338   : > { %3699 = vst [vmem:[%s7293_s20 + $0x1c8] sm:$0xff] %v4677_v28  ;;  %v3770_v52 = vadd.f32 %v4677_v28, %v3769_v48  ;;  %v3837_v26 = vmul.f32 %v4677_v28, %v4677_v28  ;;  %v3561_v54 = vpop.f32.mrb[58].mxu0  ;;  %v2123_v47 = vpop.f32.mrb[59].mxu1 }
 0x339   : > { %v3871_v20 = vadd.f32 %v3870_v51, %v3836_v49  ;;  %v4678_v0 = vadd.f32 %v3561_v54, %v2121_v24  ;;  %v3563_v61 = vpop.f32.mrb[59].mxu0 }
 0x33a   : > { %v3908_v32 = vadd.f32 %v3907_v7, %v3837_v26  ;;  %v4679_v56 = vadd.f32 %v3563_v61, %v2123_v47 }
 0x33b   : > { %3700 = vst [vmem:[%s7293_s20 + $0x1d0] sm:$0xff] %v4678_v0  ;;  %v3734_v23 = vadd.f32 %v4678_v0, %v3733_v55  ;;  %v3838_v31 = vmul.f32 %v4678_v0, %v4678_v0  ;;  %v2127_v2 = vpop.f32.mrb[60].mxu1 }
 0x33c   : > { %3701 = vst [vmem:[%s7293_s20 + $0x1d8] sm:$0xff] %v4679_v56  ;;  %v3771_v4 = vadd.f32 %v4679_v56, %v3770_v52  ;;  %v3839_v18 = vmul.f32 %v4679_v56, %v4679_v56  ;;  %v3567_v11 = vpop.f32.mrb[60].mxu0  ;;  %v2129_v19 = vpop.f32.mrb[61].mxu1 }
 0x33d   : > { %v3872_v45 = vadd.f32 %v3871_v20, %v3838_v31  ;;  %v4680_v46 = vadd.f32 %v3567_v11, %v2127_v2  ;;  %v3569_v35 = vpop.f32.mrb[61].mxu0 }
 0x33e   : > { %v3909_v41 = vadd.f32 %v3908_v32, %v3839_v18  ;;  %v4681_v58 = vadd.f32 %v3569_v35, %v2129_v19 }
 0x33f   : > { %3702 = vst [vmem:[%s7293_s20 + $0x1e0] sm:$0xff] %v4680_v46  ;;  %v3735_v8 = vadd.f32 %v4680_v46, %v3734_v23  ;;  %v3840_v5 = vmul.f32 %v4680_v46, %v4680_v46  ;;  %v2133_v57 = vpop.f32.mrb[62].mxu1 }
 0x340   : > { %3703 = vst [vmem:[%s7293_s20 + $0x1e8] sm:$0xff] %v4681_v58  ;;  %v3772_v17 = vadd.f32 %v4681_v58, %v3771_v4  ;;  %v3841_v1 = vmul.f32 %v4681_v58, %v4681_v58  ;;  %v3573_v38 = vpop.f32.mrb[62].mxu0  ;;  %v2135_v36 = vpop.f32.mrb[63].mxu1 }
 0x341   : > { %v3873_v9 = vadd.f32 %v3872_v45, %v3840_v5  ;;  %v4682_v3 = vadd.f32 %v3573_v38, %v2133_v57  ;;  %v3575_v42 = vpop.f32.mrb[63].mxu0 }
 0x342   : > { %v3910_v60 = vadd.f32 %v3909_v41, %v3841_v1  ;;  %v4683_v12 = vadd.f32 %v3575_v42, %v2135_v36 }
 0x343   : > { %3704 = vst [vmem:[%s7293_s20 + $0x1f0] sm:$0xff] %v4682_v3  ;;  %v3736_v34 = vadd.f32 %v4682_v3, %v3735_v8  ;;  %v3842_v39 = vmul.f32 %v4682_v3, %v4682_v3 }
 0x344   : > { %3705 = vst [vmem:[%s7293_s20 + $0x1f8] sm:$0xff] %v4683_v12  ;;  %v3773_v50 = vadd.f32 %v4683_v12, %v3772_v17  ;;  %v3843_v21 = vmul.f32 %v4683_v12, %v4683_v12 }
 0x345   : > { %v3737_v43 = vrot.slane %v3736_v34, 4  ;;  %v3874_v25 = vadd.f32 %v3873_v9, %v3842_v39 }
 0x346   : > { %v3774_v33 = vrot.slane %v3773_v50, 4  ;;  %v3911_v30 = vadd.f32 %v3910_v60, %v3843_v21 }
 0x347   : > { %v3738_v53 = vadd.f32 %v3737_v43, %v3736_v34  ;;  %v3875_v10 = vrot.slane %v3874_v25, 4 }
 0x348   : > { %v3775_v37 = vadd.f32 %v3774_v33, %v3773_v50  ;;  %v3912_v29 = vrot.slane %v3911_v30, 4 }
 0x349   : > { %v3739_v22 = vrot.slane %v3738_v53, 2  ;;  %v3876_v40 = vadd.f32 %v3875_v10, %v3874_v25 }
 0x34a   : > { %v3776_v63 = vrot.slane %v3775_v37, 2  ;;  %v3913_v62 = vadd.f32 %v3912_v29, %v3911_v30 }
 0x34b   : > { %v3740_v44 = vadd.f32 %v3739_v22, %v3738_v53  ;;  %v3877_v27 = vrot.slane %v3876_v40, 2 }
 0x34c   : > { %v3777_v15 = vadd.f32 %v3776_v63, %v3775_v37  ;;  %v3914_v48 = vrot.slane %v3913_v62, 2 }
 0x34d   : > { %v3741_v16 = vrot.slane %v3740_v44, 1  ;;  %v3878_v14 = vadd.f32 %v3877_v27, %v3876_v40 }
 0x34e   : > { %v3778_v6 = vrot.slane %v3777_v15, 1  ;;  %v3915_v51 = vadd.f32 %v3914_v48, %v3913_v62 }
 0x34f   : > { %v3742_v59 = vadd.f32 %v3741_v16, %v3740_v44  ;;  %v3879_v13 = vrot.slane %v3878_v14, 1 }
 0x350   : > { %v3779_v7 = vadd.f32 %v3778_v6, %v3777_v15  ;;  %v3916_v28 = vrot.slane %v3915_v51, 1 }
 0x351   : > { %v3880_v55 = vadd.f32 %v3879_v13, %v3878_v14  ;;  %3918 = vst [vmem:[%s217_s22] sm:$0xff] %v3742_v59 }
 0x352   : > { %v3917_v49 = vadd.f32 %v3916_v28, %v3915_v51  ;;  %3919 = vst [vmem:[%s217_s22 + $0x8] sm:$0xff] %v3779_v7 }
 0x353   : > { %3920 = vst [vmem:[%s222_s27] sm:$0xff] %v3880_v55 }
 0x354   : > { %3921 = vst [vmem:[%s222_s27 + $0x8] sm:$0xff] %v3917_v49 }
 0x355 PF: > { %s15_s15 = sadd.s32 1, %s5184_s15  }
 0x356   : > { %p12_p4 = scmp.ge.s32.totalorder %s15_s15, 4  }
 0x358   :  { %14 = sbr.rel (!%p12_p4) target bundleno = 1 (0x1), region = 90 }

// kernel: da_head_forward.17
= control target key start
LH: loop header
LB: loop body
LE: loop exit
PB: predicated region body
PF: predicated region fallthrough
CT: control target
= control target key end

     0   :  { %s5161_s15 = smov 0   ;;  %s6490_s0 = inlined_call_operand.vmem [shape: f32[2,18,18,128], index: 0, kind: input, shape index: {}]   ;;  %s6491_s1 = inlined_call_operand.vmem [shape: f32[3,3,128,128], index: 1, kind: input, shape index: {}]   ;;  %s6492_s2 = inlined_call_operand.vmem [shape: f32[2,256,128], index: 2, kind: output, shape index: {0}]   ;;  %s6493_s3 = inlined_call_operand.vmem [shape: f32[2,8,128], index: 3, kind: output, shape index: {1}]   ;;  %s6494_s4 = inlined_call_operand.vmem [shape: f32[2,8,128], index: 4, kind: output, shape index: {2}]  }
   0x1 LB: > { %s3239_s16 = sadd.s32 4294967295, %s5134_s15   ;;  %p3243_p0 = scmp.ge.s32.totalorder %s5134_s15, 1  ;;  %s5134_s15 = sphi %s5161_s15, %s15_s15  }
   0x2   : > { %p167_p1 = scmp.lt.s32.totalorder %s5134_s15, 3 }
   0x4   : > { %p168_p2 = pnand %p3243_p0, %p167_p1 }
   0x6   : > { %171 = sbr.rel (%p168_p2) target bundleno = 567 (0x237), region = 28 }
   0xd   : > { %v3249_v0 = vld [vmem:[%s6491_s1 + $0x80] sm:$0xff]  ;;  %v3250_v1 = vld [vmem:[%s6491_s1 + $0x88] sm:$0xff]  ;;  %p201_p3 = scmp.lt.s32.totalorder %s3239_s16, 1  ;;  %v3251_v5 = vld [vmem:[%s6491_s1 + $0x90] sm:$0xff]  ;;  %vm337_vm0 = vcmask 1046528   ;;  %vm917_vm1 = vcmask 1045504  }
   0xe   : > { %v3297_v2 = vld [vmem:[%s6491_s1 + $0x200] sm:$0xff]  ;;  %v4532_v3 = vpack.c.bf16 %v3250_v1, %v3249_v0  ;;  %v3298_v4 = vld [vmem:[%s6491_s1 + $0x208] sm:$0xff]  ;;  %v3252_v6 = vld [vmem:[%s6491_s1 + $0x98] sm:$0xff] }
   0xf   : > { %v5187_v7 = vpack.c.bf16 %v3298_v4, %v3297_v2  ;;  %v4536_v8 = vpack.c.bf16 %v3252_v6, %v3251_v5  ;;  %v3299_v9 = vld [vmem:[%s6491_s1 + $0x210] sm:$0xff]  ;;  %v3300_v10 = vld [vmem:[%s6491_s1 + $0x218] sm:$0xff]  ;;  %v3253_v11 = vld [vmem:[%s6491_s1 + $0xa0] sm:$0xff]  ;;  %s6677_s16 = smov (!%p201_p3, %s3239_s16), 1 }
  0x10   : > { %4533 = vmatprep.subr.bf16.mxu1 %v4532_v3  ;;  %v5200_v12 = vpack.c.bf16 %v3300_v10, %v3299_v9  ;;  %v3254_v13 = vld [vmem:[%s6491_s1 + $0xa8] sm:$0xff]  ;;  %v3301_v14 = vld [vmem:[%s6491_s1 + $0x220] sm:$0xff]  ;;  %s5092_s17 = smul.u32 432, %s6677_s16  ;;  %v3255_v18 = vld [vmem:[%s6491_s1 + $0xb0] sm:$0xff]  ;;  %s3247_s9 = sshll.u32 %s6677_s16, 3 }
  0x11   : > { %6577 = vst [vmem:[#allocation2_spill] sm:$0xff] %v5187_v7  ;;  %v3302_v15 = vld [vmem:[%s6491_s1 + $0x228] sm:$0xff]  ;;  %4661 = vmatprep.subr.bf16.mxu0 %v5187_v7  ;;  %4535 = vmatpush3.bf16.msra.mxu1 %v4532_v3  ;;  %v4540_v16 = vpack.c.bf16 %v3254_v13, %v3253_v11  ;;  %v3256_v19 = vld [vmem:[%s6491_s1 + $0xb8] sm:$0xff]  ;;  %v3303_v20 = vld [vmem:[%s6491_s1 + $0x230] sm:$0xff]  ;;  %s214_s12 = scalar_lea.vmem %s6493_s3, %s3247_s9 }
  0x12   : > { %6578 = vst [vmem:[#allocation3_spill] sm:$0xff] %v5200_v12  ;;  %4663 = vmatpush3.bf16.msra.mxu0 %v5187_v7  ;;  %4537 = vmatprep.subr.bf16.mxu1 %v4536_v8  ;;  %v5215_v17 = vpack.c.bf16 %v3302_v15, %v3301_v14  ;;  %v3304_v21 = vld [vmem:[%s6491_s1 + $0x238] sm:$0xff]  ;;  %s5232_s28 = scalar_lea.vmem %s6490_s0, %s5092_s17  ;;  %v4544_v22 = vpack.c.bf16 %v3256_v19, %v3255_v18  ;;  %v3257_v23 = vld [vmem:[%s6491_s1 + $0xc0] sm:$0xff]  ;;  %v3258_v24 = vld [vmem:[%s6491_s1 + $0xc8] sm:$0xff]  ;;  %s218_s17 = scalar_lea.vmem %s6494_s4, %s3247_s9 }
  0x13   : > { %4665 = vmatprep.subr.bf16.mxu0 %v5200_v12  ;;  %v5242_v25 = vpack.c.bf16 %v3304_v21, %v3303_v20  ;;  %v3305_v26 = vld [vmem:[%s6491_s1 + $0x240] sm:$0xff]  ;;  %v3306_v27 = vld [vmem:[%s6491_s1 + $0x248] sm:$0xff]  ;;  %v5258_v31 = vld [vmem:[%s5232_s28 + $0x18] sm:$0xff]  ;;  %v4548_v36 = vpack.c.bf16 %v3258_v24, %v3257_v23 }
  0x14   : > { %6579 = vst [vmem:[#allocation4_spill] sm:$0xff] %v5215_v17  ;;  %v5251_v28 = vld [vmem:[%s5232_s28] sm:$0xff]  ;;  %v5254_v29 = vld [vmem:[%s5232_s28 + $0x8] sm:$0xff]  ;;  %v343_v34 = vrot.slane %v5258_v31, 1  ;;  %v5268_v37 = vpack.c.bf16 %v3306_v27, %v3305_v26  ;;  %v3259_v38 = vld [vmem:[%s6491_s1 + $0xd0] sm:$0xff] }
  0x15   : > { %4539 = vmatpush3.bf16.msra.mxu1 %v4536_v8  ;;  %6580 = vst [vmem:[#allocation5_spill] sm:$0xff] %v5242_v25  ;;  %v338_v30 = vrot.slane %v5251_v28, 1  ;;  %v5261_v32 = vld [vmem:[%s5232_s28 + $0x20] sm:$0xff]  ;;  %v339_v33 = vrot.slane %v5254_v29, 1  ;;  %v3260_v39 = vld [vmem:[%s6491_s1 + $0xd8] sm:$0xff]  ;;  %v3307_v42 = vld [vmem:[%s6491_s1 + $0x250] sm:$0xff] }
  0x16   : > { %4667 = vmatpush3.bf16.msra.mxu0 %v5200_v12  ;;  %4541 = vmatprep.subr.bf16.mxu1 %v4540_v16  ;;  %v344_v35 = vrot.slane %v5261_v32, 1  ;;  %6581 = vst [vmem:[#allocation6_spill] sm:$0xff] %v5268_v37  ;;  %v3308_v43 = vld [vmem:[%s6491_s1 + $0x258] sm:$0xff]  ;;  %v4552_v44 = vpack.c.bf16 %v3260_v39, %v3259_v38  ;;  %v3261_v46 = vld [vmem:[%s6491_s1 + $0xe0] sm:$0xff]  ;;  %v3262_v47 = vld [vmem:[%s6491_s1 + $0xe8] sm:$0xff] }
  0x17   : > { %4669 = vmatprep.subr.bf16.mxu0 %v5215_v17  ;;  %v340_v40 = vsel %vm337_vm0, %v338_v30, %v339_v33  ;;  %v5293_v45 = vpack.c.bf16 %v3308_v43, %v3307_v42  ;;  %v3309_v48 = vld [vmem:[%s6491_s1 + $0x260] sm:$0xff]  ;;  %v3310_v49 = vld [vmem:[%s6491_s1 + $0x268] sm:$0xff]  ;;  %v4556_v50 = vpack.c.bf16 %v3262_v47, %v3261_v46  ;;  %v3263_v52 = vld [vmem:[%s6491_s1 + $0xf0] sm:$0xff] }
  0x18   : > { %v5282_v41 = vsel %vm337_vm0, %v343_v34, %v344_v35  ;;  %3844 = vmatprep.mubr.f32.mxu1 %v340_v40  ;;  %v5309_v51 = vpack.c.bf16 %v3310_v49, %v3309_v48  ;;  %v3264_v53 = vld [vmem:[%s6491_s1 + $0xf8] sm:$0xff]  ;;  %v3311_v54 = vld [vmem:[%s6491_s1 + $0x270] sm:$0xff]  ;;  %v273_v59 = vld [vmem:[%s6491_s1] sm:$0xff] }
  0x19   : > { %4543 = vmatpush3.bf16.msra.mxu1 %v4540_v16  ;;  %4164 = vmatprep.mubr.f32.mxu0 %v5282_v41  ;;  %6582 = vst [vmem:[#allocation7_spill] sm:$0xff] %v5293_v45  ;;  %v3312_v55 = vld [vmem:[%s6491_s1 + $0x278] sm:$0xff]  ;;  %v4560_v56 = vpack.c.bf16 %v3264_v53, %v3263_v52  ;;  %v221_v57 = vld [vmem:[%s5232_s28 + $0x10] sm:$0x3]  ;;  %v274_v60 = vld [vmem:[%s6491_s1 + $0x8] sm:$0xff] }
  0x1a   : > { %4671 = vmatpush3.bf16.msra.mxu0 %v5215_v17  ;;  %4545 = vmatprep.subr.bf16.mxu1 %v4544_v22  ;;  %6583 = vst [vmem:[#allocation8_spill] sm:$0xff] %v5309_v51  ;;  %v5326_v58 = vpack.c.bf16 %v3312_v55, %v3311_v54  ;;  %v5335_v61 = vld [vmem:[%s5232_s28 + $0x28] sm:$0x3]  ;;  %v3313_v62 = vld [vmem:[%s6491_s1 + $0x280] sm:$0xff]  ;;  %v341_v0 = vrot.slane %v221_v57, 1  ;;  %v5344_v1 = vld [vmem:[%s5232_s28 + $0x30] sm:$0xff]  ;;  %v4564_v3 = vpack.c.bf16 %v274_v60, %v273_v59 }
  0x1b   : > { %4673 = vmatprep.subr.bf16.mxu0 %v5242_v25  ;;  %v3314_v63 = vld [vmem:[%s6491_s1 + $0x288] sm:$0xff]  ;;  %v5347_v2 = vld [vmem:[%s5232_s28 + $0x38] sm:$0xff]  ;;  %v346_v4 = vrot.slane %v5335_v61, 1  ;;  %v5353_v6 = vld [vmem:[%s5232_s28 + $0x40] sm:$0x3]  ;;  %v348_v9 = vrot.slane %v5344_v1, 1 }
  0x1c   : > { %6584 = vst [vmem:[#allocation9_spill] sm:$0xff] %v5326_v58  ;;  %v4692_v5 = vpack.c.bf16 %v3314_v63, %v3313_v62  ;;  %v3315_v8 = vld [vmem:[%s6491_s1 + $0x290] sm:$0xff]  ;;  %v349_v10 = vrot.slane %v5347_v2, 1  ;;  %v3316_v11 = vld [vmem:[%s6491_s1 + $0x298] sm:$0xff]  ;;  %v5364_v13 = vld [vmem:[%s5232_s28 + $0x48] sm:$0xff]  ;;  %v342_v15 = vsel %vm337_vm0, %v339_v33, %v341_v0  ;;  %v351_v20 = vrot.slane %v5353_v6, 1 }
  0x1d   : > { %4547 = vmatpush3.bf16.msra.mxu1 %v4544_v22  ;;  %v5367_v14 = vld [vmem:[%s5232_s28 + $0x50] sm:$0xff]  ;;  %v276_v18 = vld [vmem:[%s6491_s1 + $0x18] sm:$0xff]  ;;  %v347_v19 = vsel %vm337_vm0, %v344_v35, %v346_v4  ;;  %v4696_v21 = vpack.c.bf16 %v3316_v11, %v3315_v8  ;;  %v353_v22 = vrot.slane %v5364_v13, 1  ;;  %v3317_v26 = vld [vmem:[%s6491_s1 + $0x2a0] sm:$0xff] }
  0x1e   : > { %4675 = vmatpush3.bf16.msra.mxu0 %v5242_v25  ;;  %4549 = vmatprep.subr.bf16.mxu1 %v4548_v36  ;;  %v275_v16 = vld [vmem:[%s6491_s1 + $0x10] sm:$0xff]  ;;  %v354_v23 = vrot.slane %v5367_v14, 1  ;;  %v5386_v24 = vld [vmem:[%s5232_s28 + $0x58] sm:$0x3]  ;;  %v5392_v27 = vsel %vm337_vm0, %v348_v9, %v349_v10  ;;  %v3318_v33 = vld [vmem:[%s6491_s1 + $0x2a8] sm:$0xff]  ;;  %v5411_v39 = vsel %vm337_vm0, %v349_v10, %v351_v20  ;;  %v928_v25 = vrot.slane %v5344_v1, 2 }
  0x1f   : > { %4677 = vmatprep.subr.bf16.mxu0 %v5268_v37  ;;  %6585 = vst [vmem:[#allocation10_spill] sm:$0xff] %v5392_v27  ;;  %v4568_v30 = vpack.c.bf16 %v276_v18, %v275_v16  ;;  %v5398_v34 = vld [vmem:[%s5232_s28 + $0x60] sm:$0xff]  ;;  %v5401_v35 = vld [vmem:[%s5232_s28 + $0x68] sm:$0xff]  ;;  %6586 = vst [vmem:[#allocation11_spill] sm:$0xff] %v5411_v39  ;;  %v356_v40 = vrot.slane %v5386_v24, 1  ;;  %v4700_v43 = vpack.c.bf16 %v3318_v33, %v3317_v26 }
  0x20   : > { %v278_v38 = vld [vmem:[%s6491_s1 + $0x28] sm:$0xff]  ;;  %v5416_v42 = vsel %vm337_vm0, %v353_v22, %v354_v23  ;;  %v359_v46 = vrot.slane %v5401_v35, 1  ;;  %v5421_v47 = vld [vmem:[%s5232_s28 + $0x70] sm:$0x3]  ;;  %v3320_v48 = vld [vmem:[%s6491_s1 + $0x2b8] sm:$0xff] }
  0x21   : > { %4551 = vmatpush3.bf16.msra.mxu1 %v4548_v36  ;;  %v277_v36 = vld [vmem:[%s6491_s1 + $0x20] sm:$0xff]  ;;  %6587 = vst [vmem:[#allocation12_spill] sm:$0xff] %v5416_v42  ;;  %v5430_v49 = vld [vmem:[%s5232_s28 + $0x78] sm:$0xff]  ;;  %v279_v53 = vld [vmem:[%s6491_s1 + $0x30] sm:$0xff]  ;;  %v5445_v55 = vsel %vm337_vm0, %v354_v23, %v356_v40 }
  0x22   : > { %4679 = vmatpush3.bf16.msra.mxu0 %v5268_v37  ;;  %4553 = vmatprep.subr.bf16.mxu1 %v4552_v44  ;;  %v4572_v52 = vpack.c.bf16 %v278_v38, %v277_v36  ;;  %v280_v54 = vld [vmem:[%s6491_s1 + $0x38] sm:$0xff]  ;;  %6588 = vst [vmem:[#allocation13_spill] sm:$0xff] %v5445_v55  ;;  %v363_v60 = vrot.slane %v5430_v49, 1  ;;  %v5454_v63 = vld [vmem:[%s5232_s28 + $0x88] sm:$0x3]  ;;  %v3321_v0 = vld [vmem:[%s6491_s1 + $0x2c0] sm:$0xff] }
  0x23   : > { %4681 = vmatprep.subr.bf16.mxu0 %v5293_v45  ;;  %v5464_v4 = vld [vmem:[%s5232_s28 + $0x90] sm:$0xff]  ;;  %v4576_v8 = vpack.c.bf16 %v280_v54, %v279_v53  ;;  %v281_v9 = vld [vmem:[%s6491_s1 + $0x40] sm:$0xff]  ;;  %v282_v10 = vld [vmem:[%s6491_s1 + $0x48] sm:$0xff] }
  0x24   : > { %v3323_v22 = vld [vmem:[%s6491_s1 + $0x2d0] sm:$0xff]  ;;  %v3324_v23 = vld [vmem:[%s6491_s1 + $0x2d8] sm:$0xff]  ;;  %v5498_v26 = vld [vmem:[%s5232_s28 + $0xa8] sm:$0xff]  ;;  %v4580_v33 = vpack.c.bf16 %v282_v10, %v281_v9 }
  0x25   : > { %4555 = vmatpush3.bf16.msra.mxu1 %v4552_v44  ;;  %v358_v44 = vrot.slane %v5398_v34, 1  ;;  %v283_v36 = vld [vmem:[%s6491_s1 + $0x50] sm:$0xff]  ;;  %v284_v38 = vld [vmem:[%s6491_s1 + $0x58] sm:$0xff]  ;;  %v3325_v53 = vld [vmem:[%s6491_s1 + $0x2e0] sm:$0xff] }
  0x26   : > { %4683 = vmatpush3.bf16.msra.mxu0 %v5293_v45  ;;  %4557 = vmatprep.subr.bf16.mxu1 %v4556_v50  ;;  %v3326_v54 = vld [vmem:[%s6491_s1 + $0x2e8] sm:$0xff]  ;;  %v5623_v17 = vld [vmem:[%s5232_s28 + $0xf8] sm:$0xff] }
  0x27   : > { %4685 = vmatprep.subr.bf16.mxu0 %v5309_v51  ;;  %v5449_v57 = vsel %vm337_vm0, %v358_v44, %v359_v46  ;;  %v4716_v10 = vpack.c.bf16 %v3326_v54, %v3325_v53  ;;  %v923_v54 = vrot.slane %v5258_v31, 2 }
  0x28   : > { %6589 = vst [vmem:[#allocation14_spill] sm:$0xff] %v5449_v57 }
  0x29   : > { %4559 = vmatpush3.bf16.msra.mxu1 %v4556_v50  ;;  %v5433_v50 = vld [vmem:[%s5232_s28 + $0x80] sm:$0xff] }
  0x2a   : > { %4687 = vmatpush3.bf16.msra.mxu0 %v5309_v51  ;;  %4561 = vmatprep.subr.bf16.mxu1 %v4560_v56  ;;  %v364_v62 = vrot.slane %v5433_v50, 1  ;;  %v5612_v51 = vld [vmem:[%s5232_s28 + $0xe8] sm:$0x3] }
  0x2b   : > { %4689 = vmatprep.subr.bf16.mxu0 %v5326_v58 }
  0x2c   : > { %v5483_v16 = vsel %vm337_vm0, %v363_v60, %v364_v62  ;;  %v4584_v60 = vpack.c.bf16 %v284_v38, %v283_v36  ;;  %v288_v36 = vld [vmem:[%s6491_s1 + $0x78] sm:$0xff] }
  0x2d   : > { %4563 = vmatpush3.bf16.msra.mxu1 %v4560_v56  ;;  %v361_v56 = vrot.slane %v5421_v47, 1  ;;  %6591 = vst [vmem:[#allocation16_spill] sm:$0xff] %v5483_v16 }
  0x2e   : > { %4691 = vmatpush3.bf16.msra.mxu0 %v5326_v58  ;;  %4565 = vmatprep.subr.bf16.mxu1 %v4564_v3  ;;  %v5587_v58 = vld [vmem:[%s5232_s28 + $0xe0] sm:$0xff] }
  0x2f   : > { %4693 = vmatprep.subr.bf16.mxu0 %v4692_v5  ;;  %v5479_v11 = vsel %vm337_vm0, %v359_v46, %v361_v56  ;;  %v4712_v46 = vpack.c.bf16 %v3324_v23, %v3323_v22  ;;  %v5532_v56 = vld [vmem:[%s5232_s28 + $0xc0] sm:$0xff]  ;;  %v5556_v22 = vld [vmem:[%s5232_s28 + $0xd0] sm:$0x3] }
  0x30   : > { %3845 = vmatmul.mubr.f32.vlgmr.msra.gmra.mrb[0].mxu1 %v342_v15  ;;  %6590 = vst [vmem:[#allocation15_spill] sm:$0xff] %v5479_v11  ;;  %v366_v15 = vrot.slane %v5454_v63, 1 }
  0x31   : > { %4165 = vmatmul.mubr.f32.vlgmr.msra.gmra.mrb[0].mxu0 %v347_v19  ;;  %4567 = vmatpush3.bf16.msra.mxu1 %v4564_v3  ;;  %v3322_v3 = vld [vmem:[%s6491_s1 + $0x2c8] sm:$0xff] }
  0x32   : > { %4695 = vmatpush3.bf16.msra.mxu0 %v4692_v5  ;;  %3847 = vmatprep.mubr.f32.mxu1 %v5282_v41  ;;  %v3319_v41 = vld [vmem:[%s6491_s1 + $0x2b0] sm:$0xff]  ;;  %v5467_v5 = vld [vmem:[%s5232_s28 + $0x98] sm:$0xff]  ;;  %v4708_v18 = vpack.c.bf16 %v3322_v3, %v3321_v0  ;;  %v5513_v40 = vsel %vm337_vm0, %v364_v62, %v366_v15  ;;  %v285_v62 = vld [vmem:[%s6491_s1 + $0x60] sm:$0xff]  ;;  %v378_v15 = vrot.slane %v5532_v56, 1 }
  0x33   : > { %4167 = vmatprep.mubr.f32.mxu0 %v5392_v27  ;;  %4697 = vmatprep.subr.bf16.mxu0 %v4696_v21  ;;  %v4704_v59 = vpack.c.bf16 %v3320_v48, %v3319_v41  ;;  %v369_v20 = vrot.slane %v5467_v5, 1  ;;  %6592 = vst [vmem:[#allocation17_spill] sm:$0xff] %v5513_v40  ;;  %v373_v41 = vrot.slane %v5498_v26, 1  ;;  %v286_v0 = vld [vmem:[%s6491_s1 + $0x68] sm:$0xff] }
  0x34   : > { %3848 = vmatmul.mubr.f32.gmra.mrb[2].mxu1 %v347_v19  ;;  %4569 = vmatprep.subr.bf16.mxu1 %v4568_v30  ;;  %v368_v19 = vrot.slane %v5464_v4, 1  ;;  %v4588_v23 = vpack.c.bf16 %v286_v0, %v285_v62  ;;  %v924_v62 = vrot.slane %v5261_v32, 2  ;;  %v5584_v0 = vld [vmem:[%s5232_s28 + $0xd8] sm:$0xff] }
  0x35   : > { %4168 = vmatmul.mubr.f32.gmra.mrb[2].mxu0 %v5411_v39  ;;  %3850 = vmatprep.mubr.f32.mxu1 %v5392_v27  ;;  %v5760_v27 = vld [vmem:[%s5232_s28 + $0x148] sm:$0x3] }
  0x36   : > { %4699 = vmatpush3.bf16.msra.mxu0 %v4696_v21  ;;  %4170 = vmatprep.mubr.f32.mxu0 %v5416_v42  ;;  %v5488_v21 = vld [vmem:[%s5232_s28 + $0xa0] sm:$0x3]  ;;  %v5517_v44 = vsel %vm337_vm0, %v368_v19, %v369_v20  ;;  %v5615_v45 = vsel %vm917_vm1, %v923_v54, %v924_v62 }
  0x37   : > { %4701 = vmatprep.subr.bf16.mxu0 %v4700_v43  ;;  %4571 = vmatpush3.bf16.msra.mxu1 %v4568_v30  ;;  %v5501_v30 = vld [vmem:[%s5232_s28 + $0xb0] sm:$0xff]  ;;  %6593 = vst [vmem:[#allocation18_spill] sm:$0xff] %v5517_v44 }
  0x38   : > { %3851 = vmatmul.mubr.f32.gmra.mrb[4].mxu1 %v5411_v39  ;;  %4573 = vmatprep.subr.bf16.mxu1 %v4572_v52  ;;  %v374_v48 = vrot.slane %v5501_v30, 1  ;;  %v946_v39 = vrot.slane %v5454_v63, 2 }
  0x39   : > { %4171 = vmatmul.mubr.f32.gmra.mrb[4].mxu0 %v5445_v55  ;;  %3853 = vmatprep.mubr.f32.mxu1 %v5416_v42 }
  0x3a   : > { %4703 = vmatpush3.bf16.msra.mxu0 %v4700_v43  ;;  %4173 = vmatprep.mubr.f32.mxu0 %v5449_v57  ;;  %v371_v43 = vrot.slane %v5488_v21, 1  ;;  %v5551_v9 = vsel %vm337_vm0, %v373_v41, %v374_v48 }
  0x3b   : > { %4705 = vmatprep.subr.bf16.mxu0 %v4704_v59  ;;  %4575 = vmatpush3.bf16.msra.mxu1 %v4572_v52  ;;  %v5522_v52 = vld [vmem:[%s5232_s28 + $0xb8] sm:$0x3]  ;;  %6595 = vst [vmem:[#allocation20_spill] sm:$0xff] %v5551_v9 }
  0x3c   : > { %3854 = vmatmul.mubr.f32.gmra.mrb[6].mxu1 %v5445_v55  ;;  %4577 = vmatprep.subr.bf16.mxu1 %v4576_v8  ;;  %v5547_v3 = vsel %vm337_vm0, %v369_v20, %v371_v43  ;;  %v3328_v20 = vld [vmem:[%s6491_s1 + $0x2f8] sm:$0xff]  ;;  %v381_v43 = vrot.slane %v5556_v22, 1  ;;  %v5723_v55 = vld [vmem:[%s5232_s28 + $0x130] sm:$0x3] }
  0x3d   : > { %4174 = vmatmul.mubr.f32.gmra.mrb[6].mxu0 %v5479_v11  ;;  %3856 = vmatprep.mubr.f32.mxu1 %v5449_v57  ;;  %6594 = vst [vmem:[#allocation19_spill] sm:$0xff] %v5547_v3 }
  0x3e   : > { %4707 = vmatpush3.bf16.msra.mxu0 %v4704_v59  ;;  %4176 = vmatprep.mubr.f32.mxu0 %v5483_v16  ;;  %v5535_v59 = vld [vmem:[%s5232_s28 + $0xc8] sm:$0xff] }
  0x3f   : > { %4709 = vmatprep.subr.bf16.mxu0 %v4708_v18  ;;  %4579 = vmatpush3.bf16.msra.mxu1 %v4576_v8  ;;  %v376_v8 = vrot.slane %v5522_v52, 1  ;;  %v379_v19 = vrot.slane %v5535_v59, 1 }
  0x40   : > { %3857 = vmatmul.mubr.f32.gmra.mrb[8].mxu1 %v5479_v11  ;;  %4581 = vmatprep.subr.bf16.mxu1 %v4580_v33 }
  0x41   : > { %4177 = vmatmul.mubr.f32.gmra.mrb[8].mxu0 %v5513_v40  ;;  %3859 = vmatprep.mubr.f32.mxu1 %v5483_v16  ;;  %v5575_v38 = vsel %vm337_vm0, %v374_v48, %v376_v8  ;;  %v5579_v41 = vsel %vm337_vm0, %v378_v15, %v379_v19  ;;  %v3330_v48 = vld [vmem:[%s6491_s1 + $0x308] sm:$0xff] }
  0x42   : > { %4711 = vmatpush3.bf16.msra.mxu0 %v4708_v18  ;;  %4179 = vmatprep.mubr.f32.mxu0 %v5517_v44  ;;  %v3327_v18 = vld [vmem:[%s6491_s1 + $0x2f0] sm:$0xff]  ;;  %6596 = vst [vmem:[#allocation21_spill] sm:$0xff] %v5575_v38  ;;  %6597 = vst [vmem:[#allocation22_spill] sm:$0xff] %v5579_v41  ;;  %v3266_v15 = vld [vmem:[%s6491_s1 + $0x108] sm:$0xff] }
  0x43   : > { %4713 = vmatprep.subr.bf16.mxu0 %v4712_v46  ;;  %4583 = vmatpush3.bf16.msra.mxu1 %v4580_v33  ;;  %v287_v33 = vld [vmem:[%s6491_s1 + $0x70] sm:$0xff]  ;;  %v4720_v53 = vpack.c.bf16 %v3328_v20, %v3327_v18  ;;  %v926_v18 = vrot.slane %v5335_v61, 2  ;;  %v5607_v20 = vsel %vm337_vm0, %v379_v19, %v381_v43  ;;  %v929_v61 = vrot.slane %v5347_v2, 2  ;;  %v3332_v43 = vld [vmem:[%s6491_s1 + $0x318] sm:$0xff] }
  0x44   : > { %3860 = vmatmul.mubr.f32.gmra.mrb[10].mxu1 %v5513_v40  ;;  %4585 = vmatprep.subr.bf16.mxu1 %v4584_v60  ;;  %v4592_v8 = vpack.c.bf16 %v288_v36, %v287_v33  ;;  %6598 = vst [vmem:[#allocation23_spill] sm:$0xff] %v5607_v20  ;;  %v383_v33 = vrot.slane %v5584_v0, 1  ;;  %v384_v36 = vrot.slane %v5587_v58, 1  ;;  %v3331_v19 = vld [vmem:[%s6491_s1 + $0x310] sm:$0xff]  ;;  %v5686_v40 = vld [vmem:[%s5232_s28 + $0x118] sm:$0x3] }
  0x45   : > { %4180 = vmatmul.mubr.f32.gmra.mrb[10].mxu0 %v5547_v3  ;;  %3862 = vmatprep.mubr.f32.mxu1 %v5517_v44 }
  0x46   : > { %4715 = vmatpush3.bf16.msra.mxu0 %v4712_v46  ;;  %4182 = vmatprep.mubr.f32.mxu0 %v5551_v9  ;;  %v3329_v46 = vld [vmem:[%s6491_s1 + $0x300] sm:$0xff]  ;;  %v5643_v12 = vsel %vm337_vm0, %v383_v33, %v384_v36 }
  0x47   : > { %4717 = vmatprep.subr.bf16.mxu0 %v4716_v10  ;;  %4587 = vmatpush3.bf16.msra.mxu1 %v4584_v60  ;;  %v3265_v60 = vld [vmem:[%s6491_s1 + $0x100] sm:$0xff]  ;;  %v4724_v37 = vpack.c.bf16 %v3330_v48, %v3329_v46  ;;  %v931_v46 = vrot.slane %v5353_v6, 2  ;;  %v5640_v48 = vsel %vm917_vm1, %v924_v62, %v926_v18  ;;  %6599 = vst [vmem:[#allocation24_spill] sm:$0xff] %v5643_v12  ;;  %v933_v6 = vrot.slane %v5364_v13, 2  ;;  %v5656_v62 = vld [vmem:[%s5232_s28 + $0x108] sm:$0xff]  ;;  %v5659_v18 = vld [vmem:[%s5232_s28 + $0x110] sm:$0xff] }
  0x48   : > { %3863 = vmatmul.mubr.f32.gmra.mrb[12].mxu1 %v5547_v3  ;;  %4589 = vmatprep.subr.bf16.mxu1 %v4588_v23  ;;  %v5632_v54 = vpack.c.bf16 %v3266_v15, %v3265_v60  ;;  %v389_v15 = vrot.slane %v5623_v17, 1  ;;  %v3333_v33 = vld [vmem:[%s6491_s1 + $0x320] sm:$0xff]  ;;  %v936_v3 = vrot.slane %v5386_v24, 2  ;;  %v393_v44 = vrot.slane %v5656_v62, 1 }
  0x49   : > { %4183 = vmatmul.mubr.f32.gmra.mrb[12].mxu0 %v5575_v38  ;;  %3865 = vmatprep.mubr.f32.mxu1 %v5551_v9  ;;  %v4728_v9 = vpack.c.bf16 %v3332_v43, %v3331_v19  ;;  %v5675_v19 = vsel %vm917_vm1, %v929_v61, %v931_v46  ;;  %v5697_v46 = vld [vmem:[%s5232_s28 + $0x128] sm:$0xff] }
  0x4a   : > { %4719 = vmatpush3.bf16.msra.mxu0 %v4716_v10  ;;  %4185 = vmatprep.mubr.f32.mxu0 %v5579_v41  ;;  %v5620_v10 = vld [vmem:[%s5232_s28 + $0xf0] sm:$0xff]  ;;  %6602 = vst [vmem:[#allocation27_spill] sm:$0xff] %v5675_v19 }
  0x4b   : > { %4721 = vmatprep.subr.bf16.mxu0 %v4720_v53  ;;  %4591 = vmatpush3.bf16.msra.mxu1 %v4588_v23  ;;  %v386_v23 = vrot.slane %v5612_v51, 1  ;;  %v388_v60 = vrot.slane %v5620_v10, 1 }
  0x4c   : > { %3866 = vmatmul.mubr.f32.gmra.mrb[14].mxu1 %v5575_v38  ;;  %4593 = vmatprep.subr.bf16.mxu1 %v4592_v8  ;;  %v5648_v38 = vld [vmem:[%s5232_s28 + $0x100] sm:$0x3] }
  0x4d   : > { %4186 = vmatmul.mubr.f32.gmra.mrb[14].mxu0 %v5607_v20  ;;  %3868 = vmatprep.mubr.f32.mxu1 %v5579_v41  ;;  %v5651_v41 = vsel %vm917_vm1, %v928_v25, %v929_v61  ;;  %v3334_v25 = vld [vmem:[%s6491_s1 + $0x328] sm:$0xff]  ;;  %v391_v43 = vrot.slane %v5648_v38, 1  ;;  %v938_v61 = vrot.slane %v5398_v34, 2 }
  0x4e   : > { %4723 = vmatpush3.bf16.msra.mxu0 %v4720_v53  ;;  %4244 = vmatprep.mubr.f32.mxu0 %v5615_v45  ;;  %6600 = vst [vmem:[#allocation25_spill] sm:$0xff] %v5651_v41  ;;  %v934_v53 = vrot.slane %v5367_v14, 2  ;;  %v4732_v24 = vpack.c.bf16 %v3334_v25, %v3333_v33  ;;  %v396_v33 = vrot.slane %v5686_v40, 1  ;;  %v941_v25 = vrot.slane %v5421_v47, 2 }
  0x4f   : > { %4725 = vmatprep.subr.bf16.mxu0 %v4724_v37  ;;  %4595 = vmatpush3.bf16.msra.mxu1 %v4592_v8  ;;  %v5672_v8 = vsel %vm337_vm0, %v384_v36, %v386_v23  ;;  %v5694_v23 = vld [vmem:[%s5232_s28 + $0x120] sm:$0xff]  ;;  %v5709_v16 = vsel %vm337_vm0, %v389_v15, %v391_v43  ;;  %v943_v47 = vrot.slane %v5430_v49, 2  ;;  %v944_v43 = vrot.slane %v5433_v50, 2 }
  0x50   : > { %3869 = vmatmul.mubr.f32.gmra.mrb[16].mxu1 %v5607_v20  ;;  %4597 = vmatprep.subr.bf16.mxu1 %v5632_v54  ;;  %6601 = vst [vmem:[#allocation26_spill] sm:$0xff] %v5672_v8  ;;  %v5680_v20 = vsel %vm337_vm0, %v388_v60, %v389_v15  ;;  %v5689_v36 = vsel %vm917_vm1, %v933_v6, %v934_v53  ;;  %v3335_v60 = vld [vmem:[%s6491_s1 + $0x330] sm:$0xff]  ;;  %v3336_v6 = vld [vmem:[%s6491_s1 + $0x338] sm:$0xff]  ;;  %6605 = vst [vmem:[#allocation30_spill] sm:$0xff] %v5709_v16  ;;  %v398_v57 = vrot.slane %v5694_v23, 1 }
  0x51   : > { %4245 = vmatmul.mubr.f32.vlgmr.msra.gmra.mrb[0].mxu0 %v5640_v48  ;;  %3871 = vmatprep.mubr.f32.mxu1 %v5643_v12  ;;  %6603 = vst [vmem:[#allocation28_spill] sm:$0xff] %v5680_v20  ;;  %v394_v12 = vrot.slane %v5659_v18, 1  ;;  %6604 = vst [vmem:[#allocation29_spill] sm:$0xff] %v5689_v36 }
  0x52   : > { %4727 = vmatpush3.bf16.msra.mxu0 %v4724_v37  ;;  %4247 = vmatprep.mubr.f32.mxu0 %v5651_v41  ;;  %v939_v37 = vrot.slane %v5401_v35, 2 }
  0x53   : > { %4729 = vmatprep.subr.bf16.mxu0 %v4728_v9  ;;  %v5718_v11 = vsel %vm337_vm0, %v393_v44, %v394_v12  ;;  %v4736_v44 = vpack.c.bf16 %v3336_v6, %v3335_v60  ;;  %v5746_v42 = vsel %vm337_vm0, %v394_v12, %v396_v33  ;;  %v401_v6 = vrot.slane %v5723_v55, 1 }
  0x54   : > { %3872 = vmatmul.mubr.f32.gmra.mrb[18].mxu1 %v5672_v8  ;;  %v5715_v8 = vsel %vm917_vm1, %v934_v53, %v936_v3  ;;  %6607 = vst [vmem:[#allocation32_spill] sm:$0xff] %v5718_v11  ;;  %v5726_v15 = vsel %vm917_vm1, %v938_v61, %v939_v37  ;;  %v5731_v3 = vld [vmem:[%s5232_s28 + $0x138] sm:$0xff]  ;;  %v3337_v53 = vld [vmem:[%s6491_s1 + $0x340] sm:$0xff]  ;;  %v3338_v61 = vld [vmem:[%s6491_s1 + $0x348] sm:$0xff]  ;;  %v5749_v60 = vsel %vm917_vm1, %v939_v37, %v941_v25  ;;  %v948_v37 = vrot.slane %v5464_v4, 2 }
  0x55   : > { %4248 = vmatmul.mubr.f32.gmra.mrb[2].mxu0 %v5675_v19  ;;  %3874 = vmatprep.mubr.f32.mxu1 %v5680_v20  ;;  %6606 = vst [vmem:[#allocation31_spill] sm:$0xff] %v5715_v8  ;;  %v399_v20 = vrot.slane %v5697_v46, 1  ;;  %6608 = vst [vmem:[#allocation33_spill] sm:$0xff] %v5726_v15  ;;  %v403_v7 = vrot.slane %v5731_v3, 1  ;;  %v5763_v12 = vsel %vm917_vm1, %v943_v47, %v944_v43  ;;  %v949_v33 = vrot.slane %v5467_v5, 2  ;;  %v5768_v25 = vld [vmem:[%s5232_s28 + $0x150] sm:$0xff] }
  0x56   : > { %4250 = vmatprep.mubr.f32.mxu0 %v5689_v36  ;;  %4731 = vmatpush3.bf16.msra.mxu0 %v4728_v9  ;;  %v5734_v9 = vld [vmem:[%s5232_s28 + $0x140] sm:$0xff]  ;;  %6609 = vst [vmem:[#allocation34_spill] sm:$0xff] %v5746_v42  ;;  %6610 = vst [vmem:[#allocation35_spill] sm:$0xff] %v5749_v60  ;;  %v4740_v63 = vpack.c.bf16 %v3338_v61, %v3337_v53  ;;  %v3340_v47 = vld [vmem:[%s6491_s1 + $0x358] sm:$0xff]  ;;  %v406_v53 = vrot.slane %v5760_v27, 1  ;;  %v951_v61 = vrot.slane %v5488_v21, 2 }
  0x57   : > { %4733 = vmatprep.subr.bf16.mxu0 %v4732_v24  ;;  %6612 = vst [vmem:[#allocation37_spill] sm:$0xff] %v5763_v12  ;;  %v953_v21 = vrot.slane %v5498_v26, 2 }
  0x58   : > { %3875 = vmatmul.mubr.f32.gmra.mrb[20].mxu1 %v5709_v16  ;;  %v5754_v16 = vsel %vm337_vm0, %v398_v57, %v399_v20  ;;  %v5771_v57 = vld [vmem:[%s5232_s28 + $0x158] sm:$0xff]  ;;  %v5823_v19 = vsel %vm917_vm1, %v949_v33, %v951_v61 }
  0x59   : > { %4251 = vmatmul.mubr.f32.gmra.mrb[4].mxu0 %v5715_v8  ;;  %3877 = vmatprep.mubr.f32.mxu1 %v5718_v11  ;;  %6611 = vst [vmem:[#allocation36_spill] sm:$0xff] %v5754_v16  ;;  %v404_v11 = vrot.slane %v5734_v9, 1  ;;  %v409_v36 = vrot.slane %v5771_v57, 1  ;;  %6617 = vst [vmem:[#allocation42_spill] sm:$0xff] %v5823_v19 }
  0x5a   : > { %4253 = vmatprep.mubr.f32.mxu0 %v5726_v15  ;;  %4735 = vmatpush3.bf16.msra.mxu0 %v4732_v24  ;;  %v3339_v24 = vld [vmem:[%s6491_s1 + $0x350] sm:$0xff]  ;;  %v5783_v15 = vsel %vm337_vm0, %v399_v20, %v401_v6  ;;  %v5800_v20 = vsel %vm917_vm1, %v948_v37, %v949_v33  ;;  %v954_v6 = vrot.slane %v5501_v30, 2  ;;  %v958_v33 = vrot.slane %v5532_v56, 2 }
  0x5b   : > { %4737 = vmatprep.subr.bf16.mxu0 %v4736_v44  ;;  %6613 = vst [vmem:[#allocation38_spill] sm:$0xff] %v5783_v15  ;;  %v5792_v8 = vsel %vm337_vm0, %v403_v7, %v404_v11  ;;  %v4744_v7 = vpack.c.bf16 %v3340_v47, %v3339_v24  ;;  %v5820_v37 = vsel %vm337_vm0, %v404_v11, %v406_v53  ;;  %v959_v53 = vrot.slane %v5535_v59, 2 }
  0x5c   : > { %3878 = vmatmul.mubr.f32.gmra.mrb[22].mxu1 %v5746_v42  ;;  %v5789_v42 = vsel %vm917_vm1, %v944_v43, %v946_v39  ;;  %6615 = vst [vmem:[#allocation40_spill] sm:$0xff] %v5792_v8  ;;  %v5808_v39 = vld [vmem:[%s5232_s28 + $0x170] sm:$0xff]  ;;  %v3341_v43 = vld [vmem:[%s6491_s1 + $0x360] sm:$0xff]  ;;  %6616 = vst [vmem:[#allocation41_spill] sm:$0xff] %v5820_v37  ;;  %v5837_v11 = vsel %vm917_vm1, %v953_v21, %v954_v6 }
  0x5d   : > { %4254 = vmatmul.mubr.f32.gmra.mrb[6].mxu0 %v5749_v60  ;;  %3880 = vmatprep.mubr.f32.mxu1 %v5754_v16  ;;  %6614 = vst [vmem:[#allocation39_spill] sm:$0xff] %v5789_v42  ;;  %v408_v60 = vrot.slane %v5768_v25, 1  ;;  %v5797_v16 = vld [vmem:[%s5232_s28 + $0x160] sm:$0x3] }
  0x5e   : > { %4256 = vmatprep.mubr.f32.mxu0 %v5763_v12  ;;  %4739 = vmatpush3.bf16.msra.mxu0 %v4736_v44  ;;  %v5805_v12 = vld [vmem:[%s5232_s28 + $0x168] sm:$0xff]  ;;  %v411_v24 = vrot.slane %v5797_v16, 1 }
  0x5f   : > { %4741 = vmatprep.subr.bf16.mxu0 %v4740_v63  ;;  %v3342_v44 = vld [vmem:[%s6491_s1 + $0x368] sm:$0xff]  ;;  %v5828_v47 = vsel %vm337_vm0, %v408_v60, %v409_v36  ;;  %v413_v41 = vrot.slane %v5805_v12, 1  ;;  %v3344_v60 = vld [vmem:[%s6491_s1 + $0x378] sm:$0xff] }
  0x60   : > { %3881 = vmatmul.mubr.f32.gmra.mrb[24].mxu1 %v5783_v15  ;;  %6618 = vst [vmem:[#allocation43_spill] sm:$0xff] %v5828_v47  ;;  %v956_v15 = vrot.slane %v5522_v52, 2  ;;  %v4748_v61 = vpack.c.bf16 %v3342_v44, %v3341_v43  ;;  %v3343_v52 = vld [vmem:[%s6491_s1 + $0x370] sm:$0xff] }
  0x61   : > { %4257 = vmatmul.mubr.f32.gmra.mrb[8].mxu0 %v5789_v42  ;;  %3883 = vmatprep.mubr.f32.mxu1 %v5792_v8  ;;  %v414_v42 = vrot.slane %v5808_v39, 1  ;;  %v5834_v8 = vld [vmem:[%s5232_s28 + $0x178] sm:$0x3] }
  0x62   : > { %4259 = vmatprep.mubr.f32.mxu0 %v5800_v20  ;;  %4743 = vmatpush3.bf16.msra.mxu0 %v4740_v63  ;;  %v5851_v63 = vsel %vm337_vm0, %v409_v36, %v411_v24  ;;  %v416_v21 = vrot.slane %v5834_v8, 1  ;;  %v5856_v43 = vsel %vm917_vm1, %v954_v6, %v956_v15  ;;  %v964_v36 = vrot.slane %v5587_v58, 2  ;;  %v3345_v15 = vld [vmem:[%s6491_s1 + $0x380] sm:$0xff] }
  0x63   : > { %4745 = vmatprep.subr.bf16.mxu0 %v4744_v7  ;;  %6619 = vst [vmem:[#allocation44_spill] sm:$0xff] %v5851_v63  ;;  %v5859_v44 = vsel %vm337_vm0, %v413_v41, %v414_v42  ;;  %v4752_v24 = vpack.c.bf16 %v3344_v60, %v3343_v52  ;;  %v968_v52 = vrot.slane %v5620_v10, 2  ;;  %v969_v60 = vrot.slane %v5623_v17, 2 }
  0x64   : > { %3884 = vmatmul.mubr.f32.gmra.mrb[26].mxu1 %v5820_v37  ;;  %6620 = vst [vmem:[#allocation45_spill] sm:$0xff] %v5859_v44  ;;  %v961_v37 = vrot.slane %v5556_v22, 2  ;;  %v3346_v22 = vld [vmem:[%s6491_s1 + $0x388] sm:$0xff]  ;;  %v5877_v41 = vsel %vm337_vm0, %v414_v42, %v416_v21  ;;  %v3267_v42 = vld [vmem:[%s6491_s1 + $0x110] sm:$0xff]  ;;  %v974_v21 = vrot.slane %v5659_v18, 2 }
  0x65   : > { %4260 = vmatmul.mubr.f32.gmra.mrb[10].mxu0 %v5823_v19  ;;  %3886 = vmatprep.mubr.f32.mxu1 %v5828_v47  ;;  %v5863_v19 = vsel %vm917_vm1, %v958_v33, %v959_v53  ;;  %v963_v47 = vrot.slane %v5584_v0, 2  ;;  %6621 = vst [vmem:[#allocation46_spill] sm:$0xff] %v5877_v41 }
  0x66   : > { %4262 = vmatprep.mubr.f32.mxu0 %v5837_v11  ;;  %4747 = vmatpush3.bf16.msra.mxu0 %v4744_v7  ;;  %v5881_v6 = vsel %vm917_vm1, %v959_v53, %v961_v37  ;;  %v966_v7 = vrot.slane %v5612_v51, 2  ;;  %v3268_v51 = vld [vmem:[%s6491_s1 + $0x118] sm:$0xff]  ;;  %v5906_v53 = vsel %vm917_vm1, %v968_v52, %v969_v60 }
  0x67   : > { %4749 = vmatprep.subr.bf16.mxu0 %v4748_v61  ;;  %v5885_v33 = vsel %vm917_vm1, %v963_v47, %v964_v36  ;;  %v971_v47 = vrot.slane %v5648_v38, 2  ;;  %v3270_v38 = vld [vmem:[%s6491_s1 + $0x128] sm:$0xff] }
  0x68   : > { %3887 = vmatmul.mubr.f32.gmra.mrb[28].mxu1 %v5851_v63  ;;  %v5902_v37 = vsel %vm917_vm1, %v964_v36, %v966_v7  ;;  %v979_v7 = vrot.slane %v5697_v46, 2  ;;  %v6014_v63 = vld [vmem:[%s5232_s28 + $0x190] sm:$0x3] }
  0x69   : > { %4263 = vmatmul.mubr.f32.gmra.mrb[12].mxu0 %v5856_v43  ;;  %3889 = vmatprep.mubr.f32.mxu1 %v5859_v44  ;;  %v5889_v44 = vpack.c.bf16 %v3346_v22, %v3345_v15  ;;  %v4600_v15 = vpack.c.bf16 %v3268_v51, %v3267_v42  ;;  %v5923_v36 = vsel %vm917_vm1, %v969_v60, %v971_v47  ;;  %v978_v22 = vrot.slane %v5694_v23, 2 }
  0x6a   : > { %4265 = vmatprep.mubr.f32.mxu0 %v5863_v19  ;;  %4751 = vmatpush3.bf16.msra.mxu0 %v4748_v61  ;;  %v973_v61 = vrot.slane %v5656_v62, 2  ;;  %v983_v42 = vrot.slane %v5731_v3, 2  ;;  %v984_v51 = vrot.slane %v5734_v9, 2 }
  0x6b   : > { %4753 = vmatprep.subr.bf16.mxu0 %v4752_v24  ;;  %v5946_v60 = vsel %vm917_vm1, %v978_v22, %v979_v7 }
  0x6c   : > { %3890 = vmatmul.mubr.f32.gmra.mrb[30].mxu1 %v5877_v41  ;;  %v5993_v41 = vld [vmem:[%s5232_s28 + $0x188] sm:$0xff] }
  0x6d   : > { %4266 = vmatmul.mubr.f32.gmra.mrb[14].mxu0 %v5881_v6  ;;  %3924 = vmatprep.mubr.f32.mxu1 %v5251_v28  ;;  %v3269_v28 = vld [vmem:[%s6491_s1 + $0x120] sm:$0xff] }
  0x6e   : > { %4268 = vmatprep.mubr.f32.mxu0 %v5885_v33  ;;  %4755 = vmatpush3.bf16.msra.mxu0 %v4752_v24  ;;  %v5927_v24 = vsel %vm917_vm1, %v973_v61, %v974_v21  ;;  %v4604_v52 = vpack.c.bf16 %v3270_v38, %v3269_v28  ;;  %v3273_v61 = vld [vmem:[%s6491_s1 + $0x140] sm:$0xff]  ;;  %v5965_v28 = vsel %vm917_vm1, %v983_v42, %v984_v51  ;;  %v988_v38 = vrot.slane %v5768_v25, 2 }
  0x6f   : > { %4757 = vmatprep.subr.bf16.mxu0 %v5889_v44  ;;  %v994_v42 = vrot.slane %v5808_v39, 2 }
  0x70   : > { %3925 = vmatmul.mubr.f32.vlgmr.msra.gmra.mrb[0].mxu1 %v5254_v29  ;;  %v976_v29 = vrot.slane %v5686_v40, 2 }
  0x71   : > { %4269 = vmatmul.mubr.f32.gmra.mrb[16].mxu0 %v5902_v37  ;;  %4599 = vmatpush3.bf16.msra.mxu1 %v5632_v54  ;;  %v3272_v54 = vld [vmem:[%s6491_s1 + $0x138] sm:$0xff] }
  0x72   : > { %3927 = vmatprep.mubr.f32.mxu1 %v5258_v31  ;;  %4271 = vmatprep.mubr.f32.mxu0 %v5906_v53  ;;  %v3271_v31 = vld [vmem:[%s6491_s1 + $0x130] sm:$0xff]  ;;  %v5942_v40 = vsel %vm917_vm1, %v974_v21, %v976_v29  ;;  %v3274_v21 = vld [vmem:[%s6491_s1 + $0x148] sm:$0xff]  ;;  %v989_v29 = vrot.slane %v5771_v57, 2 }
  0x73   : > { %4601 = vmatprep.subr.bf16.mxu1 %v4600_v15  ;;  %v4608_v47 = vpack.c.bf16 %v3272_v54, %v3271_v31  ;;  %v4612_v22 = vpack.c.bf16 %v3274_v21, %v3273_v61  ;;  %v991_v31 = vrot.slane %v5797_v16, 2  ;;  %v5989_v61 = vld [vmem:[%s5232_s28 + $0x180] sm:$0xff] }
  0x74   : > { %3928 = vmatmul.mubr.f32.gmra.mrb[2].mxu1 %v5261_v32  ;;  %v981_v32 = vrot.slane %v5723_v55, 2  ;;  %v5984_v54 = vsel %vm917_vm1, %v988_v38, %v989_v29  ;;  %v3277_v16 = vld [vmem:[%s6491_s1 + $0x160] sm:$0xff] }
  0x75   : > { %4272 = vmatmul.mubr.f32.gmra.mrb[18].mxu0 %v5923_v36  ;;  %3930 = vmatprep.mubr.f32.mxu1 %v5344_v1 }
  0x76   : > { %4274 = vmatprep.mubr.f32.mxu0 %v5927_v24  ;;  %4603 = vmatpush3.bf16.msra.mxu1 %v4600_v15  ;;  %v5961_v55 = vsel %vm917_vm1, %v979_v7, %v981_v32  ;;  %v986_v15 = vrot.slane %v5760_v27, 2  ;;  %v3275_v7 = vld [vmem:[%s6491_s1 + $0x150] sm:$0xff]  ;;  %v3276_v27 = vld [vmem:[%s6491_s1 + $0x158] sm:$0xff]  ;;  %v993_v32 = vrot.slane %v5805_v12, 2 }
  0x77   : > { %4605 = vmatprep.subr.bf16.mxu1 %v4604_v52  ;;  %v4616_v21 = vpack.c.bf16 %v3276_v27, %v3275_v7  ;;  %v1862_v7 = vrot.slane %v5989_v61, 2  ;;  %v1863_v27 = vrot.slane %v5993_v41, 2 }
  0x78   : > { %3931 = vmatmul.mubr.f32.gmra.mrb[4].mxu1 %v5347_v2  ;;  %v6009_v38 = vsel %vm917_vm1, %v993_v32, %v994_v42 }
  0x79   : > { %4275 = vmatmul.mubr.f32.gmra.mrb[20].mxu0 %v5942_v40  ;;  %3933 = vmatprep.mubr.f32.mxu1 %v5364_v13  ;;  %6623 = vst [vmem:[#allocation48_spill] sm:$0xff] %v6009_v38  ;;  %v6031_v32 = vsel %vm917_vm1, %v1862_v7, %v1863_v27  ;;  %v3348_v7 = vld [vmem:[%s6491_s1 + $0x398] sm:$0xff] }
  0x7a   : > { %4277 = vmatprep.mubr.f32.mxu0 %v5946_v60  ;;  %4607 = vmatpush3.bf16.msra.mxu1 %v4604_v52  ;;  %v5980_v52 = vsel %vm917_vm1, %v984_v51, %v986_v15  ;;  %v3278_v51 = vld [vmem:[%s6491_s1 + $0x168] sm:$0xff]  ;;  %v996_v15 = vrot.slane %v5834_v8, 2  ;;  %v3280_v8 = vld [vmem:[%s6491_s1 + $0x178] sm:$0xff]  ;;  %6624 = vst [vmem:[#allocation49_spill] sm:$0xff] %v6031_v32 }
  0x7b   : > { %4609 = vmatprep.subr.bf16.mxu1 %v4608_v47  ;;  %6622 = vst [vmem:[#allocation47_spill] sm:$0xff] %v5980_v52 }
  0x7c   : > { %3934 = vmatmul.mubr.f32.gmra.mrb[6].mxu1 %v5367_v14 }
  0x7d   : > { %4278 = vmatmul.mubr.f32.gmra.mrb[22].mxu0 %v5961_v55  ;;  %3936 = vmatprep.mubr.f32.mxu1 %v5398_v34 }
  0x7e   : > { %4280 = vmatprep.mubr.f32.mxu0 %v5965_v28  ;;  %4611 = vmatpush3.bf16.msra.mxu1 %v4608_v47  ;;  %v6005_v47 = vsel %vm917_vm1, %v989_v29, %v991_v31  ;;  %v3279_v29 = vld [vmem:[%s6491_s1 + $0x170] sm:$0xff]  ;;  %v1865_v31 = vrot.slane %v6014_v63, 2 }
  0x7f   : > { %4613 = vmatprep.subr.bf16.mxu1 %v4612_v22 }
  0x80   : > { %3937 = vmatmul.mubr.f32.gmra.mrb[8].mxu1 %v5401_v35 }
  0x81   : > { %4281 = vmatmul.mubr.f32.gmra.mrb[24].mxu0 %v5980_v52  ;;  %3939 = vmatprep.mubr.f32.mxu1 %v5430_v49  ;;  %v4620_v52 = vpack.c.bf16 %v3278_v51, %v3277_v16  ;;  %v4624_v16 = vpack.c.bf16 %v3280_v8, %v3279_v29  ;;  %v3281_v51 = vld [vmem:[%s6491_s1 + $0x180] sm:$0xff]  ;;  %v3351_v29 = vld [vmem:[%s6491_s1 + $0x3b0] sm:$0xff]  ;;  %v3352_v8 = vld [vmem:[%s6491_s1 + $0x3b8] sm:$0xff] }
  0x82   : > { %4283 = vmatprep.mubr.f32.mxu0 %v5984_v54  ;;  %4615 = vmatpush3.bf16.msra.mxu1 %v4612_v22  ;;  %v6027_v22 = vsel %vm917_vm1, %v994_v42, %v996_v15  ;;  %v6044_v42 = vsel %vm917_vm1, %v1863_v27, %v1865_v31  ;;  %v3347_v15 = vld [vmem:[%s6491_s1 + $0x390] sm:$0xff]  ;;  %v3350_v27 = vld [vmem:[%s6491_s1 + $0x3a8] sm:$0xff]  ;;  %v3356_v31 = vld [vmem:[%s6491_s1 + $0x3d8] sm:$0xff] }
  0x83   : > { %4617 = vmatprep.subr.bf16.mxu1 %v4616_v21  ;;  %6625 = vst [vmem:[#allocation50_spill] sm:$0xff] %v6044_v42 }
  0x84   : > { %3940 = vmatmul.mubr.f32.gmra.mrb[10].mxu1 %v5433_v50 }
  0x85   : > { %4284 = vmatmul.mubr.f32.gmra.mrb[26].mxu0 %v6005_v47  ;;  %3942 = vmatprep.mubr.f32.mxu1 %v5464_v4 }
  0x86   : > { %4286 = vmatprep.mubr.f32.mxu0 %v6009_v38  ;;  %4619 = vmatpush3.bf16.msra.mxu1 %v4616_v21  ;;  %v3282_v38 = vld [vmem:[%s6491_s1 + $0x188] sm:$0xff] }
  0x87   : > { %4621 = vmatprep.subr.bf16.mxu1 %v4620_v52  ;;  %v6046_v21 = vpack.c.bf16 %v3282_v38, %v3281_v51  ;;  %v3349_v38 = vld [vmem:[%s6491_s1 + $0x3a0] sm:$0xff]  ;;  %v3360_v51 = vld [vmem:[%s6491_s1 + $0x3f8] sm:$0xff] }
  0x88   : > { %3943 = vmatmul.mubr.f32.gmra.mrb[12].mxu1 %v5467_v5 }
  0x89   : > { %4287 = vmatmul.mubr.f32.gmra.mrb[28].mxu0 %v6027_v22  ;;  %3945 = vmatprep.mubr.f32.mxu1 %v5498_v26 }
  0x8a   : > { %4289 = vmatprep.mubr.f32.mxu0 %v6031_v32  ;;  %4623 = vmatpush3.bf16.msra.mxu1 %v4620_v52  ;;  %v4760_v52 = vpack.c.bf16 %v3348_v7, %v3347_v15  ;;  %v5102_v15 = vld [vmem:[%s5232_s28 + $0x8] sm:$0xff] }
  0x8b   : > { %4625 = vmatprep.subr.bf16.mxu1 %v4624_v16  ;;  %v919_v7 = vrot.slane %v5102_v15, 2  ;;  %v3295_v15 = vld [vmem:[%s6491_s1 + $0x1f0] sm:$0xff] }
  0x8c   : > { %3946 = vmatmul.mubr.f32.gmra.mrb[14].mxu1 %v5501_v30 }
  0x8d   : > { %4290 = vmatmul.mubr.f32.gmra.mrb[30].mxu0 %v6044_v42  ;;  %3948 = vmatprep.mubr.f32.mxu1 %v5532_v56  ;;  %v6670_v42 = vld [vmem:[#allocation46_spill] sm:$0xff] }
  0x8e   : > { %4324 = vmatprep.mubr.f32.mxu0 %v5344_v1  ;;  %4627 = vmatpush3.bf16.msra.mxu1 %v4624_v16  ;;  %v4764_v1 = vpack.c.bf16 %v3350_v27, %v3349_v38  ;;  %v3358_v16 = vld [vmem:[%s6491_s1 + $0x3e8] sm:$0xff]  ;;  %v3361_v38 = vld [vmem:[%s6491_s1 + $0x400] sm:$0xff]  ;;  %v5103_v27 = vld [vmem:[%s5232_s28 + $0x10] sm:$0x3] }
  0x8f   : > { %4629 = vmatprep.subr.bf16.mxu1 %v6046_v21 }
  0x90   : > { %3949 = vmatmul.mubr.f32.gmra.mrb[16].mxu1 %v5535_v59 }
  0x91   : > { %4325 = vmatmul.mubr.f32.vlgmr.msra.gmra.mrb[0].mxu0 %v5347_v2  ;;  %3951 = vmatprep.mubr.f32.mxu1 %v5584_v0  ;;  %v4768_v2 = vpack.c.bf16 %v3352_v8, %v3351_v29  ;;  %v3283_v8 = vld [vmem:[%s6491_s1 + $0x190] sm:$0xff] }
  0x92   : > { %4759 = vmatpush3.bf16.msra.mxu0 %v5889_v44  ;;  %4327 = vmatprep.mubr.f32.mxu0 %v5364_v13  ;;  %v3353_v13 = vld [vmem:[%s6491_s1 + $0x3c0] sm:$0xff]  ;;  %v3354_v44 = vld [vmem:[%s6491_s1 + $0x3c8] sm:$0xff] }
  0x93   : > { %4761 = vmatprep.subr.bf16.mxu0 %v4760_v52 }
  0x94   : > { %3952 = vmatmul.mubr.f32.gmra.mrb[18].mxu1 %v5587_v58 }
  0x95   : > { %4328 = vmatmul.mubr.f32.gmra.mrb[2].mxu0 %v5367_v14  ;;  %3954 = vmatprep.mubr.f32.mxu1 %v5620_v10  ;;  %v4772_v14 = vpack.c.bf16 %v3354_v44, %v3353_v13  ;;  %v3285_v13 = vld [vmem:[%s6491_s1 + $0x1a0] sm:$0xff]  ;;  %v3286_v44 = vld [vmem:[%s6491_s1 + $0x1a8] sm:$0xff] }
  0x96   : > { %4330 = vmatprep.mubr.f32.mxu0 %v5398_v34  ;;  %4763 = vmatpush3.bf16.msra.mxu0 %v4760_v52  ;;  %v3355_v34 = vld [vmem:[%s6491_s1 + $0x3d0] sm:$0xff] }
  0x97   : > { %4765 = vmatprep.subr.bf16.mxu0 %v4764_v1 }
  0x98   : > { %3955 = vmatmul.mubr.f32.gmra.mrb[20].mxu1 %v5623_v17 }
  0x99   : > { %4331 = vmatmul.mubr.f32.gmra.mrb[4].mxu0 %v5401_v35  ;;  %3957 = vmatprep.mubr.f32.mxu1 %v5656_v62  ;;  %v4776_v35 = vpack.c.bf16 %v3356_v31, %v3355_v34  ;;  %v6629_v34 = vld [vmem:[#allocation31_spill] sm:$0xff]  ;;  %v3291_v31 = vld [vmem:[%s6491_s1 + $0x1d0] sm:$0xff] }
  0x9a   : > { %4333 = vmatprep.mubr.f32.mxu0 %v5430_v49  ;;  %4767 = vmatpush3.bf16.msra.mxu0 %v4764_v1  ;;  %v3357_v49 = vld [vmem:[%s6491_s1 + $0x3e0] sm:$0xff]  ;;  %v921_v1 = vrot.slane %v5103_v27, 2 }
  0x9b   : > { %4769 = vmatprep.subr.bf16.mxu0 %v4768_v2  ;;  %v6215_v27 = vld [vmem:[%s5232_s28 + $0x1a0] sm:$0xff] }
  0x9c   : > { %3958 = vmatmul.mubr.f32.gmra.mrb[22].mxu1 %v5659_v18 }
  0x9d   : > { %4334 = vmatmul.mubr.f32.gmra.mrb[6].mxu0 %v5433_v50  ;;  %3960 = vmatprep.mubr.f32.mxu1 %v5694_v23  ;;  %v4780_v50 = vpack.c.bf16 %v3358_v16, %v3357_v49  ;;  %v6631_v16 = vld [vmem:[#allocation35_spill] sm:$0xff] }
  0x9e   : > { %4336 = vmatprep.mubr.f32.mxu0 %v5464_v4  ;;  %4771 = vmatpush3.bf16.msra.mxu0 %v4768_v2  ;;  %v3359_v4 = vld [vmem:[%s6491_s1 + $0x3f0] sm:$0xff] }
  0x9f   : > { %4773 = vmatprep.subr.bf16.mxu0 %v4772_v14  ;;  %v4784_v52 = vpack.c.bf16 %v3360_v51, %v3359_v4  ;;  %v3294_v4 = vld [vmem:[%s6491_s1 + $0x1e8] sm:$0xff]  ;;  %v6632_v51 = vld [vmem:[#allocation37_spill] sm:$0xff] }
  0xa0   : > { %3961 = vmatmul.mubr.f32.gmra.mrb[24].mxu1 %v5697_v46 }
  0xa1   : > { %4337 = vmatmul.mubr.f32.gmra.mrb[8].mxu0 %v5467_v5  ;;  %3963 = vmatprep.mubr.f32.mxu1 %v5731_v3  ;;  %v5101_v5 = vld [vmem:[%s5232_s28] sm:$0xff] }
  0xa2   : > { %4339 = vmatprep.mubr.f32.mxu0 %v5498_v26  ;;  %4775 = vmatpush3.bf16.msra.mxu0 %v4772_v14  ;;  %v918_v26 = vrot.slane %v5101_v5, 2  ;;  %v3288_v14 = vld [vmem:[%s6491_s1 + $0x1b8] sm:$0xff] }
  0xa3   : > { %4777 = vmatprep.subr.bf16.mxu0 %v4776_v35 }
  0xa4   : > { %3964 = vmatmul.mubr.f32.gmra.mrb[26].mxu1 %v5734_v9 }
  0xa5   : > { %4340 = vmatmul.mubr.f32.gmra.mrb[10].mxu0 %v5501_v30  ;;  %3966 = vmatprep.mubr.f32.mxu1 %v5768_v25  ;;  %v3362_v30 = vld [vmem:[%s6491_s1 + $0x408] sm:$0xff] }
  0xa6   : > { %4342 = vmatprep.mubr.f32.mxu0 %v5532_v56  ;;  %4779 = vmatpush3.bf16.msra.mxu0 %v4776_v35  ;;  %v920_v56 = vsel %vm917_vm1, %v918_v26, %v919_v7  ;;  %v6134_v29 = vpack.c.bf16 %v3362_v30, %v3361_v38  ;;  %v3292_v35 = vld [vmem:[%s6491_s1 + $0x1d8] sm:$0xff]  ;;  %v6633_v26 = vld [vmem:[#allocation39_spill] sm:$0xff]  ;;  %v6634_v30 = vld [vmem:[#allocation42_spill] sm:$0xff] }
  0xa7   : > { %4781 = vmatprep.subr.bf16.mxu0 %v4780_v50  ;;  %v4648_v49 = vpack.c.bf16 %v3292_v35, %v3291_v31  ;;  %v3370_v31 = vld [vmem:[%s6491_s1 + $0x448] sm:$0xff] }
  0xa8   : > { %3967 = vmatmul.mubr.f32.gmra.mrb[28].mxu1 %v5771_v57  ;;  %v6641_v35 = vld [vmem:[#allocation15_spill] sm:$0xff] }
  0xa9   : > { %4343 = vmatmul.mubr.f32.gmra.mrb[12].mxu0 %v5535_v59  ;;  %3969 = vmatprep.mubr.f32.mxu1 %v5805_v12  ;;  %v3284_v59 = vld [vmem:[%s6491_s1 + $0x198] sm:$0xff] }
  0xaa   : > { %4345 = vmatprep.mubr.f32.mxu0 %v5584_v0  ;;  %4783 = vmatpush3.bf16.msra.mxu0 %v4780_v50  ;;  %v922_v0 = vsel %vm917_vm1, %v919_v7, %v921_v1  ;;  %v4632_v2 = vpack.c.bf16 %v3284_v59, %v3283_v8  ;;  %v3293_v50 = vld [vmem:[%s6491_s1 + $0x1e0] sm:$0xff]  ;;  %v3296_v7 = vld [vmem:[%s6491_s1 + $0x1f8] sm:$0xff]  ;;  %v3363_v1 = vld [vmem:[%s6491_s1 + $0x410] sm:$0xff] }
  0xab   : > { %4785 = vmatprep.subr.bf16.mxu0 %v4784_v52  ;;  %v4652_v5 = vpack.c.bf16 %v3294_v4, %v3293_v50  ;;  %v4656_v38 = vpack.c.bf16 %v3296_v7, %v3295_v15  ;;  %v6635_v8 = vld [vmem:[#allocation10_spill] sm:$0xff]  ;;  %v3371_v4 = vld [vmem:[%s6491_s1 + $0x450] sm:$0xff]  ;;  %v6643_v15 = vld [vmem:[#allocation17_spill] sm:$0xff] }
  0xac   : > { %3970 = vmatmul.mubr.f32.gmra.mrb[30].mxu1 %v5808_v39  ;;  %v6644_v7 = vld [vmem:[#allocation18_spill] sm:$0xff] }
  0xad   : > { %4346 = vmatmul.mubr.f32.gmra.mrb[14].mxu0 %v5587_v58  ;;  %4004 = vmatprep.mubr.f32.mxu1 %v920_v56  ;;  %v4636_v58 = vpack.c.bf16 %v3286_v44, %v3285_v13  ;;  %v3364_v56 = vld [vmem:[%s6491_s1 + $0x418] sm:$0xff]  ;;  %v3366_v13 = vld [vmem:[%s6491_s1 + $0x428] sm:$0xff] }
  0xae   : > { %4348 = vmatprep.mubr.f32.mxu0 %v5620_v10  ;;  %4787 = vmatpush3.bf16.msra.mxu0 %v4784_v52  ;;  %v3287_v10 = vld [vmem:[%s6491_s1 + $0x1b0] sm:$0xff]  ;;  %v6208_v52 = vld [vmem:[%s5232_s28 + $0x198] sm:$0xff]  ;;  %v4792_v59 = vpack.c.bf16 %v3364_v56, %v3363_v1  ;;  %v6637_v44 = vld [vmem:[#allocation11_spill] sm:$0xff] }
  0xaf   : > { %4789 = vmatprep.subr.bf16.mxu0 %v6134_v29  ;;  %v3373_v1 = vld [vmem:[%s6491_s1 + $0x460] sm:$0xff]  ;;  %v3374_v56 = vld [vmem:[%s6491_s1 + $0x468] sm:$0xff] }
  0xb0   : > { %4005 = vmatmul.mubr.f32.vlgmr.msra.gmra.mrb[0].mxu1 %v922_v0  ;;  %v6636_v0 = vld [vmem:[#allocation2_spill] sm:$0xff] }
  0xb1   : > { %4349 = vmatmul.mubr.f32.gmra.mrb[16].mxu0 %v5623_v17  ;;  %4631 = vmatpush3.bf16.msra.mxu1 %v6046_v21  ;;  %v6626_v17 = vld [vmem:[#allocation25_spill] sm:$0xff]  ;;  %v3290_v21 = vld [vmem:[%s6491_s1 + $0x1c8] sm:$0xff] }
  0xb2   : > { %4007 = vmatprep.mubr.f32.mxu1 %v5615_v45  ;;  %4351 = vmatprep.mubr.f32.mxu0 %v5656_v62  ;;  %v4640_v45 = vpack.c.bf16 %v3288_v14, %v3287_v10  ;;  %v6627_v62 = vld [vmem:[#allocation27_spill] sm:$0xff]  ;;  %v3367_v14 = vld [vmem:[%s6491_s1 + $0x430] sm:$0xff] }
  0xb3   : > { %4633 = vmatprep.subr.bf16.mxu1 %v4632_v2 }
  0xb4   : > { %4008 = vmatmul.mubr.f32.gmra.mrb[2].mxu1 %v5640_v48  ;;  %v3289_v48 = vld [vmem:[%s6491_s1 + $0x1c0] sm:$0xff] }
  0xb5   : > { %4352 = vmatmul.mubr.f32.gmra.mrb[18].mxu0 %v5659_v18  ;;  %4010 = vmatprep.mubr.f32.mxu1 %v6626_v17  ;;  %v6628_v18 = vld [vmem:[#allocation29_spill] sm:$0xff] }
  0xb6   : > { %4354 = vmatprep.mubr.f32.mxu0 %v5694_v23  ;;  %4635 = vmatpush3.bf16.msra.mxu1 %v4632_v2  ;;  %v4644_v23 = vpack.c.bf16 %v3290_v21, %v3289_v48  ;;  %v3365_v2 = vld [vmem:[%s6491_s1 + $0x420] sm:$0xff]  ;;  %v6639_v48 = vld [vmem:[#allocation13_spill] sm:$0xff] }
  0xb7   : > { %4637 = vmatprep.subr.bf16.mxu1 %v4636_v58  ;;  %v4796_v10 = vpack.c.bf16 %v3366_v13, %v3365_v2  ;;  %v6640_v21 = vld [vmem:[#allocation14_spill] sm:$0xff]  ;;  %v4812_v2 = vpack.c.bf16 %v3374_v56, %v3373_v1  ;;  %v6647_v13 = vld [vmem:[#allocation47_spill] sm:$0xff]  ;;  %v6659_v56 = vld [vmem:[#allocation36_spill] sm:$0xff] }
  0xb8   : > { %4011 = vmatmul.mubr.f32.gmra.mrb[4].mxu1 %v6627_v62  ;;  %v5108_v1 = vld [vmem:[%s5232_s28 + $0x48] sm:$0xff] }
  0xb9   : > { %4355 = vmatmul.mubr.f32.gmra.mrb[20].mxu0 %v5697_v46  ;;  %4013 = vmatprep.mubr.f32.mxu1 %v6628_v18  ;;  %v6630_v46 = vld [vmem:[#allocation33_spill] sm:$0xff] }
  0xba   : > { %4357 = vmatprep.mubr.f32.mxu0 %v5731_v3  ;;  %4639 = vmatpush3.bf16.msra.mxu1 %v4636_v58  ;;  %v6638_v58 = vld [vmem:[#allocation12_spill] sm:$0xff] }
  0xbb   : > { %4641 = vmatprep.subr.bf16.mxu1 %v4640_v45 }
  0xbc   : > { %4014 = vmatmul.mubr.f32.gmra.mrb[6].mxu1 %v6629_v34 }
  0xbd   : > { %4358 = vmatmul.mubr.f32.gmra.mrb[22].mxu0 %v5734_v9  ;;  %4016 = vmatprep.mubr.f32.mxu1 %v6630_v46 }
  0xbe   : > { %4360 = vmatprep.mubr.f32.mxu0 %v5768_v25  ;;  %4643 = vmatpush3.bf16.msra.mxu1 %v4640_v45  ;;  %v3368_v45 = vld [vmem:[%s6491_s1 + $0x438] sm:$0xff] }
  0xbf   : > { %4645 = vmatprep.subr.bf16.mxu1 %v4644_v23 }
  0xc0   : > { %4017 = vmatmul.mubr.f32.gmra.mrb[8].mxu1 %v6631_v16 }
  0xc1   : > { %4361 = vmatmul.mubr.f32.gmra.mrb[24].mxu0 %v5771_v57  ;;  %4019 = vmatprep.mubr.f32.mxu1 %v6632_v51 }
  0xc2   : > { %4363 = vmatprep.mubr.f32.mxu0 %v5805_v12  ;;  %4647 = vmatpush3.bf16.msra.mxu1 %v4644_v23  ;;  %v3369_v23 = vld [vmem:[%s6491_s1 + $0x440] sm:$0xff] }
  0xc3   : > { %4649 = vmatprep.subr.bf16.mxu1 %v4648_v49  ;;  %v4804_v50 = vpack.c.bf16 %v3370_v31, %v3369_v23  ;;  %v6653_v23 = vld [vmem:[#allocation26_spill] sm:$0xff]  ;;  %v5104_v31 = vld [vmem:[%s5232_s28 + $0x18] sm:$0xff] }
  0xc4   : > { %4020 = vmatmul.mubr.f32.gmra.mrb[10].mxu1 %v6633_v26 }
  0xc5   : > { %4364 = vmatmul.mubr.f32.gmra.mrb[26].mxu0 %v5808_v39  ;;  %4022 = vmatprep.mubr.f32.mxu1 %v5800_v20 }
  0xc6   : > { %4366 = vmatprep.mubr.f32.mxu0 %v5989_v61  ;;  %4651 = vmatpush3.bf16.msra.mxu1 %v4648_v49  ;;  %v6642_v49 = vld [vmem:[#allocation16_spill] sm:$0xff] }
  0xc7   : > { %4653 = vmatprep.subr.bf16.mxu1 %v4652_v5 }
  0xc8   : > { %4023 = vmatmul.mubr.f32.gmra.mrb[12].mxu1 %v6634_v30 }
  0xc9   : > { %4367 = vmatmul.mubr.f32.gmra.mrb[28].mxu0 %v5993_v41  ;;  %4025 = vmatprep.mubr.f32.mxu1 %v5837_v11 }
  0xca   : > { %4369 = vmatprep.mubr.f32.mxu0 %v6208_v52  ;;  %4655 = vmatpush3.bf16.msra.mxu1 %v4652_v5  ;;  %v3372_v5 = vld [vmem:[%s6491_s1 + $0x458] sm:$0xff] }
  0xcb   : > { %4657 = vmatprep.subr.bf16.mxu1 %v4656_v38 }
  0xcc   : > { %4026 = vmatmul.mubr.f32.gmra.mrb[14].mxu1 %v5856_v43 }
  0xcd   : > { %4370 = vmatmul.mubr.f32.gmra.mrb[30].mxu0 %v6215_v27  ;;  %4028 = vmatprep.mubr.f32.mxu1 %v5863_v19 }
  0xce   : > { %4404 = vmatprep.mubr.f32.mxu0 %v6635_v8  ;;  %4659 = vmatpush3.bf16.msra.mxu1 %v4656_v38  ;;  %v4808_v38 = vpack.c.bf16 %v3372_v5, %v3371_v4  ;;  %v6645_v8 = vld [vmem:[#allocation19_spill] sm:$0xff]  ;;  %v5106_v4 = vld [vmem:[%s5232_s28 + $0x30] sm:$0xff] }
  0xcf   : > { %4820 = vmatprep.subr.bf16.mxu1 %v6636_v0  ;;  %v6656_v5 = vld [vmem:[#allocation32_spill] sm:$0xff] }
  0xd0   : > { %4029 = vmatmul.mubr.f32.gmra.mrb[16].mxu1 %v5881_v6 }
  0xd1   : > { %4405 = vmatmul.mubr.f32.vlgmr.msra.gmra.mrb[0].mxu0 %v6637_v44  ;;  %4031 = vmatprep.mubr.f32.mxu1 %v5885_v33  ;;  %v3375_v44 = vld [vmem:[%s6491_s1 + $0x470] sm:$0xff] }
  0xd2   : > { %4791 = vmatpush3.bf16.msra.mxu0 %v6134_v29  ;;  %4407 = vmatprep.mubr.f32.mxu0 %v6638_v58  ;;  %v4800_v29 = vpack.c.bf16 %v3368_v45, %v3367_v14  ;;  %v3376_v58 = vld [vmem:[%s6491_s1 + $0x478] sm:$0xff]  ;;  %v6649_v14 = vld [vmem:[#allocation22_spill] sm:$0xff] }
  0xd3   : > { %4793 = vmatprep.subr.bf16.mxu0 %v4792_v59  ;;  %v4816_v45 = vpack.c.bf16 %v3376_v58, %v3375_v44  ;;  %v6662_v44 = vld [vmem:[#allocation40_spill] sm:$0xff]  ;;  %v6663_v58 = vld [vmem:[#allocation5_spill] sm:$0xff] }
  0xd4   : > { %4032 = vmatmul.mubr.f32.gmra.mrb[18].mxu1 %v5902_v37 }
  0xd5   : > { %4408 = vmatmul.mubr.f32.gmra.mrb[2].mxu0 %v6639_v48  ;;  %4034 = vmatprep.mubr.f32.mxu1 %v5906_v53  ;;  %v6650_v48 = vld [vmem:[#allocation23_spill] sm:$0xff] }
  0xd6   : > { %4410 = vmatprep.mubr.f32.mxu0 %v6640_v21  ;;  %4795 = vmatpush3.bf16.msra.mxu0 %v4792_v59  ;;  %v6646_v59 = vld [vmem:[#allocation20_spill] sm:$0xff] }
  0xd7   : > { %4797 = vmatprep.subr.bf16.mxu0 %v4796_v10  ;;  %v6651_v21 = vld [vmem:[#allocation48_spill] sm:$0xff] }
  0xd8   : > { %4035 = vmatmul.mubr.f32.gmra.mrb[20].mxu1 %v5923_v36 }
  0xd9   : > { %4411 = vmatmul.mubr.f32.gmra.mrb[4].mxu0 %v6641_v35  ;;  %4037 = vmatprep.mubr.f32.mxu1 %v5927_v24  ;;  %v6654_v35 = vld [vmem:[#allocation28_spill] sm:$0xff] }
  0xda   : > { %4413 = vmatprep.mubr.f32.mxu0 %v6642_v49  ;;  %4799 = vmatpush3.bf16.msra.mxu0 %v4796_v10  ;;  %v6648_v10 = vld [vmem:[#allocation21_spill] sm:$0xff]  ;;  %v5105_v49 = vld [vmem:[%s5232_s28 + $0x20] sm:$0xff] }
  0xdb   : > { %4801 = vmatprep.subr.bf16.mxu0 %v4800_v29 }
  0xdc   : > { %4038 = vmatmul.mubr.f32.gmra.mrb[22].mxu1 %v5942_v40 }
  0xdd   : > { %4414 = vmatmul.mubr.f32.gmra.mrb[6].mxu0 %v6643_v15  ;;  %4040 = vmatprep.mubr.f32.mxu1 %v5946_v60  ;;  %v6657_v15 = vld [vmem:[#allocation3_spill] sm:$0xff] }
  0xde   : > { %4416 = vmatprep.mubr.f32.mxu0 %v6644_v7  ;;  %4803 = vmatpush3.bf16.msra.mxu0 %v4800_v29  ;;  %v6652_v29 = vld [vmem:[#allocation24_spill] sm:$0xff]  ;;  %v5107_v7 = vld [vmem:[%s5232_s28 + $0x38] sm:$0xff] }
  0xdf   : > { %4805 = vmatprep.subr.bf16.mxu0 %v4804_v50 }
  0xe0   : > { %4041 = vmatmul.mubr.f32.gmra.mrb[24].mxu1 %v5961_v55 }
  0xe1   : > { %4417 = vmatmul.mubr.f32.gmra.mrb[8].mxu0 %v6645_v8  ;;  %4043 = vmatprep.mubr.f32.mxu1 %v5965_v28  ;;  %v5109_v8 = vld [vmem:[%s5232_s28 + $0x50] sm:$0xff] }
  0xe2   : > { %4419 = vmatprep.mubr.f32.mxu0 %v6646_v59  ;;  %4807 = vmatpush3.bf16.msra.mxu0 %v4804_v50  ;;  %v6655_v50 = vld [vmem:[#allocation30_spill] sm:$0xff] }
  0xe3   : > { %4809 = vmatprep.subr.bf16.mxu0 %v4808_v38  ;;  %v6661_v59 = vld [vmem:[#allocation38_spill] sm:$0xff] }
  0xe4   : > { %4044 = vmatmul.mubr.f32.gmra.mrb[26].mxu1 %v6647_v13 }
  0xe5   : > { %4420 = vmatmul.mubr.f32.gmra.mrb[10].mxu0 %v6648_v10  ;;  %4046 = vmatprep.mubr.f32.mxu1 %v5984_v54  ;;  %v5111_v10 = vld [vmem:[%s5232_s28 + $0x68] sm:$0xff] }
  0xe6   : > { %4422 = vmatprep.mubr.f32.mxu0 %v6649_v14  ;;  %4811 = vmatpush3.bf16.msra.mxu0 %v4808_v38  ;;  %v6658_v38 = vld [vmem:[#allocation34_spill] sm:$0xff]  ;;  %v6664_v14 = vld [vmem:[#allocation41_spill] sm:$0xff] }
  0xe7   : > { %4813 = vmatprep.subr.bf16.mxu0 %v4812_v2 }
  0xe8   : > { %4047 = vmatmul.mubr.f32.gmra.mrb[28].mxu1 %v6005_v47 }
  0xe9   : > { %4423 = vmatmul.mubr.f32.gmra.mrb[12].mxu0 %v6650_v48  ;;  %4049 = vmatprep.mubr.f32.mxu1 %v6651_v21  ;;  %v6665_v48 = vld [vmem:[#allocation43_spill] sm:$0xff] }
  0xea   : > { %4425 = vmatprep.mubr.f32.mxu0 %v6652_v29  ;;  %4815 = vmatpush3.bf16.msra.mxu0 %v4812_v2  ;;  %v5110_v2 = vld [vmem:[%s5232_s28 + $0x60] sm:$0xff] }
  0xeb   : > { %4817 = vmatprep.subr.bf16.mxu0 %v4816_v45 }
  0xec   : > { %4050 = vmatmul.mubr.f32.gmra.mrb[30].mxu1 %v6027_v22 }
  0xed   : > { %4426 = vmatmul.mubr.f32.gmra.mrb[14].mxu0 %v6653_v23  ;;  %4084 = vmatprep.mubr.f32.mxu1 %v5104_v31  ;;  %v1581_v31 = vrot.slane %v5989_v61, 1 }
  0xee   : > { %4428 = vmatprep.mubr.f32.mxu0 %v6654_v35  ;;  %4819 = vmatpush3.bf16.msra.mxu0 %v4816_v45  ;;  %v5112_v45 = vld [vmem:[%s5232_s28 + $0x78] sm:$0xff] }
  0xf0   : > { %4085 = vmatmul.mubr.f32.vlgmr.msra.gmra.mrb[0].mxu1 %v5105_v49  ;;  %v1582_v49 = vrot.slane %v5993_v41, 1 }
  0xf1   : > { %4429 = vmatmul.mubr.f32.gmra.mrb[16].mxu0 %v6655_v50  ;;  %4828 = vmatpush3.bf16.msra.mxu1 %v6636_v0  ;;  %v6660_v0 = vld [vmem:[#allocation4_spill] sm:$0xff] }
  0xf2   : > { %4087 = vmatprep.mubr.f32.mxu1 %v5106_v4  ;;  %4431 = vmatprep.mubr.f32.mxu0 %v6656_v5  ;;  %v6666_v4 = vld [vmem:[#allocation6_spill] sm:$0xff] }
  0xf3   : > { %4821 = vmatprep.subr.bf16.mxu1 %v6657_v15 }
  0xf4   : > { %4088 = vmatmul.mubr.f32.gmra.mrb[2].mxu1 %v5107_v7  ;;  %v6667_v7 = vld [vmem:[#allocation44_spill] sm:$0xff] }
  0xf5   : > { %4432 = vmatmul.mubr.f32.gmra.mrb[18].mxu0 %v6658_v38  ;;  %4090 = vmatprep.mubr.f32.mxu1 %v5108_v1  ;;  %v5114_v1 = vld [vmem:[%s5232_s28 + $0x90] sm:$0xff] }
  0xf6   : > { %4434 = vmatprep.mubr.f32.mxu0 %v6659_v56  ;;  %4829 = vmatpush3.bf16.msra.mxu1 %v6657_v15  ;;  %v5113_v15 = vld [vmem:[%s5232_s28 + $0x80] sm:$0xff] }
  0xf7   : > { %4822 = vmatprep.subr.bf16.mxu1 %v6660_v0 }
  0xf8   : > { %4091 = vmatmul.mubr.f32.gmra.mrb[4].mxu1 %v5109_v8  ;;  %v1584_v8 = vrot.slane %v6014_v63, 1  ;;  %v5116_v63 = vld [vmem:[%s5232_s28 + $0xa8] sm:$0xff] }
  0xf9   : > { %4435 = vmatmul.mubr.f32.gmra.mrb[20].mxu0 %v6661_v59  ;;  %4093 = vmatprep.mubr.f32.mxu1 %v5110_v2  ;;  %v2420_v2 = vrot.slane %v6208_v52, 1 }
  0xfa   : > { %4437 = vmatprep.mubr.f32.mxu0 %v6662_v44  ;;  %4830 = vmatpush3.bf16.msra.mxu1 %v6660_v0  ;;  %v6668_v0 = vld [vmem:[#allocation45_spill] sm:$0xff] }
  0xfb   : > { %4823 = vmatprep.subr.bf16.mxu1 %v6663_v58 }
  0xfc   : > { %4094 = vmatmul.mubr.f32.gmra.mrb[6].mxu1 %v5111_v10  ;;  %v6332_v10 = vsel %vm337_vm0, %v1581_v31, %v1582_v49 }
  0xfd   : > { %4438 = vmatmul.mubr.f32.gmra.mrb[22].mxu0 %v6664_v14  ;;  %4096 = vmatprep.mubr.f32.mxu1 %v5112_v45  ;;  %v6335_v45 = vld [vmem:[%s5232_s28 + $0x1a8] sm:$0x3] }
  0xfe   : > { %4440 = vmatprep.mubr.f32.mxu0 %v6665_v48  ;;  %4831 = vmatpush3.bf16.msra.mxu1 %v6663_v58  ;;  %v2421_v58 = vrot.slane %v6215_v27, 1  ;;  %v2423_v31 = vrot.slane %v6335_v45, 1 }
  0xff   : > { %4824 = vmatprep.subr.bf16.mxu1 %v6666_v4 }
 0x100   : > { %4097 = vmatmul.mubr.f32.gmra.mrb[8].mxu1 %v5113_v15  ;;  %v6669_v15 = vld [vmem:[#allocation7_spill] sm:$0xff]  ;;  %v2422_v32 = vsel %vm337_vm0, %v2420_v2, %v2421_v58  ;;  %v5120_v2 = vld [vmem:[%s5232_s28 + $0xd8] sm:$0xff] }
 0x101   : > { %4441 = vmatmul.mubr.f32.gmra.mrb[24].mxu0 %v6667_v7  ;;  %4099 = vmatprep.mubr.f32.mxu1 %v5114_v1  ;;  %v5115_v1 = vld [vmem:[%s5232_s28 + $0x98] sm:$0xff] }
 0x102   : > { %4443 = vmatprep.mubr.f32.mxu0 %v6668_v0  ;;  %4832 = vmatpush3.bf16.msra.mxu1 %v6666_v4  ;;  %v6343_v4 = vsel %vm337_vm0, %v1582_v49, %v1584_v8  ;;  %v6671_v0 = vld [vmem:[#allocation8_spill] sm:$0xff]  ;;  %v2424_v49 = vsel %vm337_vm0, %v2421_v58, %v2423_v31  ;;  %v6672_v8 = vld [vmem:[#allocation9_spill] sm:$0xff]  ;;  %v5124_v31 = vld [vmem:[%s5232_s28 + $0x108] sm:$0xff] }
 0x103   : > { %4825 = vmatprep.subr.bf16.mxu1 %v6669_v15  ;;  %v5123_v58 = vld [vmem:[%s5232_s28 + $0xf8] sm:$0xff] }
 0x104   : > { %4100 = vmatmul.mubr.f32.gmra.mrb[10].mxu1 %v5115_v1  ;;  %v5117_v1 = vld [vmem:[%s5232_s28 + $0xb0] sm:$0xff] }
 0x105   : > { %4444 = vmatmul.mubr.f32.gmra.mrb[26].mxu0 %v6670_v42  ;;  %4102 = vmatprep.mubr.f32.mxu1 %v5116_v63  ;;  %v5118_v63 = vld [vmem:[%s5232_s28 + $0xc0] sm:$0xff] }
 0x106   : > { %4446 = vmatprep.mubr.f32.mxu0 %v6332_v10  ;;  %4833 = vmatpush3.bf16.msra.mxu1 %v6669_v15  ;;  %v5119_v15 = vld [vmem:[%s5232_s28 + $0xc8] sm:$0xff] }
 0x107   : > { %4826 = vmatprep.subr.bf16.mxu1 %v6671_v0 }
 0x108   : > { %4103 = vmatmul.mubr.f32.gmra.mrb[12].mxu1 %v5117_v1  ;;  %v5126_v1 = vld [vmem:[%s5232_s28 + $0x120] sm:$0xff] }
 0x109   : > { %4447 = vmatmul.mubr.f32.gmra.mrb[28].mxu0 %v6343_v4  ;;  %4105 = vmatprep.mubr.f32.mxu1 %v5118_v63 }
 0x10a   : > { %4449 = vmatprep.mubr.f32.mxu0 %v2422_v32  ;;  %4834 = vmatpush3.bf16.msra.mxu1 %v6671_v0  ;;  %v5121_v32 = vld [vmem:[%s5232_s28 + $0xe0] sm:$0xff]  ;;  %v5122_v0 = vld [vmem:[%s5232_s28 + $0xf0] sm:$0xff] }
 0x10b   : > { %4827 = vmatprep.subr.bf16.mxu1 %v6672_v8 }
 0x10c   : > { %4106 = vmatmul.mubr.f32.gmra.mrb[14].mxu1 %v5119_v15 }
 0x10d   : > { %4450 = vmatmul.mubr.f32.gmra.mrb[30].mxu0 %v2424_v49  ;;  %4108 = vmatprep.mubr.f32.mxu1 %v5120_v2 }
 0x10e   : > { %4484 = vmatprep.mubr.f32.mxu0 %v6626_v17  ;;  %4835 = vmatpush3.bf16.msra.mxu1 %v6672_v8  ;;  %v5125_v17 = vld [vmem:[%s5232_s28 + $0x110] sm:$0xff] }
 0x110   : > { %4109 = vmatmul.mubr.f32.gmra.mrb[16].mxu1 %v5121_v32 }
 0x111   : > { %4485 = vmatmul.mubr.f32.vlgmr.msra.gmra.mrb[0].mxu0 %v6627_v62  ;;  %4111 = vmatprep.mubr.f32.mxu1 %v5122_v0  ;;  %v5127_v62 = vld [vmem:[%s5232_s28 + $0x128] sm:$0xff]  ;;  %s3379_s28 = sshll.u32 %s6677_s16, 8 }
 0x112   : > { %4487 = vmatprep.mubr.f32.mxu0 %v6628_v18  ;;  %s6440_s8 = scalar_lea.vmem %s6492_s2, %s3379_s28 }
 0x114   : > { %4112 = vmatmul.mubr.f32.gmra.mrb[18].mxu1 %v5123_v58 }
 0x115   : > { %4488 = vmatmul.mubr.f32.gmra.mrb[2].mxu0 %v6629_v34  ;;  %4114 = vmatprep.mubr.f32.mxu1 %v5124_v31 }
 0x116   : > { %4490 = vmatprep.mubr.f32.mxu0 %v6630_v46 }
 0x118   : > { %4115 = vmatmul.mubr.f32.gmra.mrb[20].mxu1 %v5125_v17 }
 0x119   : > { %4491 = vmatmul.mubr.f32.gmra.mrb[4].mxu0 %v6631_v16  ;;  %4117 = vmatprep.mubr.f32.mxu1 %v5126_v1 }
 0x11a   : > { %4493 = vmatprep.mubr.f32.mxu0 %v6632_v51 }
 0x11c   : > { %4118 = vmatmul.mubr.f32.gmra.mrb[22].mxu1 %v5127_v62 }
 0x11d   : > { %4494 = vmatmul.mubr.f32.gmra.mrb[6].mxu0 %v6633_v26  ;;  %4120 = vmatprep.mubr.f32.mxu1 %v5731_v3  ;;  %v2702_v3 = vrot.slane %v6215_v27, 2 }
 0x11e   : > { %4496 = vmatprep.mubr.f32.mxu0 %v5800_v20  ;;  %v6675_v20 = vld [vmem:[#allocation50_spill] sm:$0xff] }
 0x120   : > { %4121 = vmatmul.mubr.f32.gmra.mrb[24].mxu1 %v5734_v9  ;;  %v6673_v9 = vld [vmem:[#allocation45_spill] sm:$0xff] }
 0x121   : > { %4497 = vmatmul.mubr.f32.gmra.mrb[8].mxu0 %v6634_v30  ;;  %4123 = vmatprep.mubr.f32.mxu1 %v5768_v25  ;;  %v2704_v25 = vrot.slane %v6335_v45, 2 }
 0x122   : > { %4499 = vmatprep.mubr.f32.mxu0 %v5837_v11 }
 0x124   : > { %4124 = vmatmul.mubr.f32.gmra.mrb[26].mxu1 %v5771_v57 }
 0x125   : > { %4500 = vmatmul.mubr.f32.gmra.mrb[10].mxu0 %v5856_v43  ;;  %4126 = vmatprep.mubr.f32.mxu1 %v5805_v12  ;;  %v6674_v12 = vld [vmem:[#allocation49_spill] sm:$0xff] }
 0x126   : > { %4502 = vmatprep.mubr.f32.mxu0 %v5863_v19  ;;  %v2701_v19 = vrot.slane %v6208_v52, 2 }
 0x128   : > { %4127 = vmatmul.mubr.f32.gmra.mrb[28].mxu1 %v5808_v39  ;;  %v2703_v57 = vsel %vm917_vm1, %v2701_v19, %v2702_v3  ;;  %v2705_v39 = vsel %vm917_vm1, %v2702_v3, %v2704_v25 }
 0x129   : > { %4503 = vmatmul.mubr.f32.gmra.mrb[12].mxu0 %v5881_v6  ;;  %4129 = vmatprep.mubr.f32.mxu1 %v5989_v61 }
 0x12a   : > { %4505 = vmatprep.mubr.f32.mxu0 %v5885_v33 }
 0x12c   : > { %4130 = vmatmul.mubr.f32.gmra.mrb[30].mxu1 %v5993_v41 }
 0x12d   : > { %4506 = vmatmul.mubr.f32.gmra.mrb[14].mxu0 %v5902_v37  ;;  %4188 = vmatprep.mubr.f32.mxu1 %v6652_v29 }
 0x12e   : > { %4508 = vmatprep.mubr.f32.mxu0 %v5906_v53 }
 0x130   : > { %4189 = vmatmul.mubr.f32.vlgmr.msra.gmra.mrb[16].mxu1 %v6653_v23 }
 0x131   : > { %4509 = vmatmul.mubr.f32.gmra.mrb[16].mxu0 %v5923_v36  ;;  %4191 = vmatprep.mubr.f32.mxu1 %v6654_v35 }
 0x132   : > { %4511 = vmatprep.mubr.f32.mxu0 %v5927_v24 }
 0x134   : > { %4192 = vmatmul.mubr.f32.gmra.mrb[18].mxu1 %v6655_v50 }
 0x135   : > { %4512 = vmatmul.mubr.f32.gmra.mrb[18].mxu0 %v5942_v40  ;;  %4194 = vmatprep.mubr.f32.mxu1 %v6656_v5 }
 0x136   : > { %4514 = vmatprep.mubr.f32.mxu0 %v5946_v60 }
 0x138   : > { %4195 = vmatmul.mubr.f32.gmra.mrb[20].mxu1 %v6658_v38 }
 0x139   : > { %4515 = vmatmul.mubr.f32.gmra.mrb[20].mxu0 %v5961_v55  ;;  %4197 = vmatprep.mubr.f32.mxu1 %v6659_v56 }
 0x13a   : > { %4517 = vmatprep.mubr.f32.mxu0 %v5965_v28 }
 0x13c   : > { %4198 = vmatmul.mubr.f32.gmra.mrb[22].mxu1 %v6661_v59 }
 0x13d   : > { %4518 = vmatmul.mubr.f32.gmra.mrb[22].mxu0 %v6647_v13  ;;  %4200 = vmatprep.mubr.f32.mxu1 %v6662_v44 }
 0x13e   : > { %4520 = vmatprep.mubr.f32.mxu0 %v5984_v54 }
 0x140   : > { %4201 = vmatmul.mubr.f32.gmra.mrb[24].mxu1 %v6664_v14 }
 0x141   : > { %4521 = vmatmul.mubr.f32.gmra.mrb[24].mxu0 %v6005_v47  ;;  %4203 = vmatprep.mubr.f32.mxu1 %v6665_v48 }
 0x142   : > { %4523 = vmatprep.mubr.f32.mxu0 %v6651_v21 }
 0x144   : > { %4204 = vmatmul.mubr.f32.gmra.mrb[26].mxu1 %v6667_v7 }
 0x145   : > { %4524 = vmatmul.mubr.f32.gmra.mrb[26].mxu0 %v6027_v22  ;;  %4206 = vmatprep.mubr.f32.mxu1 %v6673_v9 }
 0x146   : > { %4526 = vmatprep.mubr.f32.mxu0 %v6674_v12 }
 0x148   : > { %4207 = vmatmul.mubr.f32.gmra.mrb[28].mxu1 %v6670_v42 }
 0x149   : > { %4527 = vmatmul.mubr.f32.gmra.mrb[28].mxu0 %v6675_v20  ;;  %4209 = vmatprep.mubr.f32.mxu1 %v6332_v10 }
 0x14a   : > { %4529 = vmatprep.mubr.f32.mxu0 %v2703_v57 }
 0x14c   : > { %4210 = vmatmul.mubr.f32.gmra.mrb[30].mxu1 %v6343_v4 }
 0x14d   : > { %4530 = vmatmul.mubr.f32.gmra.mrb[30].mxu0 %v2705_v39 }
 0x1c3   : > { %v4086_v11 = vpop.f32.mrb[0].mxu1 }
 0x1c4   : > { %v1387_v43 = vpop.f32.mrb[1].mxu1 }
 0x1c7   : > { %v4089_v41 = vpop.f32.mrb[2].mxu1 }
 0x1c8   : > { %v1397_v6 = vpop.f32.mrb[3].mxu1 }
 0x1cb   : > { %v4092_v33 = vpop.f32.mrb[4].mxu1 }
 0x1cc   : > { %v1407_v37 = vpop.f32.mrb[5].mxu1 }
 0x1cf   : > { %v4095_v53 = vpop.f32.mrb[6].mxu1 }
 0x1d0   : > { %v1417_v36 = vpop.f32.mrb[7].mxu1 }
 0x1d3   : > { %v4098_v24 = vpop.f32.mrb[8].mxu1 }
 0x1d4   : > { %v1427_v40 = vpop.f32.mrb[9].mxu1 }
 0x1d7   : > { %v6424_v60 = vpop.f32.mrb[10].mxu1 }
 0x1d8   : > { %v6426_v55 = vpop.f32.mrb[11].mxu1 }
 0x1db   : > { %v6428_v28 = vpop.f32.mrb[12].mxu1 }
 0x1dc   : > { %v6430_v54 = vpop.f32.mrb[13].mxu1 }
 0x1df   : > { %v6432_v61 = vpop.f32.mrb[14].mxu1 }
 0x1e0   : > { %v6434_v47 = vpop.f32.mrb[15].mxu1 }
 0x1e4   : > { %v4486_v22 = vpop.f32.mrb[0].mxu0 }
 0x1e5   : > { %v4836_v42 = vadd.f32 %v4486_v22, %v4086_v11  ;;  %v2791_v18 = vpop.f32.mrb[1].mxu0 }
 0x1e6   : > { %v4837_v34 = vadd.f32 %v2791_v18, %v1387_v43 }
 0x1e7   : > { %2983 = vst [vmem:[%s6440_s8 + $0x8] sm:$0xff] %v4836_v42  ;;  %v3052_v46 = vmul.f32 %v4836_v42, %v4836_v42 }
 0x1e8   : > { %2982 = vst [vmem:[%s6440_s8] sm:$0xff] %v4837_v34  ;;  %v3014_v16 = vadd.f32 %v4837_v34, %v4836_v42  ;;  %v3051_v51 = vmul.f32 %v4837_v34, %v4837_v34  ;;  %v4489_v26 = vpop.f32.mrb[2].mxu0 }
 0x1e9   : > { %v4838_v52 = vadd.f32 %v4489_v26, %v4089_v41  ;;  %v2801_v30 = vpop.f32.mrb[3].mxu0 }
 0x1ea   : > { %v3083_v27 = vadd.f32 %v3052_v46, %v3051_v51  ;;  %v4839_v13 = vadd.f32 %v2801_v30, %v1397_v6 }
 0x1eb   : > { %2985 = vst [vmem:[%s6440_s8 + $0x18] sm:$0xff] %v4838_v52  ;;  %v3054_v5 = vmul.f32 %v4838_v52, %v4838_v52 }
 0x1ec   : > { %2984 = vst [vmem:[%s6440_s8 + $0x10] sm:$0xff] %v4839_v13  ;;  %v3015_v21 = vadd.f32 %v4839_v13, %v3014_v16  ;;  %v3053_v29 = vmul.f32 %v4839_v13, %v4839_v13  ;;  %v4492_v23 = vpop.f32.mrb[4].mxu0 }
 0x1ed   : > { %v4840_v35 = vadd.f32 %v4492_v23, %v4092_v33  ;;  %v2811_v50 = vpop.f32.mrb[5].mxu0 }
 0x1ee   : > { %v3084_v38 = vadd.f32 %v3083_v27, %v3053_v29  ;;  %v4841_v56 = vadd.f32 %v2811_v50, %v1407_v37  ;;  %v3016_v59 = vadd.f32 %v4838_v52, %v3015_v21 }
 0x1ef   : > { %2987 = vst [vmem:[%s6440_s8 + $0x28] sm:$0xff] %v4840_v35  ;;  %v3056_v4 = vmul.f32 %v4840_v35, %v4840_v35 }
 0x1f0   : > { %2986 = vst [vmem:[%s6440_s8 + $0x20] sm:$0xff] %v4841_v56  ;;  %v3017_v44 = vadd.f32 %v4841_v56, %v3016_v59  ;;  %v3055_v14 = vmul.f32 %v4841_v56, %v4841_v56  ;;  %v3085_v48 = vadd.f32 %v3084_v38, %v3054_v5  ;;  %v4495_v7 = vpop.f32.mrb[6].mxu0 }
 0x1f1   : > { %v4842_v10 = vadd.f32 %v4495_v7, %v4095_v53  ;;  %v2821_v45 = vpop.f32.mrb[7].mxu0 }
 0x1f2   : > { %v3086_v63 = vadd.f32 %v3085_v48, %v3055_v14  ;;  %v4843_v49 = vadd.f32 %v2821_v45, %v1417_v36  ;;  %v3018_v8 = vadd.f32 %v4840_v35, %v3017_v44 }
 0x1f3   : > { %2989 = vst [vmem:[%s6440_s8 + $0x38] sm:$0xff] %v4842_v10  ;;  %v3058_v17 = vmul.f32 %v4842_v10, %v4842_v10 }
 0x1f4   : > { %2988 = vst [vmem:[%s6440_s8 + $0x30] sm:$0xff] %v4843_v49  ;;  %v3019_v15 = vadd.f32 %v4843_v49, %v3018_v8  ;;  %v3057_v2 = vmul.f32 %v4843_v49, %v4843_v49  ;;  %v3087_v32 = vadd.f32 %v3086_v63, %v3056_v4  ;;  %v4498_v0 = vpop.f32.mrb[8].mxu0 }
 0x1f5   : > { %v4844_v58 = vadd.f32 %v4498_v0, %v4098_v24  ;;  %v2831_v31 = vpop.f32.mrb[9].mxu0 }
 0x1f6   : > { %v3088_v1 = vadd.f32 %v3087_v32, %v3057_v2  ;;  %v4845_v62 = vadd.f32 %v2831_v31, %v1427_v40  ;;  %v3020_v19 = vadd.f32 %v4842_v10, %v3019_v15 }
 0x1f7   : > { %2991 = vst [vmem:[%s6440_s8 + $0x48] sm:$0xff] %v4844_v58  ;;  %v3060_v39 = vmul.f32 %v4844_v58, %v4844_v58 }
 0x1f8   : > { %2990 = vst [vmem:[%s6440_s8 + $0x40] sm:$0xff] %v4845_v62  ;;  %v3021_v3 = vadd.f32 %v4845_v62, %v3020_v19  ;;  %v3059_v9 = vmul.f32 %v4845_v62, %v4845_v62  ;;  %v3089_v12 = vadd.f32 %v3088_v1, %v3058_v17  ;;  %v4501_v25 = vpop.f32.mrb[10].mxu0 }
 0x1f9   : > { %v4846_v57 = vadd.f32 %v4501_v25, %v6424_v60  ;;  %v2841_v20 = vpop.f32.mrb[11].mxu0 }
 0x1fa   : > { %v3090_v11 = vadd.f32 %v3089_v12, %v3059_v9  ;;  %v4847_v43 = vadd.f32 %v2841_v20, %v6426_v55  ;;  %v3022_v41 = vadd.f32 %v4844_v58, %v3021_v3 }
 0x1fb   : > { %2993 = vst [vmem:[%s6440_s8 + $0x58] sm:$0xff] %v4846_v57  ;;  %v3062_v40 = vmul.f32 %v4846_v57, %v4846_v57 }
 0x1fc   : > { %2992 = vst [vmem:[%s6440_s8 + $0x50] sm:$0xff] %v4847_v43  ;;  %v3023_v6 = vadd.f32 %v4847_v43, %v3022_v41  ;;  %v3061_v33 = vmul.f32 %v4847_v43, %v4847_v43  ;;  %v3091_v37 = vadd.f32 %v3090_v11, %v3060_v39  ;;  %v4504_v53 = vpop.f32.mrb[12].mxu0 }
 0x1fd   : > { %v4848_v36 = vadd.f32 %v4504_v53, %v6428_v28  ;;  %v2851_v24 = vpop.f32.mrb[13].mxu0 }
 0x1fe   : > { %v3092_v60 = vadd.f32 %v3091_v37, %v3061_v33  ;;  %v4849_v22 = vadd.f32 %v2851_v24, %v6430_v54  ;;  %v3024_v42 = vadd.f32 %v4846_v57, %v3023_v6 }
 0x1ff   : > { %2995 = vst [vmem:[%s6440_s8 + $0x68] sm:$0xff] %v4848_v36  ;;  %v3064_v26 = vmul.f32 %v4848_v36, %v4848_v36 }
 0x200   : > { %2994 = vst [vmem:[%s6440_s8 + $0x60] sm:$0xff] %v4849_v22  ;;  %v3025_v55 = vadd.f32 %v4849_v22, %v3024_v42  ;;  %v3063_v18 = vmul.f32 %v4849_v22, %v4849_v22  ;;  %v3093_v34 = vadd.f32 %v3092_v60, %v3062_v40  ;;  %v4507_v46 = vpop.f32.mrb[14].mxu0 }
 0x201   : > { %v4850_v16 = vadd.f32 %v4507_v46, %v6432_v61  ;;  %v2861_v51 = vpop.f32.mrb[15].mxu0 }
 0x202   : > { %v3094_v52 = vadd.f32 %v3093_v34, %v3063_v18  ;;  %v4851_v28 = vadd.f32 %v2861_v51, %v6434_v47  ;;  %v3026_v30 = vadd.f32 %v4848_v36, %v3025_v55 }
 0x203   : > { %2997 = vst [vmem:[%s6440_s8 + $0x78] sm:$0xff] %v4850_v16  ;;  %v4190_v54 = vpop.f32.mrb[16].mxu1  ;;  %v3066_v5 = vmul.f32 %v4850_v16, %v4850_v16 }
 0x204   : > { %2996 = vst [vmem:[%s6440_s8 + $0x70] sm:$0xff] %v4851_v28  ;;  %v3027_v27 = vadd.f32 %v4851_v28, %v3026_v30  ;;  %v3065_v13 = vmul.f32 %v4851_v28, %v4851_v28  ;;  %v3095_v21 = vadd.f32 %v3094_v52, %v3064_v26  ;;  %v4510_v29 = vpop.f32.mrb[16].mxu0  ;;  %v1751_v23 = vpop.f32.mrb[17].mxu1 }
 0x205   : > { %v4852_v35 = vadd.f32 %v4510_v29, %v4190_v54  ;;  %v2871_v50 = vpop.f32.mrb[17].mxu0 }
 0x206   : > { %v3096_v61 = vadd.f32 %v3095_v21, %v3065_v13  ;;  %v4853_v38 = vadd.f32 %v2871_v50, %v1751_v23  ;;  %v3028_v56 = vadd.f32 %v4850_v16, %v3027_v27 }
 0x207   : > { %2999 = vst [vmem:[%s6440_s8 + $0x88] sm:$0xff] %v4852_v35  ;;  %v4193_v47 = vpop.f32.mrb[18].mxu1  ;;  %v3068_v4 = vmul.f32 %v4852_v35, %v4852_v35 }
 0x208   : > { %2998 = vst [vmem:[%s6440_s8 + $0x80] sm:$0xff] %v4853_v38  ;;  %v3029_v59 = vadd.f32 %v4853_v38, %v3028_v56  ;;  %v3067_v44 = vmul.f32 %v4853_v38, %v4853_v38  ;;  %v3097_v14 = vadd.f32 %v3096_v61, %v3066_v5  ;;  %v4513_v48 = vpop.f32.mrb[18].mxu0  ;;  %v1761_v7 = vpop.f32.mrb[19].mxu1 }
 0x209   : > { %v4854_v10 = vadd.f32 %v4513_v48, %v4193_v47  ;;  %v2881_v45 = vpop.f32.mrb[19].mxu0 }
 0x20a   : > { %v3098_v63 = vadd.f32 %v3097_v14, %v3067_v44  ;;  %v4855_v49 = vadd.f32 %v2881_v45, %v1761_v7  ;;  %v3030_v8 = vadd.f32 %v4852_v35, %v3029_v59 }
 0x20b   : > { %3001 = vst [vmem:[%s6440_s8 + $0x98] sm:$0xff] %v4854_v10  ;;  %v4196_v15 = vpop.f32.mrb[20].mxu1  ;;  %v3070_v62 = vmul.f32 %v4854_v10, %v4854_v10 }
 0x20c   : > { %3000 = vst [vmem:[%s6440_s8 + $0x90] sm:$0xff] %v4855_v49  ;;  %v3031_v2 = vadd.f32 %v4855_v49, %v3030_v8  ;;  %v3069_v32 = vmul.f32 %v4855_v49, %v4855_v49  ;;  %v3099_v0 = vadd.f32 %v3098_v63, %v3068_v4  ;;  %v4516_v58 = vpop.f32.mrb[20].mxu0  ;;  %v1771_v31 = vpop.f32.mrb[21].mxu1 }
 0x20d   : > { %v4856_v17 = vadd.f32 %v4516_v58, %v4196_v15  ;;  %v2891_v1 = vpop.f32.mrb[21].mxu0 }
 0x20e   : > { %v3100_v19 = vadd.f32 %v3099_v0, %v3069_v32  ;;  %v4857_v3 = vadd.f32 %v2891_v1, %v1771_v31  ;;  %v3032_v9 = vadd.f32 %v4854_v10, %v3031_v2 }
 0x20f   : > { %3003 = vst [vmem:[%s6440_s8 + $0xa8] sm:$0xff] %v4856_v17  ;;  %v4199_v12 = vpop.f32.mrb[22].mxu1  ;;  %v3072_v6 = vmul.f32 %v4856_v17, %v4856_v17 }
 0x210   : > { %3002 = vst [vmem:[%s6440_s8 + $0xa0] sm:$0xff] %v4857_v3  ;;  %v3033_v25 = vadd.f32 %v4857_v3, %v3032_v9  ;;  %v3071_v57 = vmul.f32 %v4857_v3, %v4857_v3  ;;  %v3101_v20 = vadd.f32 %v3100_v19, %v3070_v62  ;;  %v4519_v39 = vpop.f32.mrb[22].mxu0  ;;  %v1781_v11 = vpop.f32.mrb[23].mxu1 }
 0x211   : > { %v4858_v43 = vadd.f32 %v4519_v39, %v4199_v12  ;;  %v2901_v41 = vpop.f32.mrb[23].mxu0 }
 0x212   : > { %v3102_v33 = vadd.f32 %v3101_v20, %v3071_v57  ;;  %v4859_v37 = vadd.f32 %v2901_v41, %v1781_v11  ;;  %v3034_v53 = vadd.f32 %v4856_v17, %v3033_v25 }
 0x213   : > { %3005 = vst [vmem:[%s6440_s8 + $0xb8] sm:$0xff] %v4858_v43  ;;  %v4202_v36 = vpop.f32.mrb[24].mxu1  ;;  %v3074_v34 = vmul.f32 %v4858_v43, %v4858_v43 }
 0x214   : > { %3004 = vst [vmem:[%s6440_s8 + $0xb0] sm:$0xff] %v4859_v37  ;;  %v3035_v24 = vadd.f32 %v4859_v37, %v3034_v53  ;;  %v3073_v40 = vmul.f32 %v4859_v37, %v4859_v37  ;;  %v3103_v60 = vadd.f32 %v3102_v33, %v3072_v6  ;;  %v4522_v22 = vpop.f32.mrb[24].mxu0  ;;  %v1791_v42 = vpop.f32.mrb[25].mxu1 }
 0x215   : > { %v4860_v55 = vadd.f32 %v4522_v22, %v4202_v36  ;;  %v2911_v18 = vpop.f32.mrb[25].mxu0 }
 0x216   : > { %v3104_v46 = vadd.f32 %v3103_v60, %v3073_v40  ;;  %v4861_v16 = vadd.f32 %v2911_v18, %v1791_v42  ;;  %v3036_v51 = vadd.f32 %v4858_v43, %v3035_v24 }
 0x217   : > { %3007 = vst [vmem:[%s6440_s8 + $0xc8] sm:$0xff] %v4860_v55  ;;  %v4205_v26 = vpop.f32.mrb[26].mxu1  ;;  %v3076_v29 = vmul.f32 %v4860_v55, %v4860_v55 }
 0x218   : > { %3006 = vst [vmem:[%s6440_s8 + $0xc0] sm:$0xff] %v4861_v16  ;;  %v3037_v52 = vadd.f32 %v4861_v16, %v3036_v51  ;;  %v3075_v28 = vmul.f32 %v4861_v16, %v4861_v16  ;;  %v3105_v30 = vadd.f32 %v3104_v46, %v3074_v34  ;;  %v4525_v54 = vpop.f32.mrb[26].mxu0  ;;  %v1801_v27 = vpop.f32.mrb[27].mxu1 }
 0x219   : > { %v4862_v13 = vadd.f32 %v4525_v54, %v4205_v26  ;;  %v2921_v21 = vpop.f32.mrb[27].mxu0 }
 0x21a   : > { %v3106_v23 = vadd.f32 %v3105_v30, %v3075_v28  ;;  %v4863_v35 = vadd.f32 %v2921_v21, %v1801_v27  ;;  %v3038_v50 = vadd.f32 %v4860_v55, %v3037_v52 }
 0x21b   : > { %3009 = vst [vmem:[%s6440_s8 + $0xd8] sm:$0xff] %v4862_v13  ;;  %v4208_v5 = vpop.f32.mrb[28].mxu1  ;;  %v3078_v48 = vmul.f32 %v4862_v13, %v4862_v13 }
 0x21c   : > { %3008 = vst [vmem:[%s6440_s8 + $0xd0] sm:$0xff] %v4863_v35  ;;  %v3039_v61 = vadd.f32 %v4863_v35, %v3038_v50  ;;  %v3077_v38 = vmul.f32 %v4863_v35, %v4863_v35  ;;  %v3107_v56 = vadd.f32 %v3106_v23, %v3076_v29  ;;  %v4528_v47 = vpop.f32.mrb[28].mxu0  ;;  %v1811_v59 = vpop.f32.mrb[29].mxu1 }
 0x21d   : > { %v4864_v44 = vadd.f32 %v4528_v47, %v4208_v5  ;;  %v2931_v14 = vpop.f32.mrb[29].mxu0 }
 0x21e   : > { %v3108_v7 = vadd.f32 %v3107_v56, %v3077_v38  ;;  %v4865_v10 = vadd.f32 %v2931_v14, %v1811_v59  ;;  %v3040_v45 = vadd.f32 %v4862_v13, %v3039_v61 }
 0x21f   : > { %3011 = vst [vmem:[%s6440_s8 + $0xe8] sm:$0xff] %v4864_v44  ;;  %v4211_v4 = vpop.f32.mrb[30].mxu1  ;;  %v3080_v58 = vmul.f32 %v4864_v44, %v4864_v44 }
 0x220   : > { %3010 = vst [vmem:[%s6440_s8 + $0xe0] sm:$0xff] %v4865_v10  ;;  %v3041_v63 = vadd.f32 %v4865_v10, %v3040_v45  ;;  %v3079_v49 = vmul.f32 %v4865_v10, %v4865_v10  ;;  %v3109_v8 = vadd.f32 %v3108_v7, %v3078_v48  ;;  %v4531_v15 = vpop.f32.mrb[30].mxu0  ;;  %v1821_v2 = vpop.f32.mrb[31].mxu1 }
 0x221   : > { %v4866_v32 = vadd.f32 %v4531_v15, %v4211_v4  ;;  %v2941_v0 = vpop.f32.mrb[31].mxu0 }
 0x222   : > { %v3110_v31 = vadd.f32 %v3109_v8, %v3079_v49  ;;  %v4867_v17 = vadd.f32 %v2941_v0, %v1821_v2  ;;  %v3042_v1 = vadd.f32 %v4864_v44, %v3041_v63 }
 0x223   : > { %3013 = vst [vmem:[%s6440_s8 + $0xf8] sm:$0xff] %v4866_v32  ;;  %v3082_v9 = vmul.f32 %v4866_v32, %v4866_v32 }
 0x224   : > { %3012 = vst [vmem:[%s6440_s8 + $0xf0] sm:$0xff] %v4867_v17  ;;  %v3043_v62 = vadd.f32 %v4867_v17, %v3042_v1  ;;  %v3081_v19 = vmul.f32 %v4867_v17, %v4867_v17  ;;  %v3111_v3 = vadd.f32 %v3110_v31, %v3080_v58 }
 0x226   : > { %v3044_v12 = vadd.f32 %v4866_v32, %v3043_v62  ;;  %v3112_v25 = vadd.f32 %v3111_v3, %v3081_v19 }
 0x228   : > { %v3045_v57 = vrot.slane %v3044_v12, 4  ;;  %v3113_v20 = vadd.f32 %v3112_v25, %v3082_v9 }
 0x22a   : > { %v3046_v39 = vadd.f32 %v3045_v57, %v3044_v12  ;;  %v3114_v11 = vrot.slane %v3113_v20, 4 }
 0x22c   : > { %v3047_v43 = vrot.slane %v3046_v39, 2  ;;  %v3115_v41 = vadd.f32 %v3114_v11, %v3113_v20 }
 0x22e   : > { %v3048_v6 = vadd.f32 %v3047_v43, %v3046_v39  ;;  %v3116_v33 = vrot.slane %v3115_v41, 2 }
 0x230   : > { %v3049_v37 = vrot.slane %v3048_v6, 1  ;;  %v3117_v53 = vadd.f32 %v3116_v33, %v3115_v41 }
 0x232   : > { %v3050_v36 = vadd.f32 %v3049_v37, %v3048_v6  ;;  %v3118_v24 = vrot.slane %v3117_v53, 1 }
 0x234   : > { %v3119_v40 = vadd.f32 %v3118_v24, %v3117_v53  ;;  %3120 = vst [vmem:[%s214_s12] sm:$0xff] %v3050_v36 }
 0x236   : > { %3121 = vst [vmem:[%s218_s17] sm:$0xff] %v3119_v40 }
 0x237 PF: > { %s15_s15 = sadd.s32 1, %s5134_s15  }
 0x238   : > { %p12_p4 = scmp.ge.s32.totalorder %s15_s15, 4  }
 0x23a   :  { %14 = sbr.rel (!%p12_p4) target bundleno = 1 (0x1), region = 90 }

// kernel: da_head_forward.12
= control target key start
LH: loop header
LB: loop body
LE: loop exit
PB: predicated region body
PF: predicated region fallthrough
CT: control target
= control target key end

     0   :  { %s1167_s12 = smov 0   ;;  %s1657_s0 = inlined_call_operand.vmem [shape: f32[512,128], index: 0, kind: input, shape index: {}]   ;;  %s1658_s1 = inlined_call_operand.vmem [shape: f32[128,384], index: 1, kind: input, shape index: {}]   ;;  %s1659_s2 = inlined_call_operand.vmem [shape: f32[1,384], index: 2, kind: input, shape index: {}]   ;;  %s1660_s3 = inlined_call_operand.vmem [shape: f32[512,384], index: 3, kind: output, shape index: {}]  }
   0x1 LB: > { %s909_s13 = sadd.s32 4294967295, %s1144_s12   ;;  %p913_p0 = scmp.ge.s32.totalorder %s1144_s12, 1  ;;  %s1144_s12 = sphi %s1167_s12, %s13_s12  }
   0x2   : > { %p138_p1 = scmp.lt.s32.totalorder %s1144_s12, 3 }
   0x4   : > { %p139_p2 = pnand %p913_p0, %p138_p1 }
   0x5   : > { %v209_v0 = vld [vmem:[%s1658_s1 + $0x8] sm:$0xff] (!%p139_p2)  ;;  %v212_v1 = vld [vmem:[%s1658_s1 + $0x20] sm:$0xff] (!%p139_p2)  ;;  %v211_v4 = vld [vmem:[%s1658_s1 + $0x18] sm:$0xff] (!%p139_p2)  ;;  %v1146_v7 = vmov (!%p139_p2), 0.0   ;;  %s914_s6 = sshll.u32 (!%p139_p2), %s909_s13, 5 }
   0x6   : > { %142 = sbr.rel (%p139_p2) target bundleno = 348 (0x15c), region = 32  ;;  %v208_v2 = vld [vmem:[%s1658_s1] sm:$0xff] (!%p139_p2)  ;;  %v1048_v3 = vpack.c.bf16 (!%p139_p2), %v212_v1, %v209_v0  ;;  %v215_v5 = vld [vmem:[%s1658_s1 + $0x38] sm:$0xff] (!%p139_p2)  ;;  %v218_v6 = vld [vmem:[%s1658_s1 + $0x50] sm:$0xff] (!%p139_p2)  ;;  %337 = vmatprep.mubr.f32.mxu0 (!%p139_p2), %v1146_v7  ;;  %481 = vmatprep.mubr.f32.mxu1 (!%p139_p2), %v1146_v7  ;;  %p164_p3 = scmp.lt.s32.totalorder (!%p139_p2), %s914_s6, 63 }
   0x7   : > { %v1050_v8 = vpack.c.bf16 (!%p139_p2), %v211_v4, %v208_v2  ;;  %v1052_v9 = vpack.c.bf16 (!%p139_p2), %v218_v6, %v215_v5  ;;  %v214_v10 = vld [vmem:[%s1658_s1 + $0x30] sm:$0xff] (!%p139_p2)  ;;  %v217_v11 = vld [vmem:[%s1658_s1 + $0x48] sm:$0xff] (!%p139_p2)  ;;  %v224_v13 = vld [vmem:[%s1658_s1 + $0x80] sm:$0xff] (!%p139_p2) }
   0x8   : > { %v221_v12 = vld [vmem:[%s1658_s1 + $0x68] sm:$0xff] (!%p139_p2)  ;;  %1049 = vmatprep.subr.bf16.mxu0 (!%p139_p2), %v1048_v3  ;;  %1112 = vmatprep.subr.bf16.mxu1 (!%p139_p2), %v1048_v3  ;;  %v1054_v14 = vpack.c.bf16 (!%p139_p2), %v217_v11, %v214_v10  ;;  %v220_v16 = vld [vmem:[%s1658_s1 + $0x60] sm:$0xff] (!%p139_p2)  ;;  %v223_v17 = vld [vmem:[%s1658_s1 + $0x78] sm:$0xff] (!%p139_p2) }
   0x9   : > { %1051 = vmatpush1.bf16.msra.mxu0 (!%p139_p2), %v1050_v8  ;;  %1120 = vmatpush1.bf16.msra.mxu1 (!%p139_p2), %v1050_v8  ;;  %v1056_v15 = vpack.c.bf16 (!%p139_p2), %v224_v13, %v221_v12  ;;  %v227_v18 = vld [vmem:[%s1658_s1 + $0x98] sm:$0xff] (!%p139_p2)  ;;  %v230_v19 = vld [vmem:[%s1658_s1 + $0xb0] sm:$0xff] (!%p139_p2)  ;;  %v1058_v20 = vpack.c.bf16 (!%p139_p2), %v223_v17, %v220_v16  ;;  %v229_v23 = vld [vmem:[%s1658_s1 + $0xa8] sm:$0xff] (!%p139_p2) }
   0xa   : > { %1053 = vmatprep.subr.bf16.mxu0 (!%p139_p2), %v1052_v9  ;;  %1113 = vmatprep.subr.bf16.mxu1 (!%p139_p2), %v1052_v9  ;;  %v1060_v21 = vpack.c.bf16 (!%p139_p2), %v230_v19, %v227_v18  ;;  %v226_v22 = vld [vmem:[%s1658_s1 + $0x90] sm:$0xff] (!%p139_p2)  ;;  %v233_v24 = vld [vmem:[%s1658_s1 + $0xc8] sm:$0xff] (!%p139_p2)  ;;  %v236_v25 = vld [vmem:[%s1658_s1 + $0xe0] sm:$0xff] (!%p139_p2) }
   0xb   : > { %v1062_v26 = vpack.c.bf16 (!%p139_p2), %v229_v23, %v226_v22  ;;  %v1064_v27 = vpack.c.bf16 (!%p139_p2), %v236_v25, %v233_v24  ;;  %v232_v28 = vld [vmem:[%s1658_s1 + $0xc0] sm:$0xff] (!%p139_p2)  ;;  %v235_v29 = vld [vmem:[%s1658_s1 + $0xd8] sm:$0xff] (!%p139_p2)  ;;  %v242_v31 = vld [vmem:[%s1658_s1 + $0x110] sm:$0xff] (!%p139_p2) }
   0xc   : > { %v239_v30 = vld [vmem:[%s1658_s1 + $0xf8] sm:$0xff] (!%p139_p2)  ;;  %v1066_v32 = vpack.c.bf16 (!%p139_p2), %v235_v29, %v232_v28  ;;  %v238_v34 = vld [vmem:[%s1658_s1 + $0xf0] sm:$0xff] (!%p139_p2)  ;;  %v241_v35 = vld [vmem:[%s1658_s1 + $0x108] sm:$0xff] (!%p139_p2) }
   0xd   : > { %1055 = vmatpush1.bf16.msra.mxu0 %v1054_v14  ;;  %1121 = vmatpush1.bf16.msra.mxu1 %v1054_v14  ;;  %v1068_v33 = vpack.c.bf16 %v242_v31, %v239_v30  ;;  %v245_v36 = vld [vmem:[%s1658_s1 + $0x128] sm:$0xff]  ;;  %v248_v37 = vld [vmem:[%s1658_s1 + $0x140] sm:$0xff]  ;;  %v1070_v38 = vpack.c.bf16 %v241_v35, %v238_v34  ;;  %v247_v41 = vld [vmem:[%s1658_s1 + $0x138] sm:$0xff]  ;;  %s1662_s6 = smov (!%p164_p3, %s914_s6), 63 }
   0xe   : > { %1057 = vmatprep.subr.bf16.mxu0 %v1056_v15  ;;  %1114 = vmatprep.subr.bf16.mxu1 %v1056_v15  ;;  %v1072_v39 = vpack.c.bf16 %v248_v37, %v245_v36  ;;  %v244_v40 = vld [vmem:[%s1658_s1 + $0x120] sm:$0xff]  ;;  %v251_v42 = vld [vmem:[%s1658_s1 + $0x158] sm:$0xff]  ;;  %v254_v43 = vld [vmem:[%s1658_s1 + $0x170] sm:$0xff]  ;;  %s915_s28 = sshll.u32 %s1662_s6, 3  ;;  %s1128_s16 = smul.u32 24, %s1662_s6 }
   0xf   : > { %v1074_v44 = vpack.c.bf16 %v247_v41, %v244_v40  ;;  %v1076_v45 = vpack.c.bf16 %v254_v43, %v251_v42  ;;  %v250_v46 = vld [vmem:[%s1658_s1 + $0x150] sm:$0xff]  ;;  %v253_v47 = vld [vmem:[%s1658_s1 + $0x168] sm:$0xff]  ;;  %s1287_s9 = scalar_lea.vmem %s1657_s0, %s915_s28  ;;  %v216_v52 = vld [vmem:[%s1658_s1 + $0x40] sm:$0xff]  ;;  %v258_v42 = vlaneseq }
  0x10   : > { %v210_v48 = vld [vmem:[%s1658_s1 + $0x10] sm:$0xff]  ;;  %v213_v49 = vld [vmem:[%s1658_s1 + $0x28] sm:$0xff]  ;;  %v1078_v50 = vpack.c.bf16 %v253_v47, %v250_v46  ;;  %v219_v53 = vld [vmem:[%s1658_s1 + $0x58] sm:$0xff]  ;;  %s1456_s19 = scalar_lea.vmem %s1660_s3, %s1128_s16 }
  0x11   : > { %1059 = vmatpush1.bf16.msra.mxu0 %v1058_v20  ;;  %1122 = vmatpush1.bf16.msra.mxu1 %v1058_v20  ;;  %v1080_v51 = vpack.c.bf16 %v213_v49, %v210_v48  ;;  %v1296_v54 = vld [vmem:[%s1287_s9] sm:$0xff]  ;;  %v1084_v56 = vpack.c.bf16 %v219_v53, %v216_v52  ;;  %v222_v57 = vld [vmem:[%s1658_s1 + $0x70] sm:$0xff]  ;;  %v225_v58 = vld [vmem:[%s1658_s1 + $0x88] sm:$0xff]  ;;  %v1437_v43 = vshrl.u32 %v258_v42, 7 }
  0x12   : > { %1061 = vmatprep.subr.bf16.mxu0 %v1060_v21  ;;  %1115 = vmatprep.subr.bf16.mxu1 %v1060_v21  ;;  %v1299_v55 = vld [vmem:[%s1287_s9 + $0xc0] sm:$0xff]  ;;  %v1311_v59 = vld [vmem:[%s1287_s9 + $0x8] sm:$0xff]  ;;  %v1088_v61 = vpack.c.bf16 %v225_v58, %v222_v57  ;;  %v231_v63 = vld [vmem:[%s1658_s1 + $0xb8] sm:$0xff] }
  0x13   : > { %v1314_v60 = vld [vmem:[%s1287_s9 + $0xc8] sm:$0xff]  ;;  %v228_v62 = vld [vmem:[%s1658_s1 + $0xa0] sm:$0xff]  ;;  %v1327_v0 = vld [vmem:[%s1287_s9 + $0x10] sm:$0xff]  ;;  %v264_v46 = vsub.s32 1, %v1437_v43 }
  0x14   : > { %v1330_v1 = vld [vmem:[%s1287_s9 + $0xd0] sm:$0xff]  ;;  %v1092_v2 = vpack.c.bf16 %v231_v63, %v228_v62  ;;  %v237_v4 = vld [vmem:[%s1658_s1 + $0xe8] sm:$0xff]  ;;  %v179_v5 = vld [vmem:[%s1287_s9 + $0x18] sm:$0xff] }
  0x15   : > { %1063 = vmatpush1.bf16.msra.mxu0 %v1062_v26  ;;  %1123 = vmatpush1.bf16.msra.mxu1 %v1062_v26  ;;  %v234_v3 = vld [vmem:[%s1658_s1 + $0xd0] sm:$0xff]  ;;  %v1344_v6 = vld [vmem:[%s1287_s9 + $0xd8] sm:$0xff]  ;;  %v240_v9 = vld [vmem:[%s1658_s1 + $0x100] sm:$0xff] }
  0x16   : > { %1065 = vmatprep.subr.bf16.mxu0 %v1064_v27  ;;  %1116 = vmatprep.subr.bf16.mxu1 %v1064_v27  ;;  %v1096_v8 = vpack.c.bf16 %v237_v4, %v234_v3  ;;  %v243_v10 = vld [vmem:[%s1658_s1 + $0x118] sm:$0xff]  ;;  %v180_v11 = vld [vmem:[%s1287_s9 + $0x20] sm:$0xff]  ;;  %v246_v14 = vld [vmem:[%s1658_s1 + $0x130] sm:$0xff] }
  0x17   : > { %v1357_v12 = vld [vmem:[%s1287_s9 + $0xe0] sm:$0xff]  ;;  %v1100_v13 = vpack.c.bf16 %v243_v10, %v240_v9  ;;  %v249_v15 = vld [vmem:[%s1658_s1 + $0x148] sm:$0xff]  ;;  %v255_v20 = vld [vmem:[%s1658_s1 + $0x178] sm:$0xff] }
  0x18   : > { %v181_v16 = vld [vmem:[%s1287_s9 + $0x28] sm:$0xff]  ;;  %v1104_v18 = vpack.c.bf16 %v249_v15, %v246_v14  ;;  %v252_v19 = vld [vmem:[%s1658_s1 + $0x160] sm:$0xff]  ;;  %v182_v21 = vld [vmem:[%s1287_s9 + $0x30] sm:$0xff] }
  0x19   : > { %1067 = vmatpush1.bf16.msra.mxu0 %v1066_v32  ;;  %1124 = vmatpush1.bf16.msra.mxu1 %v1066_v32  ;;  %v1370_v17 = vld [vmem:[%s1287_s9 + $0xe8] sm:$0xff]  ;;  %v1383_v22 = vld [vmem:[%s1287_s9 + $0xf0] sm:$0xff]  ;;  %v1108_v23 = vpack.c.bf16 %v255_v20, %v252_v19  ;;  %v183_v24 = vld [vmem:[%s1287_s9 + $0x38] sm:$0xff] }
  0x1a   : > { %1069 = vmatprep.subr.bf16.mxu0 %v1068_v33  ;;  %1117 = vmatprep.subr.bf16.mxu1 %v1068_v33  ;;  %v1390_v25 = vld [vmem:[%s1287_s9 + $0xf8] sm:$0xff]  ;;  %v184_v26 = vld [vmem:[%s1287_s9 + $0x40] sm:$0xff]  ;;  %v185_v27 = vld [vmem:[%s1287_s9 + $0x48] sm:$0xff] }
  0x1b   : > { %v186_v28 = vld [vmem:[%s1287_s9 + $0x50] sm:$0xff]  ;;  %v187_v29 = vld [vmem:[%s1287_s9 + $0x58] sm:$0xff]  ;;  %v188_v30 = vld [vmem:[%s1287_s9 + $0x60] sm:$0xff] }
  0x1c   : > { %v189_v31 = vld [vmem:[%s1287_s9 + $0x68] sm:$0xff]  ;;  %v190_v32 = vld [vmem:[%s1287_s9 + $0x70] sm:$0xff]  ;;  %v191_v33 = vld [vmem:[%s1287_s9 + $0x78] sm:$0xff] }
  0x1d   : > { %1071 = vmatpush1.bf16.msra.mxu0 %v1070_v38  ;;  %1125 = vmatpush1.bf16.msra.mxu1 %v1070_v38  ;;  %v192_v34 = vld [vmem:[%s1287_s9 + $0x80] sm:$0xff]  ;;  %v193_v35 = vld [vmem:[%s1287_s9 + $0x88] sm:$0xff]  ;;  %v194_v36 = vld [vmem:[%s1287_s9 + $0x90] sm:$0xff] }
  0x1e   : > { %1073 = vmatprep.subr.bf16.mxu0 %v1072_v39  ;;  %1118 = vmatprep.subr.bf16.mxu1 %v1072_v39  ;;  %v195_v37 = vld [vmem:[%s1287_s9 + $0x98] sm:$0xff]  ;;  %v196_v38 = vld [vmem:[%s1287_s9 + $0xa0] sm:$0xff]  ;;  %v197_v39 = vld [vmem:[%s1287_s9 + $0xa8] sm:$0xff] }
  0x1f   : > { %v198_v40 = vld [vmem:[%s1287_s9 + $0xb0] sm:$0xff]  ;;  %v199_v41 = vld [vmem:[%s1287_s9 + $0xb8] sm:$0xff] }
  0x21   : > { %1075 = vmatpush1.bf16.msra.mxu0 %v1074_v44  ;;  %1126 = vmatpush1.bf16.msra.mxu1 %v1074_v44  ;;  %v260_v44 = vsub.s32 0, %v1437_v43 }
  0x22   : > { %1077 = vmatprep.subr.bf16.mxu0 %v1076_v45  ;;  %1119 = vmatprep.subr.bf16.mxu1 %v1076_v45  ;;  %v1443_v45 = vld [vmem:[%s1659_s2] sm:$0x7] }
  0x23   : > { %v1451_v47 = vrot.slane %v1443_v45, %v264_v46 }
  0x25   : > { %1079 = vmatpush1.bf16.msra.mxu0 %v1078_v50  ;;  %1127 = vmatpush1.bf16.msra.mxu1 %v1078_v50 }
  0x26   : > { %1081 = vmatprep.subr.bf16.mxu1 %v1080_v51 }
  0x28   : > { %338 = vmatmul.mubr.f32.vlgmr.msra.gmra.mrb[0].mxu0 %v1296_v54  ;;  %482 = vmatmul.mubr.f32.vlgmr.msra.gmra.mrb[0].mxu1 %v1299_v55 }
  0x29   : > { %1083 = vmatpush3.bf16.msra.mxu1 %v1080_v51  ;;  %343 = vmatprep.mubr.f32.mxu0 %v1146_v7 }
  0x2a   : > { %487 = vmatprep.mubr.f32.mxu1 %v1146_v7  ;;  %1085 = vmatprep.subr.bf16.mxu1 %v1084_v56 }
  0x2c   : > { %344 = vmatmul.mubr.f32.gmra.mrb[2].mxu0 %v1311_v59  ;;  %488 = vmatmul.mubr.f32.gmra.mrb[2].mxu1 %v1314_v60 }
  0x2d   : > { %1087 = vmatpush3.bf16.msra.mxu1 %v1084_v56  ;;  %349 = vmatprep.mubr.f32.mxu0 %v1146_v7 }
  0x2e   : > { %493 = vmatprep.mubr.f32.mxu1 %v1146_v7  ;;  %1089 = vmatprep.subr.bf16.mxu1 %v1088_v61 }
  0x30   : > { %350 = vmatmul.mubr.f32.gmra.mrb[4].mxu0 %v1327_v0  ;;  %494 = vmatmul.mubr.f32.gmra.mrb[4].mxu1 %v1330_v1 }
  0x31   : > { %1091 = vmatpush3.bf16.msra.mxu1 %v1088_v61  ;;  %355 = vmatprep.mubr.f32.mxu0 %v1146_v7 }
  0x32   : > { %499 = vmatprep.mubr.f32.mxu1 %v1146_v7  ;;  %1093 = vmatprep.subr.bf16.mxu1 %v1092_v2 }
  0x34   : > { %356 = vmatmul.mubr.f32.gmra.mrb[6].mxu0 %v179_v5  ;;  %500 = vmatmul.mubr.f32.gmra.mrb[6].mxu1 %v1344_v6 }
  0x35   : > { %1095 = vmatpush3.bf16.msra.mxu1 %v1092_v2  ;;  %361 = vmatprep.mubr.f32.mxu0 %v1146_v7 }
  0x36   : > { %505 = vmatprep.mubr.f32.mxu1 %v1146_v7  ;;  %1097 = vmatprep.subr.bf16.mxu1 %v1096_v8 }
  0x38   : > { %362 = vmatmul.mubr.f32.gmra.mrb[8].mxu0 %v180_v11  ;;  %506 = vmatmul.mubr.f32.gmra.mrb[8].mxu1 %v1357_v12 }
  0x39   : > { %1099 = vmatpush3.bf16.msra.mxu1 %v1096_v8  ;;  %367 = vmatprep.mubr.f32.mxu0 %v1146_v7 }
  0x3a   : > { %511 = vmatprep.mubr.f32.mxu1 %v1146_v7  ;;  %1101 = vmatprep.subr.bf16.mxu1 %v1100_v13 }
  0x3c   : > { %368 = vmatmul.mubr.f32.gmra.mrb[10].mxu0 %v181_v16  ;;  %512 = vmatmul.mubr.f32.gmra.mrb[10].mxu1 %v1370_v17 }
  0x3d   : > { %1103 = vmatpush3.bf16.msra.mxu1 %v1100_v13  ;;  %373 = vmatprep.mubr.f32.mxu0 %v1146_v7 }
  0x3e   : > { %517 = vmatprep.mubr.f32.mxu1 %v1146_v7  ;;  %1105 = vmatprep.subr.bf16.mxu1 %v1104_v18 }
  0x40   : > { %374 = vmatmul.mubr.f32.gmra.mrb[12].mxu0 %v182_v21  ;;  %518 = vmatmul.mubr.f32.gmra.mrb[12].mxu1 %v1383_v22 }
  0x41   : > { %1107 = vmatpush3.bf16.msra.mxu1 %v1104_v18  ;;  %379 = vmatprep.mubr.f32.mxu0 %v1146_v7 }
  0x42   : > { %523 = vmatprep.mubr.f32.mxu1 %v1146_v7  ;;  %1109 = vmatprep.subr.bf16.mxu1 %v1108_v23 }
  0x44   : > { %380 = vmatmul.mubr.f32.gmra.mrb[14].mxu0 %v183_v24  ;;  %524 = vmatmul.mubr.f32.gmra.mrb[14].mxu1 %v1390_v25 }
  0x45   : > { %1111 = vmatpush3.bf16.msra.mxu1 %v1108_v23  ;;  %385 = vmatprep.mubr.f32.mxu0 %v1146_v7 }
  0x46   : > { %1000 = vmatprep.mubr.f32.mxu1 %v1296_v54 }
  0x48   : > { %386 = vmatmul.mubr.f32.gmra.mrb[16].mxu0 %v184_v26  ;;  %1001 = vmatmul.mubr.f32.vlgmr.msra.gmra.mrb[16].mxu1 %v1311_v59 }
  0x49   : > { %391 = vmatprep.mubr.f32.mxu0 %v1146_v7  ;;  %1003 = vmatprep.mubr.f32.mxu1 %v1327_v0 }
  0x4c   : > { %392 = vmatmul.mubr.f32.gmra.mrb[18].mxu0 %v185_v27  ;;  %1004 = vmatmul.mubr.f32.gmra.mrb[18].mxu1 %v179_v5 }
  0x4d   : > { %397 = vmatprep.mubr.f32.mxu0 %v1146_v7  ;;  %1006 = vmatprep.mubr.f32.mxu1 %v180_v11 }
  0x50   : > { %398 = vmatmul.mubr.f32.gmra.mrb[20].mxu0 %v186_v28  ;;  %1007 = vmatmul.mubr.f32.gmra.mrb[20].mxu1 %v181_v16 }
  0x51   : > { %403 = vmatprep.mubr.f32.mxu0 %v1146_v7  ;;  %1009 = vmatprep.mubr.f32.mxu1 %v182_v21 }
  0x54   : > { %404 = vmatmul.mubr.f32.gmra.mrb[22].mxu0 %v187_v29  ;;  %1010 = vmatmul.mubr.f32.gmra.mrb[22].mxu1 %v183_v24 }
  0x55   : > { %409 = vmatprep.mubr.f32.mxu0 %v1146_v7  ;;  %1012 = vmatprep.mubr.f32.mxu1 %v184_v26 }
  0x58   : > { %410 = vmatmul.mubr.f32.gmra.mrb[24].mxu0 %v188_v30  ;;  %1013 = vmatmul.mubr.f32.gmra.mrb[24].mxu1 %v185_v27 }
  0x59   : > { %415 = vmatprep.mubr.f32.mxu0 %v1146_v7  ;;  %1015 = vmatprep.mubr.f32.mxu1 %v186_v28 }
  0x5c   : > { %416 = vmatmul.mubr.f32.gmra.mrb[26].mxu0 %v189_v31  ;;  %1016 = vmatmul.mubr.f32.gmra.mrb[26].mxu1 %v187_v29 }
  0x5d   : > { %421 = vmatprep.mubr.f32.mxu0 %v1146_v7  ;;  %1018 = vmatprep.mubr.f32.mxu1 %v188_v30 }
  0x60   : > { %422 = vmatmul.mubr.f32.gmra.mrb[28].mxu0 %v190_v32  ;;  %1019 = vmatmul.mubr.f32.gmra.mrb[28].mxu1 %v189_v31 }
  0x61   : > { %427 = vmatprep.mubr.f32.mxu0 %v1146_v7  ;;  %1021 = vmatprep.mubr.f32.mxu1 %v190_v32 }
  0x64   : > { %428 = vmatmul.mubr.f32.gmra.mrb[30].mxu0 %v191_v33  ;;  %1022 = vmatmul.mubr.f32.gmra.mrb[30].mxu1 %v191_v33 }
  0x65   : > { %433 = vmatprep.mubr.f32.mxu0 %v1146_v7  ;;  %1024 = vmatprep.mubr.f32.mxu1 %v192_v34 }
  0x68   : > { %434 = vmatmul.mubr.f32.gmra.mrb[32].mxu0 %v192_v34  ;;  %1025 = vmatmul.mubr.f32.gmra.mrb[32].mxu1 %v193_v35 }
  0x69   : > { %439 = vmatprep.mubr.f32.mxu0 %v1146_v7  ;;  %1027 = vmatprep.mubr.f32.mxu1 %v194_v36 }
  0x6c   : > { %440 = vmatmul.mubr.f32.gmra.mrb[34].mxu0 %v193_v35  ;;  %1028 = vmatmul.mubr.f32.gmra.mrb[34].mxu1 %v195_v37 }
  0x6d   : > { %445 = vmatprep.mubr.f32.mxu0 %v1146_v7  ;;  %1030 = vmatprep.mubr.f32.mxu1 %v196_v38 }
  0x70   : > { %446 = vmatmul.mubr.f32.gmra.mrb[36].mxu0 %v194_v36  ;;  %1031 = vmatmul.mubr.f32.gmra.mrb[36].mxu1 %v197_v39 }
  0x71   : > { %451 = vmatprep.mubr.f32.mxu0 %v1146_v7  ;;  %1033 = vmatprep.mubr.f32.mxu1 %v198_v40 }
  0x74   : > { %452 = vmatmul.mubr.f32.gmra.mrb[38].mxu0 %v195_v37  ;;  %1034 = vmatmul.mubr.f32.gmra.mrb[38].mxu1 %v199_v41 }
  0x75   : > { %457 = vmatprep.mubr.f32.mxu0 %v1146_v7  ;;  %1036 = vmatprep.mubr.f32.mxu1 %v1299_v55 }
  0x78   : > { %458 = vmatmul.mubr.f32.gmra.mrb[40].mxu0 %v196_v38  ;;  %1037 = vmatmul.mubr.f32.gmra.mrb[40].mxu1 %v1314_v60 }
  0x79   : > { %463 = vmatprep.mubr.f32.mxu0 %v1146_v7  ;;  %1039 = vmatprep.mubr.f32.mxu1 %v1330_v1 }
  0x7c   : > { %464 = vmatmul.mubr.f32.gmra.mrb[42].mxu0 %v197_v39  ;;  %1040 = vmatmul.mubr.f32.gmra.mrb[42].mxu1 %v1344_v6  ;;  %v268_v39 = vsub.s32 2, %v1437_v43 }
  0x7d   : > { %469 = vmatprep.mubr.f32.mxu0 %v1146_v7  ;;  %1042 = vmatprep.mubr.f32.mxu1 %v1357_v12 }
  0x80   : > { %470 = vmatmul.mubr.f32.gmra.mrb[44].mxu0 %v198_v40  ;;  %1043 = vmatmul.mubr.f32.gmra.mrb[44].mxu1 %v1370_v17 }
  0x81   : > { %475 = vmatprep.mubr.f32.mxu0 %v1146_v7  ;;  %1045 = vmatprep.mubr.f32.mxu1 %v1383_v22  ;;  %v1448_v7 = vrot.slane %v1443_v45, %v260_v44 }
  0x84   : > { %476 = vmatmul.mubr.f32.gmra.mrb[46].mxu0 %v199_v41  ;;  %1046 = vmatmul.mubr.f32.gmra.mrb[46].mxu1 %v1390_v25 }
  0xfb   : > { %v339_v48 = vpop.f32.mrb[0].mxu0  ;;  %v483_v49 = vpop.f32.mrb[0].mxu1 }
  0xfc   : > { %v340_v50 = vadd.f32 %v339_v48, %v1448_v7  ;;  %v484_v51 = vadd.f32 %v483_v49, %v1448_v7  ;;  %v341_v52 = vpop.f32.mrb[1].mxu0  ;;  %v485_v53 = vpop.f32.mrb[1].mxu1 }
  0xfd   : > { %v342_v54 = vadd.f32 %v341_v52, %v1451_v47  ;;  %v486_v55 = vadd.f32 %v485_v53, %v1451_v47 }
  0xfe   : > { %755 = vst [vmem:[%s1456_s19] sm:$0xff] %v340_v50  ;;  %827 = vst [vmem:[%s1456_s19 + $0x240] sm:$0xff] %v484_v51  ;;  %v1518_v50 = vrot.slane %v1443_v45, %v268_v39 }
  0xff   : > { %756 = vst [vmem:[%s1456_s19 + $0x8] sm:$0xff] %v342_v54  ;;  %828 = vst [vmem:[%s1456_s19 + $0x248] sm:$0xff] %v486_v55  ;;  %v345_v56 = vpop.f32.mrb[2].mxu0  ;;  %v489_v57 = vpop.f32.mrb[2].mxu1 }
 0x100   : > { %v346_v58 = vadd.f32 %v345_v56, %v1448_v7  ;;  %v490_v59 = vadd.f32 %v489_v57, %v1448_v7  ;;  %v347_v60 = vpop.f32.mrb[3].mxu0  ;;  %v491_v61 = vpop.f32.mrb[3].mxu1 }
 0x101   : > { %v348_v62 = vadd.f32 %v347_v60, %v1451_v47  ;;  %v492_v63 = vadd.f32 %v491_v61, %v1451_v47 }
 0x102   : > { %758 = vst [vmem:[%s1456_s19 + $0x18] sm:$0xff] %v346_v58  ;;  %830 = vst [vmem:[%s1456_s19 + $0x258] sm:$0xff] %v490_v59 }
 0x103   : > { %759 = vst [vmem:[%s1456_s19 + $0x20] sm:$0xff] %v348_v62  ;;  %831 = vst [vmem:[%s1456_s19 + $0x260] sm:$0xff] %v492_v63  ;;  %v351_v0 = vpop.f32.mrb[4].mxu0  ;;  %v495_v1 = vpop.f32.mrb[4].mxu1 }
 0x104   : > { %v352_v2 = vadd.f32 %v351_v0, %v1448_v7  ;;  %v496_v3 = vadd.f32 %v495_v1, %v1448_v7  ;;  %v353_v4 = vpop.f32.mrb[5].mxu0  ;;  %v497_v5 = vpop.f32.mrb[5].mxu1 }
 0x105   : > { %v354_v6 = vadd.f32 %v353_v4, %v1451_v47  ;;  %v498_v8 = vadd.f32 %v497_v5, %v1451_v47 }
 0x106   : > { %761 = vst [vmem:[%s1456_s19 + $0x30] sm:$0xff] %v352_v2  ;;  %833 = vst [vmem:[%s1456_s19 + $0x270] sm:$0xff] %v496_v3 }
 0x107   : > { %762 = vst [vmem:[%s1456_s19 + $0x38] sm:$0xff] %v354_v6  ;;  %834 = vst [vmem:[%s1456_s19 + $0x278] sm:$0xff] %v498_v8  ;;  %v357_v9 = vpop.f32.mrb[6].mxu0  ;;  %v501_v10 = vpop.f32.mrb[6].mxu1 }
 0x108   : > { %v358_v11 = vadd.f32 %v357_v9, %v1448_v7  ;;  %v502_v12 = vadd.f32 %v501_v10, %v1448_v7  ;;  %v359_v13 = vpop.f32.mrb[7].mxu0  ;;  %v503_v14 = vpop.f32.mrb[7].mxu1 }
 0x109   : > { %v360_v15 = vadd.f32 %v359_v13, %v1451_v47  ;;  %v504_v16 = vadd.f32 %v503_v14, %v1451_v47 }
 0x10a   : > { %764 = vst [vmem:[%s1456_s19 + $0x48] sm:$0xff] %v358_v11  ;;  %836 = vst [vmem:[%s1456_s19 + $0x288] sm:$0xff] %v502_v12 }
 0x10b   : > { %765 = vst [vmem:[%s1456_s19 + $0x50] sm:$0xff] %v360_v15  ;;  %837 = vst [vmem:[%s1456_s19 + $0x290] sm:$0xff] %v504_v16  ;;  %v363_v17 = vpop.f32.mrb[8].mxu0  ;;  %v507_v18 = vpop.f32.mrb[8].mxu1 }
 0x10c   : > { %v364_v19 = vadd.f32 %v363_v17, %v1448_v7  ;;  %v508_v20 = vadd.f32 %v507_v18, %v1448_v7  ;;  %v365_v21 = vpop.f32.mrb[9].mxu0  ;;  %v509_v22 = vpop.f32.mrb[9].mxu1 }
 0x10d   : > { %v366_v23 = vadd.f32 %v365_v21, %v1451_v47  ;;  %v510_v24 = vadd.f32 %v509_v22, %v1451_v47 }
 0x10e   : > { %767 = vst [vmem:[%s1456_s19 + $0x60] sm:$0xff] %v364_v19  ;;  %839 = vst [vmem:[%s1456_s19 + $0x2a0] sm:$0xff] %v508_v20 }
 0x10f   : > { %768 = vst [vmem:[%s1456_s19 + $0x68] sm:$0xff] %v366_v23  ;;  %840 = vst [vmem:[%s1456_s19 + $0x2a8] sm:$0xff] %v510_v24  ;;  %v369_v25 = vpop.f32.mrb[10].mxu0  ;;  %v513_v26 = vpop.f32.mrb[10].mxu1 }
 0x110   : > { %v370_v27 = vadd.f32 %v369_v25, %v1448_v7  ;;  %v514_v28 = vadd.f32 %v513_v26, %v1448_v7  ;;  %v371_v29 = vpop.f32.mrb[11].mxu0  ;;  %v515_v30 = vpop.f32.mrb[11].mxu1 }
 0x111   : > { %v372_v31 = vadd.f32 %v371_v29, %v1451_v47  ;;  %v516_v32 = vadd.f32 %v515_v30, %v1451_v47 }
 0x112   : > { %770 = vst [vmem:[%s1456_s19 + $0x78] sm:$0xff] %v370_v27  ;;  %842 = vst [vmem:[%s1456_s19 + $0x2b8] sm:$0xff] %v514_v28 }
 0x113   : > { %771 = vst [vmem:[%s1456_s19 + $0x80] sm:$0xff] %v372_v31  ;;  %843 = vst [vmem:[%s1456_s19 + $0x2c0] sm:$0xff] %v516_v32  ;;  %v375_v33 = vpop.f32.mrb[12].mxu0  ;;  %v519_v34 = vpop.f32.mrb[12].mxu1 }
 0x114   : > { %v376_v35 = vadd.f32 %v375_v33, %v1448_v7  ;;  %v520_v36 = vadd.f32 %v519_v34, %v1448_v7  ;;  %v377_v37 = vpop.f32.mrb[13].mxu0  ;;  %v521_v38 = vpop.f32.mrb[13].mxu1 }
 0x115   : > { %v378_v40 = vadd.f32 %v377_v37, %v1451_v47  ;;  %v522_v41 = vadd.f32 %v521_v38, %v1451_v47 }
 0x116   : > { %773 = vst [vmem:[%s1456_s19 + $0x90] sm:$0xff] %v376_v35  ;;  %845 = vst [vmem:[%s1456_s19 + $0x2d0] sm:$0xff] %v520_v36 }
 0x117   : > { %774 = vst [vmem:[%s1456_s19 + $0x98] sm:$0xff] %v378_v40  ;;  %846 = vst [vmem:[%s1456_s19 + $0x2d8] sm:$0xff] %v522_v41  ;;  %v381_v42 = vpop.f32.mrb[14].mxu0  ;;  %v525_v44 = vpop.f32.mrb[14].mxu1 }
 0x118   : > { %v382_v46 = vadd.f32 %v381_v42, %v1448_v7  ;;  %v526_v48 = vadd.f32 %v525_v44, %v1448_v7  ;;  %v383_v49 = vpop.f32.mrb[15].mxu0  ;;  %v527_v43 = vpop.f32.mrb[15].mxu1 }
 0x119   : > { %v384_v51 = vadd.f32 %v383_v49, %v1451_v47  ;;  %v528_v52 = vadd.f32 %v527_v43, %v1451_v47 }
 0x11a   : > { %776 = vst [vmem:[%s1456_s19 + $0xa8] sm:$0xff] %v382_v46  ;;  %848 = vst [vmem:[%s1456_s19 + $0x2e8] sm:$0xff] %v526_v48 }
 0x11b   : > { %777 = vst [vmem:[%s1456_s19 + $0xb0] sm:$0xff] %v384_v51  ;;  %849 = vst [vmem:[%s1456_s19 + $0x2f0] sm:$0xff] %v528_v52  ;;  %v387_v53 = vpop.f32.mrb[16].mxu0  ;;  %v1002_v54 = vpop.f32.mrb[16].mxu1 }
 0x11c   : > { %v388_v55 = vadd.f32 %v387_v53, %v1448_v7  ;;  %v602_v56 = vadd.f32 %v1002_v54, %v1518_v50  ;;  %v389_v57 = vpop.f32.mrb[17].mxu0  ;;  %v596_v45 = vpop.f32.mrb[17].mxu1 }
 0x11d   : > { %v390_v58 = vadd.f32 %v389_v57, %v1451_v47  ;;  %v597_v59 = vadd.f32 %v596_v45, %v1518_v50 }
 0x11e   : > { %779 = vst [vmem:[%s1456_s19 + $0xc0] sm:$0xff] %v388_v55  ;;  %760 = vst [vmem:[%s1456_s19 + $0x28] sm:$0xff] %v602_v56 }
 0x11f   : > { %780 = vst [vmem:[%s1456_s19 + $0xc8] sm:$0xff] %v390_v58  ;;  %757 = vst [vmem:[%s1456_s19 + $0x10] sm:$0xff] %v597_v59  ;;  %v393_v60 = vpop.f32.mrb[18].mxu0  ;;  %v1005_v61 = vpop.f32.mrb[18].mxu1 }
 0x120   : > { %v394_v62 = vadd.f32 %v393_v60, %v1448_v7  ;;  %v612_v63 = vadd.f32 %v1005_v61, %v1518_v50  ;;  %v395_v0 = vpop.f32.mrb[19].mxu0  ;;  %v606_v1 = vpop.f32.mrb[19].mxu1 }
 0x121   : > { %v396_v2 = vadd.f32 %v395_v0, %v1451_v47  ;;  %v607_v3 = vadd.f32 %v606_v1, %v1518_v50 }
 0x122   : > { %782 = vst [vmem:[%s1456_s19 + $0xd8] sm:$0xff] %v394_v62  ;;  %766 = vst [vmem:[%s1456_s19 + $0x58] sm:$0xff] %v612_v63 }
 0x123   : > { %783 = vst [vmem:[%s1456_s19 + $0xe0] sm:$0xff] %v396_v2  ;;  %763 = vst [vmem:[%s1456_s19 + $0x40] sm:$0xff] %v607_v3  ;;  %v399_v4 = vpop.f32.mrb[20].mxu0  ;;  %v1008_v5 = vpop.f32.mrb[20].mxu1 }
 0x124   : > { %v400_v6 = vadd.f32 %v399_v4, %v1448_v7  ;;  %v622_v8 = vadd.f32 %v1008_v5, %v1518_v50  ;;  %v401_v9 = vpop.f32.mrb[21].mxu0  ;;  %v616_v10 = vpop.f32.mrb[21].mxu1 }
 0x125   : > { %v402_v11 = vadd.f32 %v401_v9, %v1451_v47  ;;  %v617_v12 = vadd.f32 %v616_v10, %v1518_v50 }
 0x126   : > { %785 = vst [vmem:[%s1456_s19 + $0xf0] sm:$0xff] %v400_v6  ;;  %772 = vst [vmem:[%s1456_s19 + $0x88] sm:$0xff] %v622_v8 }
 0x127   : > { %786 = vst [vmem:[%s1456_s19 + $0xf8] sm:$0xff] %v402_v11  ;;  %769 = vst [vmem:[%s1456_s19 + $0x70] sm:$0xff] %v617_v12  ;;  %v405_v13 = vpop.f32.mrb[22].mxu0  ;;  %v1011_v14 = vpop.f32.mrb[22].mxu1 }
 0x128   : > { %v406_v15 = vadd.f32 %v405_v13, %v1448_v7  ;;  %v632_v16 = vadd.f32 %v1011_v14, %v1518_v50  ;;  %v407_v17 = vpop.f32.mrb[23].mxu0  ;;  %v626_v18 = vpop.f32.mrb[23].mxu1 }
 0x129   : > { %v408_v19 = vadd.f32 %v407_v17, %v1451_v47  ;;  %v627_v20 = vadd.f32 %v626_v18, %v1518_v50 }
 0x12a   : > { %788 = vst [vmem:[%s1456_s19 + $0x108] sm:$0xff] %v406_v15  ;;  %778 = vst [vmem:[%s1456_s19 + $0xb8] sm:$0xff] %v632_v16 }
 0x12b   : > { %789 = vst [vmem:[%s1456_s19 + $0x110] sm:$0xff] %v408_v19  ;;  %775 = vst [vmem:[%s1456_s19 + $0xa0] sm:$0xff] %v627_v20  ;;  %v411_v21 = vpop.f32.mrb[24].mxu0  ;;  %v1014_v22 = vpop.f32.mrb[24].mxu1 }
 0x12c   : > { %v412_v23 = vadd.f32 %v411_v21, %v1448_v7  ;;  %v642_v24 = vadd.f32 %v1014_v22, %v1518_v50  ;;  %v413_v25 = vpop.f32.mrb[25].mxu0  ;;  %v636_v26 = vpop.f32.mrb[25].mxu1 }
 0x12d   : > { %v414_v27 = vadd.f32 %v413_v25, %v1451_v47  ;;  %v637_v28 = vadd.f32 %v636_v26, %v1518_v50 }
 0x12e   : > { %791 = vst [vmem:[%s1456_s19 + $0x120] sm:$0xff] %v412_v23  ;;  %784 = vst [vmem:[%s1456_s19 + $0xe8] sm:$0xff] %v642_v24 }
 0x12f   : > { %792 = vst [vmem:[%s1456_s19 + $0x128] sm:$0xff] %v414_v27  ;;  %781 = vst [vmem:[%s1456_s19 + $0xd0] sm:$0xff] %v637_v28  ;;  %v417_v29 = vpop.f32.mrb[26].mxu0  ;;  %v1017_v30 = vpop.f32.mrb[26].mxu1 }
 0x130   : > { %v418_v31 = vadd.f32 %v417_v29, %v1448_v7  ;;  %v652_v32 = vadd.f32 %v1017_v30, %v1518_v50  ;;  %v419_v33 = vpop.f32.mrb[27].mxu0  ;;  %v646_v34 = vpop.f32.mrb[27].mxu1 }
 0x131   : > { %v420_v35 = vadd.f32 %v419_v33, %v1451_v47  ;;  %v647_v36 = vadd.f32 %v646_v34, %v1518_v50 }
 0x132   : > { %794 = vst [vmem:[%s1456_s19 + $0x138] sm:$0xff] %v418_v31  ;;  %790 = vst [vmem:[%s1456_s19 + $0x118] sm:$0xff] %v652_v32 }
 0x133   : > { %795 = vst [vmem:[%s1456_s19 + $0x140] sm:$0xff] %v420_v35  ;;  %787 = vst [vmem:[%s1456_s19 + $0x100] sm:$0xff] %v647_v36  ;;  %v423_v37 = vpop.f32.mrb[28].mxu0  ;;  %v1020_v38 = vpop.f32.mrb[28].mxu1 }
 0x134   : > { %v424_v39 = vadd.f32 %v423_v37, %v1448_v7  ;;  %v662_v40 = vadd.f32 %v1020_v38, %v1518_v50  ;;  %v425_v41 = vpop.f32.mrb[29].mxu0  ;;  %v656_v42 = vpop.f32.mrb[29].mxu1 }
 0x135   : > { %v426_v44 = vadd.f32 %v425_v41, %v1451_v47  ;;  %v657_v46 = vadd.f32 %v656_v42, %v1518_v50 }
 0x136   : > { %797 = vst [vmem:[%s1456_s19 + $0x150] sm:$0xff] %v424_v39  ;;  %796 = vst [vmem:[%s1456_s19 + $0x148] sm:$0xff] %v662_v40 }
 0x137   : > { %798 = vst [vmem:[%s1456_s19 + $0x158] sm:$0xff] %v426_v44  ;;  %793 = vst [vmem:[%s1456_s19 + $0x130] sm:$0xff] %v657_v46  ;;  %v429_v48 = vpop.f32.mrb[30].mxu0  ;;  %v1023_v49 = vpop.f32.mrb[30].mxu1 }
 0x138   : > { %v430_v43 = vadd.f32 %v429_v48, %v1448_v7  ;;  %v672_v51 = vadd.f32 %v1023_v49, %v1518_v50  ;;  %v431_v52 = vpop.f32.mrb[31].mxu0  ;;  %v666_v53 = vpop.f32.mrb[31].mxu1 }
 0x139   : > { %v432_v54 = vadd.f32 %v431_v52, %v1451_v47  ;;  %v667_v55 = vadd.f32 %v666_v53, %v1518_v50 }
 0x13a   : > { %800 = vst [vmem:[%s1456_s19 + $0x168] sm:$0xff] %v430_v43  ;;  %802 = vst [vmem:[%s1456_s19 + $0x178] sm:$0xff] %v672_v51 }
 0x13b   : > { %801 = vst [vmem:[%s1456_s19 + $0x170] sm:$0xff] %v432_v54  ;;  %799 = vst [vmem:[%s1456_s19 + $0x160] sm:$0xff] %v667_v55  ;;  %v435_v56 = vpop.f32.mrb[32].mxu0  ;;  %v1026_v57 = vpop.f32.mrb[32].mxu1 }
 0x13c   : > { %v436_v45 = vadd.f32 %v435_v56, %v1448_v7  ;;  %v682_v58 = vadd.f32 %v1026_v57, %v1518_v50  ;;  %v437_v59 = vpop.f32.mrb[33].mxu0  ;;  %v676_v60 = vpop.f32.mrb[33].mxu1 }
 0x13d   : > { %v438_v61 = vadd.f32 %v437_v59, %v1451_v47  ;;  %v677_v62 = vadd.f32 %v676_v60, %v1518_v50 }
 0x13e   : > { %803 = vst [vmem:[%s1456_s19 + $0x180] sm:$0xff] %v436_v45  ;;  %808 = vst [vmem:[%s1456_s19 + $0x1a8] sm:$0xff] %v682_v58 }
 0x13f   : > { %804 = vst [vmem:[%s1456_s19 + $0x188] sm:$0xff] %v438_v61  ;;  %805 = vst [vmem:[%s1456_s19 + $0x190] sm:$0xff] %v677_v62  ;;  %v441_v63 = vpop.f32.mrb[34].mxu0  ;;  %v1029_v0 = vpop.f32.mrb[34].mxu1 }
 0x140   : > { %v442_v1 = vadd.f32 %v441_v63, %v1448_v7  ;;  %v692_v2 = vadd.f32 %v1029_v0, %v1518_v50  ;;  %v443_v3 = vpop.f32.mrb[35].mxu0  ;;  %v686_v4 = vpop.f32.mrb[35].mxu1 }
 0x141   : > { %v444_v5 = vadd.f32 %v443_v3, %v1451_v47  ;;  %v687_v6 = vadd.f32 %v686_v4, %v1518_v50 }
 0x142   : > { %806 = vst [vmem:[%s1456_s19 + $0x198] sm:$0xff] %v442_v1  ;;  %814 = vst [vmem:[%s1456_s19 + $0x1d8] sm:$0xff] %v692_v2 }
 0x143   : > { %807 = vst [vmem:[%s1456_s19 + $0x1a0] sm:$0xff] %v444_v5  ;;  %811 = vst [vmem:[%s1456_s19 + $0x1c0] sm:$0xff] %v687_v6  ;;  %v447_v8 = vpop.f32.mrb[36].mxu0  ;;  %v1032_v9 = vpop.f32.mrb[36].mxu1 }
 0x144   : > { %v448_v10 = vadd.f32 %v447_v8, %v1448_v7  ;;  %v702_v11 = vadd.f32 %v1032_v9, %v1518_v50  ;;  %v449_v12 = vpop.f32.mrb[37].mxu0  ;;  %v696_v13 = vpop.f32.mrb[37].mxu1 }
 0x145   : > { %v450_v14 = vadd.f32 %v449_v12, %v1451_v47  ;;  %v697_v15 = vadd.f32 %v696_v13, %v1518_v50 }
 0x146   : > { %809 = vst [vmem:[%s1456_s19 + $0x1b0] sm:$0xff] %v448_v10  ;;  %820 = vst [vmem:[%s1456_s19 + $0x208] sm:$0xff] %v702_v11 }
 0x147   : > { %810 = vst [vmem:[%s1456_s19 + $0x1b8] sm:$0xff] %v450_v14  ;;  %817 = vst [vmem:[%s1456_s19 + $0x1f0] sm:$0xff] %v697_v15  ;;  %v453_v16 = vpop.f32.mrb[38].mxu0  ;;  %v1035_v17 = vpop.f32.mrb[38].mxu1 }
 0x148   : > { %v454_v18 = vadd.f32 %v453_v16, %v1448_v7  ;;  %v712_v19 = vadd.f32 %v1035_v17, %v1518_v50  ;;  %v455_v20 = vpop.f32.mrb[39].mxu0  ;;  %v706_v21 = vpop.f32.mrb[39].mxu1 }
 0x149   : > { %v456_v22 = vadd.f32 %v455_v20, %v1451_v47  ;;  %v707_v23 = vadd.f32 %v706_v21, %v1518_v50 }
 0x14a   : > { %812 = vst [vmem:[%s1456_s19 + $0x1c8] sm:$0xff] %v454_v18  ;;  %826 = vst [vmem:[%s1456_s19 + $0x238] sm:$0xff] %v712_v19 }
 0x14b   : > { %813 = vst [vmem:[%s1456_s19 + $0x1d0] sm:$0xff] %v456_v22  ;;  %823 = vst [vmem:[%s1456_s19 + $0x220] sm:$0xff] %v707_v23  ;;  %v459_v24 = vpop.f32.mrb[40].mxu0  ;;  %v1038_v25 = vpop.f32.mrb[40].mxu1 }
 0x14c   : > { %v460_v26 = vadd.f32 %v459_v24, %v1448_v7  ;;  %v722_v27 = vadd.f32 %v1038_v25, %v1518_v50  ;;  %v461_v28 = vpop.f32.mrb[41].mxu0  ;;  %v716_v29 = vpop.f32.mrb[41].mxu1 }
 0x14d   : > { %v462_v30 = vadd.f32 %v461_v28, %v1451_v47  ;;  %v717_v31 = vadd.f32 %v716_v29, %v1518_v50 }
 0x14e   : > { %815 = vst [vmem:[%s1456_s19 + $0x1e0] sm:$0xff] %v460_v26  ;;  %832 = vst [vmem:[%s1456_s19 + $0x268] sm:$0xff] %v722_v27 }
 0x14f   : > { %816 = vst [vmem:[%s1456_s19 + $0x1e8] sm:$0xff] %v462_v30  ;;  %829 = vst [vmem:[%s1456_s19 + $0x250] sm:$0xff] %v717_v31  ;;  %v465_v32 = vpop.f32.mrb[42].mxu0  ;;  %v1041_v33 = vpop.f32.mrb[42].mxu1 }
 0x150   : > { %v466_v34 = vadd.f32 %v465_v32, %v1448_v7  ;;  %v732_v35 = vadd.f32 %v1041_v33, %v1518_v50  ;;  %v467_v36 = vpop.f32.mrb[43].mxu0  ;;  %v726_v37 = vpop.f32.mrb[43].mxu1 }
 0x151   : > { %v468_v38 = vadd.f32 %v467_v36, %v1451_v47  ;;  %v727_v39 = vadd.f32 %v726_v37, %v1518_v50 }
 0x152   : > { %818 = vst [vmem:[%s1456_s19 + $0x1f8] sm:$0xff] %v466_v34  ;;  %838 = vst [vmem:[%s1456_s19 + $0x298] sm:$0xff] %v732_v35 }
 0x153   : > { %819 = vst [vmem:[%s1456_s19 + $0x200] sm:$0xff] %v468_v38  ;;  %835 = vst [vmem:[%s1456_s19 + $0x280] sm:$0xff] %v727_v39  ;;  %v471_v40 = vpop.f32.mrb[44].mxu0  ;;  %v1044_v41 = vpop.f32.mrb[44].mxu1 }
 0x154   : > { %v472_v42 = vadd.f32 %v471_v40, %v1448_v7  ;;  %v742_v44 = vadd.f32 %v1044_v41, %v1518_v50  ;;  %v473_v46 = vpop.f32.mrb[45].mxu0  ;;  %v736_v48 = vpop.f32.mrb[45].mxu1 }
 0x155   : > { %v474_v49 = vadd.f32 %v473_v46, %v1451_v47  ;;  %v737_v43 = vadd.f32 %v736_v48, %v1518_v50 }
 0x156   : > { %821 = vst [vmem:[%s1456_s19 + $0x210] sm:$0xff] %v472_v42  ;;  %844 = vst [vmem:[%s1456_s19 + $0x2c8] sm:$0xff] %v742_v44 }
 0x157   : > { %822 = vst [vmem:[%s1456_s19 + $0x218] sm:$0xff] %v474_v49  ;;  %841 = vst [vmem:[%s1456_s19 + $0x2b0] sm:$0xff] %v737_v43  ;;  %v477_v51 = vpop.f32.mrb[46].mxu0  ;;  %v1047_v52 = vpop.f32.mrb[46].mxu1 }
 0x158   : > { %v478_v53 = vadd.f32 %v477_v51, %v1448_v7  ;;  %v752_v54 = vadd.f32 %v1047_v52, %v1518_v50  ;;  %v479_v55 = vpop.f32.mrb[47].mxu0  ;;  %v746_v56 = vpop.f32.mrb[47].mxu1 }
 0x159   : > { %v480_v57 = vadd.f32 %v479_v55, %v1451_v47  ;;  %v747_v45 = vadd.f32 %v746_v56, %v1518_v50 }
 0x15a   : > { %824 = vst [vmem:[%s1456_s19 + $0x228] sm:$0xff] %v478_v53  ;;  %850 = vst [vmem:[%s1456_s19 + $0x2f8] sm:$0xff] %v752_v54 }
 0x15b   : > { %825 = vst [vmem:[%s1456_s19 + $0x230] sm:$0xff] %v480_v57  ;;  %847 = vst [vmem:[%s1456_s19 + $0x2e0] sm:$0xff] %v747_v45 }
 0x15c PF: > { %s13_s12 = sadd.s32 1, %s1144_s12  }
 0x15d   : > { %p10_p4 = scmp.ge.s32.totalorder %s13_s12, 4  }
 0x15f   :  { %12 = sbr.rel (!%p10_p4) target bundleno = 1 (0x1), region = 62 }

// kernel: da_head_forward.19
= control target key start
LH: loop header
LB: loop body
LE: loop exit
PB: predicated region body
PF: predicated region fallthrough
CT: control target
= control target key end

     0   :  { %s898_s15 = smov 0   ;;  %s1110_s0 = inlined_call_operand.vmem [shape: f32[512,128], index: 0, kind: input, shape index: {}]   ;;  %s1111_s1 = inlined_call_operand.vmem [shape: f32[512,128], index: 1, kind: input, shape index: {}]   ;;  %s1112_s2 = inlined_call_operand.vmem [shape: f32[128,128], index: 2, kind: input, shape index: {}]   ;;  %s1113_s3 = inlined_call_operand.vmem [shape: f32[1,128], index: 3, kind: input, shape index: {}]   ;;  %s1114_s4 = inlined_call_operand.vmem [shape: f32[512,128], index: 4, kind: output, shape index: {}]  }
   0x1 LB: > { %s667_s16 = sadd.s32 4294967295, %s871_s15   ;;  %p671_p0 = scmp.ge.s32.totalorder %s871_s15, 1  ;;  %s871_s15 = sphi %s898_s15, %s14_s15  }
   0x2   : > { %p174_p1 = scmp.lt.s32.totalorder %s871_s15, 3 }
   0x4   : > { %p175_p2 = pnand %p671_p0, %p174_p1 }
   0x5   : > { %v319_v0 = vld [vmem:[%s1112_s2] sm:$0xff] (!%p175_p2)  ;;  %v320_v1 = vld [vmem:[%s1112_s2 + $0x8] sm:$0xff] (!%p175_p2)  ;;  %v321_v2 = vld [vmem:[%s1112_s2 + $0x10] sm:$0xff] (!%p175_p2)  ;;  %s672_s23 = sshll.u32 (!%p175_p2), %s667_s16, 5 }
   0x6   : > { %178 = sbr.rel (%p175_p2) target bundleno = 284 (0x11c), region = 36  ;;  %v809_v3 = vpack.c.bf16 (!%p175_p2), %v320_v1, %v319_v0  ;;  %v322_v4 = vld [vmem:[%s1112_s2 + $0x18] sm:$0xff] (!%p175_p2)  ;;  %p206_p3 = scmp.lt.s32.totalorder (!%p175_p2), %s672_s23, 63  ;;  %v323_v6 = vld [vmem:[%s1112_s2 + $0x20] sm:$0xff] (!%p175_p2)  ;;  %v324_v7 = vld [vmem:[%s1112_s2 + $0x28] sm:$0xff] (!%p175_p2) }
   0x7   : > { %v813_v5 = vpack.c.bf16 (!%p175_p2), %v322_v4, %v321_v2  ;;  %v817_v8 = vpack.c.bf16 (!%p175_p2), %v324_v7, %v323_v6  ;;  %v325_v9 = vld [vmem:[%s1112_s2 + $0x30] sm:$0xff] (!%p175_p2)  ;;  %v326_v10 = vld [vmem:[%s1112_s2 + $0x38] sm:$0xff] (!%p175_p2)  ;;  %v327_v18 = vld [vmem:[%s1112_s2 + $0x40] sm:$0xff] (!%p175_p2) }
   0x8   : > { %810 = vmatprep.subr.bf16.mxu0 (!%p175_p2), %v809_v3  ;;  %841 = vmatprep.subr.bf16.mxu1 (!%p175_p2), %v809_v3  ;;  %v821_v16 = vpack.c.bf16 (!%p175_p2), %v326_v10, %v325_v9  ;;  %v328_v19 = vld [vmem:[%s1112_s2 + $0x48] sm:$0xff] (!%p175_p2)  ;;  %v329_v21 = vld [vmem:[%s1112_s2 + $0x50] sm:$0xff] (!%p175_p2)  ;;  %v330_v22 = vld [vmem:[%s1112_s2 + $0x58] sm:$0xff] (!%p175_p2) }
   0x9   : > { %812 = vmatpush3.bf16.msra.mxu0 (!%p175_p2), %v809_v3  ;;  %849 = vmatpush3.bf16.msra.mxu1 (!%p175_p2), %v809_v3  ;;  %v825_v20 = vpack.c.bf16 (!%p175_p2), %v328_v19, %v327_v18  ;;  %v829_v23 = vpack.c.bf16 (!%p175_p2), %v330_v22, %v329_v21  ;;  %v331_v24 = vld [vmem:[%s1112_s2 + $0x60] sm:$0xff] (!%p175_p2)  ;;  %v332_v25 = vld [vmem:[%s1112_s2 + $0x68] sm:$0xff] (!%p175_p2)  ;;  %v333_v27 = vld [vmem:[%s1112_s2 + $0x70] sm:$0xff] (!%p175_p2) }
   0xa   : > { %814 = vmatprep.subr.bf16.mxu0 (!%p175_p2), %v813_v5  ;;  %842 = vmatprep.subr.bf16.mxu1 (!%p175_p2), %v813_v5  ;;  %v833_v26 = vpack.c.bf16 (!%p175_p2), %v332_v25, %v331_v24  ;;  %v334_v28 = vld [vmem:[%s1112_s2 + $0x78] sm:$0xff] (!%p175_p2) }
   0xb   : > { %v837_v29 = vpack.c.bf16 (!%p175_p2), %v334_v28, %v333_v27 }
   0xd   : > { %s1116_s23 = smov (!%p206_p3, %s672_s23), 63  ;;  %816 = vmatpush3.bf16.msra.mxu0 %v813_v5  ;;  %850 = vmatpush3.bf16.msra.mxu1 %v813_v5 }
   0xe   : > { %s924_s30 = sshll.u32 %s1116_s23, 3  ;;  %818 = vmatprep.subr.bf16.mxu0 %v817_v8  ;;  %843 = vmatprep.subr.bf16.mxu1 %v817_v8 }
   0xf   : > { %s936_s11 = scalar_lea.vmem %s1110_s0, %s924_s30  ;;  %s942_s14 = scalar_lea.vmem %s1111_s1, %s924_s30 }
  0x10   : > { %v223_v11 = vld [vmem:[%s936_s11] sm:$0xff]  ;;  %v224_v30 = vld [vmem:[%s936_s11 + $0x8] sm:$0xff]  ;;  %v225_v34 = vld [vmem:[%s936_s11 + $0x10] sm:$0xff]  ;;  %s1041_s12 = scalar_lea.vmem %s1114_s4, %s924_s30 }
  0x11   : > { %v255_v12 = vld [vmem:[%s942_s14] sm:$0xff]  ;;  %820 = vmatpush3.bf16.msra.mxu0 %v817_v8  ;;  %851 = vmatpush3.bf16.msra.mxu1 %v817_v8  ;;  %v256_v31 = vld [vmem:[%s942_s14 + $0x8] sm:$0xff]  ;;  %v257_v35 = vld [vmem:[%s942_s14 + $0x10] sm:$0xff] }
  0x12   : > { %v239_v13 = vld [vmem:[%s936_s11 + $0x80] sm:$0xff]  ;;  %v287_v14 = vadd.f32 %v255_v12, %v223_v11  ;;  %822 = vmatprep.subr.bf16.mxu0 %v821_v16  ;;  %844 = vmatprep.subr.bf16.mxu1 %v821_v16  ;;  %v240_v32 = vld [vmem:[%s936_s11 + $0x88] sm:$0xff]  ;;  %v241_v36 = vld [vmem:[%s936_s11 + $0x90] sm:$0xff]  ;;  %v288_v38 = vadd.f32 %v256_v31, %v224_v30  ;;  %v289_v42 = vadd.f32 %v257_v35, %v225_v34 }
  0x13   : > { %v271_v15 = vld [vmem:[%s942_s14 + $0x80] sm:$0xff]  ;;  %v272_v33 = vld [vmem:[%s942_s14 + $0x88] sm:$0xff]  ;;  %v273_v37 = vld [vmem:[%s942_s14 + $0x90] sm:$0xff] }
  0x14   : > { %v303_v17 = vadd.f32 %v271_v15, %v239_v13  ;;  %761 = vmatprep.mubr.f32.mxu0 %v287_v14  ;;  %v304_v39 = vadd.f32 %v272_v33, %v240_v32  ;;  %v226_v40 = vld [vmem:[%s936_s11 + $0x18] sm:$0xff]  ;;  %v305_v43 = vadd.f32 %v273_v37, %v241_v36  ;;  %v227_v46 = vld [vmem:[%s936_s11 + $0x20] sm:$0xff]  ;;  %v228_v52 = vld [vmem:[%s936_s11 + $0x28] sm:$0xff] }
  0x15   : > { %824 = vmatpush3.bf16.msra.mxu0 %v821_v16  ;;  %852 = vmatpush3.bf16.msra.mxu1 %v821_v16  ;;  %v258_v41 = vld [vmem:[%s942_s14 + $0x18] sm:$0xff]  ;;  %v259_v47 = vld [vmem:[%s942_s14 + $0x20] sm:$0xff]  ;;  %v260_v53 = vld [vmem:[%s942_s14 + $0x28] sm:$0xff] }
  0x16   : > { %785 = vmatprep.mubr.f32.mxu1 %v303_v17  ;;  %826 = vmatprep.subr.bf16.mxu0 %v825_v20  ;;  %v242_v44 = vld [vmem:[%s936_s11 + $0x98] sm:$0xff]  ;;  %v243_v48 = vld [vmem:[%s936_s11 + $0xa0] sm:$0xff]  ;;  %v290_v50 = vadd.f32 %v258_v41, %v226_v40  ;;  %v291_v54 = vadd.f32 %v259_v47, %v227_v46  ;;  %v244_v56 = vld [vmem:[%s936_s11 + $0xa8] sm:$0xff]  ;;  %v292_v62 = vadd.f32 %v260_v53, %v228_v52 }
  0x17   : > { %845 = vmatprep.subr.bf16.mxu1 %v825_v20  ;;  %v274_v45 = vld [vmem:[%s942_s14 + $0x98] sm:$0xff]  ;;  %v275_v49 = vld [vmem:[%s942_s14 + $0xa0] sm:$0xff]  ;;  %v276_v57 = vld [vmem:[%s942_s14 + $0xa8] sm:$0xff] }
  0x18   : > { %v306_v51 = vadd.f32 %v274_v45, %v242_v44  ;;  %v307_v55 = vadd.f32 %v275_v49, %v243_v48  ;;  %v229_v58 = vld [vmem:[%s936_s11 + $0x30] sm:$0xff]  ;;  %v308_v63 = vadd.f32 %v276_v57, %v244_v56  ;;  %v230_v0 = vld [vmem:[%s936_s11 + $0x38] sm:$0xff]  ;;  %v231_v6 = vld [vmem:[%s936_s11 + $0x40] sm:$0xff] }
  0x19   : > { %828 = vmatpush3.bf16.msra.mxu0 %v825_v20  ;;  %853 = vmatpush3.bf16.msra.mxu1 %v825_v20  ;;  %v261_v59 = vld [vmem:[%s942_s14 + $0x30] sm:$0xff]  ;;  %v262_v1 = vld [vmem:[%s942_s14 + $0x38] sm:$0xff]  ;;  %v263_v7 = vld [vmem:[%s942_s14 + $0x40] sm:$0xff] }
  0x1a   : > { %830 = vmatprep.subr.bf16.mxu0 %v829_v23  ;;  %846 = vmatprep.subr.bf16.mxu1 %v829_v23  ;;  %v245_v60 = vld [vmem:[%s936_s11 + $0xb0] sm:$0xff]  ;;  %v293_v2 = vadd.f32 %v261_v59, %v229_v58  ;;  %v246_v4 = vld [vmem:[%s936_s11 + $0xb8] sm:$0xff]  ;;  %v247_v8 = vld [vmem:[%s936_s11 + $0xc0] sm:$0xff]  ;;  %v294_v10 = vadd.f32 %v262_v1, %v230_v0  ;;  %v295_v14 = vadd.f32 %v263_v7, %v231_v6 }
  0x1b   : > { %v277_v61 = vld [vmem:[%s942_s14 + $0xb0] sm:$0xff]  ;;  %v278_v5 = vld [vmem:[%s942_s14 + $0xb8] sm:$0xff]  ;;  %v279_v9 = vld [vmem:[%s942_s14 + $0xc0] sm:$0xff] }
  0x1c   : > { %v309_v3 = vadd.f32 %v277_v61, %v245_v60  ;;  %v310_v11 = vadd.f32 %v278_v5, %v246_v4  ;;  %v232_v12 = vld [vmem:[%s936_s11 + $0x48] sm:$0xff]  ;;  %v311_v15 = vadd.f32 %v279_v9, %v247_v8  ;;  %v233_v18 = vld [vmem:[%s936_s11 + $0x50] sm:$0xff]  ;;  %v234_v24 = vld [vmem:[%s936_s11 + $0x58] sm:$0xff] }
  0x1d   : > { %832 = vmatpush3.bf16.msra.mxu0 %v829_v23  ;;  %854 = vmatpush3.bf16.msra.mxu1 %v829_v23  ;;  %v264_v13 = vld [vmem:[%s942_s14 + $0x48] sm:$0xff]  ;;  %v265_v19 = vld [vmem:[%s942_s14 + $0x50] sm:$0xff]  ;;  %v266_v25 = vld [vmem:[%s942_s14 + $0x58] sm:$0xff] }
  0x1e   : > { %834 = vmatprep.subr.bf16.mxu0 %v833_v26  ;;  %847 = vmatprep.subr.bf16.mxu1 %v833_v26  ;;  %v248_v16 = vld [vmem:[%s936_s11 + $0xc8] sm:$0xff]  ;;  %v249_v20 = vld [vmem:[%s936_s11 + $0xd0] sm:$0xff]  ;;  %v296_v22 = vadd.f32 %v264_v13, %v232_v12  ;;  %v250_v28 = vld [vmem:[%s936_s11 + $0xd8] sm:$0xff]  ;;  %v298_v34 = vadd.f32 %v266_v25, %v234_v24 }
  0x1f   : > { %v280_v17 = vld [vmem:[%s942_s14 + $0xc8] sm:$0xff]  ;;  %v281_v21 = vld [vmem:[%s942_s14 + $0xd0] sm:$0xff]  ;;  %v235_v30 = vld [vmem:[%s936_s11 + $0x60] sm:$0xff] }
  0x20   : > { %v312_v23 = vadd.f32 %v280_v17, %v248_v16  ;;  %v313_v27 = vadd.f32 %v281_v21, %v249_v20  ;;  %v267_v31 = vld [vmem:[%s942_s14 + $0x60] sm:$0xff]  ;;  %v236_v36 = vld [vmem:[%s936_s11 + $0x68] sm:$0xff]  ;;  %v253_v44 = vld [vmem:[%s936_s11 + $0xf0] sm:$0xff] }
  0x21   : > { %836 = vmatpush3.bf16.msra.mxu0 %v833_v26  ;;  %855 = vmatpush3.bf16.msra.mxu1 %v833_v26  ;;  %v297_v26 = vadd.f32 %v265_v19, %v233_v18  ;;  %v251_v32 = vld [vmem:[%s936_s11 + $0xe0] sm:$0xff]  ;;  %v268_v37 = vld [vmem:[%s942_s14 + $0x68] sm:$0xff]  ;;  %v285_v45 = vld [vmem:[%s942_s14 + $0xf0] sm:$0xff] }
  0x22   : > { %838 = vmatprep.subr.bf16.mxu0 %v837_v29  ;;  %848 = vmatprep.subr.bf16.mxu1 %v837_v29  ;;  %v283_v33 = vld [vmem:[%s942_s14 + $0xe0] sm:$0xff]  ;;  %v252_v40 = vld [vmem:[%s936_s11 + $0xe8] sm:$0xff]  ;;  %v300_v46 = vadd.f32 %v268_v37, %v236_v36  ;;  %v238_v48 = vld [vmem:[%s936_s11 + $0x78] sm:$0xff] }
  0x23   : > { %v284_v41 = vld [vmem:[%s942_s14 + $0xe8] sm:$0xff]  ;;  %v254_v52 = vld [vmem:[%s936_s11 + $0xf8] sm:$0xff]  ;;  %v1035_v56 = vld [vmem:[%s1113_s3] ss:$0 sm:$0xff] }
  0x24   : > { %v316_v47 = vadd.f32 %v284_v41, %v252_v40  ;;  %v286_v53 = vld [vmem:[%s942_s14 + $0xf8] sm:$0xff] }
  0x25   : > { %840 = vmatpush3.bf16.msra.mxu0 %v837_v29  ;;  %856 = vmatpush3.bf16.msra.mxu1 %v837_v29  ;;  %v282_v29 = vld [vmem:[%s942_s14 + $0xd8] sm:$0xff] }
  0x26   : > { %v314_v35 = vadd.f32 %v282_v29, %v250_v28 }
  0x28   : > { %762 = vmatmul.mubr.f32.vlgmr.msra.gmra.mrb[0].mxu0 %v288_v38  ;;  %786 = vmatmul.mubr.f32.vlgmr.msra.gmra.mrb[0].mxu1 %v304_v39  ;;  %v299_v38 = vadd.f32 %v267_v31, %v235_v30  ;;  %v315_v39 = vadd.f32 %v283_v33, %v251_v32 }
  0x29   : > { %764 = vmatprep.mubr.f32.mxu0 %v289_v42  ;;  %788 = vmatprep.mubr.f32.mxu1 %v305_v43  ;;  %v237_v42 = vld [vmem:[%s936_s11 + $0x70] sm:$0xff] }
  0x2a   : > { %v269_v43 = vld [vmem:[%s942_s14 + $0x70] sm:$0xff] }
  0x2b   : > { %v301_v49 = vadd.f32 %v269_v43, %v237_v42 }
  0x2c   : > { %765 = vmatmul.mubr.f32.gmra.mrb[2].mxu0 %v290_v50  ;;  %789 = vmatmul.mubr.f32.gmra.mrb[2].mxu1 %v306_v51  ;;  %v317_v50 = vadd.f32 %v285_v45, %v253_v44  ;;  %v270_v51 = vld [vmem:[%s942_s14 + $0x78] sm:$0xff] }
  0x2d   : > { %767 = vmatprep.mubr.f32.mxu0 %v291_v54  ;;  %791 = vmatprep.mubr.f32.mxu1 %v307_v55  ;;  %v302_v54 = vadd.f32 %v270_v51, %v238_v48  ;;  %v318_v55 = vadd.f32 %v286_v53, %v254_v52 }
  0x30   : > { %768 = vmatmul.mubr.f32.gmra.mrb[4].mxu0 %v292_v62  ;;  %792 = vmatmul.mubr.f32.gmra.mrb[4].mxu1 %v308_v63 }
  0x31   : > { %770 = vmatprep.mubr.f32.mxu0 %v293_v2  ;;  %794 = vmatprep.mubr.f32.mxu1 %v309_v3 }
  0x34   : > { %771 = vmatmul.mubr.f32.gmra.mrb[6].mxu0 %v294_v10  ;;  %795 = vmatmul.mubr.f32.gmra.mrb[6].mxu1 %v310_v11 }
  0x35   : > { %773 = vmatprep.mubr.f32.mxu0 %v295_v14  ;;  %797 = vmatprep.mubr.f32.mxu1 %v311_v15 }
  0x38   : > { %774 = vmatmul.mubr.f32.gmra.mrb[8].mxu0 %v296_v22  ;;  %798 = vmatmul.mubr.f32.gmra.mrb[8].mxu1 %v312_v23 }
  0x39   : > { %776 = vmatprep.mubr.f32.mxu0 %v297_v26  ;;  %800 = vmatprep.mubr.f32.mxu1 %v313_v27 }
  0x3c   : > { %777 = vmatmul.mubr.f32.gmra.mrb[10].mxu0 %v298_v34  ;;  %801 = vmatmul.mubr.f32.gmra.mrb[10].mxu1 %v314_v35 }
  0x3d   : > { %779 = vmatprep.mubr.f32.mxu0 %v299_v38  ;;  %803 = vmatprep.mubr.f32.mxu1 %v315_v39 }
  0x40   : > { %780 = vmatmul.mubr.f32.gmra.mrb[12].mxu0 %v300_v46  ;;  %804 = vmatmul.mubr.f32.gmra.mrb[12].mxu1 %v316_v47 }
  0x41   : > { %782 = vmatprep.mubr.f32.mxu0 %v301_v49  ;;  %806 = vmatprep.mubr.f32.mxu1 %v317_v50 }
  0x44   : > { %783 = vmatmul.mubr.f32.gmra.mrb[14].mxu0 %v302_v54  ;;  %807 = vmatmul.mubr.f32.gmra.mrb[14].mxu1 %v318_v55 }
  0xfb   : > { %v763_v57 = vpop.f32.mrb[0].mxu0  ;;  %v787_v58 = vpop.f32.mrb[0].mxu1 }
  0xfc   : > { %v414_v59 = vadd.f32 %v763_v57, %v1035_v56  ;;  %v494_v60 = vadd.f32 %v787_v58, %v1035_v56  ;;  %v408_v61 = vpop.f32.mrb[1].mxu0  ;;  %v488_v62 = vpop.f32.mrb[1].mxu1 }
  0xfd   : > { %v409_v63 = vadd.f32 %v1035_v56, %v408_v61  ;;  %v489_v0 = vadd.f32 %v1035_v56, %v488_v62 }
  0xfe   : > { %568 = vst [vmem:[%s1041_s12 + $0x8] sm:$0xff] %v414_v59  ;;  %584 = vst [vmem:[%s1041_s12 + $0x88] sm:$0xff] %v494_v60 }
  0xff   : > { %567 = vst [vmem:[%s1041_s12] sm:$0xff] %v409_v63  ;;  %583 = vst [vmem:[%s1041_s12 + $0x80] sm:$0xff] %v489_v0  ;;  %v766_v1 = vpop.f32.mrb[2].mxu0  ;;  %v790_v2 = vpop.f32.mrb[2].mxu1 }
 0x100   : > { %v424_v3 = vadd.f32 %v766_v1, %v1035_v56  ;;  %v504_v4 = vadd.f32 %v790_v2, %v1035_v56  ;;  %v418_v5 = vpop.f32.mrb[3].mxu0  ;;  %v498_v6 = vpop.f32.mrb[3].mxu1 }
 0x101   : > { %v419_v7 = vadd.f32 %v1035_v56, %v418_v5  ;;  %v499_v8 = vadd.f32 %v1035_v56, %v498_v6 }
 0x102   : > { %570 = vst [vmem:[%s1041_s12 + $0x18] sm:$0xff] %v424_v3  ;;  %586 = vst [vmem:[%s1041_s12 + $0x98] sm:$0xff] %v504_v4 }
 0x103   : > { %569 = vst [vmem:[%s1041_s12 + $0x10] sm:$0xff] %v419_v7  ;;  %585 = vst [vmem:[%s1041_s12 + $0x90] sm:$0xff] %v499_v8  ;;  %v769_v9 = vpop.f32.mrb[4].mxu0  ;;  %v793_v10 = vpop.f32.mrb[4].mxu1 }
 0x104   : > { %v434_v11 = vadd.f32 %v769_v9, %v1035_v56  ;;  %v514_v12 = vadd.f32 %v793_v10, %v1035_v56  ;;  %v428_v13 = vpop.f32.mrb[5].mxu0  ;;  %v508_v14 = vpop.f32.mrb[5].mxu1 }
 0x105   : > { %v429_v15 = vadd.f32 %v1035_v56, %v428_v13  ;;  %v509_v16 = vadd.f32 %v1035_v56, %v508_v14 }
 0x106   : > { %572 = vst [vmem:[%s1041_s12 + $0x28] sm:$0xff] %v434_v11  ;;  %588 = vst [vmem:[%s1041_s12 + $0xa8] sm:$0xff] %v514_v12 }
 0x107   : > { %571 = vst [vmem:[%s1041_s12 + $0x20] sm:$0xff] %v429_v15  ;;  %587 = vst [vmem:[%s1041_s12 + $0xa0] sm:$0xff] %v509_v16  ;;  %v772_v17 = vpop.f32.mrb[6].mxu0  ;;  %v796_v18 = vpop.f32.mrb[6].mxu1 }
 0x108   : > { %v444_v19 = vadd.f32 %v772_v17, %v1035_v56  ;;  %v524_v20 = vadd.f32 %v796_v18, %v1035_v56  ;;  %v438_v21 = vpop.f32.mrb[7].mxu0  ;;  %v518_v22 = vpop.f32.mrb[7].mxu1 }
 0x109   : > { %v439_v23 = vadd.f32 %v1035_v56, %v438_v21  ;;  %v519_v24 = vadd.f32 %v1035_v56, %v518_v22 }
 0x10a   : > { %574 = vst [vmem:[%s1041_s12 + $0x38] sm:$0xff] %v444_v19  ;;  %590 = vst [vmem:[%s1041_s12 + $0xb8] sm:$0xff] %v524_v20 }
 0x10b   : > { %573 = vst [vmem:[%s1041_s12 + $0x30] sm:$0xff] %v439_v23  ;;  %589 = vst [vmem:[%s1041_s12 + $0xb0] sm:$0xff] %v519_v24  ;;  %v775_v25 = vpop.f32.mrb[8].mxu0  ;;  %v799_v26 = vpop.f32.mrb[8].mxu1 }
 0x10c   : > { %v454_v27 = vadd.f32 %v775_v25, %v1035_v56  ;;  %v534_v28 = vadd.f32 %v799_v26, %v1035_v56  ;;  %v448_v29 = vpop.f32.mrb[9].mxu0  ;;  %v528_v30 = vpop.f32.mrb[9].mxu1 }
 0x10d   : > { %v449_v31 = vadd.f32 %v1035_v56, %v448_v29  ;;  %v529_v32 = vadd.f32 %v1035_v56, %v528_v30 }
 0x10e   : > { %576 = vst [vmem:[%s1041_s12 + $0x48] sm:$0xff] %v454_v27  ;;  %592 = vst [vmem:[%s1041_s12 + $0xc8] sm:$0xff] %v534_v28 }
 0x10f   : > { %575 = vst [vmem:[%s1041_s12 + $0x40] sm:$0xff] %v449_v31  ;;  %591 = vst [vmem:[%s1041_s12 + $0xc0] sm:$0xff] %v529_v32  ;;  %v778_v33 = vpop.f32.mrb[10].mxu0  ;;  %v802_v34 = vpop.f32.mrb[10].mxu1 }
 0x110   : > { %v464_v35 = vadd.f32 %v778_v33, %v1035_v56  ;;  %v544_v36 = vadd.f32 %v802_v34, %v1035_v56  ;;  %v458_v37 = vpop.f32.mrb[11].mxu0  ;;  %v538_v38 = vpop.f32.mrb[11].mxu1 }
 0x111   : > { %v459_v39 = vadd.f32 %v1035_v56, %v458_v37  ;;  %v539_v40 = vadd.f32 %v1035_v56, %v538_v38 }
 0x112   : > { %578 = vst [vmem:[%s1041_s12 + $0x58] sm:$0xff] %v464_v35  ;;  %594 = vst [vmem:[%s1041_s12 + $0xd8] sm:$0xff] %v544_v36 }
 0x113   : > { %577 = vst [vmem:[%s1041_s12 + $0x50] sm:$0xff] %v459_v39  ;;  %593 = vst [vmem:[%s1041_s12 + $0xd0] sm:$0xff] %v539_v40  ;;  %v781_v41 = vpop.f32.mrb[12].mxu0  ;;  %v805_v42 = vpop.f32.mrb[12].mxu1 }
 0x114   : > { %v474_v43 = vadd.f32 %v781_v41, %v1035_v56  ;;  %v554_v44 = vadd.f32 %v805_v42, %v1035_v56  ;;  %v468_v45 = vpop.f32.mrb[13].mxu0  ;;  %v548_v46 = vpop.f32.mrb[13].mxu1 }
 0x115   : > { %v469_v47 = vadd.f32 %v1035_v56, %v468_v45  ;;  %v549_v48 = vadd.f32 %v1035_v56, %v548_v46 }
 0x116   : > { %580 = vst [vmem:[%s1041_s12 + $0x68] sm:$0xff] %v474_v43  ;;  %596 = vst [vmem:[%s1041_s12 + $0xe8] sm:$0xff] %v554_v44 }
 0x117   : > { %579 = vst [vmem:[%s1041_s12 + $0x60] sm:$0xff] %v469_v47  ;;  %595 = vst [vmem:[%s1041_s12 + $0xe0] sm:$0xff] %v549_v48  ;;  %v784_v49 = vpop.f32.mrb[14].mxu0  ;;  %v808_v50 = vpop.f32.mrb[14].mxu1 }
 0x118   : > { %v484_v51 = vadd.f32 %v784_v49, %v1035_v56  ;;  %v564_v52 = vadd.f32 %v808_v50, %v1035_v56  ;;  %v478_v53 = vpop.f32.mrb[15].mxu0  ;;  %v558_v54 = vpop.f32.mrb[15].mxu1 }
 0x119   : > { %v479_v55 = vadd.f32 %v1035_v56, %v478_v53  ;;  %v559_v57 = vadd.f32 %v1035_v56, %v558_v54 }
 0x11a   : > { %582 = vst [vmem:[%s1041_s12 + $0x78] sm:$0xff] %v484_v51  ;;  %598 = vst [vmem:[%s1041_s12 + $0xf8] sm:$0xff] %v564_v52 }
 0x11b   : > { %581 = vst [vmem:[%s1041_s12 + $0x70] sm:$0xff] %v479_v55  ;;  %597 = vst [vmem:[%s1041_s12 + $0xf0] sm:$0xff] %v559_v57 }
 0x11c PF: > { %s14_s15 = sadd.s32 1, %s871_s15  }
 0x11d   : > { %p11_p4 = scmp.ge.s32.totalorder %s14_s15, 4  }
 0x11f   :  { %13 = sbr.rel (!%p11_p4) target bundleno = 1 (0x1), region = 69 }

// kernel: da_head_forward.13
= control target key start
LH: loop header
LB: loop body
LE: loop exit
PB: predicated region body
PF: predicated region fallthrough
CT: control target
= control target key end

     0   :  { %s2133_s18 = smov 0   ;;  %s2135_s19 = smov 0   ;;  %s2917_s0 = inlined_call_operand.vmem [shape: f32[2,256,128], index: 0, kind: input, shape index: {}]   ;;  %s2918_s1 = inlined_call_operand.vmem [shape: f32[2,256,128], index: 1, kind: input, shape index: {}]   ;;  %s2919_s2 = inlined_call_operand.vmem [shape: f32[2,256,128], index: 2, kind: input, shape index: {}]   ;;  %s2920_s3 = inlined_call_operand.vmem [shape: f32[2,256,128], index: 3, kind: input, shape index: {}]   ;;  %s2921_s4 = inlined_call_operand.vmem [shape: f32[1,128], index: 4, kind: input, shape index: {}]   ;;  %s2922_s5 = inlined_call_operand.vmem [shape: f32[2,256,128], index: 5, kind: output, shape index: {}]  }
   0x1   :  { %s2137_s20 = smov 0  }
   0x2 LB: > { %s27_s21 = sadd.s32 1, %s2096_s19  ;;  %p1666_p0 = scmp.ge.s32.totalorder %s2100_s20, 1  ;;  %s2100_s20 = sphi %s2137_s20, %s15_s20   ;;  %s2096_s19 = sphi %s2135_s19, %s2999_s19   ;;  %s2092_s18 = sphi %s2133_s18, %s2998_s18  }
   0x3   : > { %p29_p1 = scmp.ge.s32.totalorder %s27_s21, 2  ;;  %p245_p2 = scmp.lt.s32.totalorder %s2100_s20, 3 }
   0x5   : > { %s3001_s21 = smov (%p29_p1, %s27_s21), 0  ;;  %p246_p3 = pnand %p1666_p0, %p245_p2 }
   0x7   : > { %249 = sbr.rel (%p246_p3) target bundleno = 958 (0x3be), region = 40 }
   0xe   : > { %p301_p4 = scmp.lt.s32.totalorder %s2092_s18, 1 }
  0x10   : > { %s3003_s18 = smov (!%p301_p4, %s2092_s18), 1 }
  0x11   : > { %s2151_s22 = sshll.u32 %s3003_s18, 8 }
  0x12   : > { %s2157_s25 = scalar_lea.vmem %s2918_s1, %s2151_s22  ;;  %s2173_s28 = scalar_lea.vmem %s2917_s0, %s2151_s22 }
  0x13   : > { %v388_v0 = vld [vmem:[%s2157_s25 + $0x80] sm:$0xff]  ;;  %v389_v1 = vld [vmem:[%s2157_s25 + $0x88] sm:$0xff]  ;;  %v390_v5 = vld [vmem:[%s2157_s25 + $0x90] sm:$0xff]  ;;  %s2423_s6 = scalar_lea.vmem %s2919_s2, %s2151_s22  ;;  %s2799_s9 = scalar_lea.vmem %s2920_s3, %s2151_s22 }
  0x14   : > { %v372_v2 = vld [vmem:[%s2157_s25] sm:$0xff]  ;;  %v1781_v3 = vpack.c.bf16 %v389_v1, %v388_v0  ;;  %v373_v4 = vld [vmem:[%s2157_s25 + $0x8] sm:$0xff]  ;;  %v391_v6 = vld [vmem:[%s2157_s25 + $0x98] sm:$0xff]  ;;  %s2812_s14 = scalar_lea.vmem %s2922_s5, %s2151_s22 }
  0x15   : > { %v1783_v7 = vpack.c.bf16 %v373_v4, %v372_v2  ;;  %v1785_v8 = vpack.c.bf16 %v391_v6, %v390_v5  ;;  %v374_v9 = vld [vmem:[%s2157_s25 + $0x10] sm:$0xff]  ;;  %v375_v10 = vld [vmem:[%s2157_s25 + $0x18] sm:$0xff]  ;;  %v392_v11 = vld [vmem:[%s2157_s25 + $0xa0] sm:$0xff] }
  0x16   : > { %1782 = vmatprep.subr.bf16.mxu0 %v1781_v3  ;;  %v393_v12 = vld [vmem:[%s2157_s25 + $0xa8] sm:$0xff]  ;;  %v1787_v13 = vpack.c.bf16 %v375_v10, %v374_v9  ;;  %v340_v15 = vld [vmem:[%s2173_s28] sm:$0xff]  ;;  %v394_v18 = vld [vmem:[%s2157_s25 + $0xb0] sm:$0xff] }
  0x17   : > { %1784 = vmatpush3.bf16.xpose.msra.mxu0 %v1783_v7  ;;  %v1789_v14 = vpack.c.bf16 %v393_v12, %v392_v11  ;;  %1717 = vmatprep.mubr.f32.mxu0 %v340_v15  ;;  %v376_v16 = vld [vmem:[%s2157_s25 + $0x20] sm:$0xff]  ;;  %v377_v17 = vld [vmem:[%s2157_s25 + $0x28] sm:$0xff]  ;;  %v395_v19 = vld [vmem:[%s2157_s25 + $0xb8] sm:$0xff] }
  0x18   : > { %1786 = vmatprep.subr.bf16.mxu0 %v1785_v8  ;;  %v1791_v20 = vpack.c.bf16 %v377_v17, %v376_v16  ;;  %v1793_v21 = vpack.c.bf16 %v395_v19, %v394_v18  ;;  %v378_v22 = vld [vmem:[%s2157_s25 + $0x30] sm:$0xff]  ;;  %v379_v23 = vld [vmem:[%s2157_s25 + $0x38] sm:$0xff]  ;;  %v396_v24 = vld [vmem:[%s2157_s25 + $0xc0] sm:$0xff] }
  0x19   : > { %v397_v25 = vld [vmem:[%s2157_s25 + $0xc8] sm:$0xff]  ;;  %v1795_v26 = vpack.c.bf16 %v379_v23, %v378_v22  ;;  %v380_v28 = vld [vmem:[%s2157_s25 + $0x40] sm:$0xff]  ;;  %v398_v30 = vld [vmem:[%s2157_s25 + $0xd0] sm:$0xff] }
  0x1a   : > { %v1797_v27 = vpack.c.bf16 %v397_v25, %v396_v24  ;;  %v381_v29 = vld [vmem:[%s2157_s25 + $0x48] sm:$0xff]  ;;  %v399_v31 = vld [vmem:[%s2157_s25 + $0xd8] sm:$0xff]  ;;  %v382_v34 = vld [vmem:[%s2157_s25 + $0x50] sm:$0xff] }
  0x1b   : > { %v1799_v32 = vpack.c.bf16 %v381_v29, %v380_v28  ;;  %v1801_v33 = vpack.c.bf16 %v399_v31, %v398_v30  ;;  %v383_v35 = vld [vmem:[%s2157_s25 + $0x58] sm:$0xff]  ;;  %v400_v36 = vld [vmem:[%s2157_s25 + $0xe0] sm:$0xff]  ;;  %v401_v37 = vld [vmem:[%s2157_s25 + $0xe8] sm:$0xff] }
  0x1c   : > { %v1803_v38 = vpack.c.bf16 %v383_v35, %v382_v34  ;;  %v1805_v39 = vpack.c.bf16 %v401_v37, %v400_v36  ;;  %v384_v40 = vld [vmem:[%s2157_s25 + $0x60] sm:$0xff]  ;;  %v385_v41 = vld [vmem:[%s2157_s25 + $0x68] sm:$0xff]  ;;  %v402_v42 = vld [vmem:[%s2157_s25 + $0xf0] sm:$0xff] }
  0x1d   : > { %v403_v43 = vld [vmem:[%s2157_s25 + $0xf8] sm:$0xff]  ;;  %v1807_v44 = vpack.c.bf16 %v385_v41, %v384_v40  ;;  %v386_v46 = vld [vmem:[%s2157_s25 + $0x70] sm:$0xff]  ;;  %v341_v49 = vld [vmem:[%s2173_s28 + $0x8] sm:$0xff] }
  0x1e   : > { %v1809_v45 = vpack.c.bf16 %v403_v43, %v402_v42  ;;  %v387_v47 = vld [vmem:[%s2157_s25 + $0x78] sm:$0xff]  ;;  %v342_v50 = vld [vmem:[%s2173_s28 + $0x10] sm:$0xff]  ;;  %v344_v52 = vld [vmem:[%s2173_s28 + $0x20] sm:$0xff] }
  0x1f   : > { %1788 = vmatpush3.bf16.xpose.msra.mxu0 %v1787_v13  ;;  %v1811_v48 = vpack.c.bf16 %v387_v47, %v386_v46  ;;  %v343_v51 = vld [vmem:[%s2173_s28 + $0x18] sm:$0xff]  ;;  %v345_v53 = vld [vmem:[%s2173_s28 + $0x28] sm:$0xff]  ;;  %v346_v54 = vld [vmem:[%s2173_s28 + $0x30] sm:$0xff] }
  0x20   : > { %1790 = vmatprep.subr.bf16.mxu0 %v1789_v14  ;;  %v347_v55 = vld [vmem:[%s2173_s28 + $0x38] sm:$0xff]  ;;  %v348_v56 = vld [vmem:[%s2173_s28 + $0x40] sm:$0xff]  ;;  %v349_v57 = vld [vmem:[%s2173_s28 + $0x48] sm:$0xff] }
  0x21   : > { %v350_v58 = vld [vmem:[%s2173_s28 + $0x50] sm:$0xff]  ;;  %v351_v59 = vld [vmem:[%s2173_s28 + $0x58] sm:$0xff]  ;;  %v352_v60 = vld [vmem:[%s2173_s28 + $0x60] sm:$0xff] }
  0x22   : > { %v353_v61 = vld [vmem:[%s2173_s28 + $0x68] sm:$0xff]  ;;  %v354_v62 = vld [vmem:[%s2173_s28 + $0x70] sm:$0xff]  ;;  %v355_v63 = vld [vmem:[%s2173_s28 + $0x78] sm:$0xff] }
  0x23   : > { %v356_v0 = vld [vmem:[%s2173_s28 + $0x80] sm:$0xff]  ;;  %v357_v1 = vld [vmem:[%s2173_s28 + $0x88] sm:$0xff]  ;;  %v358_v2 = vld [vmem:[%s2173_s28 + $0x90] sm:$0xff] }
  0x24   : > { %v359_v3 = vld [vmem:[%s2173_s28 + $0x98] sm:$0xff]  ;;  %v360_v4 = vld [vmem:[%s2173_s28 + $0xa0] sm:$0xff]  ;;  %v361_v5 = vld [vmem:[%s2173_s28 + $0xa8] sm:$0xff] }
  0x25   : > { %v362_v6 = vld [vmem:[%s2173_s28 + $0xb0] sm:$0xff]  ;;  %v363_v7 = vld [vmem:[%s2173_s28 + $0xb8] sm:$0xff]  ;;  %v364_v8 = vld [vmem:[%s2173_s28 + $0xc0] sm:$0xff] }
  0x26   : > { %v365_v9 = vld [vmem:[%s2173_s28 + $0xc8] sm:$0xff]  ;;  %v366_v10 = vld [vmem:[%s2173_s28 + $0xd0] sm:$0xff]  ;;  %v367_v11 = vld [vmem:[%s2173_s28 + $0xd8] sm:$0xff] }
  0x27   : > { %1792 = vmatpush3.bf16.xpose.msra.mxu0 %v1791_v20  ;;  %v368_v12 = vld [vmem:[%s2173_s28 + $0xe0] sm:$0xff]  ;;  %v369_v13 = vld [vmem:[%s2173_s28 + $0xe8] sm:$0xff]  ;;  %v370_v14 = vld [vmem:[%s2173_s28 + $0xf0] sm:$0xff] }
  0x28   : > { %1794 = vmatprep.subr.bf16.mxu0 %v1793_v21 }
  0x2f   : > { %1796 = vmatpush3.bf16.xpose.msra.mxu0 %v1795_v26 }
  0x30   : > { %1798 = vmatprep.subr.bf16.mxu0 %v1797_v27 }
  0x37   : > { %1800 = vmatpush3.bf16.xpose.msra.mxu0 %v1799_v32 }
  0x38   : > { %1802 = vmatprep.subr.bf16.mxu0 %v1801_v33 }
  0x3f   : > { %1804 = vmatpush3.bf16.xpose.msra.mxu0 %v1803_v38 }
  0x40   : > { %1806 = vmatprep.subr.bf16.mxu0 %v1805_v39 }
  0x47   : > { %1808 = vmatpush3.bf16.xpose.msra.mxu0 %v1807_v44 }
  0x48   : > { %1810 = vmatprep.subr.bf16.mxu0 %v1809_v45 }
  0x4f   : > { %1812 = vmatpush3.bf16.xpose.msra.mxu0 %v1811_v48 }
  0x56   : > { %1718 = vmatmul.mubr.f32.vlgmr.msra.gmra.mrb[0].mxu0 %v340_v15  ;;  %v371_v15 = vld [vmem:[%s2173_s28 + $0xf8] sm:$0xff] }
  0x57   : > { %1719 = vmatprep.mubr.f32.mxu0 %v341_v49 }
  0x5a   : > { %1720 = vmatmul.mubr.f32.gmra.mrb[2].mxu0 %v341_v49 }
  0x5b   : > { %1721 = vmatprep.mubr.f32.mxu0 %v342_v50 }
  0x5e   : > { %1722 = vmatmul.mubr.f32.gmra.mrb[4].mxu0 %v342_v50 }
  0x5f   : > { %1723 = vmatprep.mubr.f32.mxu0 %v343_v51 }
  0x62   : > { %1724 = vmatmul.mubr.f32.gmra.mrb[6].mxu0 %v343_v51 }
  0x63   : > { %1725 = vmatprep.mubr.f32.mxu0 %v344_v52 }
  0x66   : > { %1726 = vmatmul.mubr.f32.gmra.mrb[8].mxu0 %v344_v52 }
  0x67   : > { %1727 = vmatprep.mubr.f32.mxu0 %v345_v53 }
  0x6a   : > { %1728 = vmatmul.mubr.f32.gmra.mrb[10].mxu0 %v345_v53 }
  0x6b   : > { %1729 = vmatprep.mubr.f32.mxu0 %v346_v54 }
  0x6e   : > { %1730 = vmatmul.mubr.f32.gmra.mrb[12].mxu0 %v346_v54 }
  0x6f   : > { %1731 = vmatprep.mubr.f32.mxu0 %v347_v55 }
  0x72   : > { %1732 = vmatmul.mubr.f32.gmra.mrb[14].mxu0 %v347_v55 }
  0x73   : > { %1733 = vmatprep.mubr.f32.mxu0 %v348_v56 }
  0x76   : > { %1734 = vmatmul.mubr.f32.gmra.mrb[16].mxu0 %v348_v56 }
  0x77   : > { %1735 = vmatprep.mubr.f32.mxu0 %v349_v57 }
  0x7a   : > { %1736 = vmatmul.mubr.f32.gmra.mrb[18].mxu0 %v349_v57 }
  0x7b   : > { %1737 = vmatprep.mubr.f32.mxu0 %v350_v58 }
  0x7e   : > { %1738 = vmatmul.mubr.f32.gmra.mrb[20].mxu0 %v350_v58 }
  0x7f   : > { %1739 = vmatprep.mubr.f32.mxu0 %v351_v59 }
  0x82   : > { %1740 = vmatmul.mubr.f32.gmra.mrb[22].mxu0 %v351_v59 }
  0x83   : > { %1741 = vmatprep.mubr.f32.mxu0 %v352_v60 }
  0x86   : > { %1742 = vmatmul.mubr.f32.gmra.mrb[24].mxu0 %v352_v60 }
  0x87   : > { %1743 = vmatprep.mubr.f32.mxu0 %v353_v61 }
  0x8a   : > { %1744 = vmatmul.mubr.f32.gmra.mrb[26].mxu0 %v353_v61 }
  0x8b   : > { %1745 = vmatprep.mubr.f32.mxu0 %v354_v62 }
  0x8e   : > { %1746 = vmatmul.mubr.f32.gmra.mrb[28].mxu0 %v354_v62 }
  0x8f   : > { %1747 = vmatprep.mubr.f32.mxu0 %v355_v63 }
  0x92   : > { %1748 = vmatmul.mubr.f32.gmra.mrb[30].mxu0 %v355_v63 }
  0x93   : > { %1749 = vmatprep.mubr.f32.mxu0 %v356_v0 }
  0x96   : > { %1750 = vmatmul.mubr.f32.gmra.mrb[32].mxu0 %v356_v0 }
  0x97   : > { %1751 = vmatprep.mubr.f32.mxu0 %v357_v1 }
  0x9a   : > { %1752 = vmatmul.mubr.f32.gmra.mrb[34].mxu0 %v357_v1 }
  0x9b   : > { %1753 = vmatprep.mubr.f32.mxu0 %v358_v2 }
  0x9e   : > { %1754 = vmatmul.mubr.f32.gmra.mrb[36].mxu0 %v358_v2 }
  0x9f   : > { %1755 = vmatprep.mubr.f32.mxu0 %v359_v3 }
  0xa2   : > { %1756 = vmatmul.mubr.f32.gmra.mrb[38].mxu0 %v359_v3 }
  0xa3   : > { %1757 = vmatprep.mubr.f32.mxu0 %v360_v4 }
  0xa6   : > { %1758 = vmatmul.mubr.f32.gmra.mrb[40].mxu0 %v360_v4 }
  0xa7   : > { %1759 = vmatprep.mubr.f32.mxu0 %v361_v5 }
  0xaa   : > { %1760 = vmatmul.mubr.f32.gmra.mrb[42].mxu0 %v361_v5 }
  0xab   : > { %1761 = vmatprep.mubr.f32.mxu0 %v362_v6 }
  0xae   : > { %1762 = vmatmul.mubr.f32.gmra.mrb[44].mxu0 %v362_v6 }
  0xaf   : > { %1763 = vmatprep.mubr.f32.mxu0 %v363_v7 }
  0xb2   : > { %1764 = vmatmul.mubr.f32.gmra.mrb[46].mxu0 %v363_v7 }
  0xb3   : > { %1765 = vmatprep.mubr.f32.mxu0 %v364_v8 }
  0xb6   : > { %1766 = vmatmul.mubr.f32.gmra.mrb[48].mxu0 %v364_v8 }
  0xb7   : > { %1767 = vmatprep.mubr.f32.mxu0 %v365_v9 }
  0xba   : > { %1768 = vmatmul.mubr.f32.gmra.mrb[50].mxu0 %v365_v9 }
  0xbb   : > { %1769 = vmatprep.mubr.f32.mxu0 %v366_v10 }
  0xbe   : > { %1770 = vmatmul.mubr.f32.gmra.mrb[52].mxu0 %v366_v10 }
  0xbf   : > { %1771 = vmatprep.mubr.f32.mxu0 %v367_v11 }
  0xc2   : > { %1772 = vmatmul.mubr.f32.gmra.mrb[54].mxu0 %v367_v11 }
  0xc3   : > { %1773 = vmatprep.mubr.f32.mxu0 %v368_v12 }
  0xc6   : > { %1774 = vmatmul.mubr.f32.gmra.mrb[56].mxu0 %v368_v12 }
  0xc7   : > { %1775 = vmatprep.mubr.f32.mxu0 %v369_v13 }
  0xca   : > { %1776 = vmatmul.mubr.f32.gmra.mrb[58].mxu0 %v369_v13 }
  0xcb   : > { %1777 = vmatprep.mubr.f32.mxu0 %v370_v14 }
  0xce   : > { %1778 = vmatmul.mubr.f32.gmra.mrb[60].mxu0 %v370_v14 }
  0xcf   : > { %1779 = vmatprep.mubr.f32.mxu0 %v371_v15 }
  0xd2   : > { %1780 = vmatmul.mubr.f32.gmra.mrb[62].mxu0 %v371_v15 }
 0x129   : > { %v2229_v16 = vpop.f32.mrb[0].mxu0 }
 0x12a   : > { %v2231_v17 = vpop.f32.mrb[1].mxu0 }
 0x12b   : > { %v693_v18 = vmax.f32 %v2229_v16, %v2231_v17 }
 0x12d   : > { %694 = vmax.xlane.f32.xlu0 %v693_v18  ;;  %v2235_v19 = vpop.f32.mrb[2].mxu0 }
 0x12e   : > { %v2237_v20 = vpop.f32.mrb[3].mxu0 }
 0x12f   : > { %v696_v21 = vmax.f32 %v2235_v19, %v2237_v20 }
 0x131   : > { %697 = vmax.xlane.f32.xlu0 %v696_v21  ;;  %v2241_v22 = vpop.f32.mrb[4].mxu0 }
 0x132   : > { %v2243_v23 = vpop.f32.mrb[5].mxu0 }
 0x133   : > { %v699_v24 = vmax.f32 %v2241_v22, %v2243_v23 }
 0x135   : > { %700 = vmax.xlane.f32.xlu1 %v699_v24  ;;  %v2247_v25 = vpop.f32.mrb[6].mxu0 }
 0x136   : > { %v2249_v26 = vpop.f32.mrb[7].mxu0 }
 0x137   : > { %v702_v27 = vmax.f32 %v2247_v25, %v2249_v26 }
 0x139   : > { %703 = vmax.xlane.f32.xlu1 %v702_v27  ;;  %v2253_v28 = vpop.f32.mrb[8].mxu0 }
 0x13a   : > { %v2255_v29 = vpop.f32.mrb[9].mxu0 }
 0x13b   : > { %v705_v30 = vmax.f32 %v2253_v28, %v2255_v29 }
 0x13d   : > { %706 = vmax.xlane.f32.xlu0 %v705_v30  ;;  %v2259_v31 = vpop.f32.mrb[10].mxu0 }
 0x13e   : > { %v2261_v32 = vpop.f32.mrb[11].mxu0 }
 0x13f   : > { %v708_v33 = vmax.f32 %v2259_v31, %v2261_v32 }
 0x141   : > { %709 = vmax.xlane.f32.xlu1 %v708_v33  ;;  %v2265_v34 = vpop.f32.mrb[12].mxu0 }
 0x142   : > { %v2267_v35 = vpop.f32.mrb[13].mxu0 }
 0x143   : > { %v711_v36 = vmax.f32 %v2265_v34, %v2267_v35 }
 0x145   : > { %712 = vmax.xlane.f32.xlu0 %v711_v36  ;;  %v2271_v37 = vpop.f32.mrb[14].mxu0 }
 0x146   : > { %v2273_v38 = vpop.f32.mrb[15].mxu0 }
 0x147   : > { %v714_v39 = vmax.f32 %v2271_v37, %v2273_v38 }
 0x149   : > { %715 = vmax.xlane.f32.xlu1 %v714_v39  ;;  %v2277_v40 = vpop.f32.mrb[16].mxu0 }
 0x14a   : > { %v2279_v41 = vpop.f32.mrb[17].mxu0 }
 0x14b   : > { %v717_v42 = vmax.f32 %v2277_v40, %v2279_v41 }
 0x14d   : > { %718 = vmax.xlane.f32.xlu0 %v717_v42  ;;  %v2283_v43 = vpop.f32.mrb[18].mxu0 }
 0x14e   : > { %v2285_v44 = vpop.f32.mrb[19].mxu0 }
 0x14f   : > { %v720_v45 = vmax.f32 %v2283_v43, %v2285_v44 }
 0x151   : > { %721 = vmax.xlane.f32.xlu1 %v720_v45  ;;  %v2289_v46 = vpop.f32.mrb[20].mxu0 }
 0x152   : > { %v2291_v47 = vpop.f32.mrb[21].mxu0 }
 0x153   : > { %v723_v48 = vmax.f32 %v2289_v46, %v2291_v47 }
 0x155   : > { %724 = vmax.xlane.f32.xlu0 %v723_v48  ;;  %v2295_v49 = vpop.f32.mrb[22].mxu0 }
 0x156   : > { %v2297_v50 = vpop.f32.mrb[23].mxu0 }
 0x157   : > { %v726_v51 = vmax.f32 %v2295_v49, %v2297_v50 }
 0x159   : > { %727 = vmax.xlane.f32.xlu1 %v726_v51  ;;  %v2301_v52 = vpop.f32.mrb[24].mxu0 }
 0x15a   : > { %v2303_v53 = vpop.f32.mrb[25].mxu0 }
 0x15b   : > { %v729_v54 = vmax.f32 %v2301_v52, %v2303_v53 }
 0x15d   : > { %730 = vmax.xlane.f32.xlu0 %v729_v54  ;;  %v2307_v55 = vpop.f32.mrb[26].mxu0 }
 0x15e   : > { %v2309_v56 = vpop.f32.mrb[27].mxu0 }
 0x15f   : > { %v732_v57 = vmax.f32 %v2307_v55, %v2309_v56 }
 0x161   : > { %733 = vmax.xlane.f32.xlu1 %v732_v57  ;;  %v2313_v58 = vpop.f32.mrb[28].mxu0 }
 0x162   : > { %v2315_v59 = vpop.f32.mrb[29].mxu0 }
 0x163   : > { %v735_v60 = vmax.f32 %v2313_v58, %v2315_v59 }
 0x165   : > { %736 = vmax.xlane.f32.xlu0 %v735_v60  ;;  %v2319_v61 = vpop.f32.mrb[30].mxu0 }
 0x166   : > { %v2321_v62 = vpop.f32.mrb[31].mxu0 }
 0x167   : > { %v738_v63 = vmax.f32 %v2319_v61, %v2321_v62 }
 0x169   : > { %739 = vmax.xlane.f32.xlu1 %v738_v63  ;;  %v2325_v0 = vpop.f32.mrb[32].mxu0 }
 0x16a   : > { %v2327_v1 = vpop.f32.mrb[33].mxu0 }
 0x16b   : > { %v741_v2 = vmax.f32 %v2325_v0, %v2327_v1 }
 0x16d   : > { %742 = vmax.xlane.f32.xlu0 %v741_v2  ;;  %v2331_v3 = vpop.f32.mrb[34].mxu0 }
 0x16e   : > { %v2333_v4 = vpop.f32.mrb[35].mxu0 }
 0x16f   : > { %v744_v5 = vmax.f32 %v2331_v3, %v2333_v4 }
 0x171   : > { %745 = vmax.xlane.f32.xlu1 %v744_v5  ;;  %v2337_v6 = vpop.f32.mrb[36].mxu0 }
 0x172   : > { %v2339_v7 = vpop.f32.mrb[37].mxu0 }
 0x173   : > { %v747_v8 = vmax.f32 %v2337_v6, %v2339_v7 }
 0x175   : > { %748 = vmax.xlane.f32.xlu0 %v747_v8  ;;  %v2343_v9 = vpop.f32.mrb[38].mxu0 }
 0x176   : > { %v2345_v10 = vpop.f32.mrb[39].mxu0 }
 0x177   : > { %v750_v11 = vmax.f32 %v2343_v9, %v2345_v10 }
 0x179   : > { %751 = vmax.xlane.f32.xlu1 %v750_v11  ;;  %v2349_v12 = vpop.f32.mrb[40].mxu0 }
 0x17a   : > { %v2351_v13 = vpop.f32.mrb[41].mxu0 }
 0x17b   : > { %v753_v14 = vmax.f32 %v2349_v12, %v2351_v13 }
 0x17d   : > { %754 = vmax.xlane.f32.xlu0 %v753_v14  ;;  %v2355_v15 = vpop.f32.mrb[42].mxu0 }
 0x17e   : > { %v2357_v18 = vpop.f32.mrb[43].mxu0 }
 0x17f   : > { %v756_v21 = vmax.f32 %v2355_v15, %v2357_v18 }
 0x181   : > { %757 = vmax.xlane.f32.xlu1 %v756_v21  ;;  %v2361_v24 = vpop.f32.mrb[44].mxu0 }
 0x182   : > { %v2363_v27 = vpop.f32.mrb[45].mxu0 }
 0x183   : > { %v759_v30 = vmax.f32 %v2361_v24, %v2363_v27 }
 0x185   : > { %760 = vmax.xlane.f32.xlu0 %v759_v30  ;;  %v2367_v33 = vpop.f32.mrb[46].mxu0 }
 0x186   : > { %v2369_v36 = vpop.f32.mrb[47].mxu0 }
 0x187   : > { %v762_v39 = vmax.f32 %v2367_v33, %v2369_v36 }
 0x189   : > { %763 = vmax.xlane.f32.xlu0 %v762_v39  ;;  %v2373_v42 = vpop.f32.mrb[48].mxu0 }
 0x18a   : > { %v2375_v45 = vpop.f32.mrb[49].mxu0 }
 0x18b   : > { %v765_v48 = vmax.f32 %v2373_v42, %v2375_v45 }
 0x18d   : > { %766 = vmax.xlane.f32.xlu0 %v765_v48  ;;  %v2379_v51 = vpop.f32.mrb[50].mxu0 }
 0x18e   : > { %2948 = vst [vmem:[#allocation2_spill] sm:$0xff] %v2379_v51  ;;  %v2381_v54 = vpop.f32.mrb[51].mxu0 }
 0x18f   : > { %2949 = vst [vmem:[#allocation3_spill] sm:$0xff] %v2381_v54  ;;  %v768_v57 = vmax.f32 %v2379_v51, %v2381_v54 }
 0x191   : > { %769 = vmax.xlane.f32.xlu0 %v768_v57  ;;  %v2385_v60 = vpop.f32.mrb[52].mxu0 }
 0x192   : > { %2950 = vst [vmem:[#allocation4_spill] sm:$0xff] %v2385_v60  ;;  %v2387_v63 = vpop.f32.mrb[53].mxu0 }
 0x193   : > { %2951 = vst [vmem:[#allocation5_spill] sm:$0xff] %v2387_v63  ;;  %v771_v2 = vmax.f32 %v2385_v60, %v2387_v63  ;;  %v412_v63 = vld [vmem:[%s2423_s6 + $0x40] sm:$0xff]  ;;  %v413_v60 = vld [vmem:[%s2423_s6 + $0x48] sm:$0xff] }
 0x195   : > { %772 = vmax.xlane.f32.xlu0 %v771_v2  ;;  %v2391_v5 = vpop.f32.mrb[54].mxu0 }
 0x196   : > { %2952 = vst [vmem:[#allocation6_spill] sm:$0xff] %v2391_v5  ;;  %v2393_v8 = vpop.f32.mrb[55].mxu0 }
 0x197   : > { %2953 = vst [vmem:[#allocation7_spill] sm:$0xff] %v2393_v8  ;;  %v774_v11 = vmax.f32 %v2391_v5, %v2393_v8 }
 0x199   : > { %775 = vmax.xlane.f32.xlu0 %v774_v11  ;;  %v2397_v14 = vpop.f32.mrb[56].mxu0 }
 0x19a   : > { %2954 = vst [vmem:[#allocation8_spill] sm:$0xff] %v2397_v14  ;;  %v2399_v21 = vpop.f32.mrb[57].mxu0 }
 0x19b   : > { %2955 = vst [vmem:[#allocation9_spill] sm:$0xff] %v2399_v21  ;;  %v777_v30 = vmax.f32 %v2397_v14, %v2399_v21 }
 0x19d   : > { %778 = vmax.xlane.f32.xlu0 %v777_v30  ;;  %v2403_v39 = vpop.f32.mrb[58].mxu0 }
 0x19e   : > { %2956 = vst [vmem:[#allocation10_spill] sm:$0xff] %v2403_v39  ;;  %v2405_v48 = vpop.f32.mrb[59].mxu0 }
 0x19f   : > { %2957 = vst [vmem:[#allocation11_spill] sm:$0xff] %v2405_v48  ;;  %v780_v57 = vmax.f32 %v2403_v39, %v2405_v48  ;;  %v406_v48 = vld [vmem:[%s2423_s6 + $0x10] sm:$0xff]  ;;  %v407_v39 = vld [vmem:[%s2423_s6 + $0x18] sm:$0xff] }
 0x1a0   : > { %v1817_v14 = vpack.c.bf16 %v407_v39, %v406_v48  ;;  %v1826_v39 = vpack.c.bf16 %v413_v60, %v412_v63  ;;  %v414_v48 = vld [vmem:[%s2423_s6 + $0x50] sm:$0xff] }
 0x1a1   : > { %781 = vmax.xlane.f32.xlu0 %v780_v57  ;;  %v2409_v2 = vpop.f32.mrb[60].mxu0  ;;  %v404_v57 = vld [vmem:[%s2423_s6] sm:$0xff] }
 0x1a2   : > { %2958 = vst [vmem:[#allocation12_spill] sm:$0xff] %v2409_v2  ;;  %v2411_v8 = vpop.f32.mrb[61].mxu0 }
 0x1a3   : > { %2959 = vst [vmem:[#allocation13_spill] sm:$0xff] %v2411_v8  ;;  %v783_v11 = vmax.f32 %v2409_v2, %v2411_v8  ;;  %v2102_v2 = vmov 0.0|0.0  }
 0x1a4   : > { %1813 = vmatprep.subr.bf16.mxu1 %v2102_v2 }
 0x1a5   : > { %784 = vmax.xlane.f32.xlu0 %v783_v11  ;;  %v2415_v5 = vpop.f32.mrb[62].mxu0  ;;  %v405_v11 = vld [vmem:[%s2423_s6 + $0x8] sm:$0xff] }
 0x1a6   : > { %2960 = vst [vmem:[#allocation14_spill] sm:$0xff] %v2415_v5  ;;  %v2417_v21 = vpop.f32.mrb[63].mxu0  ;;  %v1814_v8 = vpack.c.bf16 %v405_v11, %v404_v57 }
 0x1a7   : > { %2961 = vst [vmem:[#allocation15_spill] sm:$0xff] %v2417_v21  ;;  %v786_v30 = vmax.f32 %v2415_v5, %v2417_v21  ;;  %v408_v21 = vld [vmem:[%s2423_s6 + $0x20] sm:$0xff]  ;;  %v409_v5 = vld [vmem:[%s2423_s6 + $0x28] sm:$0xff] }
 0x1a8   : > { %1815 = vmatpush1.bf16.msra.mxu1 %v1814_v8  ;;  %v1820_v57 = vpack.c.bf16 %v409_v5, %v408_v21  ;;  %v411_v8 = vld [vmem:[%s2423_s6 + $0x38] sm:$0xff] }
 0x1a9   : > { %787 = vmax.xlane.f32.xlu0 %v786_v30  ;;  %1816 = vmatprep.subr.bf16.mxu1 %v2102_v2  ;;  %v410_v30 = vld [vmem:[%s2423_s6 + $0x30] sm:$0xff] }
 0x1aa   : > { %v1823_v11 = vpack.c.bf16 %v411_v8, %v410_v30 }
 0x1ac   : > { %1818 = vmatpush1.bf16.msra.mxu1 %v1817_v14 }
 0x1ad   : > { %1819 = vmatprep.subr.bf16.mxu1 %v2102_v2 }
 0x1b0   : > { %1821 = vmatpush1.bf16.msra.mxu1 %v1820_v57  ;;  %v415_v57 = vld [vmem:[%s2423_s6 + $0x58] sm:$0xff] }
 0x1b1   : > { %1822 = vmatprep.subr.bf16.mxu1 %v2102_v2  ;;  %v1829_v54 = vpack.c.bf16 %v415_v57, %v414_v48 }
 0x1b4   : > { %1824 = vmatpush1.bf16.msra.mxu1 %v1823_v11 }
 0x1b5   : > { %1825 = vmatprep.subr.bf16.mxu1 %v2102_v2 }
 0x1b8   : > { %1827 = vmatpush1.bf16.msra.mxu1 %v1826_v39 }
 0x1b9   : > { %1828 = vmatprep.subr.bf16.mxu1 %v2102_v2 }
 0x1ba   : > { %v695_v14 = vpop.xlane.xlu0 %694 }
 0x1bb   : > { %v789_v5 = vsub.f32 %v2229_v16, %v695_v14  ;;  %v790_v21 = vsub.f32 %v2231_v17, %v695_v14  ;;  %v416_v16 = vld [vmem:[%s2423_s6 + $0x60] sm:$0xff]  ;;  %v417_v17 = vld [vmem:[%s2423_s6 + $0x68] sm:$0xff] }
 0x1bc   : > { %1830 = vmatpush1.bf16.msra.mxu1 %v1829_v54  ;;  %v1832_v39 = vpack.c.bf16 %v417_v17, %v416_v16 }
 0x1bd   : > { %v853_v30 = vmul.f32 1.442695, %v789_v5  ;;  %v855_v8 = vmul.f32 1.442695, %v790_v21  ;;  %1831 = vmatprep.subr.bf16.mxu1 %v2102_v2  ;;  %v419_v5 = vld [vmem:[%s2423_s6 + $0x78] sm:$0xff] }
 0x1be   : > { %v698_v11 = vpop.xlane.xlu0 %697 }
 0x1bf   : > { %1886 = vpow2.f32 %v853_v30  ;;  %v791_v60 = vsub.f32 %v2235_v19, %v698_v11  ;;  %v792_v63 = vsub.f32 %v2237_v20, %v698_v11  ;;  %v418_v20 = vld [vmem:[%s2423_s6 + $0x70] sm:$0xff] }
 0x1c0   : > { %1888 = vpow2.f32 %v855_v8  ;;  %1833 = vmatpush1.bf16.msra.mxu1 %v1832_v39  ;;  %v1835_v21 = vpack.c.bf16 %v419_v5, %v418_v20  ;;  %v422_v39 = vld [vmem:[%s2423_s6 + $0x90] sm:$0xff]  ;;  %v424_v5 = vld [vmem:[%s2423_s6 + $0xa0] sm:$0xff] }
 0x1c1   : > { %v857_v14 = vmul.f32 1.442695, %v791_v60  ;;  %v859_v51 = vmul.f32 1.442695, %v792_v63  ;;  %1834 = vmatprep.subr.bf16.mxu1 %v2102_v2  ;;  %v421_v60 = vld [vmem:[%s2423_s6 + $0x88] sm:$0xff] }
 0x1c2   : > { %v701_v48 = vpop.xlane.xlu1 %700 }
 0x1c3   : > { %1890 = vpow2.f32 %v857_v14  ;;  %v793_v54 = vsub.f32 %v2241_v22, %v701_v48  ;;  %v794_v19 = vsub.f32 %v2243_v23, %v701_v48  ;;  %v420_v23 = vld [vmem:[%s2423_s6 + $0x80] sm:$0xff]  ;;  %v423_v14 = vld [vmem:[%s2423_s6 + $0x98] sm:$0xff] }
 0x1c4   : > { %1892 = vpow2.f32 %v859_v51  ;;  %1836 = vmatpush1.bf16.msra.mxu1 %v1835_v21  ;;  %v1838_v63 = vpack.c.bf16 %v421_v60, %v420_v23  ;;  %v425_v21 = vld [vmem:[%s2423_s6 + $0xa8] sm:$0xff] }
 0x1c5   : > { %v861_v57 = vmul.f32 1.442695, %v793_v54  ;;  %v863_v30 = vmul.f32 1.442695, %v794_v19  ;;  %1837 = vmatprep.subr.bf16.mxu1 %v2102_v2 }
 0x1c6   : > { %v704_v8 = vpop.xlane.xlu1 %703 }
 0x1c7   : > { %1894 = vpow2.f32 %v861_v57  ;;  %v795_v11 = vsub.f32 %v2247_v25, %v704_v8  ;;  %v796_v22 = vsub.f32 %v2249_v26, %v704_v8  ;;  %v1841_v25 = vpack.c.bf16 %v423_v14, %v422_v39 }
 0x1c8   : > { %1896 = vpow2.f32 %v863_v30  ;;  %1839 = vmatpush1.bf16.msra.mxu1 %v1838_v63  ;;  %v426_v63 = vld [vmem:[%s2423_s6 + $0xb0] sm:$0xff] }
 0x1c9   : > { %v2462_v51 = vpop.eup %1886  ;;  %v865_v16 = vmul.f32 1.442695, %v795_v11  ;;  %v867_v17 = vmul.f32 1.442695, %v796_v22  ;;  %1840 = vmatprep.subr.bf16.mxu1 %v2102_v2 }
 0x1ca   : > { %v2466_v48 = vpop.eup %1888  ;;  %v707_v54 = vpop.xlane.xlu0 %706 }
 0x1cb   : > { %1898 = vpow2.f32 %v865_v16  ;;  %v797_v26 = vsub.f32 %v2253_v28, %v707_v54  ;;  %v798_v19 = vsub.f32 %v2255_v29, %v707_v54  ;;  %v981_v20 = vadd.f32 %v2466_v48, %v2462_v51  ;;  %v427_v16 = vld [vmem:[%s2423_s6 + $0xb8] sm:$0xff] }
 0x1cc   : > { %1900 = vpow2.f32 %v867_v17  ;;  %1842 = vmatpush1.bf16.msra.mxu1 %v1841_v25  ;;  %v1844_v29 = vpack.c.bf16 %v425_v21, %v424_v5  ;;  %v429_v5 = vld [vmem:[%s2423_s6 + $0xc8] sm:$0xff] }
 0x1cd   : > { %v2475_v57 = vpop.eup %1890  ;;  %v869_v30 = vmul.f32 1.442695, %v797_v26  ;;  %v871_v8 = vmul.f32 1.442695, %v798_v19  ;;  %982 = vadd.xlane.f32.xlu1 %v981_v20  ;;  %1843 = vmatprep.subr.bf16.mxu1 %v2102_v2  ;;  %v428_v20 = vld [vmem:[%s2423_s6 + $0xc0] sm:$0xff] }
 0x1ce   : > { %v2477_v11 = vpop.eup %1892  ;;  %v710_v28 = vpop.xlane.xlu1 %709 }
 0x1cf   : > { %1902 = vpow2.f32 %v869_v30  ;;  %v799_v22 = vsub.f32 %v2259_v31, %v710_v28  ;;  %v800_v23 = vsub.f32 %v2261_v32, %v710_v28  ;;  %v984_v60 = vadd.f32 %v2477_v11, %v2475_v57 }
 0x1d0   : > { %1904 = vpow2.f32 %v871_v8  ;;  %1845 = vmatpush1.bf16.msra.mxu1 %v1844_v29  ;;  %v1847_v32 = vpack.c.bf16 %v427_v16, %v426_v63 }
 0x1d1   : > { %v2486_v17 = vpop.eup %1894  ;;  %v873_v39 = vmul.f32 1.442695, %v799_v22  ;;  %v875_v14 = vmul.f32 1.442695, %v800_v23  ;;  %985 = vadd.xlane.f32.xlu1 %v984_v60  ;;  %1846 = vmatprep.subr.bf16.mxu1 %v2102_v2 }
 0x1d2   : > { %v2488_v54 = vpop.eup %1896  ;;  %v713_v31 = vpop.xlane.xlu0 %712 }
 0x1d3   : > { %1906 = vpow2.f32 %v873_v39  ;;  %v801_v25 = vsub.f32 %v2265_v34, %v713_v31  ;;  %v802_v26 = vsub.f32 %v2267_v35, %v713_v31  ;;  %v987_v19 = vadd.f32 %v2488_v54, %v2486_v17 }
 0x1d4   : > { %1908 = vpow2.f32 %v875_v14  ;;  %1848 = vmatpush1.bf16.msra.mxu1 %v1847_v32  ;;  %v1850_v34 = vpack.c.bf16 %v429_v5, %v428_v20  ;;  %v430_v32 = vld [vmem:[%s2423_s6 + $0xd0] sm:$0xff] }
 0x1d5   : > { %v2497_v21 = vpop.eup %1898  ;;  %v877_v30 = vmul.f32 1.442695, %v801_v25  ;;  %v879_v8 = vmul.f32 1.442695, %v802_v26  ;;  %988 = vadd.xlane.f32.xlu1 %v987_v19  ;;  %1849 = vmatprep.subr.bf16.mxu1 %v2102_v2  ;;  %v431_v25 = vld [vmem:[%s2423_s6 + $0xd8] sm:$0xff] }
 0x1d6   : > { %v2499_v28 = vpop.eup %1900  ;;  %v716_v29 = vpop.xlane.xlu1 %715  ;;  %v1853_v26 = vpack.c.bf16 %v431_v25, %v430_v32  ;;  %v435_v32 = vld [vmem:[%s2423_s6 + $0xf8] sm:$0xff] }
 0x1d7   : > { %1910 = vpow2.f32 %v877_v30  ;;  %v803_v35 = vsub.f32 %v2271_v37, %v716_v29  ;;  %v804_v22 = vsub.f32 %v2273_v38, %v716_v29  ;;  %v990_v23 = vadd.f32 %v2499_v28, %v2497_v21 }
 0x1d8   : > { %1912 = vpow2.f32 %v879_v8  ;;  %1851 = vmatpush1.bf16.msra.mxu1 %v1850_v34  ;;  %v432_v34 = vld [vmem:[%s2423_s6 + $0xe0] sm:$0xff] }
 0x1d9   : > { %v2506_v60 = vpop.eup %1902  ;;  %v881_v63 = vmul.f32 1.442695, %v803_v35  ;;  %v883_v16 = vmul.f32 1.442695, %v804_v22  ;;  %991 = vadd.xlane.f32.xlu1 %v990_v23  ;;  %1852 = vmatprep.subr.bf16.mxu1 %v2102_v2  ;;  %v433_v35 = vld [vmem:[%s2423_s6 + $0xe8] sm:$0xff] }
 0x1da   : > { %v2508_v39 = vpop.eup %1904  ;;  %v719_v14 = vpop.xlane.xlu0 %718  ;;  %v1856_v22 = vpack.c.bf16 %v433_v35, %v432_v34 }
 0x1db   : > { %1914 = vpow2.f32 %v881_v63  ;;  %v805_v37 = vsub.f32 %v2277_v40, %v719_v14  ;;  %v806_v38 = vsub.f32 %v2279_v41, %v719_v14  ;;  %v993_v31 = vadd.f32 %v2508_v39, %v2506_v60 }
 0x1dc   : > { %1916 = vpow2.f32 %v883_v16  ;;  %1854 = vmatpush1.bf16.msra.mxu1 %v1853_v26 }
 0x1dd   : > { %v2517_v19 = vpop.eup %1906  ;;  %v885_v20 = vmul.f32 1.442695, %v805_v37  ;;  %v887_v5 = vmul.f32 1.442695, %v806_v38  ;;  %994 = vadd.xlane.f32.xlu1 %v993_v31  ;;  %1855 = vmatprep.subr.bf16.mxu1 %v2102_v2  ;;  %v434_v31 = vld [vmem:[%s2423_s6 + $0xf0] sm:$0xff] }
 0x1de   : > { %v2519_v30 = vpop.eup %1908  ;;  %v722_v40 = vpop.xlane.xlu1 %721  ;;  %v1859_v25 = vpack.c.bf16 %v435_v32, %v434_v31 }
 0x1df   : > { %1918 = vpow2.f32 %v885_v20  ;;  %v807_v41 = vsub.f32 %v2283_v43, %v722_v40  ;;  %v808_v8 = vsub.f32 %v2285_v44, %v722_v40  ;;  %v996_v29 = vadd.f32 %v2519_v30, %v2517_v19 }
 0x1e0   : > { %1920 = vpow2.f32 %v887_v5  ;;  %1857 = vmatpush1.bf16.msra.mxu1 %v1856_v22 }
 0x1e1   : > { %v2528_v23 = vpop.eup %1910  ;;  %v889_v63 = vmul.f32 1.442695, %v807_v41  ;;  %v891_v16 = vmul.f32 1.442695, %v808_v8  ;;  %997 = vadd.xlane.f32.xlu1 %v996_v29  ;;  %1858 = vmatprep.subr.bf16.mxu1 %v2102_v2 }
 0x1e2   : > { %v2530_v14 = vpop.eup %1912  ;;  %v725_v43 = vpop.xlane.xlu0 %724 }
 0x1e3   : > { %1922 = vpow2.f32 %v889_v63  ;;  %v809_v44 = vsub.f32 %v2289_v46, %v725_v43  ;;  %v810_v37 = vsub.f32 %v2291_v47, %v725_v43  ;;  %v999_v38 = vadd.f32 %v2530_v14, %v2528_v23 }
 0x1e4   : > { %1924 = vpow2.f32 %v891_v16  ;;  %1860 = vmatpush1.bf16.msra.mxu1 %v1859_v25 }
 0x1e5   : > { %v2539_v26 = vpop.eup %1914  ;;  %v893_v20 = vmul.f32 1.442695, %v809_v44  ;;  %v895_v5 = vmul.f32 1.442695, %v810_v37  ;;  %1000 = vadd.xlane.f32.xlu1 %v999_v38 }
 0x1e6   : > { %v2541_v40 = vpop.eup %1916  ;;  %v728_v41 = vpop.xlane.xlu1 %727 }
 0x1e7   : > { %1926 = vpow2.f32 %v893_v20  ;;  %v811_v46 = vsub.f32 %v2295_v49, %v728_v41  ;;  %v812_v47 = vsub.f32 %v2297_v50, %v728_v41  ;;  %v1002_v2 = vadd.f32 %v2541_v40, %v2539_v26 }
 0x1e8   : > { %1928 = vpow2.f32 %v895_v5 }
 0x1e9   : > { %v2547_v8 = vpop.eup %1918  ;;  %v897_v29 = vmul.f32 1.442695, %v811_v46  ;;  %v899_v34 = vmul.f32 1.442695, %v812_v47  ;;  %1003 = vadd.xlane.f32.xlu1 %v1002_v2 }
 0x1ea   : > { %v2549_v35 = vpop.eup %1920  ;;  %v731_v22 = vpop.xlane.xlu0 %730 }
 0x1eb   : > { %1930 = vpow2.f32 %v897_v29  ;;  %v813_v63 = vsub.f32 %v2301_v52, %v731_v22  ;;  %v814_v16 = vsub.f32 %v2303_v53, %v731_v22  ;;  %v1005_v49 = vadd.f32 %v2549_v35, %v2547_v8 }
 0x1ec   : > { %1932 = vpow2.f32 %v899_v34 }
 0x1ed   : > { %v2555_v50 = vpop.eup %1922  ;;  %v901_v43 = vmul.f32 1.442695, %v813_v63  ;;  %v903_v44 = vmul.f32 1.442695, %v814_v16  ;;  %1006 = vadd.xlane.f32.xlu1 %v1005_v49 }
 0x1ee   : > { %v2557_v37 = vpop.eup %1924  ;;  %v734_v38 = vpop.xlane.xlu1 %733 }
 0x1ef   : > { %1934 = vpow2.f32 %v901_v43  ;;  %v815_v31 = vsub.f32 %v2307_v55, %v734_v38  ;;  %v816_v32 = vsub.f32 %v2309_v56, %v734_v38  ;;  %v1008_v52 = vadd.f32 %v2557_v37, %v2555_v50 }
 0x1f0   : > { %1936 = vpow2.f32 %v903_v44 }
 0x1f1   : > { %v2563_v53 = vpop.eup %1926  ;;  %v905_v25 = vmul.f32 1.442695, %v815_v31  ;;  %v907_v20 = vmul.f32 1.442695, %v816_v32  ;;  %1009 = vadd.xlane.f32.xlu1 %v1008_v52 }
 0x1f2   : > { %v2565_v5 = vpop.eup %1928  ;;  %v737_v41 = vpop.xlane.xlu0 %736 }
 0x1f3   : > { %1938 = vpow2.f32 %v905_v25  ;;  %v817_v46 = vsub.f32 %v2313_v58, %v737_v41  ;;  %v818_v47 = vsub.f32 %v2315_v59, %v737_v41  ;;  %v1011_v55 = vadd.f32 %v2565_v5, %v2563_v53 }
 0x1f4   : > { %1940 = vpow2.f32 %v907_v20 }
 0x1f5   : > { %v2571_v56 = vpop.eup %1930  ;;  %v909_v2 = vmul.f32 1.442695, %v817_v46  ;;  %v911_v29 = vmul.f32 1.442695, %v818_v47  ;;  %1012 = vadd.xlane.f32.xlu0 %v1011_v55 }
 0x1f6   : > { %v2573_v34 = vpop.eup %1932  ;;  %v740_v22 = vpop.xlane.xlu1 %739 }
 0x1f7   : > { %1942 = vpow2.f32 %v909_v2  ;;  %v819_v63 = vsub.f32 %v2319_v61, %v740_v22  ;;  %v820_v16 = vsub.f32 %v2321_v62, %v740_v22  ;;  %v1014_v58 = vadd.f32 %v2573_v34, %v2571_v56 }
 0x1f8   : > { %1944 = vpow2.f32 %v911_v29 }
 0x1f9   : > { %v2579_v59 = vpop.eup %1934  ;;  %v913_v49 = vmul.f32 1.442695, %v819_v63  ;;  %v915_v43 = vmul.f32 1.442695, %v820_v16  ;;  %1015 = vadd.xlane.f32.xlu1 %v1014_v58 }
 0x1fa   : > { %v2581_v44 = vpop.eup %1936  ;;  %v743_v38 = vpop.xlane.xlu0 %742 }
 0x1fb   : > { %1946 = vpow2.f32 %v913_v49  ;;  %v821_v31 = vsub.f32 %v2325_v0, %v743_v38  ;;  %v822_v32 = vsub.f32 %v2327_v1, %v743_v38  ;;  %v1017_v61 = vadd.f32 %v2581_v44, %v2579_v59 }
 0x1fc   : > { %1948 = vpow2.f32 %v915_v43 }
 0x1fd   : > { %v2587_v62 = vpop.eup %1938  ;;  %v917_v52 = vmul.f32 1.442695, %v821_v31  ;;  %v919_v25 = vmul.f32 1.442695, %v822_v32  ;;  %1018 = vadd.xlane.f32.xlu0 %v1017_v61 }
 0x1fe   : > { %v2589_v20 = vpop.eup %1940  ;;  %v746_v41 = vpop.xlane.xlu1 %745 }
 0x1ff   : > { %1950 = vpow2.f32 %v917_v52  ;;  %v823_v46 = vsub.f32 %v2331_v3, %v746_v41  ;;  %v824_v47 = vsub.f32 %v2333_v4, %v746_v41  ;;  %v1020_v0 = vadd.f32 %v2589_v20, %v2587_v62 }
 0x200   : > { %1952 = vpow2.f32 %v919_v25 }
 0x201   : > { %v2595_v1 = vpop.eup %1942  ;;  %v921_v55 = vmul.f32 1.442695, %v823_v46  ;;  %v923_v2 = vmul.f32 1.442695, %v824_v47  ;;  %1021 = vadd.xlane.f32.xlu1 %v1020_v0 }
 0x202   : > { %v2597_v29 = vpop.eup %1944  ;;  %v749_v22 = vpop.xlane.xlu0 %748 }
 0x203   : > { %1954 = vpow2.f32 %v921_v55  ;;  %v825_v63 = vsub.f32 %v2337_v6, %v749_v22  ;;  %v826_v16 = vsub.f32 %v2339_v7, %v749_v22  ;;  %v1023_v3 = vadd.f32 %v2597_v29, %v2595_v1 }
 0x204   : > { %1956 = vpow2.f32 %v923_v2 }
 0x205   : > { %v2603_v4 = vpop.eup %1946  ;;  %v925_v58 = vmul.f32 1.442695, %v825_v63  ;;  %v927_v49 = vmul.f32 1.442695, %v826_v16  ;;  %1024 = vadd.xlane.f32.xlu0 %v1023_v3 }
 0x206   : > { %v2605_v43 = vpop.eup %1948  ;;  %v752_v38 = vpop.xlane.xlu1 %751 }
 0x207   : > { %1958 = vpow2.f32 %v925_v58  ;;  %v827_v31 = vsub.f32 %v2343_v9, %v752_v38  ;;  %v828_v32 = vsub.f32 %v2345_v10, %v752_v38  ;;  %v1026_v6 = vadd.f32 %v2605_v43, %v2603_v4 }
 0x208   : > { %1960 = vpow2.f32 %v927_v49 }
 0x209   : > { %v2611_v7 = vpop.eup %1950  ;;  %v929_v61 = vmul.f32 1.442695, %v827_v31  ;;  %v931_v52 = vmul.f32 1.442695, %v828_v32  ;;  %1027 = vadd.xlane.f32.xlu1 %v1026_v6 }
 0x20a   : > { %v2613_v25 = vpop.eup %1952  ;;  %v755_v41 = vpop.xlane.xlu0 %754 }
 0x20b   : > { %1962 = vpow2.f32 %v929_v61  ;;  %v829_v46 = vsub.f32 %v2349_v12, %v755_v41  ;;  %v830_v47 = vsub.f32 %v2351_v13, %v755_v41  ;;  %v1029_v9 = vadd.f32 %v2613_v25, %v2611_v7 }
 0x20c   : > { %1964 = vpow2.f32 %v931_v52 }
 0x20d   : > { %v2619_v10 = vpop.eup %1954  ;;  %v933_v0 = vmul.f32 1.442695, %v829_v46  ;;  %v935_v55 = vmul.f32 1.442695, %v830_v47  ;;  %1030 = vadd.xlane.f32.xlu0 %v1029_v9 }
 0x20e   : > { %v2621_v2 = vpop.eup %1956  ;;  %v758_v22 = vpop.xlane.xlu1 %757 }
 0x20f   : > { %1966 = vpow2.f32 %v933_v0  ;;  %v831_v63 = vsub.f32 %v2355_v15, %v758_v22  ;;  %v832_v16 = vsub.f32 %v2357_v18, %v758_v22  ;;  %v1032_v12 = vadd.f32 %v2621_v2, %v2619_v10 }
 0x210   : > { %1968 = vpow2.f32 %v935_v55 }
 0x211   : > { %v2627_v13 = vpop.eup %1958  ;;  %v937_v3 = vmul.f32 1.442695, %v831_v63  ;;  %v939_v58 = vmul.f32 1.442695, %v832_v16  ;;  %1033 = vadd.xlane.f32.xlu1 %v1032_v12 }
 0x212   : > { %v2629_v49 = vpop.eup %1960  ;;  %v761_v38 = vpop.xlane.xlu0 %760 }
 0x213   : > { %1970 = vpow2.f32 %v937_v3  ;;  %v833_v31 = vsub.f32 %v2361_v24, %v761_v38  ;;  %v834_v32 = vsub.f32 %v2363_v27, %v761_v38  ;;  %v1035_v15 = vadd.f32 %v2629_v49, %v2627_v13 }
 0x214   : > { %1972 = vpow2.f32 %v939_v58 }
 0x215   : > { %v2635_v18 = vpop.eup %1962  ;;  %v941_v6 = vmul.f32 1.442695, %v833_v31  ;;  %v943_v61 = vmul.f32 1.442695, %v834_v32  ;;  %1036 = vadd.xlane.f32.xlu0 %v1035_v15  ;;  %v2962_v31 = vld [vmem:[#allocation2_spill] sm:$0xff]  ;;  %v2963_v15 = vld [vmem:[#allocation3_spill] sm:$0xff] }
 0x216   : > { %v2637_v52 = vpop.eup %1964  ;;  %v764_v41 = vpop.xlane.xlu0 %763 }
 0x217   : > { %1974 = vpow2.f32 %v941_v6  ;;  %v835_v46 = vsub.f32 %v2367_v33, %v764_v41  ;;  %v836_v47 = vsub.f32 %v2369_v36, %v764_v41  ;;  %v1038_v24 = vadd.f32 %v2637_v52, %v2635_v18 }
 0x218   : > { %1976 = vpow2.f32 %v943_v61 }
 0x219   : > { %v2643_v27 = vpop.eup %1966  ;;  %v945_v9 = vmul.f32 1.442695, %v835_v46  ;;  %v947_v0 = vmul.f32 1.442695, %v836_v47  ;;  %1039 = vadd.xlane.f32.xlu1 %v1038_v24  ;;  %v2964_v24 = vld [vmem:[#allocation4_spill] sm:$0xff] }
 0x21a   : > { %v2645_v55 = vpop.eup %1968  ;;  %v767_v22 = vpop.xlane.xlu0 %766 }
 0x21b   : > { %1978 = vpow2.f32 %v945_v9  ;;  %v837_v63 = vsub.f32 %v2373_v42, %v767_v22  ;;  %v838_v16 = vsub.f32 %v2375_v45, %v767_v22  ;;  %v1041_v33 = vadd.f32 %v2645_v55, %v2643_v27 }
 0x21c   : > { %1980 = vpow2.f32 %v947_v0  ;;  %v2965_v0 = vld [vmem:[#allocation5_spill] sm:$0xff] }
 0x21d   : > { %v2651_v36 = vpop.eup %1970  ;;  %v949_v12 = vmul.f32 1.442695, %v837_v63  ;;  %v951_v3 = vmul.f32 1.442695, %v838_v16  ;;  %1042 = vadd.xlane.f32.xlu0 %v1041_v33 }
 0x21e   : > { %v2653_v58 = vpop.eup %1972  ;;  %v770_v38 = vpop.xlane.xlu0 %769 }
 0x21f   : > { %1982 = vpow2.f32 %v949_v12  ;;  %v839_v32 = vsub.f32 %v2962_v31, %v770_v38  ;;  %v840_v6 = vsub.f32 %v2963_v15, %v770_v38  ;;  %v1044_v42 = vadd.f32 %v2653_v58, %v2651_v36  ;;  %v2968_v31 = vld [vmem:[#allocation6_spill] sm:$0xff]  ;;  %v2969_v15 = vld [vmem:[#allocation7_spill] sm:$0xff] }
 0x220   : > { %1984 = vpow2.f32 %v951_v3 }
 0x221   : > { %v2659_v45 = vpop.eup %1974  ;;  %v953_v61 = vmul.f32 1.442695, %v839_v32  ;;  %v955_v41 = vmul.f32 1.442695, %v840_v6  ;;  %1045 = vadd.xlane.f32.xlu1 %v1044_v42 }
 0x222   : > { %v2661_v46 = vpop.eup %1976  ;;  %v773_v47 = vpop.xlane.xlu0 %772 }
 0x223   : > { %1986 = vpow2.f32 %v953_v61  ;;  %v841_v9 = vsub.f32 %v2964_v24, %v773_v47  ;;  %v842_v22 = vsub.f32 %v2965_v0, %v773_v47  ;;  %v1047_v63 = vadd.f32 %v2661_v46, %v2659_v45  ;;  %v2972_v0 = vld [vmem:[#allocation8_spill] sm:$0xff] }
 0x224   : > { %1988 = vpow2.f32 %v955_v41 }
 0x225   : > { %v2667_v16 = vpop.eup %1978  ;;  %v957_v33 = vmul.f32 1.442695, %v841_v9  ;;  %v959_v12 = vmul.f32 1.442695, %v842_v22  ;;  %1048 = vadd.xlane.f32.xlu0 %v1047_v63  ;;  %v2973_v63 = vld [vmem:[#allocation9_spill] sm:$0xff] }
 0x226   : > { %2966 = vst [vmem:[#allocation2_spill] sm:$0xff] %v2667_v16  ;;  %v2669_v3 = vpop.eup %1980  ;;  %v776_v38 = vpop.xlane.xlu0 %775 }
 0x227   : > { %2967 = vst [vmem:[#allocation3_spill] sm:$0xff] %v2669_v3  ;;  %1990 = vpow2.f32 %v957_v33  ;;  %v843_v32 = vsub.f32 %v2968_v31, %v776_v38  ;;  %v844_v6 = vsub.f32 %v2969_v15, %v776_v38  ;;  %v1050_v42 = vadd.f32 %v2669_v3, %v2667_v16 }
 0x228   : > { %1992 = vpow2.f32 %v959_v12 }
 0x229   : > { %v2675_v61 = vpop.eup %1982  ;;  %v961_v41 = vmul.f32 1.442695, %v843_v32  ;;  %v963_v47 = vmul.f32 1.442695, %v844_v6  ;;  %1051 = vadd.xlane.f32.xlu1 %v1050_v42  ;;  %v2976_v42 = vld [vmem:[#allocation10_spill] sm:$0xff] }
 0x22a   : > { %2970 = vst [vmem:[#allocation4_spill] sm:$0xff] %v2675_v61  ;;  %v2677_v24 = vpop.eup %1984  ;;  %v779_v9 = vpop.xlane.xlu0 %778 }
 0x22b   : > { %2971 = vst [vmem:[#allocation5_spill] sm:$0xff] %v2677_v24  ;;  %1994 = vpow2.f32 %v961_v41  ;;  %v845_v22 = vsub.f32 %v2972_v0, %v779_v9  ;;  %v846_v33 = vsub.f32 %v2973_v63, %v779_v9  ;;  %v1053_v38 = vadd.f32 %v2677_v24, %v2675_v61  ;;  %v2977_v41 = vld [vmem:[#allocation11_spill] sm:$0xff] }
 0x22c   : > { %1996 = vpow2.f32 %v963_v47 }
 0x22d   : > { %v2683_v31 = vpop.eup %1986  ;;  %v965_v12 = vmul.f32 1.442695, %v845_v22  ;;  %v967_v15 = vmul.f32 1.442695, %v846_v33  ;;  %1054 = vadd.xlane.f32.xlu0 %v1053_v38  ;;  %v2978_v38 = vld [vmem:[#allocation12_spill] sm:$0xff] }
 0x22e   : > { %2974 = vst [vmem:[#allocation6_spill] sm:$0xff] %v2683_v31  ;;  %v2685_v32 = vpop.eup %1988  ;;  %v782_v6 = vpop.xlane.xlu0 %781 }
 0x22f   : > { %2975 = vst [vmem:[#allocation7_spill] sm:$0xff] %v2685_v32  ;;  %1998 = vpow2.f32 %v965_v12  ;;  %v847_v16 = vsub.f32 %v2976_v42, %v782_v6  ;;  %v848_v3 = vsub.f32 %v2977_v41, %v782_v6  ;;  %v1056_v9 = vadd.f32 %v2685_v32, %v2683_v31  ;;  %v2979_v12 = vld [vmem:[#allocation13_spill] sm:$0xff] }
 0x230   : > { %2000 = vpow2.f32 %v967_v15 }
 0x231   : > { %v2691_v0 = vpop.eup %1990  ;;  %v969_v47 = vmul.f32 1.442695, %v847_v16  ;;  %v971_v63 = vmul.f32 1.442695, %v848_v3  ;;  %1057 = vadd.xlane.f32.xlu1 %v1056_v9  ;;  %v2980_v9 = vld [vmem:[#allocation14_spill] sm:$0xff] }
 0x232   : > { %v2693_v22 = vpop.eup %1992  ;;  %v785_v33 = vpop.xlane.xlu0 %784 }
 0x233   : > { %2002 = vpow2.f32 %v969_v47  ;;  %v849_v61 = vsub.f32 %v2978_v38, %v785_v33  ;;  %v850_v24 = vsub.f32 %v2979_v12, %v785_v33  ;;  %v1059_v6 = vadd.f32 %v2693_v22, %v2691_v0  ;;  %v2981_v47 = vld [vmem:[#allocation15_spill] sm:$0xff] }
 0x234   : > { %2004 = vpow2.f32 %v971_v63 }
 0x235   : > { %v2699_v42 = vpop.eup %1994  ;;  %v973_v15 = vmul.f32 1.442695, %v849_v61  ;;  %v975_v41 = vmul.f32 1.442695, %v850_v24  ;;  %1060 = vadd.xlane.f32.xlu0 %v1059_v6 }
 0x236   : > { %v2701_v16 = vpop.eup %1996  ;;  %v788_v3 = vpop.xlane.xlu0 %787 }
 0x237   : > { %2006 = vpow2.f32 %v973_v15  ;;  %v851_v31 = vsub.f32 %v2980_v9, %v788_v3  ;;  %v852_v32 = vsub.f32 %v2981_v47, %v788_v3  ;;  %v1062_v33 = vadd.f32 %v2701_v16, %v2699_v42 }
 0x238   : > { %2008 = vpow2.f32 %v975_v41 }
 0x239   : > { %v2707_v38 = vpop.eup %1998  ;;  %v977_v63 = vmul.f32 1.442695, %v851_v31  ;;  %v979_v12 = vmul.f32 1.442695, %v852_v32  ;;  %1063 = vadd.xlane.f32.xlu1 %v1062_v33 }
 0x23a   : > { %v2709_v61 = vpop.eup %2000 }
 0x23b   : > { %2010 = vpow2.f32 %v977_v63  ;;  %v1065_v24 = vadd.f32 %v2709_v61, %v2707_v38 }
 0x23c   : > { %2012 = vpow2.f32 %v979_v12 }
 0x23d   : > { %v2713_v6 = vpop.eup %2002  ;;  %1066 = vadd.xlane.f32.xlu0 %v1065_v24 }
 0x23e   : > { %2982 = vst [vmem:[#allocation8_spill] sm:$0xff] %v2713_v6  ;;  %v2715_v15 = vpop.eup %2004 }
 0x23f   : > { %2983 = vst [vmem:[#allocation9_spill] sm:$0xff] %v2715_v15  ;;  %v1068_v41 = vadd.f32 %v2715_v15, %v2713_v6 }
 0x241   : > { %v2719_v3 = vpop.eup %2006  ;;  %1069 = vadd.xlane.f32.xlu1 %v1068_v41 }
 0x242   : > { %2984 = vst [vmem:[#allocation10_spill] sm:$0xff] %v2719_v3  ;;  %v2721_v31 = vpop.eup %2008 }
 0x243   : > { %2985 = vst [vmem:[#allocation11_spill] sm:$0xff] %v2721_v31  ;;  %v1071_v32 = vadd.f32 %v2721_v31, %v2719_v3 }
 0x245   : > { %v2725_v9 = vpop.eup %2010  ;;  %1072 = vadd.xlane.f32.xlu0 %v1071_v32 }
 0x246   : > { %2986 = vst [vmem:[#allocation12_spill] sm:$0xff] %v2725_v9  ;;  %v2727_v47 = vpop.eup %2012 }
 0x247   : > { %v1074_v33 = vadd.f32 %v2727_v47, %v2725_v9 }
 0x249   : > { %1075 = vadd.xlane.f32.xlu1 %v1074_v33 }
 0x25a   : > { %v983_v63 = vpop.xlane.xlu1 %982 }
 0x25b   : > { %2014 = vrcp.f32 %v983_v63 }
 0x25e   : > { %v986_v12 = vpop.xlane.xlu1 %985 }
 0x25f   : > { %2016 = vrcp.f32 %v986_v12 }
 0x262   : > { %v989_v24 = vpop.xlane.xlu1 %988 }
 0x263   : > { %2018 = vrcp.f32 %v989_v24 }
 0x265   : > { %v2015_v41 = vpop.eup %2014 }
 0x266   : > { %v992_v6 = vpop.xlane.xlu1 %991  ;;  %v1110_v15 = vmul.f32 %v2015_v41, %v2466_v48  ;;  %v1109_v3 = vmul.f32 %v2015_v41, %v2462_v51 }
 0x267   : > { %2020 = vrcp.f32 %v992_v6 }
 0x268   : > { %1237 = vmatprep.mubr.f32.mxu1 %v1110_v15 }
 0x269   : > { %v2017_v32 = vpop.eup %2016  ;;  %1238 = vmatmul.mubr.f32.vlgmr.msra.gmra.mrb[0].mxu1 %v1109_v3 }
 0x26a   : > { %v995_v31 = vpop.xlane.xlu1 %994  ;;  %v1112_v9 = vmul.f32 %v2017_v32, %v2477_v11  ;;  %v1111_v33 = vmul.f32 %v2017_v32, %v2475_v57 }
 0x26b   : > { %2022 = vrcp.f32 %v995_v31 }
 0x26c   : > { %1242 = vmatprep.mubr.f32.mxu1 %v1112_v9 }
 0x26d   : > { %v2019_v63 = vpop.eup %2018  ;;  %1243 = vmatmul.mubr.f32.gmra.mrb[2].mxu1 %v1111_v33 }
 0x26e   : > { %v998_v12 = vpop.xlane.xlu1 %997  ;;  %v1114_v24 = vmul.f32 %v2019_v63, %v2488_v54  ;;  %v1113_v48 = vmul.f32 %v2019_v63, %v2486_v17 }
 0x26f   : > { %2024 = vrcp.f32 %v998_v12 }
 0x270   : > { %1247 = vmatprep.mubr.f32.mxu1 %v1114_v24 }
 0x271   : > { %v2021_v51 = vpop.eup %2020  ;;  %1248 = vmatmul.mubr.f32.gmra.mrb[4].mxu1 %v1113_v48 }
 0x272   : > { %v1001_v6 = vpop.xlane.xlu1 %1000  ;;  %v1116_v15 = vmul.f32 %v2021_v51, %v2499_v28  ;;  %v1115_v11 = vmul.f32 %v2021_v51, %v2497_v21 }
 0x273   : > { %2026 = vrcp.f32 %v1001_v6 }
 0x274   : > { %1252 = vmatprep.mubr.f32.mxu1 %v1116_v15 }
 0x275   : > { %v2023_v57 = vpop.eup %2022  ;;  %1253 = vmatmul.mubr.f32.gmra.mrb[6].mxu1 %v1115_v11 }
 0x276   : > { %v1004_v3 = vpop.xlane.xlu1 %1003  ;;  %v1118_v31 = vmul.f32 %v2023_v57, %v2508_v39  ;;  %v1117_v54 = vmul.f32 %v2023_v57, %v2506_v60 }
 0x277   : > { %2028 = vrcp.f32 %v1004_v3 }
 0x278   : > { %1257 = vmatprep.mubr.f32.mxu1 %v1118_v31 }
 0x279   : > { %v2025_v17 = vpop.eup %2024  ;;  %1258 = vmatmul.mubr.f32.gmra.mrb[8].mxu1 %v1117_v54 }
 0x27a   : > { %v1007_v9 = vpop.xlane.xlu1 %1006  ;;  %v1120_v41 = vmul.f32 %v2025_v17, %v2519_v30  ;;  %v1119_v28 = vmul.f32 %v2025_v17, %v2517_v19 }
 0x27b   : > { %2030 = vrcp.f32 %v1007_v9 }
 0x27c   : > { %1262 = vmatprep.mubr.f32.mxu1 %v1120_v41 }
 0x27d   : > { %v2027_v21 = vpop.eup %2026  ;;  %1263 = vmatmul.mubr.f32.gmra.mrb[10].mxu1 %v1119_v28 }
 0x27e   : > { %v1010_v32 = vpop.xlane.xlu1 %1009  ;;  %v1122_v33 = vmul.f32 %v2027_v21, %v2530_v14  ;;  %v1121_v39 = vmul.f32 %v2027_v21, %v2528_v23 }
 0x27f   : > { %2032 = vrcp.f32 %v1010_v32 }
 0x280   : > { %1267 = vmatprep.mubr.f32.mxu1 %v1122_v33 }
 0x281   : > { %v2029_v60 = vpop.eup %2028  ;;  %1268 = vmatmul.mubr.f32.gmra.mrb[12].mxu1 %v1121_v39 }
 0x282   : > { %v1013_v63 = vpop.xlane.xlu0 %1012  ;;  %v1124_v12 = vmul.f32 %v2029_v60, %v2541_v40  ;;  %v1123_v30 = vmul.f32 %v2029_v60, %v2539_v26 }
 0x283   : > { %2034 = vrcp.f32 %v1013_v63 }
 0x284   : > { %1272 = vmatprep.mubr.f32.mxu1 %v1124_v12 }
 0x285   : > { %v2031_v19 = vpop.eup %2030  ;;  %1273 = vmatmul.mubr.f32.gmra.mrb[14].mxu1 %v1123_v30 }
 0x286   : > { %v1016_v24 = vpop.xlane.xlu1 %1015  ;;  %v1126_v48 = vmul.f32 %v2031_v19, %v2549_v35  ;;  %v1125_v14 = vmul.f32 %v2031_v19, %v2547_v8 }
 0x287   : > { %2036 = vrcp.f32 %v1016_v24 }
 0x288   : > { %1277 = vmatprep.mubr.f32.mxu1 %v1126_v48 }
 0x289   : > { %v2033_v23 = vpop.eup %2032  ;;  %1278 = vmatmul.mubr.f32.gmra.mrb[16].mxu1 %v1125_v14 }
 0x28a   : > { %v1019_v51 = vpop.xlane.xlu0 %1018  ;;  %v1128_v6 = vmul.f32 %v2033_v23, %v2557_v37  ;;  %v1127_v40 = vmul.f32 %v2033_v23, %v2555_v50 }
 0x28b   : > { %2038 = vrcp.f32 %v1019_v51 }
 0x28c   : > { %1282 = vmatprep.mubr.f32.mxu1 %v1128_v6 }
 0x28d   : > { %v2035_v26 = vpop.eup %2034  ;;  %1283 = vmatmul.mubr.f32.gmra.mrb[18].mxu1 %v1127_v40 }
 0x28e   : > { %v1022_v15 = vpop.xlane.xlu1 %1021  ;;  %v1130_v11 = vmul.f32 %v2035_v26, %v2565_v5  ;;  %v1129_v35 = vmul.f32 %v2035_v26, %v2563_v53 }
 0x28f   : > { %2040 = vrcp.f32 %v1022_v15  ;;  %v2987_v15 = vld [vmem:[#allocation3_spill] sm:$0xff] }
 0x290   : > { %1287 = vmatprep.mubr.f32.mxu1 %v1130_v11 }
 0x291   : > { %v2037_v8 = vpop.eup %2036  ;;  %1288 = vmatmul.mubr.f32.gmra.mrb[20].mxu1 %v1129_v35  ;;  %v2988_v35 = vld [vmem:[#allocation2_spill] sm:$0xff] }
 0x292   : > { %v1025_v57 = vpop.xlane.xlu0 %1024  ;;  %v1132_v3 = vmul.f32 %v2037_v8, %v2573_v34  ;;  %v1131_v37 = vmul.f32 %v2037_v8, %v2571_v56 }
 0x293   : > { %2042 = vrcp.f32 %v1025_v57  ;;  %v2989_v57 = vld [vmem:[#allocation5_spill] sm:$0xff] }
 0x294   : > { %1292 = vmatprep.mubr.f32.mxu1 %v1132_v3 }
 0x295   : > { %v2039_v50 = vpop.eup %2038  ;;  %1293 = vmatmul.mubr.f32.gmra.mrb[22].mxu1 %v1131_v37  ;;  %v2990_v37 = vld [vmem:[#allocation4_spill] sm:$0xff] }
 0x296   : > { %v1028_v31 = vpop.xlane.xlu1 %1027  ;;  %v1134_v54 = vmul.f32 %v2039_v50, %v2581_v44  ;;  %v1133_v5 = vmul.f32 %v2039_v50, %v2579_v59 }
 0x297   : > { %2044 = vrcp.f32 %v1028_v31  ;;  %v2991_v31 = vld [vmem:[#allocation7_spill] sm:$0xff] }
 0x298   : > { %1297 = vmatprep.mubr.f32.mxu1 %v1134_v54 }
 0x299   : > { %v2041_v53 = vpop.eup %2040  ;;  %1298 = vmatmul.mubr.f32.gmra.mrb[24].mxu1 %v1133_v5  ;;  %v2992_v5 = vld [vmem:[#allocation6_spill] sm:$0xff] }
 0x29a   : > { %v1031_v17 = vpop.xlane.xlu0 %1030  ;;  %v1136_v9 = vmul.f32 %v2041_v53, %v2589_v20  ;;  %v1135_v34 = vmul.f32 %v2041_v53, %v2587_v62 }
 0x29b   : > { %2046 = vrcp.f32 %v1031_v17 }
 0x29c   : > { %1302 = vmatprep.mubr.f32.mxu1 %v1136_v9 }
 0x29d   : > { %v2043_v56 = vpop.eup %2042  ;;  %1303 = vmatmul.mubr.f32.gmra.mrb[26].mxu1 %v1135_v34 }
 0x29e   : > { %v1034_v41 = vpop.xlane.xlu1 %1033  ;;  %v1138_v28 = vmul.f32 %v2043_v56, %v2597_v29  ;;  %v1137_v44 = vmul.f32 %v2043_v56, %v2595_v1 }
 0x29f   : > { %2048 = vrcp.f32 %v1034_v41 }
 0x2a0   : > { %1307 = vmatprep.mubr.f32.mxu1 %v1138_v28 }
 0x2a1   : > { %v2045_v59 = vpop.eup %2044  ;;  %1308 = vmatmul.mubr.f32.gmra.mrb[28].mxu1 %v1137_v44 }
 0x2a2   : > { %v1037_v21 = vpop.xlane.xlu0 %1036  ;;  %v1140_v32 = vmul.f32 %v2045_v59, %v2605_v43  ;;  %v1139_v20 = vmul.f32 %v2045_v59, %v2603_v4 }
 0x2a3   : > { %2050 = vrcp.f32 %v1037_v21 }
 0x2a4   : > { %1312 = vmatprep.mubr.f32.mxu1 %v1140_v32 }
 0x2a5   : > { %v2047_v62 = vpop.eup %2046  ;;  %1313 = vmatmul.mubr.f32.gmra.mrb[30].mxu1 %v1139_v20 }
 0x2a6   : > { %v1040_v33 = vpop.xlane.xlu1 %1039  ;;  %v1142_v39 = vmul.f32 %v2047_v62, %v2613_v25  ;;  %v1141_v29 = vmul.f32 %v2047_v62, %v2611_v7  ;;  %v2993_v62 = vld [vmem:[#allocation9_spill] sm:$0xff] }
 0x2a7   : > { %2052 = vrcp.f32 %v1040_v33 }
 0x2a8   : > { %1317 = vmatprep.mubr.f32.mxu1 %v1142_v39  ;;  %v2994_v39 = vld [vmem:[#allocation8_spill] sm:$0xff] }
 0x2a9   : > { %v2049_v1 = vpop.eup %2048  ;;  %1318 = vmatmul.mubr.f32.gmra.mrb[32].mxu1 %v1141_v29  ;;  %v2995_v29 = vld [vmem:[#allocation11_spill] sm:$0xff] }
 0x2aa   : > { %v1043_v60 = vpop.xlane.xlu0 %1042  ;;  %v1144_v63 = vmul.f32 %v2049_v1, %v2621_v2  ;;  %v1143_v43 = vmul.f32 %v2049_v1, %v2619_v10 }
 0x2ab   : > { %2054 = vrcp.f32 %v1043_v60  ;;  %v2996_v60 = vld [vmem:[#allocation10_spill] sm:$0xff] }
 0x2ac   : > { %1322 = vmatprep.mubr.f32.mxu1 %v1144_v63 }
 0x2ad   : > { %v2051_v4 = vpop.eup %2050  ;;  %1323 = vmatmul.mubr.f32.gmra.mrb[34].mxu1 %v1143_v43  ;;  %v2997_v43 = vld [vmem:[#allocation12_spill] sm:$0xff] }
 0x2ae   : > { %v1046_v12 = vpop.xlane.xlu1 %1045  ;;  %v1146_v30 = vmul.f32 %v2051_v4, %v2629_v49  ;;  %v1145_v25 = vmul.f32 %v2051_v4, %v2627_v13 }
 0x2af   : > { %2056 = vrcp.f32 %v1046_v12  ;;  %v2804_v12 = vld [vmem:[%s2921_s4] ss:$0 sm:$0xff] }
 0x2b0   : > { %1327 = vmatprep.mubr.f32.mxu1 %v1146_v30 }
 0x2b1   : > { %v2053_v7 = vpop.eup %2052  ;;  %1328 = vmatmul.mubr.f32.gmra.mrb[36].mxu1 %v1145_v25  ;;  %v1437_v25 = vld [vmem:[%s2799_s9] sm:$0xff] }
 0x2b2   : > { %v1049_v19 = vpop.xlane.xlu0 %1048  ;;  %v1148_v24 = vmul.f32 %v2053_v7, %v2637_v52  ;;  %v1147_v2 = vmul.f32 %v2053_v7, %v2635_v18 }
 0x2b3   : > { %2058 = vrcp.f32 %v1049_v19 }
 0x2b4   : > { %1332 = vmatprep.mubr.f32.mxu1 %v1148_v24 }
 0x2b5   : > { %v2055_v10 = vpop.eup %2054  ;;  %1333 = vmatmul.mubr.f32.gmra.mrb[38].mxu1 %v1147_v2  ;;  %v1438_v2 = vld [vmem:[%s2799_s9 + $0x8] sm:$0xff] }
 0x2b6   : > { %v1052_v48 = vpop.xlane.xlu1 %1051  ;;  %v1150_v14 = vmul.f32 %v2055_v10, %v2645_v55  ;;  %v1149_v49 = vmul.f32 %v2055_v10, %v2643_v27 }
 0x2b7   : > { %2060 = vrcp.f32 %v1052_v48 }
 0x2b8   : > { %1337 = vmatprep.mubr.f32.mxu1 %v1150_v14 }
 0x2b9   : > { %v2057_v13 = vpop.eup %2056  ;;  %1338 = vmatmul.mubr.f32.gmra.mrb[40].mxu1 %v1149_v49 }
 0x2ba   : > { %v1055_v23 = vpop.xlane.xlu0 %1054  ;;  %v1152_v51 = vmul.f32 %v2057_v13, %v2653_v58  ;;  %v1151_v52 = vmul.f32 %v2057_v13, %v2651_v36  ;;  %v1439_v13 = vld [vmem:[%s2799_s9 + $0x10] sm:$0xff] }
 0x2bb   : > { %2062 = vrcp.f32 %v1055_v23 }
 0x2bc   : > { %1342 = vmatprep.mubr.f32.mxu1 %v1152_v51 }
 0x2bd   : > { %v2059_v18 = vpop.eup %2058  ;;  %1343 = vmatmul.mubr.f32.gmra.mrb[42].mxu1 %v1151_v52 }
 0x2be   : > { %v1058_v6 = vpop.xlane.xlu1 %1057  ;;  %v1154_v40 = vmul.f32 %v2059_v18, %v2661_v46  ;;  %v1153_v55 = vmul.f32 %v2059_v18, %v2659_v45 }
 0x2bf   : > { %2064 = vrcp.f32 %v1058_v6  ;;  %v1440_v6 = vld [vmem:[%s2799_s9 + $0x18] sm:$0xff] }
 0x2c0   : > { %1347 = vmatprep.mubr.f32.mxu1 %v1154_v40 }
 0x2c1   : > { %v2061_v27 = vpop.eup %2060  ;;  %1348 = vmatmul.mubr.f32.gmra.mrb[44].mxu1 %v1153_v55 }
 0x2c2   : > { %v1061_v26 = vpop.xlane.xlu0 %1060  ;;  %v1156_v11 = vmul.f32 %v2061_v27, %v2987_v15  ;;  %v1155_v58 = vmul.f32 %v2061_v27, %v2988_v35  ;;  %v1441_v15 = vld [vmem:[%s2799_s9 + $0x20] sm:$0xff] }
 0x2c3   : > { %2066 = vrcp.f32 %v1061_v26 }
 0x2c4   : > { %1352 = vmatprep.mubr.f32.mxu1 %v1156_v11 }
 0x2c5   : > { %v2063_v36 = vpop.eup %2062  ;;  %1353 = vmatmul.mubr.f32.gmra.mrb[46].mxu1 %v1155_v58 }
 0x2c6   : > { %v1064_v8 = vpop.xlane.xlu1 %1063  ;;  %v1158_v3 = vmul.f32 %v2063_v36, %v2989_v57  ;;  %v1157_v46 = vmul.f32 %v2063_v36, %v2990_v37 }
 0x2c7   : > { %2068 = vrcp.f32 %v1064_v8  ;;  %v1442_v8 = vld [vmem:[%s2799_s9 + $0x28] sm:$0xff] }
 0x2c8   : > { %1357 = vmatprep.mubr.f32.mxu1 %v1158_v3 }
 0x2c9   : > { %v2065_v45 = vpop.eup %2064  ;;  %1358 = vmatmul.mubr.f32.gmra.mrb[48].mxu1 %v1157_v46 }
 0x2ca   : > { %v1067_v50 = vpop.xlane.xlu0 %1066  ;;  %v1160_v54 = vmul.f32 %v2065_v45, %v2991_v31  ;;  %v1159_v53 = vmul.f32 %v2065_v45, %v2992_v5  ;;  %v1443_v45 = vld [vmem:[%s2799_s9 + $0x30] sm:$0xff] }
 0x2cb   : > { %2070 = vrcp.f32 %v1067_v50 }
 0x2cc   : > { %1362 = vmatprep.mubr.f32.mxu1 %v1160_v54 }
 0x2cd   : > { %v2067_v17 = vpop.eup %2066  ;;  %1363 = vmatmul.mubr.f32.gmra.mrb[50].mxu1 %v1159_v53  ;;  %v1444_v53 = vld [vmem:[%s2799_s9 + $0x38] sm:$0xff] }
 0x2ce   : > { %v1070_v9 = vpop.xlane.xlu1 %1069  ;;  %v1162_v34 = vmul.f32 %v2067_v17, %v2693_v22  ;;  %v1161_v56 = vmul.f32 %v2067_v17, %v2691_v0 }
 0x2cf   : > { %2072 = vrcp.f32 %v1070_v9 }
 0x2d0   : > { %1367 = vmatprep.mubr.f32.mxu1 %v1162_v34 }
 0x2d1   : > { %v2069_v41 = vpop.eup %2068  ;;  %1368 = vmatmul.mubr.f32.gmra.mrb[52].mxu1 %v1161_v56 }
 0x2d2   : > { %v1073_v28 = vpop.xlane.xlu0 %1072  ;;  %v1164_v44 = vmul.f32 %v2069_v41, %v2701_v16  ;;  %v1163_v59 = vmul.f32 %v2069_v41, %v2699_v42  ;;  %v1445_v41 = vld [vmem:[%s2799_s9 + $0x40] sm:$0xff] }
 0x2d3   : > { %2074 = vrcp.f32 %v1073_v28 }
 0x2d4   : > { %1372 = vmatprep.mubr.f32.mxu1 %v1164_v44 }
 0x2d5   : > { %v2071_v21 = vpop.eup %2070  ;;  %1373 = vmatmul.mubr.f32.gmra.mrb[54].mxu1 %v1163_v59 }
 0x2d6   : > { %v1076_v32 = vpop.xlane.xlu1 %1075  ;;  %v1166_v20 = vmul.f32 %v2071_v21, %v2709_v61  ;;  %v1165_v22 = vmul.f32 %v2071_v21, %v2707_v38 }
 0x2d7   : > { %2076 = vrcp.f32 %v1076_v32  ;;  %v1446_v32 = vld [vmem:[%s2799_s9 + $0x48] sm:$0xff] }
 0x2d8   : > { %1377 = vmatprep.mubr.f32.mxu1 %v1166_v20 }
 0x2d9   : > { %v2073_v0 = vpop.eup %2072  ;;  %1378 = vmatmul.mubr.f32.gmra.mrb[56].mxu1 %v1165_v22 }
 0x2da   : > { %v1168_v33 = vmul.f32 %v2073_v0, %v2993_v62  ;;  %v1167_v16 = vmul.f32 %v2073_v0, %v2994_v39 }
 0x2dc   : > { %1382 = vmatprep.mubr.f32.mxu1 %v1168_v33  ;;  %v1447_v33 = vld [vmem:[%s2799_s9 + $0x50] sm:$0xff] }
 0x2dd   : > { %v2075_v42 = vpop.eup %2074  ;;  %1383 = vmatmul.mubr.f32.gmra.mrb[58].mxu1 %v1167_v16 }
 0x2de   : > { %v1170_v1 = vmul.f32 %v2075_v42, %v2995_v29  ;;  %v1169_v63 = vmul.f32 %v2075_v42, %v2996_v60 }
 0x2e0   : > { %1387 = vmatprep.mubr.f32.mxu1 %v1170_v1  ;;  %v1448_v1 = vld [vmem:[%s2799_s9 + $0x58] sm:$0xff] }
 0x2e1   : > { %v2077_v61 = vpop.eup %2076  ;;  %1388 = vmatmul.mubr.f32.gmra.mrb[60].mxu1 %v1169_v63 }
 0x2e2   : > { %v1172_v38 = vmul.f32 %v2077_v61, %v2727_v47  ;;  %v1171_v4 = vmul.f32 %v2077_v61, %v2997_v43  ;;  %v1449_v43 = vld [vmem:[%s2799_s9 + $0x60] sm:$0xff] }
 0x2e4   : > { %1392 = vmatprep.mubr.f32.mxu1 %v1172_v38 }
 0x2e5   : > { %1393 = vmatmul.mubr.f32.gmra.mrb[62].mxu1 %v1171_v4 }
 0x33c   : > { %v1239_v30 = vpop.f32.mrb[0].mxu1 }
 0x33d   : > { %v1405_v47 = vmul.f32 %v2804_v12, %v1239_v30  ;;  %v1241_v7 = vpop.f32.mrb[1].mxu1 }
 0x33e   : > { %v1450_v7 = vld [vmem:[%s2799_s9 + $0x68] sm:$0xff] }
 0x33f   : > { %v1469_v19 = vadd.f32 %v1437_v25, %v1405_v47 }
 0x340   : > { %v1244_v24 = vpop.f32.mrb[2].mxu1 }
 0x341   : > { %1501 = vst [vmem:[%s2812_s14] sm:$0xff] %v1469_v19  ;;  %v1406_v10 = vmul.f32 %v2804_v12, %v1244_v24  ;;  %v1246_v48 = vpop.f32.mrb[3].mxu1 }
 0x342   : > { %v1451_v48 = vld [vmem:[%s2799_s9 + $0x70] sm:$0xff] }
 0x343   : > { %v1470_v14 = vadd.f32 %v1438_v2, %v1406_v10 }
 0x344   : > { %v1249_v49 = vpop.f32.mrb[4].mxu1 }
 0x345   : > { %1502 = vst [vmem:[%s2812_s14 + $0x8] sm:$0xff] %v1470_v14  ;;  %v1407_v23 = vmul.f32 %v2804_v12, %v1249_v49  ;;  %v1251_v51 = vpop.f32.mrb[5].mxu1 }
 0x346   : > { %v1452_v51 = vld [vmem:[%s2799_s9 + $0x78] sm:$0xff] }
 0x347   : > { %v1471_v52 = vadd.f32 %v1439_v13, %v1407_v23 }
 0x348   : > { %v1254_v18 = vpop.f32.mrb[6].mxu1 }
 0x349   : > { %1503 = vst [vmem:[%s2812_s14 + $0x10] sm:$0xff] %v1471_v52  ;;  %v1408_v40 = vmul.f32 %v2804_v12, %v1254_v18  ;;  %v1256_v55 = vpop.f32.mrb[7].mxu1 }
 0x34a   : > { %v1453_v55 = vld [vmem:[%s2799_s9 + $0x80] sm:$0xff] }
 0x34b   : > { %v1472_v27 = vadd.f32 %v1440_v6, %v1408_v40 }
 0x34c   : > { %v1259_v26 = vpop.f32.mrb[8].mxu1 }
 0x34d   : > { %1504 = vst [vmem:[%s2812_s14 + $0x18] sm:$0xff] %v1472_v27  ;;  %v1409_v11 = vmul.f32 %v2804_v12, %v1259_v26  ;;  %v1261_v35 = vpop.f32.mrb[9].mxu1 }
 0x34e   : > { %v1454_v35 = vld [vmem:[%s2799_s9 + $0x88] sm:$0xff] }
 0x34f   : > { %v1473_v58 = vadd.f32 %v1441_v15, %v1409_v11 }
 0x350   : > { %v1264_v36 = vpop.f32.mrb[10].mxu1 }
 0x351   : > { %1505 = vst [vmem:[%s2812_s14 + $0x20] sm:$0xff] %v1473_v58  ;;  %v1410_v57 = vmul.f32 %v2804_v12, %v1264_v36  ;;  %v1266_v3 = vpop.f32.mrb[11].mxu1 }
 0x352   : > { %v1455_v3 = vld [vmem:[%s2799_s9 + $0x90] sm:$0xff] }
 0x353   : > { %v1474_v37 = vadd.f32 %v1442_v8, %v1410_v57 }
 0x354   : > { %v1269_v46 = vpop.f32.mrb[12].mxu1 }
 0x355   : > { %1506 = vst [vmem:[%s2812_s14 + $0x28] sm:$0xff] %v1474_v37  ;;  %v1411_v50 = vmul.f32 %v2804_v12, %v1269_v46  ;;  %v1271_v31 = vpop.f32.mrb[13].mxu1 }
 0x356   : > { %v1456_v31 = vld [vmem:[%s2799_s9 + $0x98] sm:$0xff] }
 0x357   : > { %v1475_v54 = vadd.f32 %v1443_v45, %v1411_v50 }
 0x358   : > { %v1274_v5 = vpop.f32.mrb[14].mxu1 }
 0x359   : > { %1507 = vst [vmem:[%s2812_s14 + $0x30] sm:$0xff] %v1475_v54  ;;  %v1412_v17 = vmul.f32 %v2804_v12, %v1274_v5  ;;  %v1276_v9 = vpop.f32.mrb[15].mxu1 }
 0x35a   : > { %v1457_v9 = vld [vmem:[%s2799_s9 + $0xa0] sm:$0xff] }
 0x35b   : > { %v1476_v34 = vadd.f32 %v1444_v53, %v1412_v17 }
 0x35c   : > { %v1279_v56 = vpop.f32.mrb[16].mxu1 }
 0x35d   : > { %1508 = vst [vmem:[%s2812_s14 + $0x38] sm:$0xff] %v1476_v34  ;;  %v1413_v28 = vmul.f32 %v2804_v12, %v1279_v56  ;;  %v1281_v44 = vpop.f32.mrb[17].mxu1 }
 0x35e   : > { %v1458_v44 = vld [vmem:[%s2799_s9 + $0xa8] sm:$0xff] }
 0x35f   : > { %v1477_v59 = vadd.f32 %v1445_v41, %v1413_v28 }
 0x360   : > { %v1284_v21 = vpop.f32.mrb[18].mxu1 }
 0x361   : > { %1509 = vst [vmem:[%s2812_s14 + $0x40] sm:$0xff] %v1477_v59  ;;  %v1414_v20 = vmul.f32 %v2804_v12, %v1284_v21  ;;  %v1286_v22 = vpop.f32.mrb[19].mxu1 }
 0x362   : > { %v1459_v22 = vld [vmem:[%s2799_s9 + $0xb0] sm:$0xff] }
 0x363   : > { %v1478_v0 = vadd.f32 %v1446_v32, %v1414_v20 }
 0x364   : > { %v1289_v62 = vpop.f32.mrb[20].mxu1 }
 0x365   : > { %1510 = vst [vmem:[%s2812_s14 + $0x48] sm:$0xff] %v1478_v0  ;;  %v1415_v39 = vmul.f32 %v2804_v12, %v1289_v62  ;;  %v1291_v16 = vpop.f32.mrb[21].mxu1 }
 0x366   : > { %v1460_v16 = vld [vmem:[%s2799_s9 + $0xb8] sm:$0xff] }
 0x367   : > { %v1479_v42 = vadd.f32 %v1447_v33, %v1415_v39 }
 0x368   : > { %v1294_v29 = vpop.f32.mrb[22].mxu1 }
 0x369   : > { %1511 = vst [vmem:[%s2812_s14 + $0x50] sm:$0xff] %v1479_v42  ;;  %v1416_v60 = vmul.f32 %v2804_v12, %v1294_v29  ;;  %v1296_v63 = vpop.f32.mrb[23].mxu1 }
 0x36a   : > { %v1461_v63 = vld [vmem:[%s2799_s9 + $0xc0] sm:$0xff] }
 0x36b   : > { %v1480_v61 = vadd.f32 %v1448_v1, %v1416_v60 }
 0x36c   : > { %v1299_v38 = vpop.f32.mrb[24].mxu1 }
 0x36d   : > { %1512 = vst [vmem:[%s2812_s14 + $0x58] sm:$0xff] %v1480_v61  ;;  %v1417_v4 = vmul.f32 %v2804_v12, %v1299_v38  ;;  %v1301_v30 = vpop.f32.mrb[25].mxu1 }
 0x36e   : > { %v1462_v30 = vld [vmem:[%s2799_s9 + $0xc8] sm:$0xff] }
 0x36f   : > { %v1481_v25 = vadd.f32 %v1449_v43, %v1417_v4 }
 0x370   : > { %v1304_v47 = vpop.f32.mrb[26].mxu1 }
 0x371   : > { %1513 = vst [vmem:[%s2812_s14 + $0x60] sm:$0xff] %v1481_v25  ;;  %v1418_v19 = vmul.f32 %v2804_v12, %v1304_v47  ;;  %v1306_v24 = vpop.f32.mrb[27].mxu1 }
 0x372   : > { %v1463_v24 = vld [vmem:[%s2799_s9 + $0xd0] sm:$0xff] }
 0x373   : > { %v1482_v2 = vadd.f32 %v1450_v7, %v1418_v19 }
 0x374   : > { %v1309_v10 = vpop.f32.mrb[28].mxu1 }
 0x375   : > { %1514 = vst [vmem:[%s2812_s14 + $0x68] sm:$0xff] %v1482_v2  ;;  %v1419_v14 = vmul.f32 %v2804_v12, %v1309_v10  ;;  %v1311_v49 = vpop.f32.mrb[29].mxu1 }
 0x376   : > { %v1464_v49 = vld [vmem:[%s2799_s9 + $0xd8] sm:$0xff] }
 0x377   : > { %v1483_v13 = vadd.f32 %v1451_v48, %v1419_v14 }
 0x378   : > { %v1314_v23 = vpop.f32.mrb[30].mxu1 }
 0x379   : > { %1515 = vst [vmem:[%s2812_s14 + $0x70] sm:$0xff] %v1483_v13  ;;  %v1420_v52 = vmul.f32 %v2804_v12, %v1314_v23  ;;  %v1316_v18 = vpop.f32.mrb[31].mxu1 }
 0x37a   : > { %v1465_v18 = vld [vmem:[%s2799_s9 + $0xe0] sm:$0xff] }
 0x37b   : > { %v1484_v6 = vadd.f32 %v1452_v51, %v1420_v52 }
 0x37c   : > { %v1319_v40 = vpop.f32.mrb[32].mxu1 }
 0x37d   : > { %1516 = vst [vmem:[%s2812_s14 + $0x78] sm:$0xff] %v1484_v6  ;;  %v1421_v27 = vmul.f32 %v2804_v12, %v1319_v40  ;;  %v1321_v26 = vpop.f32.mrb[33].mxu1 }
 0x37e   : > { %v1466_v26 = vld [vmem:[%s2799_s9 + $0xe8] sm:$0xff] }
 0x37f   : > { %v1485_v15 = vadd.f32 %v1453_v55, %v1421_v27 }
 0x380   : > { %v1324_v11 = vpop.f32.mrb[34].mxu1 }
 0x381   : > { %1517 = vst [vmem:[%s2812_s14 + $0x80] sm:$0xff] %v1485_v15  ;;  %v1422_v58 = vmul.f32 %v2804_v12, %v1324_v11  ;;  %v1326_v36 = vpop.f32.mrb[35].mxu1 }
 0x382   : > { %v1467_v36 = vld [vmem:[%s2799_s9 + $0xf0] sm:$0xff] }
 0x383   : > { %v1486_v8 = vadd.f32 %v1454_v35, %v1422_v58 }
 0x384   : > { %v1329_v57 = vpop.f32.mrb[36].mxu1 }
 0x385   : > { %1518 = vst [vmem:[%s2812_s14 + $0x88] sm:$0xff] %v1486_v8  ;;  %v1423_v37 = vmul.f32 %v2804_v12, %v1329_v57  ;;  %v1331_v46 = vpop.f32.mrb[37].mxu1 }
 0x386   : > { %v1468_v46 = vld [vmem:[%s2799_s9 + $0xf8] sm:$0xff] }
 0x387   : > { %v1487_v45 = vadd.f32 %v1455_v3, %v1423_v37 }
 0x388   : > { %v1334_v50 = vpop.f32.mrb[38].mxu1 }
 0x389   : > { %1519 = vst [vmem:[%s2812_s14 + $0x90] sm:$0xff] %v1487_v45  ;;  %v1424_v54 = vmul.f32 %v2804_v12, %v1334_v50  ;;  %v1336_v5 = vpop.f32.mrb[39].mxu1 }
 0x38b   : > { %v1488_v53 = vadd.f32 %v1456_v31, %v1424_v54 }
 0x38c   : > { %v1339_v17 = vpop.f32.mrb[40].mxu1 }
 0x38d   : > { %1520 = vst [vmem:[%s2812_s14 + $0x98] sm:$0xff] %v1488_v53  ;;  %v1425_v34 = vmul.f32 %v2804_v12, %v1339_v17  ;;  %v1341_v56 = vpop.f32.mrb[41].mxu1 }
 0x38f   : > { %v1489_v41 = vadd.f32 %v1457_v9, %v1425_v34 }
 0x390   : > { %v1344_v28 = vpop.f32.mrb[42].mxu1 }
 0x391   : > { %1521 = vst [vmem:[%s2812_s14 + $0xa0] sm:$0xff] %v1489_v41  ;;  %v1426_v59 = vmul.f32 %v2804_v12, %v1344_v28  ;;  %v1346_v21 = vpop.f32.mrb[43].mxu1 }
 0x393   : > { %v1490_v32 = vadd.f32 %v1458_v44, %v1426_v59 }
 0x394   : > { %v1349_v20 = vpop.f32.mrb[44].mxu1 }
 0x395   : > { %1522 = vst [vmem:[%s2812_s14 + $0xa8] sm:$0xff] %v1490_v32  ;;  %v1427_v0 = vmul.f32 %v2804_v12, %v1349_v20  ;;  %v1351_v62 = vpop.f32.mrb[45].mxu1 }
 0x397   : > { %v1491_v33 = vadd.f32 %v1459_v22, %v1427_v0 }
 0x398   : > { %v1354_v39 = vpop.f32.mrb[46].mxu1 }
 0x399   : > { %1523 = vst [vmem:[%s2812_s14 + $0xb0] sm:$0xff] %v1491_v33  ;;  %v1428_v42 = vmul.f32 %v2804_v12, %v1354_v39  ;;  %v1356_v29 = vpop.f32.mrb[47].mxu1 }
 0x39b   : > { %v1492_v1 = vadd.f32 %v1460_v16, %v1428_v42 }
 0x39c   : > { %v1359_v60 = vpop.f32.mrb[48].mxu1 }
 0x39d   : > { %1524 = vst [vmem:[%s2812_s14 + $0xb8] sm:$0xff] %v1492_v1  ;;  %v1429_v61 = vmul.f32 %v2804_v12, %v1359_v60  ;;  %v1361_v38 = vpop.f32.mrb[49].mxu1 }
 0x39f   : > { %v1493_v43 = vadd.f32 %v1461_v63, %v1429_v61 }
 0x3a0   : > { %v1364_v4 = vpop.f32.mrb[50].mxu1 }
 0x3a1   : > { %1525 = vst [vmem:[%s2812_s14 + $0xc0] sm:$0xff] %v1493_v43  ;;  %v1430_v25 = vmul.f32 %v2804_v12, %v1364_v4  ;;  %v1366_v47 = vpop.f32.mrb[51].mxu1 }
 0x3a3   : > { %v1494_v7 = vadd.f32 %v1462_v30, %v1430_v25 }
 0x3a4   : > { %v1369_v19 = vpop.f32.mrb[52].mxu1 }
 0x3a5   : > { %1526 = vst [vmem:[%s2812_s14 + $0xc8] sm:$0xff] %v1494_v7  ;;  %v1431_v2 = vmul.f32 %v2804_v12, %v1369_v19  ;;  %v1371_v10 = vpop.f32.mrb[53].mxu1 }
 0x3a7   : > { %v1495_v48 = vadd.f32 %v1463_v24, %v1431_v2 }
 0x3a8   : > { %v1374_v14 = vpop.f32.mrb[54].mxu1 }
 0x3a9   : > { %1527 = vst [vmem:[%s2812_s14 + $0xd0] sm:$0xff] %v1495_v48  ;;  %v1432_v13 = vmul.f32 %v2804_v12, %v1374_v14  ;;  %v1376_v23 = vpop.f32.mrb[55].mxu1 }
 0x3ab   : > { %v1496_v51 = vadd.f32 %v1464_v49, %v1432_v13 }
 0x3ac   : > { %v1379_v52 = vpop.f32.mrb[56].mxu1 }
 0x3ad   : > { %1528 = vst [vmem:[%s2812_s14 + $0xd8] sm:$0xff] %v1496_v51  ;;  %v1433_v6 = vmul.f32 %v2804_v12, %v1379_v52  ;;  %v1381_v40 = vpop.f32.mrb[57].mxu1 }
 0x3af   : > { %v1497_v55 = vadd.f32 %v1465_v18, %v1433_v6 }
 0x3b0   : > { %v1384_v27 = vpop.f32.mrb[58].mxu1 }
 0x3b1   : > { %1529 = vst [vmem:[%s2812_s14 + $0xe0] sm:$0xff] %v1497_v55  ;;  %v1434_v15 = vmul.f32 %v2804_v12, %v1384_v27  ;;  %v1386_v11 = vpop.f32.mrb[59].mxu1 }
 0x3b3   : > { %v1498_v35 = vadd.f32 %v1466_v26, %v1434_v15 }
 0x3b4   : > { %v1389_v58 = vpop.f32.mrb[60].mxu1 }
 0x3b5   : > { %1530 = vst [vmem:[%s2812_s14 + $0xe8] sm:$0xff] %v1498_v35  ;;  %v1435_v8 = vmul.f32 %v2804_v12, %v1389_v58  ;;  %v1391_v57 = vpop.f32.mrb[61].mxu1 }
 0x3b7   : > { %v1499_v3 = vadd.f32 %v1467_v36, %v1435_v8 }
 0x3b8   : > { %v1394_v37 = vpop.f32.mrb[62].mxu1 }
 0x3b9   : > { %1531 = vst [vmem:[%s2812_s14 + $0xf0] sm:$0xff] %v1499_v3  ;;  %v1436_v45 = vmul.f32 %v2804_v12, %v1394_v37  ;;  %v1396_v50 = vpop.f32.mrb[63].mxu1 }
 0x3bb   : > { %v1500_v31 = vadd.f32 %v1468_v46, %v1436_v45 }
 0x3bd   : > { %1532 = vst [vmem:[%s2812_s14 + $0xf8] sm:$0xff] %v1500_v31 }
 0x3be PF: > { %s15_s20 = sadd.s32 1, %s2100_s20   ;;  %s2998_s18 = smov %s2096_s19 }
 0x3bf   : > { %p12_p5 = scmp.ge.s32.totalorder %s15_s20, 4   ;;  %s2999_s19 = smov %s3001_s21 }
 0x3c1   :  { %14 = sbr.rel (!%p12_p5) target bundleno = 2 (0x2), region = 79 }

</bundles_post_ra>
